<compile_context>
chip_gen: v7x
topology: tpu7x:2x2x1
jax: 0.10.0
libtpu: 0.0.40
codegen_flags: <defaults>
</compile_context>

<pallas_src>
import functools

import jax
import jax.numpy as jnp
from jax import lax
from jax.experimental import pallas as pl
from jax.experimental.pallas import tpu as pltpu


def _round_up(x, m):
    return (x + m - 1) // m * m


# ---------------------------------------------------------------------------
# Kernel A: K-tiled matmul, f32 accumulation in the resident output block,
# optional fused tanh, plus per-(phase, M-tile) column sum / sum-of-squares
# (the partial statistics for training-mode BatchNorm).
# ---------------------------------------------------------------------------
def _matmul_stats_kernel(x_ref, w_ref, y_ref, ps_ref, pq_ref, *, act):
    k = pl.program_id(2)
    prod = jnp.dot(x_ref[0], w_ref[0], preferred_element_type=jnp.float32)

    @pl.when(k == 0)
    def _():
        y_ref[0] = prod

    @pl.when(k > 0)
    def _():
        y_ref[0] = y_ref[0] + prod

    @pl.when(k == pl.num_programs(2) - 1)
    def _():
        y = y_ref[0]
        if act == "tanh":
            y = jnp.tanh(y)
            y_ref[0] = y
        cp = y.shape[-1]
        s = jnp.sum(y, axis=0, keepdims=True)        # one pass: sum
        q = jnp.sum(y * y, axis=0, keepdims=True)    # and sum of squares
        ps_ref[0, 0] = jnp.broadcast_to(s, (8, cp))
        pq_ref[0, 0] = jnp.broadcast_to(q, (8, cp))


def fused_matmul(x_cols, w_mats, *, act=None, tm_max=256):
    """y[p] = x_cols[p] @ w_mats[p] (optionally tanh-ed), plus per-phase column
    sums / sum-of-squares of y (over rows) for the BatchNorm statistics.

    x_cols: (P, M, K)   float (cast to bf16 for the MXU)
    w_mats: (P, Kp, Cp) bfloat16, Kp/Cp multiples of 128, Kp >= K
    returns: y (P, Mp, Cp) float32, col_sum (P, Cp), col_sumsq (P, Cp)
    """
    P, M, K = x_cols.shape
    Pw, Kp, Cp = w_mats.shape
    assert Pw == P and Kp >= K and Kp % 128 == 0 and Cp % 128 == 0

    tm = min(tm_max, _round_up(M, 8))
    Mp = _round_up(M, tm)
    tk = max(t for t in (512, 256, 128) if Kp % t == 0)
    Mt, Kt = Mp // tm, Kp // tk

    if (Mp, Kp) != (M, K):
        x_cols = jnp.pad(x_cols, ((0, 0), (0, Mp - M), (0, Kp - K)))
    x_cols = x_cols.astype(jnp.bfloat16)

    y, ps, pq = pl.pallas_call(
        functools.partial(_matmul_stats_kernel, act=act),
        out_shape=(
            jax.ShapeDtypeStruct((P, Mp, Cp), jnp.float32),
            jax.ShapeDtypeStruct((P, Mt, 8, Cp), jnp.float32),
            jax.ShapeDtypeStruct((P, Mt, 8, Cp), jnp.float32),
        ),
        grid_spec=pltpu.PrefetchScalarGridSpec(
            num_scalar_prefetch=0,
            grid=(P, Mt, Kt),
            in_specs=[
                pl.BlockSpec((1, tm, tk), lambda p, m, k: (p, m, k)),
                pl.BlockSpec((1, tk, Cp), lambda p, m, k: (p, k, 0)),
            ],
            out_specs=[
                pl.BlockSpec((1, tm, Cp), lambda p, m, k: (p, m, 0)),
                pl.BlockSpec((1, 1, 8, Cp), lambda p, m, k: (p, m, 0, 0)),
                pl.BlockSpec((1, 1, 8, Cp), lambda p, m, k: (p, m, 0, 0)),
            ],
        ),
        compiler_params=pltpu.CompilerParams(
            dimension_semantics=("parallel", "parallel", "arbitrary"),
            # Blocks are small (<= ~2 MiB each, double-buffered); 32 MiB is safe
            # on v5e/v6e (128 MiB VMEM) and on v7x (64 MiB VMEM).
            vmem_limit_bytes=32 * 1024 * 1024,
        ),
    )(x_cols, w_mats)

    col_sum = jnp.sum(ps[:, :, 0, :], axis=1)   # (P, Cp)
    col_sq = jnp.sum(pq[:, :, 0, :], axis=1)
    return y, col_sum, col_sq


# ---------------------------------------------------------------------------
# Kernel B: elementwise y*scale + shift (+ activation), M-tiled "parallel".
# ---------------------------------------------------------------------------
def _scale_shift_act_kernel(y_ref, sc_ref, sh_ref, o_ref, *, act):
    y = y_ref[...] * sc_ref[...] + sh_ref[...]
    if act == "relu":
        y = jnp.maximum(y, 0.0)
    elif act == "tanh":
        y = jnp.tanh(y)
    o_ref[...] = y.astype(o_ref.dtype)


def scale_shift_act(y2d, scale, shift, *, act="relu", out_dtype=jnp.bfloat16):
    R, Cp = y2d.shape
    assert R % 8 == 0 and Cp % 128 == 0
    tr = max(t for t in (512, 256, 128, 64, 32, 16, 8) if R % t == 0)
    return pl.pallas_call(
        functools.partial(_scale_shift_act_kernel, act=act),
        out_shape=jax.ShapeDtypeStruct((R, Cp), out_dtype),
        grid_spec=pltpu.PrefetchScalarGridSpec(
            num_scalar_prefetch=0,
            grid=(R // tr,),
            in_specs=[
                pl.BlockSpec((tr, Cp), lambda i: (i, 0)),
                pl.BlockSpec((1, Cp), lambda i: (0, 0)),
                pl.BlockSpec((1, Cp), lambda i: (0, 0)),
            ],
            out_specs=pl.BlockSpec((tr, Cp), lambda i: (i, 0)),
        ),
        compiler_params=pltpu.CompilerParams(
            dimension_semantics=("parallel",)),
    )(y2d,
      scale.reshape(1, Cp).astype(jnp.float32),
      shift.reshape(1, Cp).astype(jnp.float32))


# ---------------------------------------------------------------------------
# Sub-pixel (output-parity) decomposition of ConvTranspose2d(k=4, s=2, p=1).
#   out[2u+r, 2v+s] only uses 2x2 input taps -> 4 phase matmuls, no zero rows.
# ---------------------------------------------------------------------------
_TAP = {(0, 0): 3, (0, 1): 1, (1, 0): 2, (1, 1): 0}   # (parity, tap) -> kernel idx


def subpixel_im2col(h):
    """h: (N, H, W, C) NHWC -> X_col (4, N*H*W, 4*C), phase = r*2 + s."""
    N, H, W, C = h.shape
    hp = jnp.pad(h, ((0, 0), (1, 1), (1, 1), (0, 0)))
    phases = []
    for r in range(2):
        for s in range(2):
            taps = [hp[:, r + dh:r + dh + H, s + dw:s + dw + W, :]
                    for dh in range(2) for dw in range(2)]
            x = jnp.stack(taps, axis=3)                 # (N, H, W, 4, C)
            phases.append(x.reshape(N * H * W, 4 * C))  # cols = (tap, cin)
    return jnp.stack(phases, axis=0)                    # (4, N*H*W, 4*C)


def _subpixel_weight_mats(w):
    """w: (Cin, Cout, 4, 4) torch ConvTranspose2d weight ->
    (4, 4*Cin, Cout) per-phase matrices; rows ordered (tap, cin)."""
    cin, cout = w.shape[0], w.shape[1]
    mats = []
    for r in range(2):
        for s in range(2):
            taps = [w[:, :, _TAP[(r, dh)], _TAP[(s, dw)]]
                    for dh in range(2) for dw in range(2)]
            mats.append(jnp.stack(taps, axis=0).reshape(4 * cin, cout))
    return jnp.stack(mats, axis=0)


def prepare_params(params):
    """One-time weight prep: reshape, pad to (128-multiple) tiles, cast to bf16."""
    prep = []
    # Layer 1: ConvTranspose2d(nz, c0, 4, 1, 0) on a 1x1 input == dense matmul.
    w0 = params[0]["w"]                                       # (nz, c0, 4, 4)
    nz, c0 = w0.shape[0], w0.shape[1]
    wm0 = jnp.transpose(w0, (0, 2, 3, 1)).reshape(nz, 16 * c0)  # cols=(kh,kw,c)
    kp0 = _round_up(nz, 128)
    wm0 = jnp.pad(wm0, ((0, kp0 - nz), (0, 0))).astype(jnp.bfloat16)[None]
    prep.append({"wm": wm0,
                 "gamma": params[0]["gamma"].astype(jnp.float32),
                 "beta": params[0]["beta"].astype(jnp.float32)})
    # Layers 2..4: ConvTranspose2d(cin, cout, 4, 2, 1) via sub-pixel phases.
    for lp in params[1:]:
        w = lp["w"]
        cin, cout = w.shape[0], w.shape[1]
        kp = _round_up(4 * cin, 128)
        cp = _round_up(cout, 128)
        wm = _subpixel_weight_mats(w)                         # (4, 4*cin, cout)
        wm = jnp.pad(wm, ((0, 0), (0, kp - 4 * cin), (0, cp - cout)))
        d = {"wm": wm.astype(jnp.bfloat16)}
        if "gamma" in lp:
            d["gamma"] = lp["gamma"].astype(jnp.float32)
            d["beta"] = lp["beta"].astype(jnp.float32)
        prep.append(d)
    return prep


def _bn_scale_shift(col_sum, col_sq, count, gamma, beta, cp, eps):
    mean = col_sum / count
    var = jnp.maximum(col_sq / count - mean * mean, 0.0)
    inv = lax.rsqrt(var + eps)
    cout = gamma.shape[0]
    gamma_p = jnp.pad(gamma, (0, cp - cout)) if cp != cout else gamma
    beta_p = jnp.pad(beta, (0, cp - cout)) if cp != cout else beta
    scale = gamma_p * inv
    shift = beta_p - mean * scale
    return scale, shift


# ---------------------------------------------------------------------------
# Forward pass (NHWC internally; NCHW at the module boundary).
# NOTE: BatchNorm running-mean/var buffer updates are training-side state and
# are not modeled; the forward normalization uses batch statistics, matching
# nn.BatchNorm2d in training mode.
# ---------------------------------------------------------------------------
def generator_forward(x, prep, *, couts, eps=1e-5):
    """x: (N, nz, 1, 1) NCHW float32 -> (N, 3, 32, 32) NCHW float32."""
    N = x.shape[0]

    # ---- Layer 1: 1x1-input ConvTranspose == dense matmul -> (N, 4, 4, c0) ----
    p = prep[0]
    c0 = couts[0]
    x2 = x.reshape(1, N, -1)                               # (1, N, nz)
    y, s, q = fused_matmul(x2, p["wm"], act=None)          # (1, Mp, 16*c0)
    mp = y.shape[1]
    cnt = float(N * 16)
    col_sum = s[0].reshape(16, c0).sum(axis=0)             # per output channel
    col_sq = q[0].reshape(16, c0).sum(axis=0)
    scale, shift = _bn_scale_shift(col_sum, col_sq, cnt,
                                   p["gamma"], p["beta"], c0, eps)
    h = scale_shift_act(y.reshape(mp * 16, c0), scale, shift, act="relu")
    h = h[:N * 16].reshape(N, 4, 4, c0)                    # NHWC, bf16

    # ---- Layers 2..4: stride-2 ConvTranspose via sub-pixel phases ----
    for li in range(1, 4):
        p = prep[li]
        cout = couts[li]
        cp = p["wm"].shape[-1]
        n, hh, ww, _ = h.shape
        m = n * hh * ww
        x_cols = subpixel_im2col(h)                        # (4, M, 4*Cin)
        last = li == 3
        y, s, q = fused_matmul(x_cols, p["wm"], act="tanh" if last else None)
        mp = y.shape[1]
        if last:
            yr = y[:, :m, :cout]                           # tanh already applied
        else:
            cnt = float(4 * m)                             # = N * H_out * W_out
            scale, shift = _bn_scale_shift(s.sum(axis=0), q.sum(axis=0), cnt,
                                           p["gamma"], p["beta"], cp, eps)
            a = scale_shift_act(y.reshape(4 * mp, cp), scale, shift, act="relu")
            yr = a.reshape(4, mp, cp)[:, :m, :cout]
        # interleave the 4 output-parity phases -> (N, 2H, 2W, cout)
        h = yr.reshape(2, 2, n, hh, ww, cout).transpose(2, 3, 0, 4, 1, 5)
        h = h.reshape(n, 2 * hh, 2 * ww, cout)

    return jnp.transpose(h, (0, 3, 1, 2)).astype(jnp.float32)   # back to NCHW


# ---------------------------------------------------------------------------
# Pure-JAX reference (independent code path) for correctness checking.
# ---------------------------------------------------------------------------
_LAYER_CFG = [(1, 0, True, "relu"), (2, 1, True, "relu"),
              (2, 1, True, "relu"), (2, 1, False, "tanh")]


def _convT_ref(x, w, stride, padding):
    k = w.shape[2]
    w_direct = jnp.flip(w, (2, 3)).transpose(1, 0, 2, 3)   # (Cout, Cin, k, k)
    p = k - 1 - padding
    return lax.conv_general_dilated(
        x, w_direct, window_strides=(1, 1), padding=[(p, p), (p, p)],
        lhs_dilation=(stride, stride),
        dimension_numbers=("NCHW", "OIHW", "NCHW"),
        precision=lax.Precision.HIGHEST)


def generator_ref(x, params, eps=1e-5):
    h = x
    for (s, p, do_bn, act), lp in zip(_LAYER_CFG, params):
        h = _convT_ref(h, lp["w"], s, p)
        if do_bn:
            mean = jnp.mean(h, axis=(0, 2, 3), keepdims=True)
            var = jnp.mean(jnp.square(h - mean), axis=(0, 2, 3), keepdims=True)
            h = (h - mean) * lax.rsqrt(var + eps)
            h = h * lp["gamma"].reshape(1, -1, 1, 1) + lp["beta"].reshape(1, -1, 1, 1)
        h = jnp.maximum(h, 0.0) if act == "relu" else jnp.tanh(h)
    return h


# ---------------------------------------------------------------------------
if __name__ == "__main__":
    import numpy as np

    nz, batch = 100, 2
    chans = [(nz, 512), (512, 256), (256, 128), (128, 3)]

    key = jax.random.PRNGKey(0)
    params = []
    for li, (cin, cout) in enumerate(chans):
        key, kw, kg, kb = jax.random.split(key, 4)
        pr = {"w": (0.05 * jax.random.normal(kw, (cin, cout, 4, 4))).astype(jnp.float32)}
        if li < 3:   # last layer has no BatchNorm
            pr["gamma"] = (1.0 + 0.1 * jax.random.normal(kg, (cout,))).astype(jnp.float32)
            pr["beta"] = (0.1 * jax.random.normal(kb, (cout,))).astype(jnp.float32)
        params.append(pr)

    key, kx = jax.random.split(key)
    x = jax.random.normal(kx, (batch, nz, 1, 1), dtype=jnp.float32)

    prep = prepare_params(params)
    couts = tuple(int(p["w"].shape[1]) for p in params)
    fwd = jax.jit(functools.partial(generator_forward, couts=couts))

    out = jax.block_until_ready(fwd(x, prep))
    assert out.shape == (batch, 3, 32, 32), out.shape

    ref = jax.block_until_ready(generator_ref(x, params))
    # bf16 MXU operands -> a few % worst-case deviation vs the f32 reference.
    np.testing.assert_allclose(np.asarray(out), np.asarray(ref),
                               rtol=4e-2, atol=4e-2)
    print("KERNEL_OK")
</pallas_src>

<mosaic_0001>
module attributes {stable_mosaic.version = 11 : i64} {
  func.func @_matmul_stats_kernel(%arg0: i32, %arg1: i32, %arg2: i32, %arg3: memref<1x8x128xbf16, #tpu.memory_space<vmem>>, %arg4: memref<1x128x8192xbf16, #tpu.memory_space<vmem>>, %arg5: memref<1x8x8192xf32, #tpu.memory_space<vmem>>, %arg6: memref<1x1x8x8192xf32, #tpu.memory_space<vmem>>, %arg7: memref<1x1x8x8192xf32, #tpu.memory_space<vmem>>) attributes {dimension_semantics = [#tpu.dimension_semantics<parallel>, #tpu.dimension_semantics<parallel>, #tpu.dimension_semantics<arbitrary>], iteration_bounds = array<i64: 1, 1, 1>, scalar_prefetch = 0 : i64, scratch_operands = 0 : i64, tpu.core_type = #tpu.core_type<tc>, window_params = [{transform_indices = @transform_0, window_bounds = array<i64: 1, 8, 128>}, {transform_indices = @transform_1, window_bounds = array<i64: 1, 128, 8192>}, {transform_indices = @transform_2, window_bounds = array<i64: 1, 8, 8192>}, {transform_indices = @transform_3, window_bounds = array<i64: 1, 1, 8, 8192>}, {transform_indices = @transform_4, window_bounds = array<i64: 1, 1, 8, 8192>}]} {
    %c0 = arith.constant 0 : index
    %c0_0 = arith.constant 0 : index
    %c0_1 = arith.constant 0 : index
    %0 = vector.load %arg3[%c0, %c0_0, %c0_1] : memref<1x8x128xbf16, #tpu.memory_space<vmem>>, vector<1x8x128xbf16>
    %1 = vector.shape_cast %0 : vector<1x8x128xbf16> to vector<8x128xbf16>
    %c0_2 = arith.constant 0 : index
    %c0_3 = arith.constant 0 : index
    %c0_4 = arith.constant 0 : index
    %2 = vector.load %arg4[%c0_2, %c0_3, %c0_4] : memref<1x128x8192xbf16, #tpu.memory_space<vmem>>, vector<1x128x8192xbf16>
    %3 = vector.shape_cast %2 : vector<1x128x8192xbf16> to vector<128x8192xbf16>
    %cst = arith.constant dense<0.000000e+00> : vector<8x8192xf32>
    %4 = tpu.matmul %1, %3, %cst {dimension_numbers = #tpu.dot_dimension_numbers<[1], [0], [0], [1], [0, 0, 1, 1], [], []>} : vector<8x128xbf16>, vector<128x8192xbf16>, vector<8x8192xf32> -> vector<8x8192xf32>
    %c0_i32 = arith.constant 0 : i32
    %5 = arith.cmpi eq, %arg2, %c0_i32 : i32
    %6 = arith.extui %5 : i1 to i32
    %c0_i32_5 = arith.constant 0 : i32
    %7 = arith.cmpi ne, %6, %c0_i32_5 : i32
    scf.if %7 {
      %c0_10 = arith.constant 0 : index
      %c0_11 = arith.constant 0 : index
      %c0_12 = arith.constant 0 : index
      %14 = vector.load %arg5[%c0_10, %c0_11, %c0_12] : memref<1x8x8192xf32, #tpu.memory_space<vmem>>, vector<1x8x8192xf32>
      %15 = vector.shape_cast %14 : vector<1x8x8192xf32> to vector<8x8192xf32>
      %16 = vector.shape_cast %4 : vector<8x8192xf32> to vector<1x8x8192xf32>
      tpu.vector_store %arg5[%c0_10, %c0_11, %c0_12], %16 {strides = array<i32>} : memref<1x8x8192xf32, #tpu.memory_space<vmem>>, vector<1x8x8192xf32>,
    } else {
    }
    %c0_i32_6 = arith.constant 0 : i32
    %8 = arith.cmpi sgt, %arg2, %c0_i32_6 : i32
    %9 = arith.extui %8 : i1 to i32
    %c0_i32_7 = arith.constant 0 : i32
    %10 = arith.cmpi ne, %9, %c0_i32_7 : i32
    scf.if %10 {
      %c0_10 = arith.constant 0 : index
      %c0_11 = arith.constant 0 : index
      %c0_12 = arith.constant 0 : index
      %14 = vector.load %arg5[%c0_10, %c0_11, %c0_12] : memref<1x8x8192xf32, #tpu.memory_space<vmem>>, vector<1x8x8192xf32>
      %15 = vector.shape_cast %14 : vector<1x8x8192xf32> to vector<8x8192xf32>
      %16 = arith.addf %15, %4 : vector<8x8192xf32>
      %c0_13 = arith.constant 0 : index
      %c0_14 = arith.constant 0 : index
      %c0_15 = arith.constant 0 : index
      %17 = vector.load %arg5[%c0_13, %c0_14, %c0_15] : memref<1x8x8192xf32, #tpu.memory_space<vmem>>, vector<1x8x8192xf32>
      %18 = vector.shape_cast %17 : vector<1x8x8192xf32> to vector<8x8192xf32>
      %19 = vector.shape_cast %16 : vector<8x8192xf32> to vector<1x8x8192xf32>
      tpu.vector_store %arg5[%c0_13, %c0_14, %c0_15], %19 {strides = array<i32>} : memref<1x8x8192xf32, #tpu.memory_space<vmem>>, vector<1x8x8192xf32>,
    } else {
    }
    %c0_i32_8 = arith.constant 0 : i32
    %11 = arith.cmpi eq, %arg2, %c0_i32_8 : i32
    %12 = arith.extui %11 : i1 to i32
    %c0_i32_9 = arith.constant 0 : i32
    %13 = arith.cmpi ne, %12, %c0_i32_9 : i32
    scf.if %13 {
      %c0_10 = arith.constant 0 : index
      %c0_11 = arith.constant 0 : index
      %c0_12 = arith.constant 0 : index
      %14 = vector.load %arg5[%c0_10, %c0_11, %c0_12] : memref<1x8x8192xf32, #tpu.memory_space<vmem>>, vector<1x8x8192xf32>
      %15 = vector.shape_cast %14 : vector<1x8x8192xf32> to vector<8x8192xf32>
      %cst_13 = arith.constant dense<0.000000e+00> : vector<8192xf32>
      %16 = vector.multi_reduction <add>, %15, %cst_13 [0] : vector<8x8192xf32> to vector<8192xf32>
      %17 = vector.shape_cast %16 : vector<8192xf32> to vector<1x8192xf32>
      %18 = arith.mulf %15, %15 : vector<8x8192xf32>
      %cst_14 = arith.constant dense<0.000000e+00> : vector<8192xf32>
      %19 = vector.multi_reduction <add>, %18, %cst_14 [0] : vector<8x8192xf32> to vector<8192xf32>
      %20 = vector.shape_cast %19 : vector<8192xf32> to vector<1x8192xf32>
      %21 = vector.shape_cast %17 : vector<1x8192xf32> to vector<1x8192xf32>
      %22 = vector.broadcast %21 : vector<1x8192xf32> to vector<8x8192xf32>
      %c0_15 = arith.constant 0 : index
      %c0_16 = arith.constant 0 : index
      %c0_17 = arith.constant 0 : index
      %c0_18 = arith.constant 0 : index
      %23 = vector.load %arg6[%c0_15, %c0_16, %c0_17, %c0_18] : memref<1x1x8x8192xf32, #tpu.memory_space<vmem>>, vector<1x1x8x8192xf32>
      %24 = vector.shape_cast %23 : vector<1x1x8x8192xf32> to vector<8x8192xf32>
      %25 = vector.shape_cast %22 : vector<8x8192xf32> to vector<1x1x8x8192xf32>
      tpu.vector_store %arg6[%c0_15, %c0_16, %c0_17, %c0_18], %25 {strides = array<i32>} : memref<1x1x8x8192xf32, #tpu.memory_space<vmem>>, vector<1x1x8x8192xf32>,
      %26 = vector.shape_cast %20 : vector<1x8192xf32> to vector<1x8192xf32>
      %27 = vector.broadcast %26 : vector<1x8192xf32> to vector<8x8192xf32>
      %c0_19 = arith.constant 0 : index
      %c0_20 = arith.constant 0 : index
      %c0_21 = arith.constant 0 : index
      %c0_22 = arith.constant 0 : index
      %28 = vector.load %arg7[%c0_19, %c0_20, %c0_21, %c0_22] : memref<1x1x8x8192xf32, #tpu.memory_space<vmem>>, vector<1x1x8x8192xf32>
      %29 = vector.shape_cast %28 : vector<1x1x8x8192xf32> to vector<8x8192xf32>
      %30 = vector.shape_cast %27 : vector<8x8192xf32> to vector<1x1x8x8192xf32>
      tpu.vector_store %arg7[%c0_19, %c0_20, %c0_21, %c0_22], %30 {strides = array<i32>} : memref<1x1x8x8192xf32, #tpu.memory_space<vmem>>, vector<1x1x8x8192xf32>,
    } else {
    }
    return
  }
  func.func @transform_0(%arg0: i32, %arg1: i32, %arg2: i32) -> (i32, i32, i32) {
    %c0_i32 = arith.constant 0 : i32
    return %arg0, %arg1, %arg2 : i32, i32, i32
  }
  func.func @transform_1(%arg0: i32, %arg1: i32, %arg2: i32) -> (i32, i32, i32) {
    %c0_i32 = arith.constant 0 : i32
    %c0_i32_0 = arith.constant 0 : i32
    return %arg0, %arg2, %c0_i32 : i32, i32, i32
  }
  func.func @transform_2(%arg0: i32, %arg1: i32, %arg2: i32) -> (i32, i32, i32) {
    %c0_i32 = arith.constant 0 : i32
    %c0_i32_0 = arith.constant 0 : i32
    return %arg0, %arg1, %c0_i32 : i32, i32, i32
  }
  func.func @transform_3(%arg0: i32, %arg1: i32, %arg2: i32) -> (i32, i32, i32, i32) {
    %c0_i32 = arith.constant 0 : i32
    %c0_i32_0 = arith.constant 0 : i32
    %c0_i32_1 = arith.constant 0 : i32
    return %arg0, %arg1, %c0_i32, %c0_i32_0 : i32, i32, i32, i32
  }
  func.func @transform_4(%arg0: i32, %arg1: i32, %arg2: i32) -> (i32, i32, i32, i32) {
    %c0_i32 = arith.constant 0 : i32
    %c0_i32_0 = arith.constant 0 : i32
    %c0_i32_1 = arith.constant 0 : i32
    return %arg0, %arg1, %c0_i32, %c0_i32_0 : i32, i32, i32, i32
  }
}

module attributes {stable_mosaic.version = 11 : i64} {
  func.func @_scale_shift_act_kernel(%arg0: i32, %arg1: memref<128x512xf32, #tpu.memory_space<vmem>>, %arg2: memref<1x512xf32, #tpu.memory_space<vmem>>, %arg3: memref<1x512xf32, #tpu.memory_space<vmem>>, %arg4: memref<128x512xbf16, #tpu.memory_space<vmem>>) attributes {dimension_semantics = [#tpu.dimension_semantics<parallel>], iteration_bounds = array<i64: 1>, scalar_prefetch = 0 : i64, scratch_operands = 0 : i64, tpu.core_type = #tpu.core_type<tc>, window_params = [{transform_indices = @transform_0, window_bounds = array<i64: 128, 512>}, {pipeline_mode = #tpu.pipeline_mode<synchronous>, transform_indices = @transform_1, window_bounds = array<i64: 1, 512>}, {pipeline_mode = #tpu.pipeline_mode<synchronous>, transform_indices = @transform_2, window_bounds = array<i64: 1, 512>}, {transform_indices = @transform_3, window_bounds = array<i64: 128, 512>}]} {
    %c0 = arith.constant 0 : index
    %c0_0 = arith.constant 0 : index
    %0 = vector.load %arg1[%c0, %c0_0] : memref<128x512xf32, #tpu.memory_space<vmem>>, vector<128x512xf32>
    %c0_1 = arith.constant 0 : index
    %c0_2 = arith.constant 0 : index
    %1 = vector.load %arg2[%c0_1, %c0_2] : memref<1x512xf32, #tpu.memory_space<vmem>>, vector<1x512xf32>
    %2 = vector.broadcast %1 : vector<1x512xf32> to vector<128x512xf32>
    %3 = arith.mulf %0, %2 : vector<128x512xf32>
    %c0_3 = arith.constant 0 : index
    %c0_4 = arith.constant 0 : index
    %4 = vector.load %arg3[%c0_3, %c0_4] : memref<1x512xf32, #tpu.memory_space<vmem>>, vector<1x512xf32>
    %5 = vector.broadcast %4 : vector<1x512xf32> to vector<128x512xf32>
    %6 = arith.addf %3, %5 : vector<128x512xf32>
    %cst = arith.constant 0.000000e+00 : f32
    %7 = vector.broadcast %cst : f32 to vector<128x512xf32>
    %8 = arith.maximumf %6, %7 : vector<128x512xf32>
    %9 = arith.truncf %8 : vector<128x512xf32> to vector<128x512xbf16>
    %c0_5 = arith.constant 0 : index
    %c0_6 = arith.constant 0 : index
    %10 = vector.load %arg4[%c0_5, %c0_6] : memref<128x512xbf16, #tpu.memory_space<vmem>>, vector<128x512xbf16>
    tpu.vector_store %arg4[%c0_5, %c0_6], %9 {strides = array<i32>} : memref<128x512xbf16, #tpu.memory_space<vmem>>, vector<128x512xbf16>,
    return
  }
  func.func @transform_0(%arg0: i32) -> (i32, i32) {
    %c0_i32 = arith.constant 0 : i32
    %c0_i32_0 = arith.constant 0 : i32
    return %arg0, %c0_i32 : i32, i32
  }
  func.func @transform_1(%arg0: i32) -> (i32, i32) {
    %c0_i32 = arith.constant 0 : i32
    %c0_i32_0 = arith.constant 0 : i32
    %c0_i32_1 = arith.constant 0 : i32
    return %c0_i32, %c0_i32_0 : i32, i32
  }
  func.func @transform_2(%arg0: i32) -> (i32, i32) {
    %c0_i32 = arith.constant 0 : i32
    %c0_i32_0 = arith.constant 0 : i32
    %c0_i32_1 = arith.constant 0 : i32
    return %c0_i32, %c0_i32_0 : i32, i32
  }
  func.func @transform_3(%arg0: i32) -> (i32, i32) {
    %c0_i32 = arith.constant 0 : i32
    %c0_i32_0 = arith.constant 0 : i32
    return %arg0, %c0_i32 : i32, i32
  }
}

module attributes {stable_mosaic.version = 11 : i64} {
  func.func @_matmul_stats_kernel(%arg0: i32, %arg1: i32, %arg2: i32, %arg3: memref<1x32x512xbf16, #tpu.memory_space<vmem>>, %arg4: memref<1x512x256xbf16, #tpu.memory_space<vmem>>, %arg5: memref<1x32x256xf32, #tpu.memory_space<vmem>>, %arg6: memref<1x1x8x256xf32, #tpu.memory_space<vmem>>, %arg7: memref<1x1x8x256xf32, #tpu.memory_space<vmem>>) attributes {dimension_semantics = [#tpu.dimension_semantics<parallel>, #tpu.dimension_semantics<parallel>, #tpu.dimension_semantics<arbitrary>], iteration_bounds = array<i64: 4, 1, 4>, scalar_prefetch = 0 : i64, scratch_operands = 0 : i64, tpu.core_type = #tpu.core_type<tc>, window_params = [{transform_indices = @transform_0, window_bounds = array<i64: 1, 32, 512>}, {transform_indices = @transform_1, window_bounds = array<i64: 1, 512, 256>}, {transform_indices = @transform_2, window_bounds = array<i64: 1, 32, 256>}, {transform_indices = @transform_3, window_bounds = array<i64: 1, 1, 8, 256>}, {transform_indices = @transform_4, window_bounds = array<i64: 1, 1, 8, 256>}]} {
    %c0 = arith.constant 0 : index
    %c0_0 = arith.constant 0 : index
    %c0_1 = arith.constant 0 : index
    %0 = vector.load %arg3[%c0, %c0_0, %c0_1] : memref<1x32x512xbf16, #tpu.memory_space<vmem>>, vector<1x32x512xbf16>
    %1 = vector.shape_cast %0 : vector<1x32x512xbf16> to vector<32x512xbf16>
    %c0_2 = arith.constant 0 : index
    %c0_3 = arith.constant 0 : index
    %c0_4 = arith.constant 0 : index
    %2 = vector.load %arg4[%c0_2, %c0_3, %c0_4] : memref<1x512x256xbf16, #tpu.memory_space<vmem>>, vector<1x512x256xbf16>
    %3 = vector.shape_cast %2 : vector<1x512x256xbf16> to vector<512x256xbf16>
    %cst = arith.constant dense<0.000000e+00> : vector<32x256xf32>
    %4 = tpu.matmul %1, %3, %cst {dimension_numbers = #tpu.dot_dimension_numbers<[1], [0], [0], [1], [0, 0, 1, 1], [], []>} : vector<32x512xbf16>, vector<512x256xbf16>, vector<32x256xf32> -> vector<32x256xf32>
    %c0_i32 = arith.constant 0 : i32
    %5 = arith.cmpi eq, %arg2, %c0_i32 : i32
    %6 = arith.extui %5 : i1 to i32
    %c0_i32_5 = arith.constant 0 : i32
    %7 = arith.cmpi ne, %6, %c0_i32_5 : i32
    scf.if %7 {
      %c0_9 = arith.constant 0 : index
      %c0_10 = arith.constant 0 : index
      %c0_11 = arith.constant 0 : index
      %14 = vector.load %arg5[%c0_9, %c0_10, %c0_11] : memref<1x32x256xf32, #tpu.memory_space<vmem>>, vector<1x32x256xf32>
      %15 = vector.shape_cast %14 : vector<1x32x256xf32> to vector<32x256xf32>
      %16 = vector.shape_cast %4 : vector<32x256xf32> to vector<1x32x256xf32>
      tpu.vector_store %arg5[%c0_9, %c0_10, %c0_11], %16 {strides = array<i32>} : memref<1x32x256xf32, #tpu.memory_space<vmem>>, vector<1x32x256xf32>,
    } else {
    }
    %c0_i32_6 = arith.constant 0 : i32
    %8 = arith.cmpi sgt, %arg2, %c0_i32_6 : i32
    %9 = arith.extui %8 : i1 to i32
    %c0_i32_7 = arith.constant 0 : i32
    %10 = arith.cmpi ne, %9, %c0_i32_7 : i32
    scf.if %10 {
      %c0_9 = arith.constant 0 : index
      %c0_10 = arith.constant 0 : index
      %c0_11 = arith.constant 0 : index
      %14 = vector.load %arg5[%c0_9, %c0_10, %c0_11] : memref<1x32x256xf32, #tpu.memory_space<vmem>>, vector<1x32x256xf32>
      %15 = vector.shape_cast %14 : vector<1x32x256xf32> to vector<32x256xf32>
      %16 = arith.addf %15, %4 : vector<32x256xf32>
      %c0_12 = arith.constant 0 : index
      %c0_13 = arith.constant 0 : index
      %c0_14 = arith.constant 0 : index
      %17 = vector.load %arg5[%c0_12, %c0_13, %c0_14] : memref<1x32x256xf32, #tpu.memory_space<vmem>>, vector<1x32x256xf32>
      %18 = vector.shape_cast %17 : vector<1x32x256xf32> to vector<32x256xf32>
      %19 = vector.shape_cast %16 : vector<32x256xf32> to vector<1x32x256xf32>
      tpu.vector_store %arg5[%c0_12, %c0_13, %c0_14], %19 {strides = array<i32>} : memref<1x32x256xf32, #tpu.memory_space<vmem>>, vector<1x32x256xf32>,
    } else {
    }
    %c3_i32 = arith.constant 3 : i32
    %11 = arith.cmpi eq, %arg2, %c3_i32 : i32
    %12 = arith.extui %11 : i1 to i32
    %c0_i32_8 = arith.constant 0 : i32
    %13 = arith.cmpi ne, %12, %c0_i32_8 : i32
    scf.if %13 {
      %c0_9 = arith.constant 0 : index
      %c0_10 = arith.constant 0 : index
      %c0_11 = arith.constant 0 : index
      %14 = vector.load %arg5[%c0_9, %c0_10, %c0_11] : memref<1x32x256xf32, #tpu.memory_space<vmem>>, vector<1x32x256xf32>
      %15 = vector.shape_cast %14 : vector<1x32x256xf32> to vector<32x256xf32>
      %cst_12 = arith.constant dense<0.000000e+00> : vector<256xf32>
      %16 = vector.multi_reduction <add>, %15, %cst_12 [0] : vector<32x256xf32> to vector<256xf32>
      %17 = vector.shape_cast %16 : vector<256xf32> to vector<1x256xf32>
      %18 = arith.mulf %15, %15 : vector<32x256xf32>
      %cst_13 = arith.constant dense<0.000000e+00> : vector<256xf32>
      %19 = vector.multi_reduction <add>, %18, %cst_13 [0] : vector<32x256xf32> to vector<256xf32>
      %20 = vector.shape_cast %19 : vector<256xf32> to vector<1x256xf32>
      %21 = vector.shape_cast %17 : vector<1x256xf32> to vector<1x256xf32>
      %22 = vector.broadcast %21 : vector<1x256xf32> to vector<8x256xf32>
      %c0_14 = arith.constant 0 : index
      %c0_15 = arith.constant 0 : index
      %c0_16 = arith.constant 0 : index
      %c0_17 = arith.constant 0 : index
      %23 = vector.load %arg6[%c0_14, %c0_15, %c0_16, %c0_17] : memref<1x1x8x256xf32, #tpu.memory_space<vmem>>, vector<1x1x8x256xf32>
      %24 = vector.shape_cast %23 : vector<1x1x8x256xf32> to vector<8x256xf32>
      %25 = vector.shape_cast %22 : vector<8x256xf32> to vector<1x1x8x256xf32>
      tpu.vector_store %arg6[%c0_14, %c0_15, %c0_16, %c0_17], %25 {strides = array<i32>} : memref<1x1x8x256xf32, #tpu.memory_space<vmem>>, vector<1x1x8x256xf32>,
      %26 = vector.shape_cast %20 : vector<1x256xf32> to vector<1x256xf32>
      %27 = vector.broadcast %26 : vector<1x256xf32> to vector<8x256xf32>
      %c0_18 = arith.constant 0 : index
      %c0_19 = arith.constant 0 : index
      %c0_20 = arith.constant 0 : index
      %c0_21 = arith.constant 0 : index
      %28 = vector.load %arg7[%c0_18, %c0_19, %c0_20, %c0_21] : memref<1x1x8x256xf32, #tpu.memory_space<vmem>>, vector<1x1x8x256xf32>
      %29 = vector.shape_cast %28 : vector<1x1x8x256xf32> to vector<8x256xf32>
      %30 = vector.shape_cast %27 : vector<8x256xf32> to vector<1x1x8x256xf32>
      tpu.vector_store %arg7[%c0_18, %c0_19, %c0_20, %c0_21], %30 {strides = array<i32>} : memref<1x1x8x256xf32, #tpu.memory_space<vmem>>, vector<1x1x8x256xf32>,
    } else {
    }
    return
  }
  func.func @transform_0(%arg0: i32, %arg1: i32, %arg2: i32) -> (i32, i32, i32) {
    %c0_i32 = arith.constant 0 : i32
    return %arg0, %arg1, %arg2 : i32, i32, i32
  }
  func.func @transform_1(%arg0: i32, %arg1: i32, %arg2: i32) -> (i32, i32, i32) {
    %c0_i32 = arith.constant 0 : i32
    %c0_i32_0 = arith.constant 0 : i32
    return %arg0, %arg2, %c0_i32 : i32, i32, i32
  }
  func.func @transform_2(%arg0: i32, %arg1: i32, %arg2: i32) -> (i32, i32, i32) {
    %c0_i32 = arith.constant 0 : i32
    %c0_i32_0 = arith.constant 0 : i32
    return %arg0, %arg1, %c0_i32 : i32, i32, i32
  }
  func.func @transform_3(%arg0: i32, %arg1: i32, %arg2: i32) -> (i32, i32, i32, i32) {
    %c0_i32 = arith.constant 0 : i32
    %c0_i32_0 = arith.constant 0 : i32
    %c0_i32_1 = arith.constant 0 : i32
    return %arg0, %arg1, %c0_i32, %c0_i32_0 : i32, i32, i32, i32
  }
  func.func @transform_4(%arg0: i32, %arg1: i32, %arg2: i32) -> (i32, i32, i32, i32) {
    %c0_i32 = arith.constant 0 : i32
    %c0_i32_0 = arith.constant 0 : i32
    %c0_i32_1 = arith.constant 0 : i32
    return %arg0, %arg1, %c0_i32, %c0_i32_0 : i32, i32, i32, i32
  }
}

module attributes {stable_mosaic.version = 11 : i64} {
  func.func @_scale_shift_act_kernel(%arg0: i32, %arg1: memref<128x256xf32, #tpu.memory_space<vmem>>, %arg2: memref<1x256xf32, #tpu.memory_space<vmem>>, %arg3: memref<1x256xf32, #tpu.memory_space<vmem>>, %arg4: memref<128x256xbf16, #tpu.memory_space<vmem>>) attributes {dimension_semantics = [#tpu.dimension_semantics<parallel>], iteration_bounds = array<i64: 1>, scalar_prefetch = 0 : i64, scratch_operands = 0 : i64, tpu.core_type = #tpu.core_type<tc>, window_params = [{transform_indices = @transform_0, window_bounds = array<i64: 128, 256>}, {pipeline_mode = #tpu.pipeline_mode<synchronous>, transform_indices = @transform_1, window_bounds = array<i64: 1, 256>}, {pipeline_mode = #tpu.pipeline_mode<synchronous>, transform_indices = @transform_2, window_bounds = array<i64: 1, 256>}, {transform_indices = @transform_3, window_bounds = array<i64: 128, 256>}]} {
    %c0 = arith.constant 0 : index
    %c0_0 = arith.constant 0 : index
    %0 = vector.load %arg1[%c0, %c0_0] : memref<128x256xf32, #tpu.memory_space<vmem>>, vector<128x256xf32>
    %c0_1 = arith.constant 0 : index
    %c0_2 = arith.constant 0 : index
    %1 = vector.load %arg2[%c0_1, %c0_2] : memref<1x256xf32, #tpu.memory_space<vmem>>, vector<1x256xf32>
    %2 = vector.broadcast %1 : vector<1x256xf32> to vector<128x256xf32>
    %3 = arith.mulf %0, %2 : vector<128x256xf32>
    %c0_3 = arith.constant 0 : index
    %c0_4 = arith.constant 0 : index
    %4 = vector.load %arg3[%c0_3, %c0_4] : memref<1x256xf32, #tpu.memory_space<vmem>>, vector<1x256xf32>
    %5 = vector.broadcast %4 : vector<1x256xf32> to vector<128x256xf32>
    %6 = arith.addf %3, %5 : vector<128x256xf32>
    %cst = arith.constant 0.000000e+00 : f32
    %7 = vector.broadcast %cst : f32 to vector<128x256xf32>
    %8 = arith.maximumf %6, %7 : vector<128x256xf32>
    %9 = arith.truncf %8 : vector<128x256xf32> to vector<128x256xbf16>
    %c0_5 = arith.constant 0 : index
    %c0_6 = arith.constant 0 : index
    %10 = vector.load %arg4[%c0_5, %c0_6] : memref<128x256xbf16, #tpu.memory_space<vmem>>, vector<128x256xbf16>
    tpu.vector_store %arg4[%c0_5, %c0_6], %9 {strides = array<i32>} : memref<128x256xbf16, #tpu.memory_space<vmem>>, vector<128x256xbf16>,
    return
  }
  func.func @transform_0(%arg0: i32) -> (i32, i32) {
    %c0_i32 = arith.constant 0 : i32
    %c0_i32_0 = arith.constant 0 : i32
    return %arg0, %c0_i32 : i32, i32
  }
  func.func @transform_1(%arg0: i32) -> (i32, i32) {
    %c0_i32 = arith.constant 0 : i32
    %c0_i32_0 = arith.constant 0 : i32
    %c0_i32_1 = arith.constant 0 : i32
    return %c0_i32, %c0_i32_0 : i32, i32
  }
  func.func @transform_2(%arg0: i32) -> (i32, i32) {
    %c0_i32 = arith.constant 0 : i32
    %c0_i32_0 = arith.constant 0 : i32
    %c0_i32_1 = arith.constant 0 : i32
    return %c0_i32, %c0_i32_0 : i32, i32
  }
  func.func @transform_3(%arg0: i32) -> (i32, i32) {
    %c0_i32 = arith.constant 0 : i32
    %c0_i32_0 = arith.constant 0 : i32
    return %arg0, %c0_i32 : i32, i32
  }
}

module attributes {stable_mosaic.version = 11 : i64} {
  func.func @_matmul_stats_kernel(%arg0: i32, %arg1: i32, %arg2: i32, %arg3: memref<1x128x512xbf16, #tpu.memory_space<vmem>>, %arg4: memref<1x512x128xbf16, #tpu.memory_space<vmem>>, %arg5: memref<1x128x128xf32, #tpu.memory_space<vmem>>, %arg6: memref<1x1x8x128xf32, #tpu.memory_space<vmem>>, %arg7: memref<1x1x8x128xf32, #tpu.memory_space<vmem>>) attributes {dimension_semantics = [#tpu.dimension_semantics<parallel>, #tpu.dimension_semantics<parallel>, #tpu.dimension_semantics<arbitrary>], iteration_bounds = array<i64: 4, 1, 2>, scalar_prefetch = 0 : i64, scratch_operands = 0 : i64, tpu.core_type = #tpu.core_type<tc>, window_params = [{transform_indices = @transform_0, window_bounds = array<i64: 1, 128, 512>}, {transform_indices = @transform_1, window_bounds = array<i64: 1, 512, 128>}, {transform_indices = @transform_2, window_bounds = array<i64: 1, 128, 128>}, {transform_indices = @transform_3, window_bounds = array<i64: 1, 1, 8, 128>}, {transform_indices = @transform_4, window_bounds = array<i64: 1, 1, 8, 128>}]} {
    %c0 = arith.constant 0 : index
    %c0_0 = arith.constant 0 : index
    %c0_1 = arith.constant 0 : index
    %0 = vector.load %arg3[%c0, %c0_0, %c0_1] : memref<1x128x512xbf16, #tpu.memory_space<vmem>>, vector<1x128x512xbf16>
    %1 = vector.shape_cast %0 : vector<1x128x512xbf16> to vector<128x512xbf16>
    %c0_2 = arith.constant 0 : index
    %c0_3 = arith.constant 0 : index
    %c0_4 = arith.constant 0 : index
    %2 = vector.load %arg4[%c0_2, %c0_3, %c0_4] : memref<1x512x128xbf16, #tpu.memory_space<vmem>>, vector<1x512x128xbf16>
    %3 = vector.shape_cast %2 : vector<1x512x128xbf16> to vector<512x128xbf16>
    %cst = arith.constant dense<0.000000e+00> : vector<128x128xf32>
    %4 = tpu.matmul %1, %3, %cst {dimension_numbers = #tpu.dot_dimension_numbers<[1], [0], [0], [1], [0, 0, 1, 1], [], []>} : vector<128x512xbf16>, vector<512x128xbf16>, vector<128x128xf32> -> vector<128x128xf32>
    %c0_i32 = arith.constant 0 : i32
    %5 = arith.cmpi eq, %arg2, %c0_i32 : i32
    %6 = arith.extui %5 : i1 to i32
    %c0_i32_5 = arith.constant 0 : i32
    %7 = arith.cmpi ne, %6, %c0_i32_5 : i32
    scf.if %7 {
      %c0_9 = arith.constant 0 : index
      %c0_10 = arith.constant 0 : index
      %c0_11 = arith.constant 0 : index
      %14 = vector.load %arg5[%c0_9, %c0_10, %c0_11] : memref<1x128x128xf32, #tpu.memory_space<vmem>>, vector<1x128x128xf32>
      %15 = vector.shape_cast %14 : vector<1x128x128xf32> to vector<128x128xf32>
      %16 = vector.shape_cast %4 : vector<128x128xf32> to vector<1x128x128xf32>
      tpu.vector_store %arg5[%c0_9, %c0_10, %c0_11], %16 {strides = array<i32>} : memref<1x128x128xf32, #tpu.memory_space<vmem>>, vector<1x128x128xf32>,
    } else {
    }
    %c0_i32_6 = arith.constant 0 : i32
    %8 = arith.cmpi sgt, %arg2, %c0_i32_6 : i32
    %9 = arith.extui %8 : i1 to i32
    %c0_i32_7 = arith.constant 0 : i32
    %10 = arith.cmpi ne, %9, %c0_i32_7 : i32
    scf.if %10 {
      %c0_9 = arith.constant 0 : index
      %c0_10 = arith.constant 0 : index
      %c0_11 = arith.constant 0 : index
      %14 = vector.load %arg5[%c0_9, %c0_10, %c0_11] : memref<1x128x128xf32, #tpu.memory_space<vmem>>, vector<1x128x128xf32>
      %15 = vector.shape_cast %14 : vector<1x128x128xf32> to vector<128x128xf32>
      %16 = arith.addf %15, %4 : vector<128x128xf32>
      %c0_12 = arith.constant 0 : index
      %c0_13 = arith.constant 0 : index
      %c0_14 = arith.constant 0 : index
      %17 = vector.load %arg5[%c0_12, %c0_13, %c0_14] : memref<1x128x128xf32, #tpu.memory_space<vmem>>, vector<1x128x128xf32>
      %18 = vector.shape_cast %17 : vector<1x128x128xf32> to vector<128x128xf32>
      %19 = vector.shape_cast %16 : vector<128x128xf32> to vector<1x128x128xf32>
      tpu.vector_store %arg5[%c0_12, %c0_13, %c0_14], %19 {strides = array<i32>} : memref<1x128x128xf32, #tpu.memory_space<vmem>>, vector<1x128x128xf32>,
    } else {
    }
    %c1_i32 = arith.constant 1 : i32
    %11 = arith.cmpi eq, %arg2, %c1_i32 : i32
    %12 = arith.extui %11 : i1 to i32
    %c0_i32_8 = arith.constant 0 : i32
    %13 = arith.cmpi ne, %12, %c0_i32_8 : i32
    scf.if %13 {
      %c0_9 = arith.constant 0 : index
      %c0_10 = arith.constant 0 : index
      %c0_11 = arith.constant 0 : index
      %14 = vector.load %arg5[%c0_9, %c0_10, %c0_11] : memref<1x128x128xf32, #tpu.memory_space<vmem>>, vector<1x128x128xf32>
      %15 = vector.shape_cast %14 : vector<1x128x128xf32> to vector<128x128xf32>
      %cst_12 = arith.constant dense<0.000000e+00> : vector<128xf32>
      %16 = vector.multi_reduction <add>, %15, %cst_12 [0] : vector<128x128xf32> to vector<128xf32>
      %17 = vector.shape_cast %16 : vector<128xf32> to vector<1x128xf32>
      %18 = arith.mulf %15, %15 : vector<128x128xf32>
      %cst_13 = arith.constant dense<0.000000e+00> : vector<128xf32>
      %19 = vector.multi_reduction <add>, %18, %cst_13 [0] : vector<128x128xf32> to vector<128xf32>
      %20 = vector.shape_cast %19 : vector<128xf32> to vector<1x128xf32>
      %21 = vector.shape_cast %17 : vector<1x128xf32> to vector<1x128xf32>
      %22 = vector.broadcast %21 : vector<1x128xf32> to vector<8x128xf32>
      %c0_14 = arith.constant 0 : index
      %c0_15 = arith.constant 0 : index
      %c0_16 = arith.constant 0 : index
      %c0_17 = arith.constant 0 : index
      %23 = vector.load %arg6[%c0_14, %c0_15, %c0_16, %c0_17] : memref<1x1x8x128xf32, #tpu.memory_space<vmem>>, vector<1x1x8x128xf32>
      %24 = vector.shape_cast %23 : vector<1x1x8x128xf32> to vector<8x128xf32>
      %25 = vector.shape_cast %22 : vector<8x128xf32> to vector<1x1x8x128xf32>
      tpu.vector_store %arg6[%c0_14, %c0_15, %c0_16, %c0_17], %25 {strides = array<i32>} : memref<1x1x8x128xf32, #tpu.memory_space<vmem>>, vector<1x1x8x128xf32>,
      %26 = vector.shape_cast %20 : vector<1x128xf32> to vector<1x128xf32>
      %27 = vector.broadcast %26 : vector<1x128xf32> to vector<8x128xf32>
      %c0_18 = arith.constant 0 : index
      %c0_19 = arith.constant 0 : index
      %c0_20 = arith.constant 0 : index
      %c0_21 = arith.constant 0 : index
      %28 = vector.load %arg7[%c0_18, %c0_19, %c0_20, %c0_21] : memref<1x1x8x128xf32, #tpu.memory_space<vmem>>, vector<1x1x8x128xf32>
      %29 = vector.shape_cast %28 : vector<1x1x8x128xf32> to vector<8x128xf32>
      %30 = vector.shape_cast %27 : vector<8x128xf32> to vector<1x1x8x128xf32>
      tpu.vector_store %arg7[%c0_18, %c0_19, %c0_20, %c0_21], %30 {strides = array<i32>} : memref<1x1x8x128xf32, #tpu.memory_space<vmem>>, vector<1x1x8x128xf32>,
    } else {
    }
    return
  }
  func.func @transform_0(%arg0: i32, %arg1: i32, %arg2: i32) -> (i32, i32, i32) {
    %c0_i32 = arith.constant 0 : i32
    return %arg0, %arg1, %arg2 : i32, i32, i32
  }
  func.func @transform_1(%arg0: i32, %arg1: i32, %arg2: i32) -> (i32, i32, i32) {
    %c0_i32 = arith.constant 0 : i32
    %c0_i32_0 = arith.constant 0 : i32
    return %arg0, %arg2, %c0_i32 : i32, i32, i32
  }
  func.func @transform_2(%arg0: i32, %arg1: i32, %arg2: i32) -> (i32, i32, i32) {
    %c0_i32 = arith.constant 0 : i32
    %c0_i32_0 = arith.constant 0 : i32
    return %arg0, %arg1, %c0_i32 : i32, i32, i32
  }
  func.func @transform_3(%arg0: i32, %arg1: i32, %arg2: i32) -> (i32, i32, i32, i32) {
    %c0_i32 = arith.constant 0 : i32
    %c0_i32_0 = arith.constant 0 : i32
    %c0_i32_1 = arith.constant 0 : i32
    return %arg0, %arg1, %c0_i32, %c0_i32_0 : i32, i32, i32, i32
  }
  func.func @transform_4(%arg0: i32, %arg1: i32, %arg2: i32) -> (i32, i32, i32, i32) {
    %c0_i32 = arith.constant 0 : i32
    %c0_i32_0 = arith.constant 0 : i32
    %c0_i32_1 = arith.constant 0 : i32
    return %arg0, %arg1, %c0_i32, %c0_i32_0 : i32, i32, i32, i32
  }
}

module attributes {stable_mosaic.version = 11 : i64} {
  func.func @_scale_shift_act_kernel(%arg0: i32, %arg1: memref<512x128xf32, #tpu.memory_space<vmem>>, %arg2: memref<1x128xf32, #tpu.memory_space<vmem>>, %arg3: memref<1x128xf32, #tpu.memory_space<vmem>>, %arg4: memref<512x128xbf16, #tpu.memory_space<vmem>>) attributes {dimension_semantics = [#tpu.dimension_semantics<parallel>], iteration_bounds = array<i64: 1>, scalar_prefetch = 0 : i64, scratch_operands = 0 : i64, tpu.core_type = #tpu.core_type<tc>, window_params = [{transform_indices = @transform_0, window_bounds = array<i64: 512, 128>}, {pipeline_mode = #tpu.pipeline_mode<synchronous>, transform_indices = @transform_1, window_bounds = array<i64: 1, 128>}, {pipeline_mode = #tpu.pipeline_mode<synchronous>, transform_indices = @transform_2, window_bounds = array<i64: 1, 128>}, {transform_indices = @transform_3, window_bounds = array<i64: 512, 128>}]} {
    %c0 = arith.constant 0 : index
    %c0_0 = arith.constant 0 : index
    %0 = vector.load %arg1[%c0, %c0_0] : memref<512x128xf32, #tpu.memory_space<vmem>>, vector<512x128xf32>
    %c0_1 = arith.constant 0 : index
    %c0_2 = arith.constant 0 : index
    %1 = vector.load %arg2[%c0_1, %c0_2] : memref<1x128xf32, #tpu.memory_space<vmem>>, vector<1x128xf32>
    %2 = vector.broadcast %1 : vector<1x128xf32> to vector<512x128xf32>
    %3 = arith.mulf %0, %2 : vector<512x128xf32>
    %c0_3 = arith.constant 0 : index
    %c0_4 = arith.constant 0 : index
    %4 = vector.load %arg3[%c0_3, %c0_4] : memref<1x128xf32, #tpu.memory_space<vmem>>, vector<1x128xf32>
    %5 = vector.broadcast %4 : vector<1x128xf32> to vector<512x128xf32>
    %6 = arith.addf %3, %5 : vector<512x128xf32>
    %cst = arith.constant 0.000000e+00 : f32
    %7 = vector.broadcast %cst : f32 to vector<512x128xf32>
    %8 = arith.maximumf %6, %7 : vector<512x128xf32>
    %9 = arith.truncf %8 : vector<512x128xf32> to vector<512x128xbf16>
    %c0_5 = arith.constant 0 : index
    %c0_6 = arith.constant 0 : index
    %10 = vector.load %arg4[%c0_5, %c0_6] : memref<512x128xbf16, #tpu.memory_space<vmem>>, vector<512x128xbf16>
    tpu.vector_store %arg4[%c0_5, %c0_6], %9 {strides = array<i32>} : memref<512x128xbf16, #tpu.memory_space<vmem>>, vector<512x128xbf16>,
    return
  }
  func.func @transform_0(%arg0: i32) -> (i32, i32) {
    %c0_i32 = arith.constant 0 : i32
    %c0_i32_0 = arith.constant 0 : i32
    return %arg0, %c0_i32 : i32, i32
  }
  func.func @transform_1(%arg0: i32) -> (i32, i32) {
    %c0_i32 = arith.constant 0 : i32
    %c0_i32_0 = arith.constant 0 : i32
    %c0_i32_1 = arith.constant 0 : i32
    return %c0_i32, %c0_i32_0 : i32, i32
  }
  func.func @transform_2(%arg0: i32) -> (i32, i32) {
    %c0_i32 = arith.constant 0 : i32
    %c0_i32_0 = arith.constant 0 : i32
    %c0_i32_1 = arith.constant 0 : i32
    return %c0_i32, %c0_i32_0 : i32, i32
  }
  func.func @transform_3(%arg0: i32) -> (i32, i32) {
    %c0_i32 = arith.constant 0 : i32
    %c0_i32_0 = arith.constant 0 : i32
    return %arg0, %c0_i32 : i32, i32
  }
}

module attributes {stable_mosaic.version = 11 : i64} {
  func.func @_matmul_stats_kernel(%arg0: i32, %arg1: i32, %arg2: i32, %arg3: memref<1x256x512xbf16, #tpu.memory_space<vmem>>, %arg4: memref<1x512x128xbf16, #tpu.memory_space<vmem>>, %arg5: memref<1x256x128xf32, #tpu.memory_space<vmem>>, %arg6: memref<1x1x8x128xf32, #tpu.memory_space<vmem>>, %arg7: memref<1x1x8x128xf32, #tpu.memory_space<vmem>>) attributes {dimension_semantics = [#tpu.dimension_semantics<parallel>, #tpu.dimension_semantics<parallel>, #tpu.dimension_semantics<arbitrary>], iteration_bounds = array<i64: 4, 2, 1>, scalar_prefetch = 0 : i64, scratch_operands = 0 : i64, tpu.core_type = #tpu.core_type<tc>, window_params = [{transform_indices = @transform_0, window_bounds = array<i64: 1, 256, 512>}, {transform_indices = @transform_1, window_bounds = array<i64: 1, 512, 128>}, {transform_indices = @transform_2, window_bounds = array<i64: 1, 256, 128>}, {transform_indices = @transform_3, window_bounds = array<i64: 1, 1, 8, 128>}, {transform_indices = @transform_4, window_bounds = array<i64: 1, 1, 8, 128>}]} {
    %c0 = arith.constant 0 : index
    %c0_0 = arith.constant 0 : index
    %c0_1 = arith.constant 0 : index
    %0 = vector.load %arg3[%c0, %c0_0, %c0_1] : memref<1x256x512xbf16, #tpu.memory_space<vmem>>, vector<1x256x512xbf16>
    %1 = vector.shape_cast %0 : vector<1x256x512xbf16> to vector<256x512xbf16>
    %c0_2 = arith.constant 0 : index
    %c0_3 = arith.constant 0 : index
    %c0_4 = arith.constant 0 : index
    %2 = vector.load %arg4[%c0_2, %c0_3, %c0_4] : memref<1x512x128xbf16, #tpu.memory_space<vmem>>, vector<1x512x128xbf16>
    %3 = vector.shape_cast %2 : vector<1x512x128xbf16> to vector<512x128xbf16>
    %cst = arith.constant dense<0.000000e+00> : vector<256x128xf32>
    %4 = tpu.matmul %1, %3, %cst {dimension_numbers = #tpu.dot_dimension_numbers<[1], [0], [0], [1], [0, 0, 1, 1], [], []>} : vector<256x512xbf16>, vector<512x128xbf16>, vector<256x128xf32> -> vector<256x128xf32>
    %c0_i32 = arith.constant 0 : i32
    %5 = arith.cmpi eq, %arg2, %c0_i32 : i32
    %6 = arith.extui %5 : i1 to i32
    %c0_i32_5 = arith.constant 0 : i32
    %7 = arith.cmpi ne, %6, %c0_i32_5 : i32
    scf.if %7 {
      %c0_10 = arith.constant 0 : index
      %c0_11 = arith.constant 0 : index
      %c0_12 = arith.constant 0 : index
      %14 = vector.load %arg5[%c0_10, %c0_11, %c0_12] : memref<1x256x128xf32, #tpu.memory_space<vmem>>, vector<1x256x128xf32>
      %15 = vector.shape_cast %14 : vector<1x256x128xf32> to vector<256x128xf32>
      %16 = vector.shape_cast %4 : vector<256x128xf32> to vector<1x256x128xf32>
      tpu.vector_store %arg5[%c0_10, %c0_11, %c0_12], %16 {strides = array<i32>} : memref<1x256x128xf32, #tpu.memory_space<vmem>>, vector<1x256x128xf32>,
    } else {
    }
    %c0_i32_6 = arith.constant 0 : i32
    %8 = arith.cmpi sgt, %arg2, %c0_i32_6 : i32
    %9 = arith.extui %8 : i1 to i32
    %c0_i32_7 = arith.constant 0 : i32
    %10 = arith.cmpi ne, %9, %c0_i32_7 : i32
    scf.if %10 {
      %c0_10 = arith.constant 0 : index
      %c0_11 = arith.constant 0 : index
      %c0_12 = arith.constant 0 : index
      %14 = vector.load %arg5[%c0_10, %c0_11, %c0_12] : memref<1x256x128xf32, #tpu.memory_space<vmem>>, vector<1x256x128xf32>
      %15 = vector.shape_cast %14 : vector<1x256x128xf32> to vector<256x128xf32>
      %16 = arith.addf %15, %4 : vector<256x128xf32>
      %c0_13 = arith.constant 0 : index
      %c0_14 = arith.constant 0 : index
      %c0_15 = arith.constant 0 : index
      %17 = vector.load %arg5[%c0_13, %c0_14, %c0_15] : memref<1x256x128xf32, #tpu.memory_space<vmem>>, vector<1x256x128xf32>
      %18 = vector.shape_cast %17 : vector<1x256x128xf32> to vector<256x128xf32>
      %19 = vector.shape_cast %16 : vector<256x128xf32> to vector<1x256x128xf32>
      tpu.vector_store %arg5[%c0_13, %c0_14, %c0_15], %19 {strides = array<i32>} : memref<1x256x128xf32, #tpu.memory_space<vmem>>, vector<1x256x128xf32>,
    } else {
    }
    %c0_i32_8 = arith.constant 0 : i32
    %11 = arith.cmpi eq, %arg2, %c0_i32_8 : i32
    %12 = arith.extui %11 : i1 to i32
    %c0_i32_9 = arith.constant 0 : i32
    %13 = arith.cmpi ne, %12, %c0_i32_9 : i32
    scf.if %13 {
      %c0_10 = arith.constant 0 : index
      %c0_11 = arith.constant 0 : index
      %c0_12 = arith.constant 0 : index
      %14 = vector.load %arg5[%c0_10, %c0_11, %c0_12] : memref<1x256x128xf32, #tpu.memory_space<vmem>>, vector<1x256x128xf32>
      %15 = vector.shape_cast %14 : vector<1x256x128xf32> to vector<256x128xf32>
      %16 = math.tanh %15 : vector<256x128xf32>
      %c0_13 = arith.constant 0 : index
      %c0_14 = arith.constant 0 : index
      %c0_15 = arith.constant 0 : index
      %17 = vector.load %arg5[%c0_13, %c0_14, %c0_15] : memref<1x256x128xf32, #tpu.memory_space<vmem>>, vector<1x256x128xf32>
      %18 = vector.shape_cast %17 : vector<1x256x128xf32> to vector<256x128xf32>
      %19 = vector.shape_cast %16 : vector<256x128xf32> to vector<1x256x128xf32>
      tpu.vector_store %arg5[%c0_13, %c0_14, %c0_15], %19 {strides = array<i32>} : memref<1x256x128xf32, #tpu.memory_space<vmem>>, vector<1x256x128xf32>,
      %cst_16 = arith.constant dense<0.000000e+00> : vector<128xf32>
      %20 = vector.multi_reduction <add>, %16, %cst_16 [0] : vector<256x128xf32> to vector<128xf32>
      %21 = vector.shape_cast %20 : vector<128xf32> to vector<1x128xf32>
      %22 = arith.mulf %16, %16 : vector<256x128xf32>
      %cst_17 = arith.constant dense<0.000000e+00> : vector<128xf32>
      %23 = vector.multi_reduction <add>, %22, %cst_17 [0] : vector<256x128xf32> to vector<128xf32>
      %24 = vector.shape_cast %23 : vector<128xf32> to vector<1x128xf32>
      %25 = vector.shape_cast %21 : vector<1x128xf32> to vector<1x128xf32>
      %26 = vector.broadcast %25 : vector<1x128xf32> to vector<8x128xf32>
      %c0_18 = arith.constant 0 : index
      %c0_19 = arith.constant 0 : index
      %c0_20 = arith.constant 0 : index
      %c0_21 = arith.constant 0 : index
      %27 = vector.load %arg6[%c0_18, %c0_19, %c0_20, %c0_21] : memref<1x1x8x128xf32, #tpu.memory_space<vmem>>, vector<1x1x8x128xf32>
      %28 = vector.shape_cast %27 : vector<1x1x8x128xf32> to vector<8x128xf32>
      %29 = vector.shape_cast %26 : vector<8x128xf32> to vector<1x1x8x128xf32>
      tpu.vector_store %arg6[%c0_18, %c0_19, %c0_20, %c0_21], %29 {strides = array<i32>} : memref<1x1x8x128xf32, #tpu.memory_space<vmem>>, vector<1x1x8x128xf32>,
      %30 = vector.shape_cast %24 : vector<1x128xf32> to vector<1x128xf32>
      %31 = vector.broadcast %30 : vector<1x128xf32> to vector<8x128xf32>
      %c0_22 = arith.constant 0 : index
      %c0_23 = arith.constant 0 : index
      %c0_24 = arith.constant 0 : index
      %c0_25 = arith.constant 0 : index
      %32 = vector.load %arg7[%c0_22, %c0_23, %c0_24, %c0_25] : memref<1x1x8x128xf32, #tpu.memory_space<vmem>>, vector<1x1x8x128xf32>
      %33 = vector.shape_cast %32 : vector<1x1x8x128xf32> to vector<8x128xf32>
      %34 = vector.shape_cast %31 : vector<8x128xf32> to vector<1x1x8x128xf32>
      tpu.vector_store %arg7[%c0_22, %c0_23, %c0_24, %c0_25], %34 {strides = array<i32>} : memref<1x1x8x128xf32, #tpu.memory_space<vmem>>, vector<1x1x8x128xf32>,
    } else {
    }
    return
  }
  func.func @transform_0(%arg0: i32, %arg1: i32, %arg2: i32) -> (i32, i32, i32) {
    %c0_i32 = arith.constant 0 : i32
    return %arg0, %arg1, %arg2 : i32, i32, i32
  }
  func.func @transform_1(%arg0: i32, %arg1: i32, %arg2: i32) -> (i32, i32, i32) {
    %c0_i32 = arith.constant 0 : i32
    %c0_i32_0 = arith.constant 0 : i32
    return %arg0, %arg2, %c0_i32 : i32, i32, i32
  }
  func.func @transform_2(%arg0: i32, %arg1: i32, %arg2: i32) -> (i32, i32, i32) {
    %c0_i32 = arith.constant 0 : i32
    %c0_i32_0 = arith.constant 0 : i32
    return %arg0, %arg1, %c0_i32 : i32, i32, i32
  }
  func.func @transform_3(%arg0: i32, %arg1: i32, %arg2: i32) -> (i32, i32, i32, i32) {
    %c0_i32 = arith.constant 0 : i32
    %c0_i32_0 = arith.constant 0 : i32
    %c0_i32_1 = arith.constant 0 : i32
    return %arg0, %arg1, %c0_i32, %c0_i32_0 : i32, i32, i32, i32
  }
  func.func @transform_4(%arg0: i32, %arg1: i32, %arg2: i32) -> (i32, i32, i32, i32) {
    %c0_i32 = arith.constant 0 : i32
    %c0_i32_0 = arith.constant 0 : i32
    %c0_i32_1 = arith.constant 0 : i32
    return %arg0, %arg1, %c0_i32, %c0_i32_0 : i32, i32, i32, i32
  }
}

</mosaic_0001>

<bundles_post_ra>
// kernel: squeeze.11
= control target key start
LH: loop header
LB: loop body
LE: loop exit
PB: predicated region body
PF: predicated region fallthrough
CT: control target
= control target key end

     0   :  { %s152_s0 = inlined_call_operand.vmem [shape: f32[8192], index: 0, kind: input, shape index: {}]   ;;  %s153_s1 = inlined_call_operand.vmem [shape: f32[16,512], index: 1, kind: output, shape index: {}]  }
   0x1   :  { %v2_v0 = vld [vmem:[%s152_s0] sm:$0xff]   ;;  %v49_v1 = vld [vmem:[%s152_s0 + $0x8] sm:$0xff]   ;;  %v52_v2 = vld [vmem:[%s152_s0 + $0x10] sm:$0xff]  }
   0x2   :  { %3 = vst [vmem:[%s153_s1] ss:$8 sm:$0xf] %v2_v0   ;;  %48 = vst [vmem:[%s153_s1 - $0x1f] ss:$8 sm:$0xf0] %v2_v0   ;;  %v55_v3 = vld [vmem:[%s152_s0 + $0x18] sm:$0xff]  }
   0x3   :  { %50 = vst [vmem:[%s153_s1 + $0x2] ss:$8 sm:$0xf] %v49_v1   ;;  %51 = vst [vmem:[%s153_s1 - $0x1d] ss:$8 sm:$0xf0] %v49_v1  }
   0x4   :  { %53 = vst [vmem:[%s153_s1 + $0x4] ss:$8 sm:$0xf] %v52_v2   ;;  %54 = vst [vmem:[%s153_s1 - $0x1b] ss:$8 sm:$0xf0] %v52_v2  }
   0x5   :  { %v58_v4 = vld [vmem:[%s152_s0 + $0x20] sm:$0xff]   ;;  %v61_v5 = vld [vmem:[%s152_s0 + $0x28] sm:$0xff]   ;;  %56 = vst [vmem:[%s153_s1 + $0x6] ss:$8 sm:$0xf] %v55_v3   ;;  %v64_v6 = vld [vmem:[%s152_s0 + $0x30] sm:$0xff]  }
   0x6   :  { %57 = vst [vmem:[%s153_s1 - $0x19] ss:$8 sm:$0xf0] %v55_v3   ;;  %59 = vst [vmem:[%s153_s1 + $0x20] ss:$8 sm:$0xf] %v58_v4  }
   0x7   :  { %60 = vst [vmem:[%s153_s1 + $0x1] ss:$8 sm:$0xf0] %v58_v4   ;;  %62 = vst [vmem:[%s153_s1 + $0x22] ss:$8 sm:$0xf] %v61_v5  }
   0x8   :  { %63 = vst [vmem:[%s153_s1 + $0x3] ss:$8 sm:$0xf0] %v61_v5   ;;  %v67_v7 = vld [vmem:[%s152_s0 + $0x38] sm:$0xff]  }
   0x9   :  { %65 = vst [vmem:[%s153_s1 + $0x24] ss:$8 sm:$0xf] %v64_v6   ;;  %66 = vst [vmem:[%s153_s1 + $0x5] ss:$8 sm:$0xf0] %v64_v6  }
   0xa   :  { %68 = vst [vmem:[%s153_s1 + $0x26] ss:$8 sm:$0xf] %v67_v7   ;;  %69 = vst [vmem:[%s153_s1 + $0x7] ss:$8 sm:$0xf0] %v67_v7  }

// kernel: generator_forward.8
= control target key start
LH: loop header
LB: loop body
LE: loop exit
PB: predicated region body
PF: predicated region fallthrough
CT: control target
= control target key end

     0   :  { %v80_v0 = vlaneseq  ;;  %s1064_s1 = inlined_call_operand.vmem [shape: f32[1,512], index: 1, kind: input, shape index: {}]   ;;  %s1065_s2 = inlined_call_operand.vmem [shape: f32[1,512], index: 2, kind: input, shape index: {}]   ;;  %s1066_s0 = inlined_call_operand.vmem [shape: f32[128,512], index: 0, kind: input, shape index: {}]   ;;  %s1067_s3 = inlined_call_operand.vmem [shape: bf16[128,512], index: 3, kind: output, shape index: {}]  }
   0x1   :  { %v78_v2 = vld [vmem:[%s1064_s1] sm:$0xf]  ;;  %v15_v5 = vld [vmem:[%s1066_s0 + $0x8] sm:$0xff]  ;;  %v16_v10 = vld [vmem:[%s1066_s0 + $0x10] sm:$0xff] }
   0x2   :  { %v81_v1 = vshrl.u32 %v80_v0, 7  ;;  %v164_v3 = vld [vmem:[%s1065_s2] sm:$0xf]  ;;  %v19_v12 = vld [vmem:[%s1066_s0 + $0x28] sm:$0xff]  ;;  %v17_v17 = vld [vmem:[%s1066_s0 + $0x18] sm:$0xff] }
   0x3   :  { %v14_v4 = vld [vmem:[%s1066_s0] sm:$0xff]  ;;  %v20_v18 = vld [vmem:[%s1066_s0 + $0x30] sm:$0xff]  ;;  %v21_v19 = vld [vmem:[%s1066_s0 + $0x38] sm:$0xff] }
   0x4   :  { %v82_v6 = vsub.s32 0, %v81_v1  ;;  %v86_v7 = vsub.s32 1, %v81_v1  ;;  %v90_v8 = vsub.s32 2, %v81_v1  ;;  %v94_v9 = vsub.s32 3, %v81_v1  ;;  %v18_v11 = vld [vmem:[%s1066_s0 + $0x20] sm:$0xff]  ;;  %v23_v41 = vld [vmem:[%s1066_s0 + $0x48] sm:$0xff] }
   0x5   :  { %v22_v40 = vld [vmem:[%s1066_s0 + $0x40] sm:$0xff]  ;;  %v24_v46 = vld [vmem:[%s1066_s0 + $0x50] sm:$0xff]  ;;  %v25_v47 = vld [vmem:[%s1066_s0 + $0x58] sm:$0xff] }
   0x6   :  { %v647_v13 = vrot.slane %v78_v2, %v82_v6  ;;  %v649_v14 = vrot.slane %v78_v2, %v86_v7  ;;  %v651_v15 = vrot.slane %v164_v3, %v82_v6  ;;  %v653_v16 = vrot.slane %v164_v3, %v86_v7  ;;  %v26_v52 = vld [vmem:[%s1066_s0 + $0x60] sm:$0xff]  ;;  %v27_v53 = vld [vmem:[%s1066_s0 + $0x68] sm:$0xff]  ;;  %v28_v58 = vld [vmem:[%s1066_s0 + $0x70] sm:$0xff] }
   0x7   :  { %v664_v20 = vrot.slane %v78_v2, %v90_v8  ;;  %v666_v21 = vrot.slane %v78_v2, %v94_v9  ;;  %v668_v22 = vrot.slane %v164_v3, %v90_v8  ;;  %v670_v23 = vrot.slane %v164_v3, %v94_v9  ;;  %v29_v59 = vld [vmem:[%s1066_s0 + $0x78] sm:$0xff]  ;;  %v30_v8 = vld [vmem:[%s1066_s0 + $0x80] sm:$0xff] }
   0x8   :  { %v100_v24 = vmul.f32 %v647_v13, %v14_v4  ;;  %v101_v25 = vmul.f32 %v649_v14, %v15_v5  ;;  %v104_v26 = vmul.f32 %v647_v13, %v18_v11  ;;  %v105_v27 = vmul.f32 %v649_v14, %v19_v12 }
   0x9   :  { %v102_v28 = vmul.f32 %v664_v20, %v16_v10  ;;  %v103_v29 = vmul.f32 %v666_v21, %v17_v17  ;;  %v106_v30 = vmul.f32 %v664_v20, %v20_v18  ;;  %v107_v31 = vmul.f32 %v666_v21, %v21_v19  ;;  %v31_v17 = vld [vmem:[%s1066_s0 + $0x88] sm:$0xff] }
   0xa   :  { %v186_v32 = vadd.f32 %v651_v15, %v100_v24  ;;  %v187_v33 = vadd.f32 %v653_v16, %v101_v25  ;;  %v190_v34 = vadd.f32 %v651_v15, %v104_v26  ;;  %v191_v35 = vadd.f32 %v653_v16, %v105_v27  ;;  %v32_v26 = vld [vmem:[%s1066_s0 + $0x90] sm:$0xff]  ;;  %v33_v27 = vld [vmem:[%s1066_s0 + $0x98] sm:$0xff] }
   0xb   :  { %v188_v36 = vadd.f32 %v668_v22, %v102_v28  ;;  %v189_v37 = vadd.f32 %v670_v23, %v103_v29  ;;  %v192_v38 = vadd.f32 %v668_v22, %v106_v30  ;;  %v193_v39 = vadd.f32 %v670_v23, %v107_v31 }
   0xc   :  { %v250_v42 = vmax.f32 %v186_v32, 0.0  ;;  %v251_v43 = vmax.f32 %v187_v33, 0.0  ;;  %v254_v44 = vmax.f32 %v190_v34, 0.0  ;;  %v255_v45 = vmax.f32 %v191_v35, 0.0  ;;  %v34_v32 = vld [vmem:[%s1066_s0 + $0xa0] sm:$0xff]  ;;  %v35_v33 = vld [vmem:[%s1066_s0 + $0xa8] sm:$0xff] }
   0xd   :  { %v252_v48 = vmax.f32 %v188_v36, 0.0  ;;  %v253_v49 = vmax.f32 %v189_v37, 0.0  ;;  %v256_v50 = vmax.f32 %v192_v38, 0.0  ;;  %v257_v51 = vmax.f32 %v193_v39, 0.0  ;;  %v36_v38 = vld [vmem:[%s1066_s0 + $0xb0] sm:$0xff] }
   0xe   :  { %v574_v54 = vpack.c.bf16 %v251_v43, %v250_v42  ;;  %v576_v55 = vpack.c.bf16 %v255_v45, %v254_v44  ;;  %v108_v56 = vmul.f32 %v647_v13, %v22_v40  ;;  %v109_v57 = vmul.f32 %v649_v14, %v23_v41  ;;  %v37_v43 = vld [vmem:[%s1066_s0 + $0xb8] sm:$0xff] }
   0xf   :  { %v575_v60 = vpack.c.bf16 %v253_v49, %v252_v48  ;;  %v577_v61 = vpack.c.bf16 %v257_v51, %v256_v50  ;;  %v110_v62 = vmul.f32 %v664_v20, %v24_v46  ;;  %v111_v63 = vmul.f32 %v666_v21, %v25_v47  ;;  %v38_v48 = vld [vmem:[%s1066_s0 + $0xc0] sm:$0xff] }
  0x10   :  { %506 = vst [vmem:[%s1067_s3] sm:$0xff] %v574_v54  ;;  %508 = vst [vmem:[%s1067_s3 + $0x10] sm:$0xff] %v576_v55  ;;  %v194_v0 = vadd.f32 %v651_v15, %v108_v56  ;;  %v195_v1 = vadd.f32 %v653_v16, %v109_v57  ;;  %v112_v2 = vmul.f32 %v647_v13, %v26_v52  ;;  %v39_v57 = vld [vmem:[%s1066_s0 + $0xc8] sm:$0xff] }
  0x11   :  { %v113_v3 = vmul.f32 %v649_v14, %v27_v53  ;;  %507 = vst [vmem:[%s1067_s3 + $0x8] sm:$0xff] %v575_v60  ;;  %509 = vst [vmem:[%s1067_s3 + $0x18] sm:$0xff] %v577_v61  ;;  %v196_v4 = vadd.f32 %v668_v22, %v110_v62  ;;  %v197_v5 = vadd.f32 %v670_v23, %v111_v63  ;;  %v40_v62 = vld [vmem:[%s1066_s0 + $0xd0] sm:$0xff]  ;;  %v41_v63 = vld [vmem:[%s1066_s0 + $0xd8] sm:$0xff] }
  0x12   :  { %v114_v6 = vmul.f32 %v664_v20, %v28_v58  ;;  %v115_v7 = vmul.f32 %v666_v21, %v29_v59  ;;  %v258_v9 = vmax.f32 %v194_v0, 0.0  ;;  %v259_v10 = vmax.f32 %v195_v1, 0.0 }
  0x13   :  { %v198_v11 = vadd.f32 %v651_v15, %v112_v2  ;;  %v199_v12 = vadd.f32 %v653_v16, %v113_v3  ;;  %v260_v18 = vmax.f32 %v196_v4, 0.0  ;;  %v261_v19 = vmax.f32 %v197_v5, 0.0  ;;  %v42_v4 = vld [vmem:[%s1066_s0 + $0xe0] sm:$0xff]  ;;  %v43_v5 = vld [vmem:[%s1066_s0 + $0xe8] sm:$0xff] }
  0x14   :  { %v200_v24 = vadd.f32 %v668_v22, %v114_v6  ;;  %v201_v25 = vadd.f32 %v670_v23, %v115_v7  ;;  %v578_v28 = vpack.c.bf16 %v259_v10, %v258_v9  ;;  %v116_v31 = vmul.f32 %v647_v13, %v30_v8  ;;  %v44_v10 = vld [vmem:[%s1066_s0 + $0xf0] sm:$0xff] }
  0x15   :  { %v262_v29 = vmax.f32 %v198_v11, 0.0  ;;  %v263_v30 = vmax.f32 %v199_v12, 0.0  ;;  %v579_v34 = vpack.c.bf16 %v261_v19, %v260_v18  ;;  %v117_v37 = vmul.f32 %v649_v14, %v31_v17  ;;  %v45_v19 = vld [vmem:[%s1066_s0 + $0xf8] sm:$0xff] }
  0x16   :  { %v264_v35 = vmax.f32 %v200_v24, 0.0  ;;  %v265_v36 = vmax.f32 %v201_v25, 0.0  ;;  %510 = vst [vmem:[%s1067_s3 + $0x20] sm:$0xff] %v578_v28  ;;  %v202_v40 = vadd.f32 %v651_v15, %v116_v31  ;;  %v118_v41 = vmul.f32 %v664_v20, %v32_v26  ;;  %v46_v28 = vld [vmem:[%s1066_s0 + $0x100] sm:$0xff] }
  0x17   :  { %v580_v39 = vpack.c.bf16 %v263_v30, %v262_v29  ;;  %v119_v42 = vmul.f32 %v666_v21, %v33_v27  ;;  %511 = vst [vmem:[%s1067_s3 + $0x28] sm:$0xff] %v579_v34  ;;  %v203_v45 = vadd.f32 %v653_v16, %v117_v37  ;;  %v120_v46 = vmul.f32 %v647_v13, %v34_v32  ;;  %v47_v37 = vld [vmem:[%s1066_s0 + $0x108] sm:$0xff] }
  0x18   :  { %v581_v44 = vpack.c.bf16 %v265_v36, %v264_v35  ;;  %v121_v47 = vmul.f32 %v649_v14, %v35_v33  ;;  %v266_v49 = vmax.f32 %v202_v40, 0.0  ;;  %v204_v50 = vadd.f32 %v668_v22, %v118_v41 }
  0x19   :  { %512 = vst [vmem:[%s1067_s3 + $0x30] sm:$0xff] %v580_v39  ;;  %v205_v51 = vadd.f32 %v670_v23, %v119_v42  ;;  %v122_v52 = vmul.f32 %v664_v20, %v36_v38  ;;  %v267_v53 = vmax.f32 %v203_v45, 0.0  ;;  %v206_v54 = vadd.f32 %v651_v15, %v120_v46  ;;  %v48_v42 = vld [vmem:[%s1066_s0 + $0x110] sm:$0xff] }
  0x1a   :  { %513 = vst [vmem:[%s1067_s3 + $0x38] sm:$0xff] %v581_v44  ;;  %v207_v55 = vadd.f32 %v653_v16, %v121_v47  ;;  %v123_v56 = vmul.f32 %v666_v21, %v37_v43  ;;  %v268_v58 = vmax.f32 %v204_v50, 0.0  ;;  %v124_v61 = vmul.f32 %v647_v13, %v38_v48  ;;  %v49_v43 = vld [vmem:[%s1066_s0 + $0x118] sm:$0xff]  ;;  %v50_v48 = vld [vmem:[%s1066_s0 + $0x120] sm:$0xff] }
  0x1b   :  { %v269_v59 = vmax.f32 %v205_v51, 0.0  ;;  %v208_v60 = vadd.f32 %v668_v22, %v122_v52  ;;  %v582_v0 = vpack.c.bf16 %v267_v53, %v266_v49  ;;  %v270_v1 = vmax.f32 %v206_v54, 0.0  ;;  %v51_v49 = vld [vmem:[%s1066_s0 + $0x128] sm:$0xff]  ;;  %v52_v54 = vld [vmem:[%s1066_s0 + $0x130] sm:$0xff] }
  0x1c   :  { %v271_v2 = vmax.f32 %v207_v55, 0.0  ;;  %v209_v3 = vadd.f32 %v670_v23, %v123_v56  ;;  %v125_v8 = vmul.f32 %v649_v14, %v39_v57  ;;  %v210_v9 = vadd.f32 %v651_v15, %v124_v61 }
  0x1d   :  { %v583_v6 = vpack.c.bf16 %v269_v59, %v268_v58  ;;  %v272_v7 = vmax.f32 %v208_v60, 0.0  ;;  %514 = vst [vmem:[%s1067_s3 + $0x40] sm:$0xff] %v582_v0  ;;  %v126_v17 = vmul.f32 %v664_v20, %v40_v62  ;;  %v127_v18 = vmul.f32 %v666_v21, %v41_v63  ;;  %v53_v59 = vld [vmem:[%s1066_s0 + $0x138] sm:$0xff]  ;;  %v54_v0 = vld [vmem:[%s1066_s0 + $0x140] sm:$0xff] }
  0x1e   :  { %v584_v11 = vpack.c.bf16 %v271_v2, %v270_v1  ;;  %v273_v12 = vmax.f32 %v209_v3, 0.0  ;;  %v211_v24 = vadd.f32 %v653_v16, %v125_v8  ;;  %v274_v25 = vmax.f32 %v210_v9, 0.0  ;;  %v55_v9 = vld [vmem:[%s1066_s0 + $0x148] sm:$0xff] }
  0x1f   :  { %515 = vst [vmem:[%s1067_s3 + $0x48] sm:$0xff] %v583_v6  ;;  %v128_v26 = vmul.f32 %v647_v13, %v42_v4  ;;  %v129_v27 = vmul.f32 %v649_v14, %v43_v5  ;;  %v212_v30 = vadd.f32 %v668_v22, %v126_v17  ;;  %v213_v31 = vadd.f32 %v670_v23, %v127_v18  ;;  %v56_v18 = vld [vmem:[%s1066_s0 + $0x150] sm:$0xff] }
  0x20   :  { %516 = vst [vmem:[%s1067_s3 + $0x50] sm:$0xff] %v584_v11  ;;  %v585_v29 = vpack.c.bf16 %v273_v12, %v272_v7  ;;  %v130_v32 = vmul.f32 %v664_v20, %v44_v10  ;;  %v275_v33 = vmax.f32 %v211_v24, 0.0  ;;  %v131_v36 = vmul.f32 %v666_v21, %v45_v19  ;;  %v57_v19 = vld [vmem:[%s1066_s0 + $0x158] sm:$0xff] }
  0x21   :  { %v214_v34 = vadd.f32 %v651_v15, %v128_v26  ;;  %v215_v35 = vadd.f32 %v653_v16, %v129_v27  ;;  %v276_v38 = vmax.f32 %v212_v30, 0.0  ;;  %v277_v39 = vmax.f32 %v213_v31, 0.0 }
  0x22   :  { %517 = vst [vmem:[%s1067_s3 + $0x58] sm:$0xff] %v585_v29  ;;  %v216_v40 = vadd.f32 %v668_v22, %v130_v32  ;;  %v132_v41 = vmul.f32 %v647_v13, %v46_v28  ;;  %v586_v44 = vpack.c.bf16 %v275_v33, %v274_v25  ;;  %v217_v47 = vadd.f32 %v670_v23, %v131_v36  ;;  %v58_v28 = vld [vmem:[%s1066_s0 + $0x160] sm:$0xff]  ;;  %v59_v29 = vld [vmem:[%s1066_s0 + $0x168] sm:$0xff] }
  0x23   :  { %v278_v45 = vmax.f32 %v214_v34, 0.0  ;;  %v279_v46 = vmax.f32 %v215_v35, 0.0  ;;  %v587_v50 = vpack.c.bf16 %v277_v39, %v276_v38  ;;  %v133_v52 = vmul.f32 %v649_v14, %v47_v37  ;;  %v60_v34 = vld [vmem:[%s1066_s0 + $0x170] sm:$0xff]  ;;  %v61_v39 = vld [vmem:[%s1066_s0 + $0x178] sm:$0xff] }
  0x24   :  { %v280_v51 = vmax.f32 %v216_v40, 0.0  ;;  %v218_v53 = vadd.f32 %v651_v15, %v132_v41  ;;  %518 = vst [vmem:[%s1067_s3 + $0x60] sm:$0xff] %v586_v44  ;;  %v281_v56 = vmax.f32 %v217_v47, 0.0  ;;  %v134_v57 = vmul.f32 %v664_v20, %v48_v42  ;;  %v62_v44 = vld [vmem:[%s1066_s0 + $0x180] sm:$0xff] }
  0x25   :  { %v588_v55 = vpack.c.bf16 %v279_v46, %v278_v45  ;;  %v135_v58 = vmul.f32 %v666_v21, %v49_v43  ;;  %519 = vst [vmem:[%s1067_s3 + $0x68] sm:$0xff] %v587_v50  ;;  %v219_v60 = vadd.f32 %v653_v16, %v133_v52  ;;  %v136_v62 = vmul.f32 %v647_v13, %v50_v48 }
  0x26   :  { %v282_v61 = vmax.f32 %v218_v53, 0.0  ;;  %v137_v63 = vmul.f32 %v649_v14, %v51_v49  ;;  %v589_v1 = vpack.c.bf16 %v281_v56, %v280_v51  ;;  %v220_v2 = vadd.f32 %v668_v22, %v134_v57  ;;  %v63_v53 = vld [vmem:[%s1066_s0 + $0x188] sm:$0xff] }
  0x27   :  { %520 = vst [vmem:[%s1067_s3 + $0x70] sm:$0xff] %v588_v55  ;;  %v221_v3 = vadd.f32 %v670_v23, %v135_v58  ;;  %v138_v4 = vmul.f32 %v664_v20, %v52_v54  ;;  %v283_v5 = vmax.f32 %v219_v60, 0.0  ;;  %v222_v6 = vadd.f32 %v651_v15, %v136_v62  ;;  %v64_v58 = vld [vmem:[%s1066_s0 + $0x190] sm:$0xff] }
  0x28   :  { %v223_v7 = vadd.f32 %v653_v16, %v137_v63  ;;  %v139_v8 = vmul.f32 %v666_v21, %v53_v59  ;;  %521 = vst [vmem:[%s1067_s3 + $0x78] sm:$0xff] %v589_v1  ;;  %v284_v10 = vmax.f32 %v220_v2, 0.0  ;;  %v140_v17 = vmul.f32 %v647_v13, %v54_v0  ;;  %v65_v59 = vld [vmem:[%s1066_s0 + $0x198] sm:$0xff]  ;;  %v66_v0 = vld [vmem:[%s1066_s0 + $0x1a0] sm:$0xff]  ;;  %v67_v1 = vld [vmem:[%s1066_s0 + $0x1a8] sm:$0xff] }
  0x29   :  { %v285_v11 = vmax.f32 %v221_v3, 0.0  ;;  %v224_v12 = vadd.f32 %v668_v22, %v138_v4  ;;  %v590_v24 = vpack.c.bf16 %v283_v5, %v282_v61  ;;  %v286_v25 = vmax.f32 %v222_v6, 0.0  ;;  %v68_v6 = vld [vmem:[%s1066_s0 + $0x1b0] sm:$0xff] }
  0x2a   :  { %v287_v26 = vmax.f32 %v223_v7, 0.0  ;;  %v225_v27 = vadd.f32 %v670_v23, %v139_v8  ;;  %v141_v32 = vmul.f32 %v649_v14, %v55_v9  ;;  %v226_v33 = vadd.f32 %v651_v15, %v140_v17 }
  0x2b   :  { %v591_v30 = vpack.c.bf16 %v285_v11, %v284_v10  ;;  %v288_v31 = vmax.f32 %v224_v12, 0.0  ;;  %522 = vst [vmem:[%s1067_s3 + $0x80] sm:$0xff] %v590_v24  ;;  %v142_v37 = vmul.f32 %v664_v20, %v56_v18  ;;  %v143_v38 = vmul.f32 %v666_v21, %v57_v19  ;;  %v69_v11 = vld [vmem:[%s1066_s0 + $0x1b8] sm:$0xff]  ;;  %v70_v24 = vld [vmem:[%s1066_s0 + $0x1c0] sm:$0xff] }
  0x2c   :  { %v592_v35 = vpack.c.bf16 %v287_v26, %v286_v25  ;;  %v289_v36 = vmax.f32 %v225_v27, 0.0  ;;  %v227_v40 = vadd.f32 %v653_v16, %v141_v32  ;;  %v290_v41 = vmax.f32 %v226_v33, 0.0  ;;  %v71_v33 = vld [vmem:[%s1066_s0 + $0x1c8] sm:$0xff] }
  0x2d   :  { %523 = vst [vmem:[%s1067_s3 + $0x88] sm:$0xff] %v591_v30  ;;  %v144_v42 = vmul.f32 %v647_v13, %v58_v28  ;;  %v145_v43 = vmul.f32 %v649_v14, %v59_v29  ;;  %v228_v46 = vadd.f32 %v668_v22, %v142_v37  ;;  %v229_v47 = vadd.f32 %v670_v23, %v143_v38  ;;  %v72_v38 = vld [vmem:[%s1066_s0 + $0x1d0] sm:$0xff] }
  0x2e   :  { %524 = vst [vmem:[%s1067_s3 + $0x90] sm:$0xff] %v592_v35  ;;  %v593_v45 = vpack.c.bf16 %v289_v36, %v288_v31  ;;  %v146_v48 = vmul.f32 %v664_v20, %v60_v34  ;;  %v291_v49 = vmax.f32 %v227_v40, 0.0  ;;  %v147_v52 = vmul.f32 %v666_v21, %v61_v39  ;;  %v73_v39 = vld [vmem:[%s1066_s0 + $0x1d8] sm:$0xff] }
  0x2f   :  { %v230_v50 = vadd.f32 %v651_v15, %v144_v42  ;;  %v231_v51 = vadd.f32 %v653_v16, %v145_v43  ;;  %v292_v54 = vmax.f32 %v228_v46, 0.0  ;;  %v293_v55 = vmax.f32 %v229_v47, 0.0 }
  0x30   :  { %525 = vst [vmem:[%s1067_s3 + $0x98] sm:$0xff] %v593_v45  ;;  %v232_v56 = vadd.f32 %v668_v22, %v146_v48  ;;  %v148_v57 = vmul.f32 %v647_v13, %v62_v44  ;;  %v594_v60 = vpack.c.bf16 %v291_v49, %v290_v41  ;;  %v233_v63 = vadd.f32 %v670_v23, %v147_v52  ;;  %v74_v44 = vld [vmem:[%s1066_s0 + $0x1e0] sm:$0xff]  ;;  %v75_v45 = vld [vmem:[%s1066_s0 + $0x1e8] sm:$0xff] }
  0x31   :  { %v294_v61 = vmax.f32 %v230_v50, 0.0  ;;  %v295_v62 = vmax.f32 %v231_v51, 0.0  ;;  %v595_v2 = vpack.c.bf16 %v293_v55, %v292_v54  ;;  %v149_v4 = vmul.f32 %v649_v14, %v63_v53  ;;  %v76_v50 = vld [vmem:[%s1066_s0 + $0x1f0] sm:$0xff]  ;;  %v77_v55 = vld [vmem:[%s1066_s0 + $0x1f8] sm:$0xff] }
  0x32   :  { %v296_v3 = vmax.f32 %v232_v56, 0.0  ;;  %v234_v5 = vadd.f32 %v651_v15, %v148_v57  ;;  %526 = vst [vmem:[%s1067_s3 + $0xa0] sm:$0xff] %v594_v60  ;;  %v297_v8 = vmax.f32 %v233_v63, 0.0  ;;  %v150_v9 = vmul.f32 %v664_v20, %v64_v58 }
  0x33   :  { %v596_v7 = vpack.c.bf16 %v295_v62, %v294_v61  ;;  %v151_v10 = vmul.f32 %v666_v21, %v65_v59  ;;  %527 = vst [vmem:[%s1067_s3 + $0xa8] sm:$0xff] %v595_v2  ;;  %v235_v12 = vadd.f32 %v653_v16, %v149_v4  ;;  %v152_v18 = vmul.f32 %v647_v13, %v66_v0 }
  0x34   :  { %v298_v17 = vmax.f32 %v234_v5, 0.0  ;;  %v153_v19 = vmul.f32 %v649_v14, %v67_v1  ;;  %v597_v25 = vpack.c.bf16 %v297_v8, %v296_v3  ;;  %v236_v26 = vadd.f32 %v668_v22, %v150_v9 }
  0x35   :  { %528 = vst [vmem:[%s1067_s3 + $0xb0] sm:$0xff] %v596_v7  ;;  %v237_v27 = vadd.f32 %v670_v23, %v151_v10  ;;  %v154_v28 = vmul.f32 %v664_v20, %v68_v6  ;;  %v299_v29 = vmax.f32 %v235_v12, 0.0  ;;  %v238_v30 = vadd.f32 %v651_v15, %v152_v18 }
  0x36   :  { %v239_v31 = vadd.f32 %v653_v16, %v153_v19  ;;  %v155_v32 = vmul.f32 %v666_v21, %v69_v11  ;;  %529 = vst [vmem:[%s1067_s3 + $0xb8] sm:$0xff] %v597_v25  ;;  %v300_v34 = vmax.f32 %v236_v26, 0.0  ;;  %v156_v37 = vmul.f32 %v647_v13, %v70_v24 }
  0x37   :  { %v301_v35 = vmax.f32 %v237_v27, 0.0  ;;  %v240_v36 = vadd.f32 %v668_v22, %v154_v28  ;;  %v598_v40 = vpack.c.bf16 %v299_v29, %v298_v17  ;;  %v302_v41 = vmax.f32 %v238_v30, 0.0 }
  0x38   :  { %v303_v42 = vmax.f32 %v239_v31, 0.0  ;;  %v241_v43 = vadd.f32 %v670_v23, %v155_v32  ;;  %v157_v48 = vmul.f32 %v649_v14, %v71_v33  ;;  %v242_v49 = vadd.f32 %v651_v15, %v156_v37 }
  0x39   :  { %v599_v46 = vpack.c.bf16 %v301_v35, %v300_v34  ;;  %v304_v47 = vmax.f32 %v240_v36, 0.0  ;;  %530 = vst [vmem:[%s1067_s3 + $0xc0] sm:$0xff] %v598_v40  ;;  %v158_v53 = vmul.f32 %v664_v20, %v72_v38  ;;  %v159_v54 = vmul.f32 %v666_v21, %v73_v39 }
  0x3a   :  { %v600_v51 = vpack.c.bf16 %v303_v42, %v302_v41  ;;  %v305_v52 = vmax.f32 %v241_v43, 0.0  ;;  %v243_v56 = vadd.f32 %v653_v16, %v157_v48  ;;  %v306_v57 = vmax.f32 %v242_v49, 0.0 }
  0x3b   :  { %531 = vst [vmem:[%s1067_s3 + $0xc8] sm:$0xff] %v599_v46  ;;  %v160_v58 = vmul.f32 %v647_v13, %v74_v44  ;;  %v161_v59 = vmul.f32 %v649_v14, %v75_v45  ;;  %v244_v61 = vadd.f32 %v668_v22, %v158_v53  ;;  %v245_v62 = vadd.f32 %v670_v23, %v159_v54 }
  0x3c   :  { %532 = vst [vmem:[%s1067_s3 + $0xd0] sm:$0xff] %v600_v51  ;;  %v601_v60 = vpack.c.bf16 %v305_v52, %v304_v47  ;;  %v162_v63 = vmul.f32 %v664_v20, %v76_v50  ;;  %v307_v0 = vmax.f32 %v243_v56, 0.0  ;;  %v163_v13 = vmul.f32 %v666_v21, %v77_v55 }
  0x3d   :  { %v246_v1 = vadd.f32 %v651_v15, %v160_v58  ;;  %v247_v2 = vadd.f32 %v653_v16, %v161_v59  ;;  %v308_v14 = vmax.f32 %v244_v61, 0.0  ;;  %v309_v3 = vmax.f32 %v245_v62, 0.0 }
  0x3e   :  { %533 = vst [vmem:[%s1067_s3 + $0xd8] sm:$0xff] %v601_v60  ;;  %v248_v4 = vadd.f32 %v668_v22, %v162_v63  ;;  %v602_v5 = vpack.c.bf16 %v307_v0, %v306_v57  ;;  %v249_v20 = vadd.f32 %v670_v23, %v163_v13 }
  0x3f   :  { %v310_v6 = vmax.f32 %v246_v1, 0.0  ;;  %v311_v7 = vmax.f32 %v247_v2, 0.0  ;;  %v603_v8 = vpack.c.bf16 %v309_v3, %v308_v14 }
  0x40   :  { %v312_v9 = vmax.f32 %v248_v4, 0.0  ;;  %534 = vst [vmem:[%s1067_s3 + $0xe0] sm:$0xff] %v602_v5  ;;  %v313_v16 = vmax.f32 %v249_v20, 0.0 }
  0x41   :  { %v604_v15 = vpack.c.bf16 %v311_v7, %v310_v6  ;;  %535 = vst [vmem:[%s1067_s3 + $0xe8] sm:$0xff] %v603_v8 }
  0x42   :  { %v605_v21 = vpack.c.bf16 %v313_v16, %v312_v9 }
  0x43   :  { %536 = vst [vmem:[%s1067_s3 + $0xf0] sm:$0xff] %v604_v15 }
  0x44   :  { %537 = vst [vmem:[%s1067_s3 + $0xf8] sm:$0xff] %v605_v21 }

// kernel: generator_forward.7
= control target key start
LH: loop header
LB: loop body
LE: loop exit
PB: predicated region body
PF: predicated region fallthrough
CT: control target
= control target key end

     0   :  { %10 = vsyncpa [#allocation3], 0  ;;  %s6261_s15 = smov [#allocation2]   ;;  %s7750_s0 = inlined_call_operand.vmem [shape: bf16[1,8,128], index: 0, kind: input, shape index: {}]   ;;  %s7751_s1 = inlined_call_operand.hbm [shape: bf16[1,128,8192], index: 1, kind: input, shape index: {}]   ;;  %s7752_s2 = inlined_call_operand.vmem [shape: f32[1,8,8192], index: 2, kind: output, shape index: {0}]   ;;  %s7753_s3 = inlined_call_operand.vmem [shape: f32[1,1,8,8192], index: 3, kind: output, shape index: {1}]   ;;  %s7754_s4 = inlined_call_operand.vmem [shape: f32[1,1,8,8192], index: 4, kind: output, shape index: {2}]  }
   0x1   :  { %s18_s16 = sshll.u32 %s6261_s15, 4  ;;  %s6237_s19 = scalar_lea.hbm %s7751_s1, 65536  ;;  %s19_s16 = int_to_ptr.vmem [resolvable:$true] %s18_s16 }
   0x2   :  { %p6238_p0 = scmp.ne.s32.totalorder %s7751_s1, %s6237_s19  ;;  %p6241_p1 = scmp.lt.u32.totalorder %s6237_s19, %s7751_s1 }
   0x4   :  { %p6243_p2 = pnand %p6241_p1, %p6238_p0 }
   0x6   :  { %6246 = shalt.err (!%p6243_p2)
}
   0x7   :  { %s6247_s24 = scalar_lea.vmem %s19_s16, 65536  ;;  %p6252_p4 = scmp.lt.s32.totalorder %s19_s16, %s19_s16 }
   0x8   :  { %p6248_p3 = scmp.ne.s32.totalorder %s19_s16, %s6247_s24  ;;  %p6253_p5 = scmp.lt.s32.totalorder %s6247_s24, %s6247_s24 }
   0xa   :  { %p6254_p6 = por %p6253_p5, %p6252_p4 }
   0xc   :  { %p6255_p7 = pnand %p6254_p6, %p6248_p3 }
   0xe   :  { %6258 = shalt.err (!%p6255_p7)
}
   0xf   :  { %s6262_s25 = smov 4096   ;;  %s6263_s26 = smov 256  }
  0x10   :  { %24 = dma.hbm_to_vmem [thread:$0]  %s7751_s1, 65536, %s19_s16, [#allocation3], %s6262_s25, %s6262_s25, %s6263_s26  }
  0x11   :  { %6259 = dma.done.wait [#allocation3], 65536  }
  0x12   :  { %6260 = vsyncadd [#allocation3], 4294901760  ;;  %v6264_v0 = vmov 0   ;;  %v30_v1 = vld [vmem:[#allocation2] sm:$0xff]  ;;  %v31_v3 = vld [vmem:[#allocation2 + $0x8] sm:$0xff] }
  0x13   :  { %3134 = vmatprep.mubr.bf16.mxu0 %v6264_v0  ;;  %3175 = vmatprep.mubr.bf16.mxu1 %v6264_v0  ;;  %v62_v2 = vld [vmem:[#allocation2 + $0x100] sm:$0xff]  ;;  %v63_v5 = vld [vmem:[#allocation2 + $0x108] sm:$0xff]  ;;  %v32_v63 = vld [vmem:[#allocation2 + $0x10] sm:$0xff] }
  0x14   :  { %v5719_v4 = vcombine.high %v30_v1, %v62_v2  ;;  %v5718_v6 = vcombine.low %v30_v1, %v62_v2  ;;  %v94_v7 = vld [vmem:[#allocation2 + $0x200] sm:$0xff]  ;;  %v5721_v9 = vcombine.high %v31_v3, %v63_v5  ;;  %v5720_v10 = vcombine.low %v31_v3, %v63_v5  ;;  %v95_v12 = vld [vmem:[#allocation2 + $0x208] sm:$0xff]  ;;  %v64_v1 = vld [vmem:[#allocation2 + $0x110] sm:$0xff] }
  0x15   :  { %v126_v8 = vld [vmem:[#allocation2 + $0x300] sm:$0xff]  ;;  %v127_v13 = vld [vmem:[#allocation2 + $0x308] sm:$0xff]  ;;  %v33_v2 = vld [vmem:[#allocation2 + $0x18] sm:$0xff] }
  0x16   :  { %v5783_v11 = vcombine.high %v94_v7, %v126_v8  ;;  %v158_v14 = vld [vmem:[#allocation2 + $0x400] sm:$0xff]  ;;  %3102 = vmatprep.subr.bf16.mxu0 %v5719_v4  ;;  %v5785_v15 = vcombine.high %v95_v12, %v127_v13  ;;  %v159_v17 = vld [vmem:[#allocation2 + $0x408] sm:$0xff]  ;;  %3143 = vmatprep.subr.bf16.mxu1 %v5721_v9  ;;  %v5782_v19 = vcombine.low %v94_v7, %v126_v8  ;;  %v65_v3 = vld [vmem:[#allocation2 + $0x118] sm:$0xff] }
  0x17   :  { %v190_v16 = vld [vmem:[#allocation2 + $0x500] sm:$0xff]  ;;  %v191_v18 = vld [vmem:[#allocation2 + $0x508] sm:$0xff]  ;;  %3103 = vmatpush1.bf16.msra.mxu0 %v5718_v6  ;;  %3144 = vmatpush1.bf16.msra.mxu1 %v5720_v10  ;;  %v5784_v20 = vcombine.low %v95_v12, %v127_v13  ;;  %v5723_v6 = vcombine.high %v32_v63, %v64_v1  ;;  %v5725_v7 = vcombine.high %v33_v2, %v65_v3  ;;  %v96_v8 = vld [vmem:[#allocation2 + $0x210] sm:$0xff] }
  0x18   :  { %3104 = vmatprep.subr.bf16.mxu0 %v5783_v11  ;;  %v5847_v21 = vcombine.high %v158_v14, %v190_v16  ;;  %3145 = vmatprep.subr.bf16.mxu1 %v5785_v15  ;;  %v5849_v22 = vcombine.high %v159_v17, %v191_v18  ;;  %v222_v23 = vld [vmem:[#allocation2 + $0x600] sm:$0xff]  ;;  %v223_v25 = vld [vmem:[#allocation2 + $0x608] sm:$0xff]  ;;  %v5846_v27 = vcombine.low %v158_v14, %v190_v16  ;;  %v128_v9 = vld [vmem:[#allocation2 + $0x310] sm:$0xff] }
  0x19   :  { %v254_v24 = vld [vmem:[#allocation2 + $0x700] sm:$0xff]  ;;  %v255_v26 = vld [vmem:[#allocation2 + $0x708] sm:$0xff]  ;;  %v5848_v28 = vcombine.low %v159_v17, %v191_v18  ;;  %v97_v10 = vld [vmem:[#allocation2 + $0x218] sm:$0xff]  ;;  %v5722_v13 = vcombine.low %v32_v63, %v64_v1  ;;  %v5724_v14 = vcombine.low %v33_v2, %v65_v3  ;;  %v5787_v15 = vcombine.high %v96_v8, %v128_v9 }
  0x1a   :  { %v5911_v29 = vcombine.high %v222_v23, %v254_v24  ;;  %v5913_v30 = vcombine.high %v223_v25, %v255_v26  ;;  %v286_v31 = vld [vmem:[#allocation2 + $0x800] sm:$0xff]  ;;  %v287_v33 = vld [vmem:[#allocation2 + $0x808] sm:$0xff]  ;;  %v5910_v35 = vcombine.low %v222_v23, %v254_v24  ;;  %v5912_v36 = vcombine.low %v223_v25, %v255_v26  ;;  %v129_v11 = vld [vmem:[#allocation2 + $0x318] sm:$0xff] }
  0x1b   :  { %3105 = vmatpush1.bf16.msra.mxu0 %v5782_v19  ;;  %3146 = vmatpush1.bf16.msra.mxu1 %v5784_v20  ;;  %v318_v32 = vld [vmem:[#allocation2 + $0x900] sm:$0xff]  ;;  %v319_v34 = vld [vmem:[#allocation2 + $0x908] sm:$0xff]  ;;  %v5789_v16 = vcombine.high %v97_v10, %v129_v11  ;;  %v160_v17 = vld [vmem:[#allocation2 + $0x410] sm:$0xff] }
  0x1c   :  { %3106 = vmatprep.subr.bf16.mxu0 %v5847_v21  ;;  %3147 = vmatprep.subr.bf16.mxu1 %v5849_v22  ;;  %v5975_v37 = vcombine.high %v286_v31, %v318_v32  ;;  %v5977_v38 = vcombine.high %v287_v33, %v319_v34  ;;  %v350_v39 = vld [vmem:[#allocation2 + $0xa00] sm:$0xff]  ;;  %v351_v41 = vld [vmem:[#allocation2 + $0xa08] sm:$0xff]  ;;  %v5974_v43 = vcombine.low %v286_v31, %v318_v32  ;;  %v192_v18 = vld [vmem:[#allocation2 + $0x510] sm:$0xff] }
  0x1d   :  { %v382_v40 = vld [vmem:[#allocation2 + $0xb00] sm:$0xff]  ;;  %v383_v42 = vld [vmem:[#allocation2 + $0xb08] sm:$0xff]  ;;  %v5976_v44 = vcombine.low %v287_v33, %v319_v34  ;;  %v161_v19 = vld [vmem:[#allocation2 + $0x418] sm:$0xff]  ;;  %v5786_v21 = vcombine.low %v96_v8, %v128_v9  ;;  %v5788_v22 = vcombine.low %v97_v10, %v129_v11  ;;  %v5851_v23 = vcombine.high %v160_v17, %v192_v18 }
  0x1e   :  { %v6039_v45 = vcombine.high %v350_v39, %v382_v40  ;;  %v6041_v46 = vcombine.high %v351_v41, %v383_v42  ;;  %v414_v47 = vld [vmem:[#allocation2 + $0xc00] sm:$0xff]  ;;  %v415_v49 = vld [vmem:[#allocation2 + $0xc08] sm:$0xff]  ;;  %v6038_v51 = vcombine.low %v350_v39, %v382_v40  ;;  %v6040_v52 = vcombine.low %v351_v41, %v383_v42  ;;  %v193_v20 = vld [vmem:[#allocation2 + $0x518] sm:$0xff] }
  0x1f   :  { %3107 = vmatpush1.bf16.msra.mxu0 %v5846_v27  ;;  %3148 = vmatpush1.bf16.msra.mxu1 %v5848_v28  ;;  %v446_v48 = vld [vmem:[#allocation2 + $0xd00] sm:$0xff]  ;;  %v447_v50 = vld [vmem:[#allocation2 + $0xd08] sm:$0xff]  ;;  %v5853_v24 = vcombine.high %v161_v19, %v193_v20  ;;  %v224_v25 = vld [vmem:[#allocation2 + $0x610] sm:$0xff] }
  0x20   :  { %3108 = vmatprep.subr.bf16.mxu0 %v5911_v29  ;;  %3149 = vmatprep.subr.bf16.mxu1 %v5913_v30  ;;  %v6103_v53 = vcombine.high %v414_v47, %v446_v48  ;;  %v6105_v54 = vcombine.high %v415_v49, %v447_v50  ;;  %v478_v55 = vld [vmem:[#allocation2 + $0xe00] sm:$0xff]  ;;  %v479_v57 = vld [vmem:[#allocation2 + $0xe08] sm:$0xff]  ;;  %v6102_v59 = vcombine.low %v414_v47, %v446_v48  ;;  %v256_v26 = vld [vmem:[#allocation2 + $0x710] sm:$0xff] }
  0x21   :  { %v510_v56 = vld [vmem:[#allocation2 + $0xf00] sm:$0xff]  ;;  %v511_v58 = vld [vmem:[#allocation2 + $0xf08] sm:$0xff]  ;;  %v6104_v60 = vcombine.low %v415_v49, %v447_v50  ;;  %v225_v27 = vld [vmem:[#allocation2 + $0x618] sm:$0xff]  ;;  %v5850_v29 = vcombine.low %v160_v17, %v192_v18  ;;  %v5852_v30 = vcombine.low %v161_v19, %v193_v20  ;;  %v5915_v31 = vcombine.high %v224_v25, %v256_v26 }
  0x22   :  { %v6167_v61 = vcombine.high %v478_v55, %v510_v56  ;;  %v6169_v62 = vcombine.high %v479_v57, %v511_v58  ;;  %v6166_v4 = vcombine.low %v478_v55, %v510_v56  ;;  %v6168_v5 = vcombine.low %v479_v57, %v511_v58  ;;  %v6307_v12 = vld [vmem:[%s7750_s0] sm:$0xf]  ;;  %v257_v28 = vld [vmem:[#allocation2 + $0x718] sm:$0xff]  ;;  %v288_v33 = vld [vmem:[#allocation2 + $0x810] sm:$0xff] }
  0x23   :  { %3109 = vmatpush1.bf16.msra.mxu0 %v5910_v35  ;;  %3150 = vmatpush1.bf16.msra.mxu1 %v5912_v36  ;;  %v5917_v32 = vcombine.high %v225_v27, %v257_v28  ;;  %v320_v34 = vld [vmem:[#allocation2 + $0x910] sm:$0xff]  ;;  %v289_v35 = vld [vmem:[#allocation2 + $0x818] sm:$0xff]  ;;  %v34_v2 = vld [vmem:[#allocation2 + $0x20] sm:$0xff] }
  0x24   :  { %3110 = vmatprep.subr.bf16.mxu0 %v5975_v37  ;;  %3151 = vmatprep.subr.bf16.mxu1 %v5977_v38  ;;  %v321_v36 = vld [vmem:[#allocation2 + $0x918] sm:$0xff]  ;;  %v5914_v37 = vcombine.low %v224_v25, %v256_v26  ;;  %v5916_v38 = vcombine.low %v225_v27, %v257_v28  ;;  %v5979_v39 = vcombine.high %v288_v33, %v320_v34  ;;  %v352_v41 = vld [vmem:[#allocation2 + $0xa10] sm:$0xff]  ;;  %v66_v3 = vld [vmem:[#allocation2 + $0x120] sm:$0xff] }
  0x25   :  { %v5981_v40 = vcombine.high %v289_v35, %v321_v36  ;;  %v384_v42 = vld [vmem:[#allocation2 + $0xb10] sm:$0xff]  ;;  %v5727_v8 = vcombine.high %v34_v2, %v66_v3  ;;  %v98_v10 = vld [vmem:[#allocation2 + $0x220] sm:$0xff] }
  0x26   :  { %v6043_v47 = vcombine.high %v352_v41, %v384_v42  ;;  %v416_v49 = vld [vmem:[#allocation2 + $0xc10] sm:$0xff]  ;;  %v130_v11 = vld [vmem:[#allocation2 + $0x320] sm:$0xff] }
  0x27   :  { %3111 = vmatpush1.bf16.msra.mxu0 %v5974_v43  ;;  %3152 = vmatpush1.bf16.msra.mxu1 %v5976_v44  ;;  %v353_v43 = vld [vmem:[#allocation2 + $0xa18] sm:$0xff]  ;;  %v448_v50 = vld [vmem:[#allocation2 + $0xd10] sm:$0xff]  ;;  %v5791_v17 = vcombine.high %v98_v10, %v130_v11  ;;  %v162_v19 = vld [vmem:[#allocation2 + $0x420] sm:$0xff] }
  0x28   :  { %3112 = vmatprep.subr.bf16.mxu0 %v6039_v45  ;;  %3153 = vmatprep.subr.bf16.mxu1 %v6041_v46  ;;  %v385_v44 = vld [vmem:[#allocation2 + $0xb18] sm:$0xff]  ;;  %v5978_v45 = vcombine.low %v288_v33, %v320_v34  ;;  %v5980_v46 = vcombine.low %v289_v35, %v321_v36  ;;  %v6107_v55 = vcombine.high %v416_v49, %v448_v50  ;;  %v480_v57 = vld [vmem:[#allocation2 + $0xe10] sm:$0xff]  ;;  %v194_v20 = vld [vmem:[#allocation2 + $0x520] sm:$0xff] }
  0x29   :  { %v6045_v48 = vcombine.high %v353_v43, %v385_v44  ;;  %v512_v58 = vld [vmem:[#allocation2 + $0xf10] sm:$0xff]  ;;  %v5855_v25 = vcombine.high %v162_v19, %v194_v20  ;;  %v226_v27 = vld [vmem:[#allocation2 + $0x620] sm:$0xff] }
  0x2a   :  { %v6171_v63 = vcombine.high %v480_v57, %v512_v58  ;;  %v258_v28 = vld [vmem:[#allocation2 + $0x720] sm:$0xff] }
  0x2b   :  { %3113 = vmatpush1.bf16.msra.mxu0 %v6038_v51  ;;  %3154 = vmatpush1.bf16.msra.mxu1 %v6040_v52  ;;  %v417_v51 = vld [vmem:[#allocation2 + $0xc18] sm:$0xff]  ;;  %v5919_v33 = vcombine.high %v226_v27, %v258_v28  ;;  %v290_v35 = vld [vmem:[#allocation2 + $0x820] sm:$0xff] }
  0x2c   :  { %3114 = vmatprep.subr.bf16.mxu0 %v6103_v53  ;;  %3155 = vmatprep.subr.bf16.mxu1 %v6105_v54  ;;  %v449_v52 = vld [vmem:[#allocation2 + $0xd18] sm:$0xff]  ;;  %v6042_v53 = vcombine.low %v352_v41, %v384_v42  ;;  %v6044_v54 = vcombine.low %v353_v43, %v385_v44  ;;  %v322_v36 = vld [vmem:[#allocation2 + $0x920] sm:$0xff] }
  0x2d   :  { %v6109_v56 = vcombine.high %v417_v51, %v449_v52  ;;  %v5983_v41 = vcombine.high %v290_v35, %v322_v36  ;;  %v354_v43 = vld [vmem:[#allocation2 + $0xa20] sm:$0xff] }
  0x2e   :  { %v386_v44 = vld [vmem:[#allocation2 + $0xb20] sm:$0xff] }
  0x2f   :  { %3115 = vmatpush1.bf16.msra.mxu0 %v6102_v59  ;;  %3156 = vmatpush1.bf16.msra.mxu1 %v6104_v60  ;;  %v481_v59 = vld [vmem:[#allocation2 + $0xe18] sm:$0xff] }
  0x30   :  { %3116 = vmatprep.subr.bf16.mxu0 %v6167_v61  ;;  %3157 = vmatprep.subr.bf16.mxu1 %v6169_v62  ;;  %v513_v60 = vld [vmem:[#allocation2 + $0xf18] sm:$0xff]  ;;  %v6106_v61 = vcombine.low %v416_v49, %v448_v50  ;;  %v6108_v62 = vcombine.low %v417_v51, %v449_v52  ;;  %v6047_v49 = vcombine.high %v354_v43, %v386_v44  ;;  %v418_v51 = vld [vmem:[#allocation2 + $0xc20] sm:$0xff] }
  0x31   :  { %v6173_v1 = vcombine.high %v481_v59, %v513_v60  ;;  %v450_v52 = vld [vmem:[#allocation2 + $0xd20] sm:$0xff] }
  0x33   :  { %3117 = vmatpush1.bf16.msra.mxu0 %v6166_v4  ;;  %3158 = vmatpush1.bf16.msra.mxu1 %v6168_v5  ;;  %v35_v4 = vld [vmem:[#allocation2 + $0x28] sm:$0xff] }
  0x34   :  { %3184 = vmatprep.subr.bf16.mxu0 %v5723_v6  ;;  %3225 = vmatprep.subr.bf16.mxu1 %v5725_v7  ;;  %v67_v5 = vld [vmem:[#allocation2 + $0x128] sm:$0xff]  ;;  %v6170_v6 = vcombine.low %v480_v57, %v512_v58  ;;  %v6172_v7 = vcombine.low %v481_v59, %v513_v60  ;;  %v6111_v57 = vcombine.high %v418_v51, %v450_v52  ;;  %v482_v59 = vld [vmem:[#allocation2 + $0xe20] sm:$0xff] }
  0x35   :  { %v5729_v9 = vcombine.high %v35_v4, %v67_v5  ;;  %v514_v60 = vld [vmem:[#allocation2 + $0xf20] sm:$0xff] }
  0x36   :  { %3135 = vmatmul.mubr.bf16.vlgmr.msra.gmra.mrb[0].mxu0 %v6307_v12  ;;  %3176 = vmatmul.mubr.bf16.vlgmr.msra.gmra.mrb[0].mxu1 %v6307_v12 }
  0x37   :  { %3185 = vmatpush1.bf16.msra.mxu0 %v5722_v13  ;;  %3226 = vmatpush1.bf16.msra.mxu1 %v5724_v14  ;;  %v99_v13 = vld [vmem:[#allocation2 + $0x228] sm:$0xff] }
  0x38   :  { %3186 = vmatprep.subr.bf16.mxu0 %v5787_v15  ;;  %3227 = vmatprep.subr.bf16.mxu1 %v5789_v16  ;;  %v131_v14 = vld [vmem:[#allocation2 + $0x328] sm:$0xff]  ;;  %v5726_v15 = vcombine.low %v34_v2, %v66_v3  ;;  %v5728_v16 = vcombine.low %v35_v4, %v67_v5  ;;  %v6175_v2 = vcombine.high %v482_v59, %v514_v60  ;;  %v36_v4 = vld [vmem:[#allocation2 + $0x30] sm:$0xff] }
  0x39   :  { %3216 = vmatprep.mubr.bf16.mxu0 %v6264_v0  ;;  %3257 = vmatprep.mubr.bf16.mxu1 %v6264_v0  ;;  %v5793_v18 = vcombine.high %v99_v13, %v131_v14  ;;  %v68_v5 = vld [vmem:[#allocation2 + $0x130] sm:$0xff] }
  0x3b   :  { %3187 = vmatpush1.bf16.msra.mxu0 %v5786_v21  ;;  %3228 = vmatpush1.bf16.msra.mxu1 %v5788_v22  ;;  %v163_v21 = vld [vmem:[#allocation2 + $0x428] sm:$0xff] }
  0x3c   :  { %3188 = vmatprep.subr.bf16.mxu0 %v5851_v23  ;;  %3229 = vmatprep.subr.bf16.mxu1 %v5853_v24  ;;  %v195_v22 = vld [vmem:[#allocation2 + $0x528] sm:$0xff]  ;;  %v5790_v23 = vcombine.low %v98_v10, %v130_v11  ;;  %v5792_v24 = vcombine.low %v99_v13, %v131_v14  ;;  %v5731_v10 = vcombine.high %v36_v4, %v68_v5  ;;  %v100_v13 = vld [vmem:[#allocation2 + $0x230] sm:$0xff] }
  0x3d   :  { %v5857_v26 = vcombine.high %v163_v21, %v195_v22  ;;  %v132_v14 = vld [vmem:[#allocation2 + $0x330] sm:$0xff] }
  0x3f   :  { %3189 = vmatpush1.bf16.msra.mxu0 %v5850_v29  ;;  %3230 = vmatpush1.bf16.msra.mxu1 %v5852_v30  ;;  %v227_v29 = vld [vmem:[#allocation2 + $0x628] sm:$0xff] }
  0x40   :  { %3190 = vmatprep.subr.bf16.mxu0 %v5915_v31  ;;  %3231 = vmatprep.subr.bf16.mxu1 %v5917_v32  ;;  %v259_v30 = vld [vmem:[#allocation2 + $0x728] sm:$0xff]  ;;  %v5854_v31 = vcombine.low %v162_v19, %v194_v20  ;;  %v5856_v32 = vcombine.low %v163_v21, %v195_v22  ;;  %v5795_v19 = vcombine.high %v100_v13, %v132_v14  ;;  %v164_v21 = vld [vmem:[#allocation2 + $0x430] sm:$0xff] }
  0x41   :  { %v5921_v34 = vcombine.high %v227_v29, %v259_v30  ;;  %v196_v22 = vld [vmem:[#allocation2 + $0x530] sm:$0xff] }
  0x43   :  { %3191 = vmatpush1.bf16.msra.mxu0 %v5914_v37  ;;  %3232 = vmatpush1.bf16.msra.mxu1 %v5916_v38  ;;  %v291_v37 = vld [vmem:[#allocation2 + $0x828] sm:$0xff] }
  0x44   :  { %3192 = vmatprep.subr.bf16.mxu0 %v5979_v39  ;;  %3233 = vmatprep.subr.bf16.mxu1 %v5981_v40  ;;  %v323_v38 = vld [vmem:[#allocation2 + $0x928] sm:$0xff]  ;;  %v5918_v39 = vcombine.low %v226_v27, %v258_v28  ;;  %v5920_v40 = vcombine.low %v227_v29, %v259_v30  ;;  %v5859_v27 = vcombine.high %v164_v21, %v196_v22  ;;  %v228_v29 = vld [vmem:[#allocation2 + $0x630] sm:$0xff] }
  0x45   :  { %v5985_v42 = vcombine.high %v291_v37, %v323_v38  ;;  %v260_v30 = vld [vmem:[#allocation2 + $0x730] sm:$0xff] }
  0x47   :  { %3193 = vmatpush1.bf16.msra.mxu0 %v5978_v45  ;;  %3234 = vmatpush1.bf16.msra.mxu1 %v5980_v46  ;;  %v355_v45 = vld [vmem:[#allocation2 + $0xa28] sm:$0xff] }
  0x48   :  { %3194 = vmatprep.subr.bf16.mxu0 %v6043_v47  ;;  %3235 = vmatprep.subr.bf16.mxu1 %v6045_v48  ;;  %v387_v46 = vld [vmem:[#allocation2 + $0xb28] sm:$0xff]  ;;  %v5982_v47 = vcombine.low %v290_v35, %v322_v36  ;;  %v5984_v48 = vcombine.low %v291_v37, %v323_v38  ;;  %v5923_v35 = vcombine.high %v228_v29, %v260_v30  ;;  %v292_v37 = vld [vmem:[#allocation2 + $0x830] sm:$0xff] }
  0x49   :  { %v6049_v50 = vcombine.high %v355_v45, %v387_v46  ;;  %v324_v38 = vld [vmem:[#allocation2 + $0x930] sm:$0xff] }
  0x4b   :  { %3195 = vmatpush1.bf16.msra.mxu0 %v6042_v53  ;;  %3236 = vmatpush1.bf16.msra.mxu1 %v6044_v54  ;;  %v419_v53 = vld [vmem:[#allocation2 + $0xc28] sm:$0xff] }
  0x4c   :  { %3196 = vmatprep.subr.bf16.mxu0 %v6107_v55  ;;  %3237 = vmatprep.subr.bf16.mxu1 %v6109_v56  ;;  %v451_v54 = vld [vmem:[#allocation2 + $0xd28] sm:$0xff]  ;;  %v6046_v55 = vcombine.low %v354_v43, %v386_v44  ;;  %v6048_v56 = vcombine.low %v355_v45, %v387_v46  ;;  %v5987_v43 = vcombine.high %v292_v37, %v324_v38  ;;  %v356_v45 = vld [vmem:[#allocation2 + $0xa30] sm:$0xff] }
  0x4d   :  { %v6113_v58 = vcombine.high %v419_v53, %v451_v54  ;;  %v388_v46 = vld [vmem:[#allocation2 + $0xb30] sm:$0xff] }
  0x4f   :  { %3197 = vmatpush1.bf16.msra.mxu0 %v6106_v61  ;;  %3238 = vmatpush1.bf16.msra.mxu1 %v6108_v62  ;;  %v483_v61 = vld [vmem:[#allocation2 + $0xe28] sm:$0xff] }
  0x50   :  { %3198 = vmatprep.subr.bf16.mxu0 %v6171_v63  ;;  %3239 = vmatprep.subr.bf16.mxu1 %v6173_v1  ;;  %v515_v62 = vld [vmem:[#allocation2 + $0xf28] sm:$0xff]  ;;  %v6110_v63 = vcombine.low %v418_v51, %v450_v52  ;;  %v6112_v1 = vcombine.low %v419_v53, %v451_v54  ;;  %v6051_v51 = vcombine.high %v356_v45, %v388_v46  ;;  %v420_v53 = vld [vmem:[#allocation2 + $0xc30] sm:$0xff] }
  0x51   :  { %v6177_v3 = vcombine.high %v483_v61, %v515_v62  ;;  %v452_v54 = vld [vmem:[#allocation2 + $0xd30] sm:$0xff] }
  0x53   :  { %3199 = vmatpush1.bf16.msra.mxu0 %v6170_v6  ;;  %3240 = vmatpush1.bf16.msra.mxu1 %v6172_v7  ;;  %v37_v6 = vld [vmem:[#allocation2 + $0x38] sm:$0xff] }
  0x54   :  { %3266 = vmatprep.subr.bf16.mxu0 %v5727_v8  ;;  %3307 = vmatprep.subr.bf16.mxu1 %v5729_v9  ;;  %v69_v7 = vld [vmem:[#allocation2 + $0x138] sm:$0xff]  ;;  %v6174_v8 = vcombine.low %v482_v59, %v514_v60  ;;  %v6176_v9 = vcombine.low %v483_v61, %v515_v62  ;;  %v6115_v59 = vcombine.high %v420_v53, %v452_v54  ;;  %v484_v61 = vld [vmem:[#allocation2 + $0xe30] sm:$0xff] }
  0x55   :  { %v5733_v11 = vcombine.high %v37_v6, %v69_v7  ;;  %v516_v62 = vld [vmem:[#allocation2 + $0xf30] sm:$0xff] }
  0x56   :  { %3217 = vmatmul.mubr.bf16.vlgmr.msra.gmra.mrb[4].mxu0 %v6307_v12  ;;  %3258 = vmatmul.mubr.bf16.vlgmr.msra.gmra.mrb[4].mxu1 %v6307_v12 }
  0x57   :  { %3267 = vmatpush1.bf16.msra.mxu0 %v5726_v15  ;;  %3308 = vmatpush1.bf16.msra.mxu1 %v5728_v16  ;;  %v101_v15 = vld [vmem:[#allocation2 + $0x238] sm:$0xff] }
  0x58   :  { %3268 = vmatprep.subr.bf16.mxu0 %v5791_v17  ;;  %3309 = vmatprep.subr.bf16.mxu1 %v5793_v18  ;;  %v133_v16 = vld [vmem:[#allocation2 + $0x338] sm:$0xff]  ;;  %v5730_v17 = vcombine.low %v36_v4, %v68_v5  ;;  %v5732_v18 = vcombine.low %v37_v6, %v69_v7  ;;  %v6179_v4 = vcombine.high %v484_v61, %v516_v62  ;;  %v38_v6 = vld [vmem:[#allocation2 + $0x40] sm:$0xff] }
  0x59   :  { %3298 = vmatprep.mubr.bf16.mxu0 %v6264_v0  ;;  %3339 = vmatprep.mubr.bf16.mxu1 %v6264_v0  ;;  %v5797_v20 = vcombine.high %v101_v15, %v133_v16  ;;  %v70_v7 = vld [vmem:[#allocation2 + $0x140] sm:$0xff] }
  0x5b   :  { %3269 = vmatpush1.bf16.msra.mxu0 %v5790_v23  ;;  %3310 = vmatpush1.bf16.msra.mxu1 %v5792_v24  ;;  %v165_v23 = vld [vmem:[#allocation2 + $0x438] sm:$0xff] }
  0x5c   :  { %3270 = vmatprep.subr.bf16.mxu0 %v5855_v25  ;;  %3311 = vmatprep.subr.bf16.mxu1 %v5857_v26  ;;  %v197_v24 = vld [vmem:[#allocation2 + $0x538] sm:$0xff]  ;;  %v5794_v25 = vcombine.low %v100_v13, %v132_v14  ;;  %v5796_v26 = vcombine.low %v101_v15, %v133_v16  ;;  %v5735_v13 = vcombine.high %v38_v6, %v70_v7  ;;  %v102_v15 = vld [vmem:[#allocation2 + $0x240] sm:$0xff] }
  0x5d   :  { %v5861_v28 = vcombine.high %v165_v23, %v197_v24  ;;  %v134_v16 = vld [vmem:[#allocation2 + $0x340] sm:$0xff] }
  0x5f   :  { %3271 = vmatpush1.bf16.msra.mxu0 %v5854_v31  ;;  %3312 = vmatpush1.bf16.msra.mxu1 %v5856_v32  ;;  %v229_v31 = vld [vmem:[#allocation2 + $0x638] sm:$0xff] }
  0x60   :  { %3272 = vmatprep.subr.bf16.mxu0 %v5919_v33  ;;  %3313 = vmatprep.subr.bf16.mxu1 %v5921_v34  ;;  %v261_v32 = vld [vmem:[#allocation2 + $0x738] sm:$0xff]  ;;  %v5858_v33 = vcombine.low %v164_v21, %v196_v22  ;;  %v5860_v34 = vcombine.low %v165_v23, %v197_v24  ;;  %v5799_v21 = vcombine.high %v102_v15, %v134_v16  ;;  %v166_v23 = vld [vmem:[#allocation2 + $0x440] sm:$0xff] }
  0x61   :  { %v5925_v36 = vcombine.high %v229_v31, %v261_v32  ;;  %v198_v24 = vld [vmem:[#allocation2 + $0x540] sm:$0xff] }
  0x63   :  { %3273 = vmatpush1.bf16.msra.mxu0 %v5918_v39  ;;  %3314 = vmatpush1.bf16.msra.mxu1 %v5920_v40  ;;  %v293_v39 = vld [vmem:[#allocation2 + $0x838] sm:$0xff] }
  0x64   :  { %3274 = vmatprep.subr.bf16.mxu0 %v5983_v41  ;;  %3315 = vmatprep.subr.bf16.mxu1 %v5985_v42  ;;  %v325_v40 = vld [vmem:[#allocation2 + $0x938] sm:$0xff]  ;;  %v5922_v41 = vcombine.low %v228_v29, %v260_v30  ;;  %v5924_v42 = vcombine.low %v229_v31, %v261_v32  ;;  %v5863_v29 = vcombine.high %v166_v23, %v198_v24  ;;  %v230_v31 = vld [vmem:[#allocation2 + $0x640] sm:$0xff] }
  0x65   :  { %v5989_v44 = vcombine.high %v293_v39, %v325_v40  ;;  %v262_v32 = vld [vmem:[#allocation2 + $0x740] sm:$0xff] }
  0x67   :  { %3275 = vmatpush1.bf16.msra.mxu0 %v5982_v47  ;;  %3316 = vmatpush1.bf16.msra.mxu1 %v5984_v48  ;;  %v357_v47 = vld [vmem:[#allocation2 + $0xa38] sm:$0xff] }
  0x68   :  { %3276 = vmatprep.subr.bf16.mxu0 %v6047_v49  ;;  %3317 = vmatprep.subr.bf16.mxu1 %v6049_v50  ;;  %v389_v48 = vld [vmem:[#allocation2 + $0xb38] sm:$0xff]  ;;  %v5986_v49 = vcombine.low %v292_v37, %v324_v38  ;;  %v5988_v50 = vcombine.low %v293_v39, %v325_v40  ;;  %v5927_v37 = vcombine.high %v230_v31, %v262_v32  ;;  %v294_v39 = vld [vmem:[#allocation2 + $0x840] sm:$0xff] }
  0x69   :  { %v6053_v52 = vcombine.high %v357_v47, %v389_v48  ;;  %v326_v40 = vld [vmem:[#allocation2 + $0x940] sm:$0xff] }
  0x6b   :  { %3277 = vmatpush1.bf16.msra.mxu0 %v6046_v55  ;;  %3318 = vmatpush1.bf16.msra.mxu1 %v6048_v56  ;;  %v421_v55 = vld [vmem:[#allocation2 + $0xc38] sm:$0xff] }
  0x6c   :  { %3278 = vmatprep.subr.bf16.mxu0 %v6111_v57  ;;  %3319 = vmatprep.subr.bf16.mxu1 %v6113_v58  ;;  %v453_v56 = vld [vmem:[#allocation2 + $0xd38] sm:$0xff]  ;;  %v6050_v57 = vcombine.low %v356_v45, %v388_v46  ;;  %v6052_v58 = vcombine.low %v357_v47, %v389_v48  ;;  %v5991_v45 = vcombine.high %v294_v39, %v326_v40  ;;  %v358_v47 = vld [vmem:[#allocation2 + $0xa40] sm:$0xff] }
  0x6d   :  { %v6117_v60 = vcombine.high %v421_v55, %v453_v56  ;;  %v390_v48 = vld [vmem:[#allocation2 + $0xb40] sm:$0xff] }
  0x6f   :  { %3279 = vmatpush1.bf16.msra.mxu0 %v6110_v63  ;;  %3320 = vmatpush1.bf16.msra.mxu1 %v6112_v1  ;;  %v485_v63 = vld [vmem:[#allocation2 + $0xe38] sm:$0xff] }
  0x70   :  { %3280 = vmatprep.subr.bf16.mxu0 %v6175_v2  ;;  %3321 = vmatprep.subr.bf16.mxu1 %v6177_v3  ;;  %v517_v1 = vld [vmem:[#allocation2 + $0xf38] sm:$0xff]  ;;  %v6114_v2 = vcombine.low %v420_v53, %v452_v54  ;;  %v6116_v3 = vcombine.low %v421_v55, %v453_v56  ;;  %v6055_v53 = vcombine.high %v358_v47, %v390_v48  ;;  %v422_v55 = vld [vmem:[#allocation2 + $0xc40] sm:$0xff] }
  0x71   :  { %v6181_v5 = vcombine.high %v485_v63, %v517_v1  ;;  %v454_v56 = vld [vmem:[#allocation2 + $0xd40] sm:$0xff] }
  0x73   :  { %3281 = vmatpush1.bf16.msra.mxu0 %v6174_v8  ;;  %3322 = vmatpush1.bf16.msra.mxu1 %v6176_v9  ;;  %v39_v8 = vld [vmem:[#allocation2 + $0x48] sm:$0xff] }
  0x74   :  { %3348 = vmatprep.subr.bf16.mxu0 %v5731_v10  ;;  %3389 = vmatprep.subr.bf16.mxu1 %v5733_v11  ;;  %v71_v9 = vld [vmem:[#allocation2 + $0x148] sm:$0xff]  ;;  %v6178_v10 = vcombine.low %v484_v61, %v516_v62  ;;  %v6180_v11 = vcombine.low %v485_v63, %v517_v1  ;;  %v6119_v61 = vcombine.high %v422_v55, %v454_v56  ;;  %v486_v63 = vld [vmem:[#allocation2 + $0xe40] sm:$0xff] }
  0x75   :  { %v5737_v14 = vcombine.high %v39_v8, %v71_v9  ;;  %v518_v1 = vld [vmem:[#allocation2 + $0xf40] sm:$0xff] }
  0x76   :  { %3299 = vmatmul.mubr.bf16.vlgmr.msra.gmra.mrb[8].mxu0 %v6307_v12  ;;  %3340 = vmatmul.mubr.bf16.vlgmr.msra.gmra.mrb[8].mxu1 %v6307_v12 }
  0x77   :  { %3349 = vmatpush1.bf16.msra.mxu0 %v5730_v17  ;;  %3390 = vmatpush1.bf16.msra.mxu1 %v5732_v18  ;;  %v103_v17 = vld [vmem:[#allocation2 + $0x248] sm:$0xff] }
  0x78   :  { %3350 = vmatprep.subr.bf16.mxu0 %v5795_v19  ;;  %3391 = vmatprep.subr.bf16.mxu1 %v5797_v20  ;;  %v135_v18 = vld [vmem:[#allocation2 + $0x348] sm:$0xff]  ;;  %v5734_v19 = vcombine.low %v38_v6, %v70_v7  ;;  %v5736_v20 = vcombine.low %v39_v8, %v71_v9  ;;  %v6183_v6 = vcombine.high %v486_v63, %v518_v1  ;;  %v40_v8 = vld [vmem:[#allocation2 + $0x50] sm:$0xff] }
  0x79   :  { %3380 = vmatprep.mubr.bf16.mxu0 %v6264_v0  ;;  %3421 = vmatprep.mubr.bf16.mxu1 %v6264_v0  ;;  %v5801_v22 = vcombine.high %v103_v17, %v135_v18  ;;  %v72_v9 = vld [vmem:[#allocation2 + $0x150] sm:$0xff] }
  0x7b   :  { %3351 = vmatpush1.bf16.msra.mxu0 %v5794_v25  ;;  %3392 = vmatpush1.bf16.msra.mxu1 %v5796_v26  ;;  %v167_v25 = vld [vmem:[#allocation2 + $0x448] sm:$0xff] }
  0x7c   :  { %3352 = vmatprep.subr.bf16.mxu0 %v5859_v27  ;;  %3393 = vmatprep.subr.bf16.mxu1 %v5861_v28  ;;  %v199_v26 = vld [vmem:[#allocation2 + $0x548] sm:$0xff]  ;;  %v5798_v27 = vcombine.low %v102_v15, %v134_v16  ;;  %v5800_v28 = vcombine.low %v103_v17, %v135_v18  ;;  %v5739_v15 = vcombine.high %v40_v8, %v72_v9  ;;  %v104_v17 = vld [vmem:[#allocation2 + $0x250] sm:$0xff] }
  0x7d   :  { %v5865_v30 = vcombine.high %v167_v25, %v199_v26  ;;  %v136_v18 = vld [vmem:[#allocation2 + $0x350] sm:$0xff] }
  0x7f   :  { %3353 = vmatpush1.bf16.msra.mxu0 %v5858_v33  ;;  %3394 = vmatpush1.bf16.msra.mxu1 %v5860_v34  ;;  %v231_v33 = vld [vmem:[#allocation2 + $0x648] sm:$0xff] }
  0x80   :  { %3354 = vmatprep.subr.bf16.mxu0 %v5923_v35  ;;  %3395 = vmatprep.subr.bf16.mxu1 %v5925_v36  ;;  %v263_v34 = vld [vmem:[#allocation2 + $0x748] sm:$0xff]  ;;  %v5862_v35 = vcombine.low %v166_v23, %v198_v24  ;;  %v5864_v36 = vcombine.low %v167_v25, %v199_v26  ;;  %v5803_v23 = vcombine.high %v104_v17, %v136_v18  ;;  %v168_v25 = vld [vmem:[#allocation2 + $0x450] sm:$0xff] }
  0x81   :  { %v5929_v38 = vcombine.high %v231_v33, %v263_v34  ;;  %v200_v26 = vld [vmem:[#allocation2 + $0x550] sm:$0xff] }
  0x83   :  { %3355 = vmatpush1.bf16.msra.mxu0 %v5922_v41  ;;  %3396 = vmatpush1.bf16.msra.mxu1 %v5924_v42  ;;  %v295_v41 = vld [vmem:[#allocation2 + $0x848] sm:$0xff] }
  0x84   :  { %3356 = vmatprep.subr.bf16.mxu0 %v5987_v43  ;;  %3397 = vmatprep.subr.bf16.mxu1 %v5989_v44  ;;  %v327_v42 = vld [vmem:[#allocation2 + $0x948] sm:$0xff]  ;;  %v5926_v43 = vcombine.low %v230_v31, %v262_v32  ;;  %v5928_v44 = vcombine.low %v231_v33, %v263_v34  ;;  %v5867_v31 = vcombine.high %v168_v25, %v200_v26  ;;  %v232_v33 = vld [vmem:[#allocation2 + $0x650] sm:$0xff] }
  0x85   :  { %v5993_v46 = vcombine.high %v295_v41, %v327_v42  ;;  %v264_v34 = vld [vmem:[#allocation2 + $0x750] sm:$0xff] }
  0x87   :  { %3357 = vmatpush1.bf16.msra.mxu0 %v5986_v49  ;;  %3398 = vmatpush1.bf16.msra.mxu1 %v5988_v50  ;;  %v359_v49 = vld [vmem:[#allocation2 + $0xa48] sm:$0xff] }
  0x88   :  { %3358 = vmatprep.subr.bf16.mxu0 %v6051_v51  ;;  %3399 = vmatprep.subr.bf16.mxu1 %v6053_v52  ;;  %v391_v50 = vld [vmem:[#allocation2 + $0xb48] sm:$0xff]  ;;  %v5990_v51 = vcombine.low %v294_v39, %v326_v40  ;;  %v5992_v52 = vcombine.low %v295_v41, %v327_v42  ;;  %v5931_v39 = vcombine.high %v232_v33, %v264_v34  ;;  %v296_v41 = vld [vmem:[#allocation2 + $0x850] sm:$0xff] }
  0x89   :  { %v6057_v54 = vcombine.high %v359_v49, %v391_v50  ;;  %v328_v42 = vld [vmem:[#allocation2 + $0x950] sm:$0xff] }
  0x8b   :  { %3359 = vmatpush1.bf16.msra.mxu0 %v6050_v57  ;;  %3400 = vmatpush1.bf16.msra.mxu1 %v6052_v58  ;;  %v423_v57 = vld [vmem:[#allocation2 + $0xc48] sm:$0xff] }
  0x8c   :  { %3360 = vmatprep.subr.bf16.mxu0 %v6115_v59  ;;  %3401 = vmatprep.subr.bf16.mxu1 %v6117_v60  ;;  %v455_v58 = vld [vmem:[#allocation2 + $0xd48] sm:$0xff]  ;;  %v6054_v59 = vcombine.low %v358_v47, %v390_v48  ;;  %v6056_v60 = vcombine.low %v359_v49, %v391_v50  ;;  %v5995_v47 = vcombine.high %v296_v41, %v328_v42  ;;  %v360_v49 = vld [vmem:[#allocation2 + $0xa50] sm:$0xff] }
  0x8d   :  { %v6121_v62 = vcombine.high %v423_v57, %v455_v58  ;;  %v392_v50 = vld [vmem:[#allocation2 + $0xb50] sm:$0xff] }
  0x8f   :  { %3361 = vmatpush1.bf16.msra.mxu0 %v6114_v2  ;;  %3402 = vmatpush1.bf16.msra.mxu1 %v6116_v3  ;;  %v487_v2 = vld [vmem:[#allocation2 + $0xe48] sm:$0xff] }
  0x90   :  { %3362 = vmatprep.subr.bf16.mxu0 %v6179_v4  ;;  %3403 = vmatprep.subr.bf16.mxu1 %v6181_v5  ;;  %v519_v3 = vld [vmem:[#allocation2 + $0xf48] sm:$0xff]  ;;  %v6118_v4 = vcombine.low %v422_v55, %v454_v56  ;;  %v6120_v5 = vcombine.low %v423_v57, %v455_v58  ;;  %v6059_v55 = vcombine.high %v360_v49, %v392_v50  ;;  %v424_v57 = vld [vmem:[#allocation2 + $0xc50] sm:$0xff] }
  0x91   :  { %v6185_v7 = vcombine.high %v487_v2, %v519_v3  ;;  %v456_v58 = vld [vmem:[#allocation2 + $0xd50] sm:$0xff] }
  0x93   :  { %3363 = vmatpush1.bf16.msra.mxu0 %v6178_v10  ;;  %3404 = vmatpush1.bf16.msra.mxu1 %v6180_v11  ;;  %v41_v10 = vld [vmem:[#allocation2 + $0x58] sm:$0xff] }
  0x94   :  { %3430 = vmatprep.subr.bf16.mxu0 %v5735_v13  ;;  %3471 = vmatprep.subr.bf16.mxu1 %v5737_v14  ;;  %v73_v11 = vld [vmem:[#allocation2 + $0x158] sm:$0xff]  ;;  %v6182_v13 = vcombine.low %v486_v63, %v518_v1  ;;  %v6184_v14 = vcombine.low %v487_v2, %v519_v3  ;;  %v6123_v63 = vcombine.high %v424_v57, %v456_v58  ;;  %v488_v2 = vld [vmem:[#allocation2 + $0xe50] sm:$0xff] }
  0x95   :  { %v5741_v16 = vcombine.high %v41_v10, %v73_v11  ;;  %v520_v3 = vld [vmem:[#allocation2 + $0xf50] sm:$0xff] }
  0x96   :  { %3381 = vmatmul.mubr.bf16.vlgmr.msra.gmra.mrb[12].mxu0 %v6307_v12  ;;  %3422 = vmatmul.mubr.bf16.vlgmr.msra.gmra.mrb[12].mxu1 %v6307_v12 }
  0x97   :  { %3431 = vmatpush1.bf16.msra.mxu0 %v5734_v19  ;;  %3472 = vmatpush1.bf16.msra.mxu1 %v5736_v20  ;;  %v105_v19 = vld [vmem:[#allocation2 + $0x258] sm:$0xff] }
  0x98   :  { %3432 = vmatprep.subr.bf16.mxu0 %v5799_v21  ;;  %3473 = vmatprep.subr.bf16.mxu1 %v5801_v22  ;;  %v137_v20 = vld [vmem:[#allocation2 + $0x358] sm:$0xff]  ;;  %v5738_v21 = vcombine.low %v40_v8, %v72_v9  ;;  %v5740_v22 = vcombine.low %v41_v10, %v73_v11  ;;  %v6187_v8 = vcombine.high %v488_v2, %v520_v3  ;;  %v42_v10 = vld [vmem:[#allocation2 + $0x60] sm:$0xff] }
  0x99   :  { %3462 = vmatprep.mubr.bf16.mxu0 %v6264_v0  ;;  %3503 = vmatprep.mubr.bf16.mxu1 %v6264_v0  ;;  %v5805_v24 = vcombine.high %v105_v19, %v137_v20  ;;  %v74_v11 = vld [vmem:[#allocation2 + $0x160] sm:$0xff] }
  0x9b   :  { %3433 = vmatpush1.bf16.msra.mxu0 %v5798_v27  ;;  %3474 = vmatpush1.bf16.msra.mxu1 %v5800_v28  ;;  %v169_v27 = vld [vmem:[#allocation2 + $0x458] sm:$0xff] }
  0x9c   :  { %3434 = vmatprep.subr.bf16.mxu0 %v5863_v29  ;;  %3475 = vmatprep.subr.bf16.mxu1 %v5865_v30  ;;  %v201_v28 = vld [vmem:[#allocation2 + $0x558] sm:$0xff]  ;;  %v5802_v29 = vcombine.low %v104_v17, %v136_v18  ;;  %v5804_v30 = vcombine.low %v105_v19, %v137_v20  ;;  %v5743_v17 = vcombine.high %v42_v10, %v74_v11  ;;  %v106_v19 = vld [vmem:[#allocation2 + $0x260] sm:$0xff] }
  0x9d   :  { %v5869_v32 = vcombine.high %v169_v27, %v201_v28  ;;  %v138_v20 = vld [vmem:[#allocation2 + $0x360] sm:$0xff] }
  0x9f   :  { %3435 = vmatpush1.bf16.msra.mxu0 %v5862_v35  ;;  %3476 = vmatpush1.bf16.msra.mxu1 %v5864_v36  ;;  %v233_v35 = vld [vmem:[#allocation2 + $0x658] sm:$0xff] }
  0xa0   :  { %3436 = vmatprep.subr.bf16.mxu0 %v5927_v37  ;;  %3477 = vmatprep.subr.bf16.mxu1 %v5929_v38  ;;  %v265_v36 = vld [vmem:[#allocation2 + $0x758] sm:$0xff]  ;;  %v5866_v37 = vcombine.low %v168_v25, %v200_v26  ;;  %v5868_v38 = vcombine.low %v169_v27, %v201_v28  ;;  %v5807_v25 = vcombine.high %v106_v19, %v138_v20  ;;  %v170_v27 = vld [vmem:[#allocation2 + $0x460] sm:$0xff] }
  0xa1   :  { %v5933_v40 = vcombine.high %v233_v35, %v265_v36  ;;  %v202_v28 = vld [vmem:[#allocation2 + $0x560] sm:$0xff] }
  0xa3   :  { %3437 = vmatpush1.bf16.msra.mxu0 %v5926_v43  ;;  %3478 = vmatpush1.bf16.msra.mxu1 %v5928_v44  ;;  %v297_v43 = vld [vmem:[#allocation2 + $0x858] sm:$0xff] }
  0xa4   :  { %3438 = vmatprep.subr.bf16.mxu0 %v5991_v45  ;;  %3479 = vmatprep.subr.bf16.mxu1 %v5993_v46  ;;  %v329_v44 = vld [vmem:[#allocation2 + $0x958] sm:$0xff]  ;;  %v5930_v45 = vcombine.low %v232_v33, %v264_v34  ;;  %v5932_v46 = vcombine.low %v233_v35, %v265_v36  ;;  %v5871_v34 = vcombine.high %v170_v27, %v202_v28  ;;  %v234_v36 = vld [vmem:[#allocation2 + $0x660] sm:$0xff] }
  0xa5   :  { %v5997_v48 = vcombine.high %v297_v43, %v329_v44 }
  0xa7   :  { %3439 = vmatpush1.bf16.msra.mxu0 %v5990_v51  ;;  %3480 = vmatpush1.bf16.msra.mxu1 %v5992_v52  ;;  %v361_v51 = vld [vmem:[#allocation2 + $0xa58] sm:$0xff] }
  0xa8   :  { %3440 = vmatprep.subr.bf16.mxu0 %v6055_v53  ;;  %3481 = vmatprep.subr.bf16.mxu1 %v6057_v54  ;;  %v393_v52 = vld [vmem:[#allocation2 + $0xb58] sm:$0xff]  ;;  %v5994_v53 = vcombine.low %v296_v41, %v328_v42  ;;  %v5996_v54 = vcombine.low %v297_v43, %v329_v44  ;;  %v298_v43 = vld [vmem:[#allocation2 + $0x860] sm:$0xff] }
  0xa9   :  { %v6061_v56 = vcombine.high %v361_v51, %v393_v52  ;;  %v330_v44 = vld [vmem:[#allocation2 + $0x960] sm:$0xff] }
  0xab   :  { %3441 = vmatpush1.bf16.msra.mxu0 %v6054_v59  ;;  %3482 = vmatpush1.bf16.msra.mxu1 %v6056_v60  ;;  %v425_v59 = vld [vmem:[#allocation2 + $0xc58] sm:$0xff] }
  0xac   :  { %3442 = vmatprep.subr.bf16.mxu0 %v6119_v61  ;;  %3483 = vmatprep.subr.bf16.mxu1 %v6121_v62  ;;  %v457_v60 = vld [vmem:[#allocation2 + $0xd58] sm:$0xff]  ;;  %v6058_v61 = vcombine.low %v360_v49, %v392_v50  ;;  %v6060_v62 = vcombine.low %v361_v51, %v393_v52  ;;  %v5999_v49 = vcombine.high %v298_v43, %v330_v44  ;;  %v362_v51 = vld [vmem:[#allocation2 + $0xa60] sm:$0xff] }
  0xad   :  { %v6125_v1 = vcombine.high %v425_v59, %v457_v60  ;;  %v394_v52 = vld [vmem:[#allocation2 + $0xb60] sm:$0xff] }
  0xaf   :  { %3443 = vmatpush1.bf16.msra.mxu0 %v6118_v4  ;;  %3484 = vmatpush1.bf16.msra.mxu1 %v6120_v5  ;;  %v489_v4 = vld [vmem:[#allocation2 + $0xe58] sm:$0xff] }
  0xb0   :  { %3444 = vmatprep.subr.bf16.mxu0 %v6183_v6  ;;  %3485 = vmatprep.subr.bf16.mxu1 %v6185_v7  ;;  %v521_v5 = vld [vmem:[#allocation2 + $0xf58] sm:$0xff]  ;;  %v6122_v6 = vcombine.low %v424_v57, %v456_v58  ;;  %v6124_v7 = vcombine.low %v425_v59, %v457_v60  ;;  %v6063_v57 = vcombine.high %v362_v51, %v394_v52  ;;  %v426_v59 = vld [vmem:[#allocation2 + $0xc60] sm:$0xff] }
  0xb1   :  { %v6189_v9 = vcombine.high %v489_v4, %v521_v5  ;;  %v458_v60 = vld [vmem:[#allocation2 + $0xd60] sm:$0xff] }
  0xb3   :  { %3445 = vmatpush1.bf16.msra.mxu0 %v6182_v13  ;;  %3486 = vmatpush1.bf16.msra.mxu1 %v6184_v14  ;;  %v43_v13 = vld [vmem:[#allocation2 + $0x68] sm:$0xff] }
  0xb4   :  { %3512 = vmatprep.subr.bf16.mxu0 %v5739_v15  ;;  %3553 = vmatprep.subr.bf16.mxu1 %v5741_v16  ;;  %v75_v14 = vld [vmem:[#allocation2 + $0x168] sm:$0xff]  ;;  %v6186_v15 = vcombine.low %v488_v2, %v520_v3  ;;  %v6188_v16 = vcombine.low %v489_v4, %v521_v5  ;;  %v6127_v2 = vcombine.high %v426_v59, %v458_v60  ;;  %v490_v4 = vld [vmem:[#allocation2 + $0xe60] sm:$0xff] }
  0xb5   :  { %v5745_v18 = vcombine.high %v43_v13, %v75_v14  ;;  %v522_v5 = vld [vmem:[#allocation2 + $0xf60] sm:$0xff] }
  0xb6   :  { %3463 = vmatmul.mubr.bf16.vlgmr.msra.gmra.mrb[16].mxu0 %v6307_v12  ;;  %3504 = vmatmul.mubr.bf16.vlgmr.msra.gmra.mrb[16].mxu1 %v6307_v12 }
  0xb7   :  { %3513 = vmatpush1.bf16.msra.mxu0 %v5738_v21  ;;  %3554 = vmatpush1.bf16.msra.mxu1 %v5740_v22  ;;  %v107_v21 = vld [vmem:[#allocation2 + $0x268] sm:$0xff] }
  0xb8   :  { %3514 = vmatprep.subr.bf16.mxu0 %v5803_v23  ;;  %3555 = vmatprep.subr.bf16.mxu1 %v5805_v24  ;;  %v139_v22 = vld [vmem:[#allocation2 + $0x368] sm:$0xff]  ;;  %v5742_v23 = vcombine.low %v42_v10, %v74_v11  ;;  %v5744_v24 = vcombine.low %v43_v13, %v75_v14  ;;  %v6191_v10 = vcombine.high %v490_v4, %v522_v5  ;;  %v44_v13 = vld [vmem:[#allocation2 + $0x70] sm:$0xff] }
  0xb9   :  { %3544 = vmatprep.mubr.bf16.mxu0 %v6264_v0  ;;  %3585 = vmatprep.mubr.bf16.mxu1 %v6264_v0  ;;  %v5809_v26 = vcombine.high %v107_v21, %v139_v22  ;;  %v5808_v33 = vcombine.low %v107_v21, %v139_v22  ;;  %v76_v14 = vld [vmem:[#allocation2 + $0x170] sm:$0xff] }
  0xba   :  { %v108_v21 = vld [vmem:[#allocation2 + $0x270] sm:$0xff] }
  0xbb   :  { %3515 = vmatpush1.bf16.msra.mxu0 %v5802_v29  ;;  %3556 = vmatpush1.bf16.msra.mxu1 %v5804_v30  ;;  %v171_v29 = vld [vmem:[#allocation2 + $0x468] sm:$0xff]  ;;  %v140_v22 = vld [vmem:[#allocation2 + $0x370] sm:$0xff] }
  0xbc   :  { %3516 = vmatprep.subr.bf16.mxu0 %v5867_v31  ;;  %3557 = vmatprep.subr.bf16.mxu1 %v5869_v32  ;;  %v203_v30 = vld [vmem:[#allocation2 + $0x568] sm:$0xff]  ;;  %v6333_v31 = vld [vmem:[%s7750_s0] sm:$0xf]  ;;  %v5806_v32 = vcombine.low %v106_v19, %v138_v20  ;;  %v5747_v19 = vcombine.high %v44_v13, %v76_v14 }
  0xbd   :  { %v5873_v35 = vcombine.high %v171_v29, %v203_v30 }
  0xbf   :  { %3517 = vmatpush1.bf16.msra.mxu0 %v5866_v37  ;;  %3558 = vmatpush1.bf16.msra.mxu1 %v5868_v38  ;;  %v266_v37 = vld [vmem:[#allocation2 + $0x760] sm:$0xff]  ;;  %v267_v38 = vld [vmem:[#allocation2 + $0x768] sm:$0xff] }
  0xc0   :  { %3518 = vmatprep.subr.bf16.mxu0 %v5931_v39  ;;  %3559 = vmatprep.subr.bf16.mxu1 %v5933_v40  ;;  %v5870_v39 = vcombine.low %v170_v27, %v202_v28  ;;  %v5872_v40 = vcombine.low %v171_v29, %v203_v30  ;;  %v5935_v41 = vcombine.high %v234_v36, %v266_v37  ;;  %v172_v29 = vld [vmem:[#allocation2 + $0x470] sm:$0xff] }
  0xc1   :  { %v5811_v27 = vcombine.high %v108_v21, %v140_v22  ;;  %v204_v30 = vld [vmem:[#allocation2 + $0x570] sm:$0xff] }
  0xc3   :  { %3519 = vmatpush1.bf16.msra.mxu0 %v5930_v45  ;;  %3560 = vmatpush1.bf16.msra.mxu1 %v5932_v46  ;;  %v299_v45 = vld [vmem:[#allocation2 + $0x868] sm:$0xff] }
  0xc4   :  { %3520 = vmatprep.subr.bf16.mxu0 %v5995_v47  ;;  %3561 = vmatprep.subr.bf16.mxu1 %v5997_v48  ;;  %v331_v46 = vld [vmem:[#allocation2 + $0x968] sm:$0xff]  ;;  %v5934_v47 = vcombine.low %v234_v36, %v266_v37  ;;  %v5875_v36 = vcombine.high %v172_v29, %v204_v30 }
  0xc5   :  { %v6001_v50 = vcombine.high %v299_v45, %v331_v46 }
  0xc7   :  { %3521 = vmatpush1.bf16.msra.mxu0 %v5994_v53  ;;  %3562 = vmatpush1.bf16.msra.mxu1 %v5996_v54  ;;  %v363_v53 = vld [vmem:[#allocation2 + $0xa68] sm:$0xff] }
  0xc8   :  { %3522 = vmatprep.subr.bf16.mxu0 %v6059_v55  ;;  %3563 = vmatprep.subr.bf16.mxu1 %v6061_v56  ;;  %v395_v54 = vld [vmem:[#allocation2 + $0xb68] sm:$0xff]  ;;  %v5998_v55 = vcombine.low %v298_v43, %v330_v44  ;;  %v6000_v56 = vcombine.low %v299_v45, %v331_v46  ;;  %v300_v45 = vld [vmem:[#allocation2 + $0x870] sm:$0xff] }
  0xc9   :  { %v6065_v58 = vcombine.high %v363_v53, %v395_v54  ;;  %v332_v46 = vld [vmem:[#allocation2 + $0x970] sm:$0xff] }
  0xcb   :  { %3523 = vmatpush1.bf16.msra.mxu0 %v6058_v61  ;;  %3564 = vmatpush1.bf16.msra.mxu1 %v6060_v62  ;;  %v427_v61 = vld [vmem:[#allocation2 + $0xc68] sm:$0xff] }
  0xcc   :  { %3524 = vmatprep.subr.bf16.mxu0 %v6123_v63  ;;  %3565 = vmatprep.subr.bf16.mxu1 %v6125_v1  ;;  %v459_v62 = vld [vmem:[#allocation2 + $0xd68] sm:$0xff]  ;;  %v6062_v63 = vcombine.low %v362_v51, %v394_v52  ;;  %v6064_v1 = vcombine.low %v363_v53, %v395_v54  ;;  %v6003_v51 = vcombine.high %v300_v45, %v332_v46  ;;  %v364_v53 = vld [vmem:[#allocation2 + $0xa70] sm:$0xff] }
  0xcd   :  { %v6129_v3 = vcombine.high %v427_v61, %v459_v62  ;;  %v396_v54 = vld [vmem:[#allocation2 + $0xb70] sm:$0xff] }
  0xcf   :  { %3525 = vmatpush1.bf16.msra.mxu0 %v6122_v6  ;;  %3566 = vmatpush1.bf16.msra.mxu1 %v6124_v7  ;;  %v491_v6 = vld [vmem:[#allocation2 + $0xe68] sm:$0xff] }
  0xd0   :  { %3526 = vmatprep.subr.bf16.mxu0 %v6187_v8  ;;  %3567 = vmatprep.subr.bf16.mxu1 %v6189_v9  ;;  %v523_v7 = vld [vmem:[#allocation2 + $0xf68] sm:$0xff]  ;;  %v6126_v8 = vcombine.low %v426_v59, %v458_v60  ;;  %v6128_v9 = vcombine.low %v427_v61, %v459_v62  ;;  %v6348_v59 = vld [vmem:[#allocation2 + $0xd70] sm:$0xff]  ;;  %v6350_v60 = vld [vmem:[#allocation2 + $0xc78] sm:$0xff] }
  0xd1   :  { %v6193_v11 = vcombine.high %v491_v6, %v523_v7  ;;  %v6352_v61 = vld [vmem:[#allocation2 + $0xd78] sm:$0xff] }
  0xd3   :  { %3527 = vmatpush1.bf16.msra.mxu0 %v6186_v15  ;;  %3568 = vmatpush1.bf16.msra.mxu1 %v6188_v16  ;;  %v45_v15 = vld [vmem:[#allocation2 + $0x78] sm:$0xff] }
  0xd4   :  { %3594 = vmatprep.subr.bf16.mxu0 %v5743_v17  ;;  %3635 = vmatprep.subr.bf16.mxu1 %v5745_v18  ;;  %v77_v16 = vld [vmem:[#allocation2 + $0x178] sm:$0xff]  ;;  %v6190_v17 = vcombine.low %v490_v4, %v522_v5  ;;  %v6192_v18 = vcombine.low %v491_v6, %v523_v7  ;;  %v6364_v6 = vld [vmem:[#allocation2 + $0x80] sm:$0xff] }
  0xd5   :  { %v5749_v20 = vcombine.high %v45_v15, %v77_v16  ;;  %v6362_v5 = vld [vmem:[#allocation2 + $0xf78] sm:$0xff]  ;;  %v6366_v7 = vld [vmem:[#allocation2 + $0x180] sm:$0xff] }
  0xd6   :  { %3545 = vmatmul.mubr.bf16.vlgmr.msra.gmra.mrb[20].mxu0 %v6307_v12  ;;  %3586 = vmatmul.mubr.bf16.vlgmr.msra.gmra.mrb[20].mxu1 %v6333_v31  ;;  %v235_v12 = vld [vmem:[#allocation2 + $0x668] sm:$0xff] }
  0xd7   :  { %3595 = vmatpush1.bf16.msra.mxu0 %v5742_v23  ;;  %3636 = vmatpush1.bf16.msra.mxu1 %v5744_v24  ;;  %v5937_v42 = vcombine.high %v235_v12, %v267_v38  ;;  %v5936_v48 = vcombine.low %v235_v12, %v267_v38  ;;  %v109_v23 = vld [vmem:[#allocation2 + $0x278] sm:$0xff]  ;;  %v236_v12 = vld [vmem:[#allocation2 + $0x670] sm:$0xff] }
  0xd8   :  { %3596 = vmatprep.subr.bf16.mxu0 %v5807_v25  ;;  %3637 = vmatprep.subr.bf16.mxu1 %v5809_v26  ;;  %v141_v24 = vld [vmem:[#allocation2 + $0x378] sm:$0xff]  ;;  %v5746_v25 = vcombine.low %v44_v13, %v76_v14  ;;  %v5748_v26 = vcombine.low %v45_v15, %v77_v16  ;;  %v268_v38 = vld [vmem:[#allocation2 + $0x770] sm:$0xff]  ;;  %v6374_v13 = vld [vmem:[#allocation2 + $0x188] sm:$0xff]  ;;  %v6132_v16 = vcombine.low %v6350_v60, %v6352_v61 }
  0xd9   :  { %3626 = vmatprep.mubr.bf16.mxu0 %v6264_v0  ;;  %3667 = vmatprep.mubr.bf16.mxu1 %v6264_v0  ;;  %v5813_v28 = vcombine.high %v109_v23, %v141_v24  ;;  %v5939_v43 = vcombine.high %v236_v12, %v268_v38  ;;  %v6376_v14 = vld [vmem:[#allocation2 + $0x280] sm:$0xff] }
  0xdb   :  { %3597 = vmatpush1.bf16.msra.mxu0 %v5806_v32  ;;  %3638 = vmatpush1.bf16.msra.mxu1 %v5808_v33  ;;  %v173_v32 = vld [vmem:[#allocation2 + $0x478] sm:$0xff] }
  0xdc   :  { %3598 = vmatprep.subr.bf16.mxu0 %v5871_v34  ;;  %3639 = vmatprep.subr.bf16.mxu1 %v5873_v35  ;;  %v205_v33 = vld [vmem:[#allocation2 + $0x578] sm:$0xff]  ;;  %v5810_v34 = vcombine.low %v108_v21, %v140_v22  ;;  %v5812_v35 = vcombine.low %v109_v23, %v141_v24  ;;  %v6390_v21 = vld [vmem:[#allocation2 + $0x388] sm:$0xff] }
  0xdd   :  { %v5877_v37 = vcombine.high %v173_v32, %v205_v33 }
  0xdf   :  { %3599 = vmatpush1.bf16.msra.mxu0 %v5870_v39  ;;  %3640 = vmatpush1.bf16.msra.mxu1 %v5872_v40  ;;  %v237_v39 = vld [vmem:[#allocation2 + $0x678] sm:$0xff] }
  0xe0   :  { %3600 = vmatprep.subr.bf16.mxu0 %v5935_v41  ;;  %3641 = vmatprep.subr.bf16.mxu1 %v5937_v42  ;;  %v269_v40 = vld [vmem:[#allocation2 + $0x778] sm:$0xff]  ;;  %v5874_v41 = vcombine.low %v172_v29, %v204_v30  ;;  %v5876_v42 = vcombine.low %v173_v32, %v205_v33 }
  0xe1   :  { %v5941_v44 = vcombine.high %v237_v39, %v269_v40 }
  0xe3   :  { %3601 = vmatpush1.bf16.msra.mxu0 %v5934_v47  ;;  %3642 = vmatpush1.bf16.msra.mxu1 %v5936_v48  ;;  %v301_v47 = vld [vmem:[#allocation2 + $0x878] sm:$0xff] }
  0xe4   :  { %3602 = vmatprep.subr.bf16.mxu0 %v5999_v49  ;;  %3643 = vmatprep.subr.bf16.mxu1 %v6001_v50  ;;  %v333_v48 = vld [vmem:[#allocation2 + $0x978] sm:$0xff]  ;;  %v5938_v49 = vcombine.low %v236_v12, %v268_v38  ;;  %v5940_v50 = vcombine.low %v237_v39, %v269_v40 }
  0xe5   :  { %v6005_v52 = vcombine.high %v301_v47, %v333_v48  ;;  %v6004_v62 = vcombine.low %v301_v47, %v333_v48 }
  0xe7   :  { %3603 = vmatpush1.bf16.msra.mxu0 %v5998_v55  ;;  %3644 = vmatpush1.bf16.msra.mxu1 %v6000_v56  ;;  %v6342_v55 = vld [vmem:[#allocation2 + $0xa78] sm:$0xff] }
  0xe8   :  { %3604 = vmatprep.subr.bf16.mxu0 %v6063_v57  ;;  %3645 = vmatprep.subr.bf16.mxu1 %v6065_v58  ;;  %v6344_v56 = vld [vmem:[#allocation2 + $0xb78] sm:$0xff]  ;;  %v6346_v57 = vld [vmem:[#allocation2 + $0xc70] sm:$0xff]  ;;  %v6002_v58 = vcombine.low %v300_v45, %v332_v46 }
  0xe9   :  { %v6069_v4 = vcombine.high %v6342_v55, %v6344_v56  ;;  %v6130_v15 = vcombine.low %v6346_v57, %v6348_v59 }
  0xeb   :  { %3605 = vmatpush1.bf16.msra.mxu0 %v6062_v63  ;;  %3646 = vmatpush1.bf16.msra.mxu1 %v6064_v1  ;;  %v6067_v63 = vcombine.high %v364_v53, %v396_v54  ;;  %v6354_v1 = vld [vmem:[#allocation2 + $0xe70] sm:$0xff] }
  0xec   :  { %3606 = vmatprep.subr.bf16.mxu0 %v6127_v2  ;;  %3647 = vmatprep.subr.bf16.mxu1 %v6129_v3  ;;  %v6356_v2 = vld [vmem:[#allocation2 + $0xf70] sm:$0xff]  ;;  %v6358_v3 = vld [vmem:[#allocation2 + $0xe78] sm:$0xff] }
  0xed   :  { %v6194_v22 = vcombine.low %v6354_v1, %v6356_v2  ;;  %v6196_v23 = vcombine.low %v6358_v3, %v6362_v5  ;;  %v6197_v24 = vcombine.high %v6358_v3, %v6362_v5 }
  0xef   :  { %3607 = vmatpush1.bf16.msra.mxu0 %v6126_v8  ;;  %3648 = vmatpush1.bf16.msra.mxu1 %v6128_v9  ;;  %v6066_v8 = vcombine.low %v364_v53, %v396_v54  ;;  %v6068_v9 = vcombine.low %v6342_v55, %v6344_v56 }
  0xf0   :  { %3608 = vmatprep.subr.bf16.mxu0 %v6191_v10  ;;  %3649 = vmatprep.subr.bf16.mxu1 %v6193_v11  ;;  %v6131_v10 = vcombine.high %v6346_v57, %v6348_v59  ;;  %v6372_v11 = vld [vmem:[#allocation2 + $0x88] sm:$0xff] }
  0xf1   :  { %v5753_v29 = vcombine.high %v6372_v11, %v6374_v13 }
  0xf3   :  { %3609 = vmatpush1.bf16.msra.mxu0 %v6190_v17  ;;  %3650 = vmatpush1.bf16.msra.mxu1 %v6192_v18  ;;  %v6133_v17 = vcombine.high %v6350_v60, %v6352_v61  ;;  %v6195_v18 = vcombine.high %v6354_v1, %v6356_v2  ;;  %v174_v1 = vld [vmem:[#allocation2 + $0x480] sm:$0xff] }
  0xf4   :  { %3676 = vmatprep.subr.bf16.mxu0 %v5747_v19  ;;  %3717 = vmatprep.subr.bf16.mxu1 %v5749_v20  ;;  %v6386_v19 = vld [vmem:[#allocation2 + $0x380] sm:$0xff]  ;;  %v6388_v20 = vld [vmem:[#allocation2 + $0x288] sm:$0xff] }
  0xf5   :  { %v206_v2 = vld [vmem:[#allocation2 + $0x580] sm:$0xff] }
  0xf6   :  { %3627 = vmatmul.mubr.bf16.vlgmr.msra.gmra.mrb[24].mxu0 %v6333_v31  ;;  %3668 = vmatmul.mubr.bf16.vlgmr.msra.gmra.mrb[24].mxu1 %v6333_v31 }
  0xf7   :  { %3677 = vmatpush1.bf16.msra.mxu0 %v5746_v25  ;;  %3718 = vmatpush1.bf16.msra.mxu1 %v5748_v26  ;;  %v5750_v26 = vcombine.low %v6364_v6, %v6366_v7 }
  0xf8   :  { %3678 = vmatprep.subr.bf16.mxu0 %v5811_v27  ;;  %3719 = vmatprep.subr.bf16.mxu1 %v5813_v28  ;;  %v5751_v27 = vcombine.high %v6364_v6, %v6366_v7  ;;  %v5752_v28 = vcombine.low %v6372_v11, %v6374_v13  ;;  %v5816_v6 = vcombine.low %v6388_v20, %v6390_v21  ;;  %v238_v13 = vld [vmem:[#allocation2 + $0x680] sm:$0xff] }
  0xf9   :  { %3708 = vmatprep.mubr.bf16.mxu0 %v6264_v0  ;;  %3749 = vmatprep.mubr.bf16.mxu1 %v6264_v0  ;;  %v5879_v7 = vcombine.high %v174_v1, %v206_v2 }
  0xfb   :  { %3679 = vmatpush1.bf16.msra.mxu0 %v5810_v34  ;;  %3720 = vmatpush1.bf16.msra.mxu1 %v5812_v35  ;;  %v5815_v35 = vcombine.high %v6376_v14, %v6386_v19 }
  0xfc   :  { %3680 = vmatprep.subr.bf16.mxu0 %v5875_v36  ;;  %3721 = vmatprep.subr.bf16.mxu1 %v5877_v37  ;;  %v5817_v36 = vcombine.high %v6388_v20, %v6390_v21 }
  0xff   :  { %3681 = vmatpush1.bf16.msra.mxu0 %v5874_v41  ;;  %3722 = vmatpush1.bf16.msra.mxu1 %v5876_v42 }
 0x100   :  { %3682 = vmatprep.subr.bf16.mxu0 %v5939_v43  ;;  %3723 = vmatprep.subr.bf16.mxu1 %v5941_v44 }
 0x103   :  { %3683 = vmatpush1.bf16.msra.mxu0 %v5938_v49  ;;  %3724 = vmatpush1.bf16.msra.mxu1 %v5940_v50 }
 0x104   :  { %3684 = vmatprep.subr.bf16.mxu0 %v6003_v51  ;;  %3725 = vmatprep.subr.bf16.mxu1 %v6005_v52 }
 0x107   :  { %3685 = vmatpush1.bf16.msra.mxu0 %v6002_v58  ;;  %3726 = vmatpush1.bf16.msra.mxu1 %v6004_v62 }
 0x108   :  { %3686 = vmatprep.subr.bf16.mxu0 %v6067_v63  ;;  %3727 = vmatprep.subr.bf16.mxu1 %v6069_v4 }
 0x109   :  { %v3136_v25 = vpop.f32.mrb[0].mxu0  ;;  %v3177_v33 = vpop.f32.mrb[0].mxu1 }
 0x10a   :  { %4418 = vst [vmem:[%s7752_s2] sm:$0xff] %v3136_v25  ;;  %v4745_v30 = vrot.slane %v3136_v25, 4  ;;  %v5129_v32 = vmul.f32 %v3136_v25, %v3136_v25  ;;  %v3138_v34 = vpop.f32.mrb[1].mxu0  ;;  %4420 = vst [vmem:[%s7752_s2 + $0x10] sm:$0xff] %v3177_v33  ;;  %v4757_v37 = vrot.slane %v3177_v33, 4  ;;  %v5131_v12 = vmul.f32 %v3177_v33, %v3177_v33  ;;  %v3179_v40 = vpop.f32.mrb[1].mxu1 }
 0x10b   :  { %4419 = vst [vmem:[%s7752_s2 + $0x8] sm:$0xff] %v3138_v34  ;;  %v4751_v38 = vrot.slane %v3138_v34, 4  ;;  %v5130_v39 = vmul.f32 %v3138_v34, %v3138_v34  ;;  %v3140_v41 = vpop.f32.mrb[2].mxu0  ;;  %3687 = vmatpush1.bf16.msra.mxu0 %v6066_v8  ;;  %4421 = vst [vmem:[%s7752_s2 + $0x18] sm:$0xff] %v3179_v40  ;;  %v4763_v44 = vrot.slane %v3179_v40, 4  ;;  %v5132_v45 = vmul.f32 %v3179_v40, %v3179_v40  ;;  %v3181_v46 = vpop.f32.mrb[2].mxu1 }
 0x10c   :  { %v4746_v42 = vadd.f32 %v4745_v30, %v3136_v25  ;;  %v5193_v43 = vrot.slane %v5129_v32, 4  ;;  %3728 = vmatpush1.bf16.msra.mxu1 %v6068_v9  ;;  %v3141_v47 = vpop.f32.mrb[3].mxu0  ;;  %3688 = vmatprep.subr.bf16.mxu0 %v6131_v10  ;;  %v4758_v48 = vadd.f32 %v4757_v37, %v3177_v33  ;;  %v5205_v49 = vrot.slane %v5131_v12, 4  ;;  %v3182_v52 = vpop.f32.mrb[3].mxu1  ;;  %v334_v46 = vld [vmem:[#allocation2 + $0x980] sm:$0xff] }
 0x10d   :  { %v4752_v50 = vadd.f32 %v4751_v38, %v3138_v34  ;;  %v5199_v51 = vrot.slane %v5130_v39, 4  ;;  %3729 = vmatprep.subr.bf16.mxu1 %v6133_v17  ;;  %v4764_v55 = vadd.f32 %v4763_v44, %v3179_v40  ;;  %v5211_v56 = vrot.slane %v5132_v45, 4  ;;  %v303_v47 = vld [vmem:[#allocation2 + $0x888] sm:$0xff] }
 0x10e   :  { %v4747_v53 = vrot.slane %v4746_v42, 2  ;;  %v5194_v54 = vadd.f32 %v5193_v43, %v5129_v32  ;;  %v4759_v57 = vrot.slane %v4758_v48, 2  ;;  %v5206_v58 = vadd.f32 %v5205_v49, %v5131_v12 }
 0x10f   :  { %v4753_v59 = vrot.slane %v4752_v50, 2  ;;  %v5200_v60 = vadd.f32 %v5199_v51, %v5130_v39  ;;  %3689 = vmatpush1.bf16.msra.mxu0 %v6130_v15  ;;  %v4765_v63 = vrot.slane %v4764_v55, 2  ;;  %v5212_v4 = vadd.f32 %v5211_v56, %v5132_v45  ;;  %v6480_v56 = vld [vmem:[#allocation2 + $0xb88] sm:$0xff] }
 0x110   :  { %v4748_v61 = vadd.f32 %v4747_v53, %v4746_v42  ;;  %v5195_v62 = vrot.slane %v5194_v54, 2  ;;  %3730 = vmatpush1.bf16.msra.mxu1 %v6132_v16  ;;  %3690 = vmatprep.subr.bf16.mxu0 %v6195_v18  ;;  %v4760_v8 = vadd.f32 %v4759_v57, %v4758_v48  ;;  %v5207_v9 = vrot.slane %v5206_v58, 2  ;;  %v335_v48 = vld [vmem:[#allocation2 + $0x988] sm:$0xff]  ;;  %v366_v53 = vld [vmem:[#allocation2 + $0xa80] sm:$0xff] }
 0x111   :  { %v4754_v10 = vadd.f32 %v4753_v59, %v4752_v50  ;;  %v5201_v25 = vrot.slane %v5200_v60, 2  ;;  %3731 = vmatprep.subr.bf16.mxu1 %v6197_v24  ;;  %v4766_v32 = vadd.f32 %v4765_v63, %v4764_v55  ;;  %v5213_v33 = vrot.slane %v5212_v4, 2  ;;  %v6478_v55 = vld [vmem:[#allocation2 + $0xa88] sm:$0xff]  ;;  %v6482_v57 = vld [vmem:[#allocation2 + $0xc80] sm:$0xff] }
 0x112   :  { %v4749_v17 = vrot.slane %v4748_v61, 1  ;;  %v5196_v30 = vadd.f32 %v5195_v62, %v5194_v54  ;;  %v4761_v34 = vrot.slane %v4760_v8, 1  ;;  %v5208_v37 = vadd.f32 %v5207_v9, %v5206_v58  ;;  %v398_v54 = vld [vmem:[#allocation2 + $0xb80] sm:$0xff]  ;;  %v6494_v9 = vld [vmem:[#allocation2 + $0xe88] sm:$0xff] }
 0x113   :  { %v4755_v12 = vrot.slane %v4754_v10, 1  ;;  %v5202_v38 = vadd.f32 %v5201_v25, %v5200_v60  ;;  %3691 = vmatpush1.bf16.msra.mxu0 %v6194_v22  ;;  %v4767_v18 = vrot.slane %v4766_v32, 1  ;;  %v5214_v39 = vadd.f32 %v5213_v33, %v5212_v4  ;;  %v6484_v59 = vld [vmem:[#allocation2 + $0xd80] sm:$0xff]  ;;  %v6486_v60 = vld [vmem:[#allocation2 + $0xc88] sm:$0xff] }
 0x114   :  { %v4750_v15 = vadd.f32 %v4749_v17, %v4748_v61  ;;  %v5197_v16 = vrot.slane %v5196_v30, 1  ;;  %3732 = vmatpush1.bf16.msra.mxu1 %v6196_v23  ;;  %3758 = vmatprep.subr.bf16.mxu0 %v5751_v27  ;;  %v4762_v24 = vadd.f32 %v4761_v34, %v4760_v8  ;;  %v5209_v40 = vrot.slane %v5208_v37, 1  ;;  %v175_v23 = vld [vmem:[#allocation2 + $0x488] sm:$0xff]  ;;  %v6490_v4 = vld [vmem:[#allocation2 + $0xe80] sm:$0xff]  ;;  %v6500_v17 = vld [vmem:[#allocation2 + $0x90] sm:$0xff] }
 0x115   :  { %v4756_v41 = vadd.f32 %v4755_v12, %v4754_v10  ;;  %v5203_v42 = vrot.slane %v5202_v38, 1  ;;  %3799 = vmatprep.subr.bf16.mxu1 %v5753_v29  ;;  %v4768_v3 = vadd.f32 %v4767_v18, %v4766_v32  ;;  %v5215_v5 = vrot.slane %v5214_v39, 1  ;;  %v207_v27 = vld [vmem:[#allocation2 + $0x588] sm:$0xff]  ;;  %v6492_v8 = vld [vmem:[#allocation2 + $0xf80] sm:$0xff]  ;;  %v6510_v12 = vld [vmem:[#allocation2 + $0x198] sm:$0xff] }
 0x116   :  { %v5198_v22 = vadd.f32 %v5197_v16, %v5196_v30  ;;  %5577 = vst [vmem:[%s7753_s3] sm:$0xff] %v4750_v15  ;;  %3709 = vmatmul.mubr.bf16.vlgmr.msra.gmra.mrb[28].mxu0 %v6333_v31  ;;  %v5210_v43 = vadd.f32 %v5209_v40, %v5208_v37  ;;  %5579 = vst [vmem:[%s7753_s3 + $0x10] sm:$0xff] %v4762_v24  ;;  %v5814_v29 = vcombine.low %v6376_v14, %v6386_v19  ;;  %v270_v14 = vld [vmem:[#allocation2 + $0x780] sm:$0xff]  ;;  %v239_v19 = vld [vmem:[#allocation2 + $0x688] sm:$0xff] }
 0x117   :  { %v5204_v44 = vadd.f32 %v5203_v42, %v5202_v38  ;;  %5578 = vst [vmem:[%s7753_s3 + $0x8] sm:$0xff] %v4756_v41  ;;  %3750 = vmatmul.mubr.bf16.vlgmr.msra.gmra.mrb[28].mxu1 %v6333_v31  ;;  %3759 = vmatpush1.bf16.msra.mxu0 %v5750_v26  ;;  %v5216_v45 = vadd.f32 %v5215_v5, %v5214_v39  ;;  %5580 = vst [vmem:[%s7753_s3 + $0x18] sm:$0xff] %v4768_v3  ;;  %v271_v26 = vld [vmem:[#allocation2 + $0x788] sm:$0xff]  ;;  %v6502_v30 = vld [vmem:[#allocation2 + $0x190] sm:$0xff] }
 0x118   :  { %5641 = vst [vmem:[%s7754_s4] sm:$0xff] %v5198_v22  ;;  %3800 = vmatpush1.bf16.msra.mxu1 %v5752_v28  ;;  %3760 = vmatprep.subr.bf16.mxu0 %v5815_v35  ;;  %5643 = vst [vmem:[%s7754_s4 + $0x10] sm:$0xff] %v5210_v43  ;;  %v5881_v11 = vcombine.high %v175_v23, %v207_v27  ;;  %v5878_v28 = vcombine.low %v174_v1, %v206_v2  ;;  %v6488_v61 = vld [vmem:[#allocation2 + $0xd88] sm:$0xff]  ;;  %v6508_v37 = vld [vmem:[#allocation2 + $0x98] sm:$0xff] }
 0x119   :  { %5642 = vst [vmem:[%s7754_s4 + $0x8] sm:$0xff] %v5204_v44  ;;  %3801 = vmatprep.subr.bf16.mxu1 %v5817_v36  ;;  %3790 = vmatprep.mubr.bf16.mxu0 %v6264_v0  ;;  %5644 = vst [vmem:[%s7754_s4 + $0x18] sm:$0xff] %v5216_v45  ;;  %v5880_v35 = vcombine.low %v175_v23, %v207_v27  ;;  %v5943_v20 = vcombine.high %v238_v13, %v270_v14  ;;  %v302_v36 = vld [vmem:[#allocation2 + $0x880] sm:$0xff]  ;;  %v6498_v25 = vld [vmem:[#allocation2 + $0xf88] sm:$0xff] }
 0x11a   :  { %3831 = vmatprep.mubr.bf16.mxu1 %v6264_v0  ;;  %v5945_v21 = vcombine.high %v239_v19, %v271_v26  ;;  %v5942_v49 = vcombine.low %v238_v13, %v270_v14  ;;  %v5944_v50 = vcombine.low %v239_v19, %v271_v26  ;;  %v6007_v51 = vcombine.high %v302_v36, %v334_v46  ;;  %v6512_v38 = vld [vmem:[#allocation2 + $0x290] sm:$0xff]  ;;  %v6524_v40 = vld [vmem:[#allocation2 + $0x298] sm:$0xff] }
 0x11b   :  { %3761 = vmatpush1.bf16.msra.mxu0 %v5814_v29  ;;  %v6009_v52 = vcombine.high %v303_v47, %v335_v48  ;;  %v6006_v58 = vcombine.low %v302_v36, %v334_v46  ;;  %v6008_v62 = vcombine.low %v303_v47, %v335_v48  ;;  %v6071_v63 = vcombine.high %v366_v53, %v398_v54  ;;  %v6522_v24 = vld [vmem:[#allocation2 + $0x390] sm:$0xff]  ;;  %v6526_v41 = vld [vmem:[#allocation2 + $0x398] sm:$0xff] }
 0x11c   :  { %3802 = vmatpush1.bf16.msra.mxu1 %v5816_v6  ;;  %3762 = vmatprep.subr.bf16.mxu0 %v5879_v7  ;;  %v6073_v10 = vcombine.high %v6478_v55, %v6480_v56  ;;  %v6070_v32 = vcombine.low %v366_v53, %v398_v54  ;;  %v6072_v33 = vcombine.low %v6478_v55, %v6480_v56 }
 0x11d   :  { %3803 = vmatprep.subr.bf16.mxu1 %v5881_v11  ;;  %v6135_v34 = vcombine.high %v6482_v57, %v6484_v59  ;;  %v6134_v15 = vcombine.low %v6482_v57, %v6484_v59  ;;  %v6136_v16 = vcombine.low %v6486_v60, %v6488_v61  ;;  %v6137_v18 = vcombine.high %v6486_v60, %v6488_v61 }
 0x11e   :  { %v6199_v39 = vcombine.high %v6490_v4, %v6492_v8  ;;  %v6198_v42 = vcombine.low %v6490_v4, %v6492_v8  ;;  %v6200_v1 = vcombine.low %v6494_v9, %v6498_v25  ;;  %v6201_v2 = vcombine.high %v6494_v9, %v6498_v25  ;;  %v176_v4 = vld [vmem:[#allocation2 + $0x490] sm:$0xff] }
 0x11f   :  { %3763 = vmatpush1.bf16.msra.mxu0 %v5878_v28  ;;  %v5754_v3 = vcombine.low %v6500_v17, %v6502_v30  ;;  %v5755_v5 = vcombine.high %v6500_v17, %v6502_v30  ;;  %v5756_v23 = vcombine.low %v6508_v37, %v6510_v12  ;;  %v5757_v27 = vcombine.high %v6508_v37, %v6510_v12  ;;  %v208_v8 = vld [vmem:[#allocation2 + $0x590] sm:$0xff] }
 0x120   :  { %3804 = vmatpush1.bf16.msra.mxu1 %v5880_v35  ;;  %3764 = vmatprep.subr.bf16.mxu0 %v5943_v20  ;;  %v5819_v6 = vcombine.high %v6512_v38, %v6522_v24  ;;  %v5821_v7 = vcombine.high %v6524_v40, %v6526_v41  ;;  %v5883_v17 = vcombine.high %v176_v4, %v208_v8  ;;  %v240_v37 = vld [vmem:[#allocation2 + $0x690] sm:$0xff] }
 0x121   :  { %3805 = vmatprep.subr.bf16.mxu1 %v5945_v21  ;;  %v272_v12 = vld [vmem:[#allocation2 + $0x790] sm:$0xff] }
 0x123   :  { %3765 = vmatpush1.bf16.msra.mxu0 %v5942_v49 }
 0x124   :  { %3806 = vmatpush1.bf16.msra.mxu1 %v5944_v50  ;;  %3766 = vmatprep.subr.bf16.mxu0 %v6007_v51 }
 0x125   :  { %3807 = vmatprep.subr.bf16.mxu1 %v6009_v52 }
 0x127   :  { %3767 = vmatpush1.bf16.msra.mxu0 %v6006_v58 }
 0x128   :  { %3808 = vmatpush1.bf16.msra.mxu1 %v6008_v62  ;;  %3768 = vmatprep.subr.bf16.mxu0 %v6071_v63 }
 0x129   :  { %v3218_v22 = vpop.f32.mrb[4].mxu0  ;;  %3809 = vmatprep.subr.bf16.mxu1 %v6073_v10  ;;  %v3259_v29 = vpop.f32.mrb[4].mxu1 }
 0x12a   :  { %4422 = vst [vmem:[%s7752_s2 + $0x20] sm:$0xff] %v3218_v22  ;;  %v4769_v43 = vrot.slane %v3218_v22, 4  ;;  %v5133_v44 = vmul.f32 %v3218_v22, %v3218_v22  ;;  %v3220_v45 = vpop.f32.mrb[5].mxu0  ;;  %4424 = vst [vmem:[%s7752_s2 + $0x30] sm:$0xff] %v3259_v29  ;;  %v4781_v11 = vrot.slane %v3259_v29, 4  ;;  %v5135_v13 = vmul.f32 %v3259_v29, %v3259_v29  ;;  %v3261_v26 = vpop.f32.mrb[5].mxu1 }
 0x12b   :  { %4423 = vst [vmem:[%s7752_s2 + $0x28] sm:$0xff] %v3220_v45  ;;  %v4775_v14 = vrot.slane %v3220_v45, 4  ;;  %v5134_v19 = vmul.f32 %v3220_v45, %v3220_v45  ;;  %v3222_v28 = vpop.f32.mrb[6].mxu0  ;;  %3769 = vmatpush1.bf16.msra.mxu0 %v6070_v32  ;;  %4425 = vst [vmem:[%s7752_s2 + $0x38] sm:$0xff] %v3261_v26  ;;  %v4787_v21 = vrot.slane %v3261_v26, 4  ;;  %v5136_v36 = vmul.f32 %v3261_v26, %v3261_v26  ;;  %v3263_v46 = vpop.f32.mrb[6].mxu1 }
 0x12c   :  { %v4770_v35 = vadd.f32 %v4769_v43, %v3218_v22  ;;  %v5217_v20 = vrot.slane %v5133_v44, 4  ;;  %3810 = vmatpush1.bf16.msra.mxu1 %v6072_v33  ;;  %v3223_v47 = vpop.f32.mrb[7].mxu0  ;;  %3770 = vmatprep.subr.bf16.mxu0 %v6135_v34  ;;  %v4782_v48 = vadd.f32 %v4781_v11, %v3259_v29  ;;  %v5229_v49 = vrot.slane %v5135_v13, 4  ;;  %v3264_v52 = vpop.f32.mrb[7].mxu1  ;;  %v305_v46 = vld [vmem:[#allocation2 + $0x898] sm:$0xff] }
 0x12d   :  { %v4776_v50 = vadd.f32 %v4775_v14, %v3220_v45  ;;  %v5223_v51 = vrot.slane %v5134_v19, 4  ;;  %3811 = vmatprep.subr.bf16.mxu1 %v6137_v18  ;;  %v4788_v55 = vadd.f32 %v4787_v21, %v3261_v26  ;;  %v5235_v56 = vrot.slane %v5136_v36, 4  ;;  %v337_v47 = vld [vmem:[#allocation2 + $0x998] sm:$0xff]  ;;  %v368_v52 = vld [vmem:[#allocation2 + $0xa90] sm:$0xff] }
 0x12e   :  { %v4771_v53 = vrot.slane %v4770_v35, 2  ;;  %v5218_v54 = vadd.f32 %v5217_v20, %v5133_v44  ;;  %v4783_v57 = vrot.slane %v4782_v48, 2  ;;  %v5230_v58 = vadd.f32 %v5229_v49, %v5135_v13 }
 0x12f   :  { %v4777_v59 = vrot.slane %v4776_v50, 2  ;;  %v5224_v60 = vadd.f32 %v5223_v51, %v5134_v19  ;;  %3771 = vmatpush1.bf16.msra.mxu0 %v6134_v15  ;;  %v4789_v63 = vrot.slane %v4788_v55, 2  ;;  %v5236_v10 = vadd.f32 %v5235_v56, %v5136_v36  ;;  %v6618_v56 = vld [vmem:[#allocation2 + $0xc90] sm:$0xff] }
 0x130   :  { %v4772_v61 = vadd.f32 %v4771_v53, %v4770_v35  ;;  %v5219_v62 = vrot.slane %v5218_v54, 2  ;;  %3812 = vmatpush1.bf16.msra.mxu1 %v6136_v16  ;;  %3772 = vmatprep.subr.bf16.mxu0 %v6199_v39  ;;  %v4784_v32 = vadd.f32 %v4783_v57, %v4782_v48  ;;  %v5231_v33 = vrot.slane %v5230_v58, 2  ;;  %v400_v53 = vld [vmem:[#allocation2 + $0xb90] sm:$0xff] }
 0x131   :  { %v4778_v34 = vadd.f32 %v4777_v59, %v4776_v50  ;;  %v5225_v22 = vrot.slane %v5224_v60, 2  ;;  %3813 = vmatprep.subr.bf16.mxu1 %v6201_v2  ;;  %v4790_v44 = vadd.f32 %v4789_v63, %v4788_v55  ;;  %v5237_v29 = vrot.slane %v5236_v10, 2  ;;  %v6616_v55 = vld [vmem:[#allocation2 + $0xb98] sm:$0xff]  ;;  %v6626_v63 = vld [vmem:[#allocation2 + $0xe90] sm:$0xff] }
 0x132   :  { %v4773_v18 = vrot.slane %v4772_v61, 1  ;;  %v5220_v43 = vadd.f32 %v5219_v62, %v5218_v54  ;;  %v4785_v45 = vrot.slane %v4784_v32, 1  ;;  %v5232_v11 = vadd.f32 %v5231_v33, %v5230_v58  ;;  %v6614_v54 = vld [vmem:[#allocation2 + $0xa98] sm:$0xff]  ;;  %v6620_v58 = vld [vmem:[#allocation2 + $0xd90] sm:$0xff] }
 0x133   :  { %v4779_v13 = vrot.slane %v4778_v34, 1  ;;  %v5226_v14 = vadd.f32 %v5225_v22, %v5224_v60  ;;  %3773 = vmatpush1.bf16.msra.mxu0 %v6198_v42  ;;  %v4791_v39 = vrot.slane %v4790_v44, 1  ;;  %v5238_v19 = vadd.f32 %v5237_v29, %v5236_v10  ;;  %v6622_v59 = vld [vmem:[#allocation2 + $0xc98] sm:$0xff]  ;;  %v6628_v10 = vld [vmem:[#allocation2 + $0xf90] sm:$0xff]  ;;  %v6636_v22 = vld [vmem:[#allocation2 + $0xa0] sm:$0xff] }
 0x134   :  { %v4774_v15 = vadd.f32 %v4773_v18, %v4772_v61  ;;  %v5221_v16 = vrot.slane %v5220_v43, 1  ;;  %3814 = vmatpush1.bf16.msra.mxu1 %v6200_v1  ;;  %3840 = vmatprep.subr.bf16.mxu0 %v5755_v5  ;;  %v4786_v2 = vadd.f32 %v4785_v45, %v4784_v32  ;;  %v5233_v26 = vrot.slane %v5232_v11, 1  ;;  %v177_v1 = vld [vmem:[#allocation2 + $0x498] sm:$0xff]  ;;  %v6638_v18 = vld [vmem:[#allocation2 + $0x1a0] sm:$0xff]  ;;  %v6644_v45 = vld [vmem:[#allocation2 + $0xa8] sm:$0xff] }
 0x135   :  { %v4780_v28 = vadd.f32 %v4779_v13, %v4778_v34  ;;  %v5227_v35 = vrot.slane %v5226_v14, 1  ;;  %3881 = vmatprep.subr.bf16.mxu1 %v5757_v27  ;;  %v4792_v9 = vadd.f32 %v4791_v39, %v4790_v44  ;;  %v5239_v25 = vrot.slane %v5238_v19, 1  ;;  %v209_v5 = vld [vmem:[#allocation2 + $0x598] sm:$0xff]  ;;  %v6648_v13 = vld [vmem:[#allocation2 + $0x2a0] sm:$0xff] }
 0x136   :  { %v5222_v42 = vadd.f32 %v5221_v16, %v5220_v43  ;;  %5581 = vst [vmem:[%s7753_s3 + $0x20] sm:$0xff] %v4774_v15  ;;  %3791 = vmatmul.mubr.bf16.vlgmr.msra.gmra.mrb[32].mxu0 %v6333_v31  ;;  %v5234_v20 = vadd.f32 %v5233_v26, %v5232_v11  ;;  %5583 = vst [vmem:[%s7753_s3 + $0x30] sm:$0xff] %v4786_v2  ;;  %v5818_v27 = vcombine.low %v6512_v38, %v6522_v24  ;;  %v241_v38 = vld [vmem:[#allocation2 + $0x698] sm:$0xff]  ;;  %v6646_v11 = vld [vmem:[#allocation2 + $0x1a8] sm:$0xff] }
 0x137   :  { %v5228_v21 = vadd.f32 %v5227_v35, %v5226_v14  ;;  %5582 = vst [vmem:[%s7753_s3 + $0x28] sm:$0xff] %v4780_v28  ;;  %3832 = vmatmul.mubr.bf16.vlgmr.msra.gmra.mrb[32].mxu1 %v6333_v31  ;;  %3841 = vmatpush1.bf16.msra.mxu0 %v5754_v3  ;;  %v5240_v36 = vadd.f32 %v5239_v25, %v5238_v19  ;;  %5584 = vst [vmem:[%s7753_s3 + $0x38] sm:$0xff] %v4792_v9  ;;  %v273_v24 = vld [vmem:[#allocation2 + $0x798] sm:$0xff]  ;;  %v6658_v19 = vld [vmem:[#allocation2 + $0x3a0] sm:$0xff] }
 0x138   :  { %5645 = vst [vmem:[%s7754_s4 + $0x20] sm:$0xff] %v5222_v42  ;;  %3882 = vmatpush1.bf16.msra.mxu1 %v5756_v23  ;;  %3842 = vmatprep.subr.bf16.mxu0 %v5819_v6  ;;  %v5820_v31 = vcombine.low %v6524_v40, %v6526_v41  ;;  %5647 = vst [vmem:[%s7754_s4 + $0x30] sm:$0xff] %v5234_v20  ;;  %v5885_v30 = vcombine.high %v177_v1, %v209_v5  ;;  %v304_v6 = vld [vmem:[#allocation2 + $0x890] sm:$0xff]  ;;  %v6624_v60 = vld [vmem:[#allocation2 + $0xd98] sm:$0xff] }
 0x139   :  { %5646 = vst [vmem:[%s7754_s4 + $0x28] sm:$0xff] %v5228_v21  ;;  %3883 = vmatprep.subr.bf16.mxu1 %v5821_v7  ;;  %3872 = vmatprep.mubr.bf16.mxu0 %v6264_v0  ;;  %5648 = vst [vmem:[%s7754_s4 + $0x38] sm:$0xff] %v5240_v36  ;;  %v5882_v3 = vcombine.low %v176_v4, %v208_v8  ;;  %v5884_v23 = vcombine.low %v177_v1, %v209_v5  ;;  %v336_v7 = vld [vmem:[#allocation2 + $0x990] sm:$0xff]  ;;  %v6630_v32 = vld [vmem:[#allocation2 + $0xe98] sm:$0xff] }
 0x13a   :  { %3913 = vmatprep.mubr.bf16.mxu1 %v6264_v0  ;;  %v5947_v40 = vcombine.high %v240_v37, %v272_v12  ;;  %v5949_v41 = vcombine.high %v241_v38, %v273_v24  ;;  %v5946_v48 = vcombine.low %v240_v37, %v272_v12  ;;  %v5948_v49 = vcombine.low %v241_v38, %v273_v24  ;;  %v6634_v34 = vld [vmem:[#allocation2 + $0xf98] sm:$0xff]  ;;  %v6660_v2 = vld [vmem:[#allocation2 + $0x2a8] sm:$0xff] }
 0x13b   :  { %3843 = vmatpush1.bf16.msra.mxu0 %v5818_v27  ;;  %v6011_v50 = vcombine.high %v304_v6, %v336_v7  ;;  %v6013_v51 = vcombine.high %v305_v46, %v337_v47  ;;  %v6010_v57 = vcombine.low %v304_v6, %v336_v7  ;;  %v6012_v61 = vcombine.low %v305_v46, %v337_v47  ;;  %v6662_v26 = vld [vmem:[#allocation2 + $0x3a8] sm:$0xff] }
 0x13c   :  { %3884 = vmatpush1.bf16.msra.mxu1 %v5820_v31  ;;  %3844 = vmatprep.subr.bf16.mxu0 %v5883_v17  ;;  %v6075_v62 = vcombine.high %v368_v52, %v400_v53  ;;  %v6077_v33 = vcombine.high %v6614_v54, %v6616_v55  ;;  %v6074_v43 = vcombine.low %v368_v52, %v400_v53 }
 0x13d   :  { %3885 = vmatprep.subr.bf16.mxu1 %v5885_v30  ;;  %v6076_v44 = vcombine.low %v6614_v54, %v6616_v55  ;;  %v6139_v29 = vcombine.high %v6618_v56, %v6620_v58  ;;  %v6138_v14 = vcombine.low %v6618_v56, %v6620_v58  ;;  %v6140_v15 = vcombine.low %v6622_v59, %v6624_v60 }
 0x13e   :  { %v6141_v16 = vcombine.high %v6622_v59, %v6624_v60  ;;  %v6203_v39 = vcombine.high %v6626_v63, %v6628_v10  ;;  %v6202_v28 = vcombine.low %v6626_v63, %v6628_v10  ;;  %v6204_v35 = vcombine.low %v6630_v32, %v6634_v34  ;;  %v178_v63 = vld [vmem:[#allocation2 + $0x4a0] sm:$0xff] }
 0x13f   :  { %3845 = vmatpush1.bf16.msra.mxu0 %v5882_v3  ;;  %v6205_v4 = vcombine.high %v6630_v32, %v6634_v34  ;;  %v5758_v42 = vcombine.low %v6636_v22, %v6638_v18  ;;  %v5759_v9 = vcombine.high %v6636_v22, %v6638_v18  ;;  %v5760_v25 = vcombine.low %v6644_v45, %v6646_v11  ;;  %v210_v10 = vld [vmem:[#allocation2 + $0x5a0] sm:$0xff] }
 0x140   :  { %3886 = vmatpush1.bf16.msra.mxu1 %v5884_v23  ;;  %3846 = vmatprep.subr.bf16.mxu0 %v5947_v40  ;;  %v5761_v1 = vcombine.high %v6644_v45, %v6646_v11  ;;  %v5823_v36 = vcombine.high %v6648_v13, %v6658_v19  ;;  %v5825_v31 = vcombine.high %v6660_v2, %v6662_v26  ;;  %v242_v11 = vld [vmem:[#allocation2 + $0x6a0] sm:$0xff] }
 0x141   :  { %3887 = vmatprep.subr.bf16.mxu1 %v5949_v41  ;;  %v5824_v22 = vcombine.low %v6660_v2, %v6662_v26  ;;  %v5887_v18 = vcombine.high %v178_v63, %v210_v10 }
 0x143   :  { %3847 = vmatpush1.bf16.msra.mxu0 %v5946_v48 }
 0x144   :  { %3888 = vmatpush1.bf16.msra.mxu1 %v5948_v49  ;;  %3848 = vmatprep.subr.bf16.mxu0 %v6011_v50 }
 0x145   :  { %3889 = vmatprep.subr.bf16.mxu1 %v6013_v51 }
 0x147   :  { %3849 = vmatpush1.bf16.msra.mxu0 %v6010_v57 }
 0x148   :  { %3890 = vmatpush1.bf16.msra.mxu1 %v6012_v61  ;;  %3850 = vmatprep.subr.bf16.mxu0 %v6075_v62 }
 0x149   :  { %v3300_v8 = vpop.f32.mrb[8].mxu0  ;;  %3891 = vmatprep.subr.bf16.mxu1 %v6077_v33  ;;  %v3341_v21 = vpop.f32.mrb[8].mxu1 }
 0x14a   :  { %4426 = vst [vmem:[%s7752_s2 + $0x40] sm:$0xff] %v3300_v8  ;;  %v4793_v5 = vrot.slane %v3300_v8, 4  ;;  %v5137_v20 = vmul.f32 %v3300_v8, %v3300_v8  ;;  %v3302_v27 = vpop.f32.mrb[9].mxu0  ;;  %4428 = vst [vmem:[%s7752_s2 + $0x50] sm:$0xff] %v3341_v21  ;;  %v4805_v17 = vrot.slane %v3341_v21, 4  ;;  %v5139_v30 = vmul.f32 %v3341_v21, %v3341_v21  ;;  %v3343_v38 = vpop.f32.mrb[9].mxu1 }
 0x14b   :  { %4427 = vst [vmem:[%s7752_s2 + $0x48] sm:$0xff] %v3302_v27  ;;  %v4799_v37 = vrot.slane %v3302_v27, 4  ;;  %v5138_v12 = vmul.f32 %v3302_v27, %v3302_v27  ;;  %v3304_v24 = vpop.f32.mrb[10].mxu0  ;;  %3851 = vmatpush1.bf16.msra.mxu0 %v6074_v43  ;;  %4429 = vst [vmem:[%s7752_s2 + $0x58] sm:$0xff] %v3343_v38  ;;  %v4811_v40 = vrot.slane %v3343_v38, 4  ;;  %v5140_v41 = vmul.f32 %v3343_v38, %v3343_v38  ;;  %v3345_v6 = vpop.f32.mrb[10].mxu1 }
 0x14c   :  { %v4794_v3 = vadd.f32 %v4793_v5, %v3300_v8  ;;  %v5241_v23 = vrot.slane %v5137_v20, 4  ;;  %3892 = vmatpush1.bf16.msra.mxu1 %v6076_v44  ;;  %v3305_v7 = vpop.f32.mrb[11].mxu0  ;;  %3852 = vmatprep.subr.bf16.mxu0 %v6139_v29  ;;  %v4806_v46 = vadd.f32 %v4805_v17, %v3341_v21  ;;  %v5253_v47 = vrot.slane %v5139_v30, 4  ;;  %v3346_v50 = vpop.f32.mrb[11].mxu1  ;;  %v338_v6 = vld [vmem:[#allocation2 + $0x9a0] sm:$0xff] }
 0x14d   :  { %v4800_v48 = vadd.f32 %v4799_v37, %v3302_v27  ;;  %v5247_v49 = vrot.slane %v5138_v12, 4  ;;  %3893 = vmatprep.subr.bf16.mxu1 %v6141_v16  ;;  %v4812_v53 = vadd.f32 %v4811_v40, %v3343_v38  ;;  %v5259_v54 = vrot.slane %v5140_v41, 4  ;;  %v307_v7 = vld [vmem:[#allocation2 + $0x8a8] sm:$0xff] }
 0x14e   :  { %v4795_v51 = vrot.slane %v4794_v3, 2  ;;  %v5242_v52 = vadd.f32 %v5241_v23, %v5137_v20  ;;  %v4807_v55 = vrot.slane %v4806_v46, 2  ;;  %v5254_v56 = vadd.f32 %v5253_v47, %v5139_v30 }
 0x14f   :  { %v4801_v57 = vrot.slane %v4800_v48, 2  ;;  %v5248_v58 = vadd.f32 %v5247_v49, %v5138_v12  ;;  %3853 = vmatpush1.bf16.msra.mxu0 %v6138_v14  ;;  %v4813_v61 = vrot.slane %v4812_v53, 2  ;;  %v5260_v62 = vadd.f32 %v5259_v54, %v5140_v41  ;;  %v6757_v54 = vld [vmem:[#allocation2 + $0xba8] sm:$0xff] }
 0x150   :  { %v4796_v59 = vadd.f32 %v4795_v51, %v4794_v3  ;;  %v5243_v60 = vrot.slane %v5242_v52, 2  ;;  %3894 = vmatpush1.bf16.msra.mxu1 %v6140_v15  ;;  %3854 = vmatprep.subr.bf16.mxu0 %v6203_v39  ;;  %v4808_v33 = vadd.f32 %v4807_v55, %v4806_v46  ;;  %v5255_v43 = vrot.slane %v5254_v56, 2  ;;  %v211_v3 = vld [vmem:[#allocation2 + $0x5a8] sm:$0xff]  ;;  %v370_v51 = vld [vmem:[#allocation2 + $0xaa0] sm:$0xff] }
 0x151   :  { %v4802_v44 = vadd.f32 %v4801_v57, %v4800_v48  ;;  %v5249_v29 = vrot.slane %v5248_v58, 2  ;;  %3895 = vmatprep.subr.bf16.mxu1 %v6205_v4  ;;  %v4814_v5 = vadd.f32 %v4813_v61, %v4812_v53  ;;  %v5261_v20 = vrot.slane %v5260_v62, 2  ;;  %v339_v46 = vld [vmem:[#allocation2 + $0x9a8] sm:$0xff]  ;;  %v6759_v55 = vld [vmem:[#allocation2 + $0xca0] sm:$0xff] }
 0x152   :  { %v4797_v16 = vrot.slane %v4796_v59, 1  ;;  %v5244_v8 = vadd.f32 %v5243_v60, %v5242_v52  ;;  %v4809_v21 = vrot.slane %v4808_v33, 1  ;;  %v5256_v27 = vadd.f32 %v5255_v43, %v5254_v56  ;;  %v402_v52 = vld [vmem:[#allocation2 + $0xba0] sm:$0xff]  ;;  %v6755_v53 = vld [vmem:[#allocation2 + $0xaa8] sm:$0xff] }
 0x153   :  { %v4803_v17 = vrot.slane %v4802_v44, 1  ;;  %v5250_v30 = vadd.f32 %v5249_v29, %v5248_v58  ;;  %3855 = vmatpush1.bf16.msra.mxu0 %v6202_v28  ;;  %v4815_v39 = vrot.slane %v4814_v5, 1  ;;  %v5262_v37 = vadd.f32 %v5261_v20, %v5260_v62  ;;  %v6761_v57 = vld [vmem:[#allocation2 + $0xda0] sm:$0xff]  ;;  %v6763_v58 = vld [vmem:[#allocation2 + $0xca8] sm:$0xff] }
 0x154   :  { %v4798_v14 = vadd.f32 %v4797_v16, %v4796_v59  ;;  %v5245_v15 = vrot.slane %v5244_v8, 1  ;;  %3896 = vmatpush1.bf16.msra.mxu1 %v6204_v35  ;;  %3922 = vmatprep.subr.bf16.mxu0 %v5759_v9  ;;  %v4810_v4 = vadd.f32 %v4809_v21, %v4808_v33  ;;  %v5257_v12 = vrot.slane %v5256_v27, 1  ;;  %v6712_v35 = vld [vmem:[%s7750_s0] sm:$0xf]  ;;  %v179_v9 = vld [vmem:[#allocation2 + $0x4a8] sm:$0xff]  ;;  %v6777_v16 = vld [vmem:[#allocation2 + $0xb0] sm:$0xff] }
 0x155   :  { %v4804_v38 = vadd.f32 %v4803_v17, %v4802_v44  ;;  %v5251_v24 = vrot.slane %v5250_v30, 1  ;;  %3963 = vmatprep.subr.bf16.mxu1 %v5761_v1  ;;  %v4816_v32 = vadd.f32 %v4815_v39, %v4814_v5  ;;  %v5263_v34 = vrot.slane %v5262_v37, 1  ;;  %v6765_v59 = vld [vmem:[#allocation2 + $0xda8] sm:$0xff]  ;;  %v6767_v62 = vld [vmem:[#allocation2 + $0xea0] sm:$0xff]  ;;  %v6787_v17 = vld [vmem:[#allocation2 + $0x1b8] sm:$0xff] }
 0x156   :  { %v5246_v28 = vadd.f32 %v5245_v15, %v5244_v8  ;;  %5585 = vst [vmem:[%s7753_s3 + $0x40] sm:$0xff] %v4798_v14  ;;  %3873 = vmatmul.mubr.bf16.vlgmr.msra.gmra.mrb[36].mxu0 %v6712_v35  ;;  %v5258_v23 = vadd.f32 %v5257_v12, %v5256_v27  ;;  %5587 = vst [vmem:[%s7753_s3 + $0x50] sm:$0xff] %v4810_v4  ;;  %v5822_v40 = vcombine.low %v6648_v13, %v6658_v19  ;;  %v274_v13 = vld [vmem:[#allocation2 + $0x7a0] sm:$0xff]  ;;  %v243_v19 = vld [vmem:[#allocation2 + $0x6a8] sm:$0xff] }
 0x157   :  { %v5252_v1 = vadd.f32 %v5251_v24, %v5250_v30  ;;  %5586 = vst [vmem:[%s7753_s3 + $0x48] sm:$0xff] %v4804_v38  ;;  %3914 = vmatmul.mubr.bf16.vlgmr.msra.gmra.mrb[36].mxu1 %v6712_v35  ;;  %3923 = vmatpush1.bf16.msra.mxu0 %v5758_v42  ;;  %v5264_v41 = vadd.f32 %v5263_v34, %v5262_v37  ;;  %5588 = vst [vmem:[%s7753_s3 + $0x58] sm:$0xff] %v4816_v32  ;;  %v275_v42 = vld [vmem:[#allocation2 + $0x7a8] sm:$0xff]  ;;  %v6769_v33 = vld [vmem:[#allocation2 + $0xfa0] sm:$0xff] }
 0x158   :  { %5649 = vst [vmem:[%s7754_s4 + $0x40] sm:$0xff] %v5246_v28  ;;  %3964 = vmatpush1.bf16.msra.mxu1 %v5760_v25  ;;  %3924 = vmatprep.subr.bf16.mxu0 %v5823_v36  ;;  %5651 = vst [vmem:[%s7754_s4 + $0x50] sm:$0xff] %v5258_v23  ;;  %v5889_v45 = vcombine.high %v179_v9, %v211_v3  ;;  %v5886_v25 = vcombine.low %v178_v63, %v210_v10  ;;  %v6771_v43 = vld [vmem:[#allocation2 + $0xea8] sm:$0xff]  ;;  %v6779_v8 = vld [vmem:[#allocation2 + $0x1b0] sm:$0xff] }
 0x159   :  { %5650 = vst [vmem:[%s7754_s4 + $0x48] sm:$0xff] %v5252_v1  ;;  %3965 = vmatprep.subr.bf16.mxu1 %v5825_v31  ;;  %3954 = vmatprep.mubr.bf16.mxu0 %v6264_v0  ;;  %5652 = vst [vmem:[%s7754_s4 + $0x58] sm:$0xff] %v5264_v41  ;;  %v5888_v36 = vcombine.low %v179_v9, %v211_v3  ;;  %v5951_v2 = vcombine.high %v242_v11, %v274_v13  ;;  %v306_v31 = vld [vmem:[#allocation2 + $0x8a0] sm:$0xff]  ;;  %v6775_v29 = vld [vmem:[#allocation2 + $0xfa8] sm:$0xff] }
 0x15a   :  { %3995 = vmatprep.mubr.bf16.mxu1 %v6264_v0  ;;  %v5953_v26 = vcombine.high %v243_v19, %v275_v42  ;;  %v5950_v47 = vcombine.low %v242_v11, %v274_v13  ;;  %v5952_v48 = vcombine.low %v243_v19, %v275_v42  ;;  %v6015_v49 = vcombine.high %v306_v31, %v338_v6  ;;  %v6785_v27 = vld [vmem:[#allocation2 + $0xb8] sm:$0xff]  ;;  %v6789_v30 = vld [vmem:[#allocation2 + $0x2b0] sm:$0xff] }
 0x15b   :  { %3925 = vmatpush1.bf16.msra.mxu0 %v5822_v40  ;;  %v6017_v50 = vcombine.high %v307_v7, %v339_v46  ;;  %v6014_v56 = vcombine.low %v306_v31, %v338_v6  ;;  %v6016_v60 = vcombine.low %v307_v7, %v339_v46  ;;  %v6079_v61 = vcombine.high %v370_v51, %v402_v52  ;;  %v6799_v4 = vld [vmem:[#allocation2 + $0x3b0] sm:$0xff]  ;;  %v6801_v12 = vld [vmem:[#allocation2 + $0x2b8] sm:$0xff] }
 0x15c   :  { %3966 = vmatpush1.bf16.msra.mxu1 %v5824_v22  ;;  %3926 = vmatprep.subr.bf16.mxu0 %v5887_v18  ;;  %v6081_v44 = vcombine.high %v6755_v53, %v6757_v54  ;;  %v6078_v5 = vcombine.low %v370_v51, %v402_v52  ;;  %v6080_v20 = vcombine.low %v6755_v53, %v6757_v54  ;;  %v6803_v38 = vld [vmem:[#allocation2 + $0x3b8] sm:$0xff] }
 0x15d   :  { %3967 = vmatprep.subr.bf16.mxu1 %v5889_v45  ;;  %v6143_v21 = vcombine.high %v6759_v55, %v6761_v57  ;;  %v6142_v14 = vcombine.low %v6759_v55, %v6761_v57  ;;  %v6144_v15 = vcombine.low %v6763_v58, %v6765_v59  ;;  %v6145_v39 = vcombine.high %v6763_v58, %v6765_v59 }
 0x15e   :  { %v6207_v37 = vcombine.high %v6767_v62, %v6769_v33  ;;  %v6206_v24 = vcombine.low %v6767_v62, %v6769_v33  ;;  %v6208_v63 = vcombine.low %v6771_v43, %v6775_v29  ;;  %v6209_v10 = vcombine.high %v6771_v43, %v6775_v29  ;;  %v180_v62 = vld [vmem:[#allocation2 + $0x4b0] sm:$0xff] }
 0x15f   :  { %3927 = vmatpush1.bf16.msra.mxu0 %v5886_v25  ;;  %v5762_v32 = vcombine.low %v6777_v16, %v6779_v8  ;;  %v5763_v34 = vcombine.high %v6777_v16, %v6779_v8  ;;  %v5764_v9 = vcombine.low %v6785_v27, %v6787_v17  ;;  %v5765_v3 = vcombine.high %v6785_v27, %v6787_v17  ;;  %v212_v33 = vld [vmem:[#allocation2 + $0x5b0] sm:$0xff] }
 0x160   :  { %3968 = vmatpush1.bf16.msra.mxu1 %v5888_v36  ;;  %3928 = vmatprep.subr.bf16.mxu0 %v5951_v2  ;;  %v5827_v22 = vcombine.high %v6789_v30, %v6799_v4  ;;  %v5829_v18 = vcombine.high %v6801_v12, %v6803_v38  ;;  %v5828_v16 = vcombine.low %v6801_v12, %v6803_v38  ;;  %v244_v17 = vld [vmem:[#allocation2 + $0x6b0] sm:$0xff] }
 0x161   :  { %3969 = vmatprep.subr.bf16.mxu1 %v5953_v26  ;;  %v5891_v8 = vcombine.high %v180_v62, %v212_v33 }
 0x163   :  { %3929 = vmatpush1.bf16.msra.mxu0 %v5950_v47 }
 0x164   :  { %3970 = vmatpush1.bf16.msra.mxu1 %v5952_v48  ;;  %3930 = vmatprep.subr.bf16.mxu0 %v6015_v49 }
 0x165   :  { %3971 = vmatprep.subr.bf16.mxu1 %v6017_v50 }
 0x167   :  { %3931 = vmatpush1.bf16.msra.mxu0 %v6014_v56 }
 0x168   :  { %3972 = vmatpush1.bf16.msra.mxu1 %v6016_v60  ;;  %3932 = vmatprep.subr.bf16.mxu0 %v6079_v61 }
 0x169   :  { %v3382_v28 = vpop.f32.mrb[12].mxu0  ;;  %3973 = vmatprep.subr.bf16.mxu1 %v6081_v44  ;;  %v3423_v40 = vpop.f32.mrb[12].mxu1 }
 0x16a   :  { %4430 = vst [vmem:[%s7752_s2 + $0x60] sm:$0xff] %v3382_v28  ;;  %v4817_v23 = vrot.slane %v3382_v28, 4  ;;  %v5141_v1 = vmul.f32 %v3382_v28, %v3382_v28  ;;  %v3384_v41 = vpop.f32.mrb[13].mxu0  ;;  %4432 = vst [vmem:[%s7752_s2 + $0x70] sm:$0xff] %v3423_v40  ;;  %v4829_v45 = vrot.slane %v3423_v40, 4  ;;  %v5143_v11 = vmul.f32 %v3423_v40, %v3423_v40  ;;  %v3425_v42 = vpop.f32.mrb[13].mxu1 }
 0x16b   :  { %4431 = vst [vmem:[%s7752_s2 + $0x68] sm:$0xff] %v3384_v41  ;;  %v4823_v13 = vrot.slane %v3384_v41, 4  ;;  %v5142_v19 = vmul.f32 %v3384_v41, %v3384_v41  ;;  %v3386_v25 = vpop.f32.mrb[14].mxu0  ;;  %3933 = vmatpush1.bf16.msra.mxu0 %v6078_v5  ;;  %4433 = vst [vmem:[%s7752_s2 + $0x78] sm:$0xff] %v3425_v42  ;;  %v4835_v26 = vrot.slane %v3425_v42, 4  ;;  %v5144_v31 = vmul.f32 %v3425_v42, %v3425_v42  ;;  %v3427_v6 = vpop.f32.mrb[14].mxu1 }
 0x16c   :  { %v4818_v36 = vadd.f32 %v4817_v23, %v3382_v28  ;;  %v5265_v2 = vrot.slane %v5141_v1, 4  ;;  %3974 = vmatpush1.bf16.msra.mxu1 %v6080_v20  ;;  %v3387_v7 = vpop.f32.mrb[15].mxu0  ;;  %3934 = vmatprep.subr.bf16.mxu0 %v6143_v21  ;;  %v4830_v46 = vadd.f32 %v4829_v45, %v3423_v40  ;;  %v5277_v47 = vrot.slane %v5143_v11, 4  ;;  %v3428_v50 = vpop.f32.mrb[15].mxu1  ;;  %v340_v6 = vld [vmem:[#allocation2 + $0x9b0] sm:$0xff] }
 0x16d   :  { %v4824_v48 = vadd.f32 %v4823_v13, %v3384_v41  ;;  %v5271_v49 = vrot.slane %v5142_v19, 4  ;;  %3975 = vmatprep.subr.bf16.mxu1 %v6145_v39  ;;  %v4836_v53 = vadd.f32 %v4835_v26, %v3425_v42  ;;  %v5283_v54 = vrot.slane %v5144_v31, 4  ;;  %v309_v7 = vld [vmem:[#allocation2 + $0x8b8] sm:$0xff] }
 0x16e   :  { %v4819_v51 = vrot.slane %v4818_v36, 2  ;;  %v5266_v52 = vadd.f32 %v5265_v2, %v5141_v1  ;;  %v4831_v55 = vrot.slane %v4830_v46, 2  ;;  %v5278_v56 = vadd.f32 %v5277_v47, %v5143_v11 }
 0x16f   :  { %v4825_v57 = vrot.slane %v4824_v48, 2  ;;  %v5272_v58 = vadd.f32 %v5271_v49, %v5142_v19  ;;  %3935 = vmatpush1.bf16.msra.mxu0 %v6142_v14  ;;  %v4837_v61 = vrot.slane %v4836_v53, 2  ;;  %v5284_v44 = vadd.f32 %v5283_v54, %v5144_v31  ;;  %v6893_v54 = vld [vmem:[#allocation2 + $0xbb8] sm:$0xff] }
 0x170   :  { %v4820_v59 = vadd.f32 %v4819_v51, %v4818_v36  ;;  %v5267_v60 = vrot.slane %v5266_v52, 2  ;;  %3976 = vmatpush1.bf16.msra.mxu1 %v6144_v15  ;;  %3936 = vmatprep.subr.bf16.mxu0 %v6207_v37  ;;  %v4832_v5 = vadd.f32 %v4831_v55, %v4830_v46  ;;  %v5279_v20 = vrot.slane %v5278_v56, 2  ;;  %v341_v46 = vld [vmem:[#allocation2 + $0x9b8] sm:$0xff]  ;;  %v372_v51 = vld [vmem:[#allocation2 + $0xab0] sm:$0xff] }
 0x171   :  { %v4826_v21 = vadd.f32 %v4825_v57, %v4824_v48  ;;  %v5273_v28 = vrot.slane %v5272_v58, 2  ;;  %3977 = vmatprep.subr.bf16.mxu1 %v6209_v10  ;;  %v4838_v1 = vadd.f32 %v4837_v61, %v4836_v53  ;;  %v5285_v40 = vrot.slane %v5284_v44, 2  ;;  %v6891_v53 = vld [vmem:[#allocation2 + $0xab8] sm:$0xff]  ;;  %v6895_v55 = vld [vmem:[#allocation2 + $0xcb0] sm:$0xff] }
 0x172   :  { %v4821_v39 = vrot.slane %v4820_v59, 1  ;;  %v5268_v23 = vadd.f32 %v5267_v60, %v5266_v52  ;;  %v4833_v41 = vrot.slane %v4832_v5, 1  ;;  %v5280_v45 = vadd.f32 %v5279_v20, %v5278_v56  ;;  %v404_v52 = vld [vmem:[#allocation2 + $0xbb0] sm:$0xff]  ;;  %v6907_v20 = vld [vmem:[#allocation2 + $0xeb8] sm:$0xff] }
 0x173   :  { %v4827_v11 = vrot.slane %v4826_v21, 1  ;;  %v5274_v13 = vadd.f32 %v5273_v28, %v5272_v58  ;;  %3937 = vmatpush1.bf16.msra.mxu0 %v6206_v24  ;;  %v4839_v37 = vrot.slane %v4838_v1, 1  ;;  %v5286_v19 = vadd.f32 %v5285_v40, %v5284_v44  ;;  %v6897_v57 = vld [vmem:[#allocation2 + $0xdb0] sm:$0xff]  ;;  %v6899_v58 = vld [vmem:[#allocation2 + $0xcb8] sm:$0xff] }
 0x174   :  { %v4822_v14 = vadd.f32 %v4821_v39, %v4820_v59  ;;  %v5269_v15 = vrot.slane %v5268_v23, 1  ;;  %3978 = vmatpush1.bf16.msra.mxu1 %v6208_v63  ;;  %4004 = vmatprep.subr.bf16.mxu0 %v5763_v34  ;;  %v4834_v10 = vadd.f32 %v4833_v41, %v4832_v5  ;;  %v5281_v42 = vrot.slane %v5280_v45, 1  ;;  %v181_v63 = vld [vmem:[#allocation2 + $0x4b8] sm:$0xff]  ;;  %v6903_v44 = vld [vmem:[#allocation2 + $0xeb0] sm:$0xff]  ;;  %v6913_v39 = vld [vmem:[#allocation2 + $0xc0] sm:$0xff] }
 0x175   :  { %v4828_v25 = vadd.f32 %v4827_v11, %v4826_v21  ;;  %v5275_v36 = vrot.slane %v5274_v13, 1  ;;  %4045 = vmatprep.subr.bf16.mxu1 %v5765_v3  ;;  %v4840_v43 = vadd.f32 %v4839_v37, %v4838_v1  ;;  %v5287_v29 = vrot.slane %v5286_v19, 1  ;;  %v213_v34 = vld [vmem:[#allocation2 + $0x5b8] sm:$0xff]  ;;  %v6905_v5 = vld [vmem:[#allocation2 + $0xfb0] sm:$0xff]  ;;  %v6923_v11 = vld [vmem:[#allocation2 + $0x1c8] sm:$0xff] }
 0x176   :  { %v5270_v24 = vadd.f32 %v5269_v15, %v5268_v23  ;;  %5589 = vst [vmem:[%s7753_s3 + $0x60] sm:$0xff] %v4822_v14  ;;  %3955 = vmatmul.mubr.bf16.vlgmr.msra.gmra.mrb[40].mxu0 %v6712_v35  ;;  %v5282_v2 = vadd.f32 %v5281_v42, %v5280_v45  ;;  %5591 = vst [vmem:[%s7753_s3 + $0x70] sm:$0xff] %v4834_v10  ;;  %v5826_v3 = vcombine.low %v6789_v30, %v6799_v4  ;;  %v276_v30 = vld [vmem:[#allocation2 + $0x7b0] sm:$0xff]  ;;  %v245_v4 = vld [vmem:[#allocation2 + $0x6b8] sm:$0xff] }
 0x177   :  { %v5276_v26 = vadd.f32 %v5275_v36, %v5274_v13  ;;  %5590 = vst [vmem:[%s7753_s3 + $0x68] sm:$0xff] %v4828_v25  ;;  %3996 = vmatmul.mubr.bf16.vlgmr.msra.gmra.mrb[40].mxu1 %v6712_v35  ;;  %4005 = vmatpush1.bf16.msra.mxu0 %v5762_v32  ;;  %v5288_v31 = vadd.f32 %v5287_v29, %v5286_v19  ;;  %5592 = vst [vmem:[%s7753_s3 + $0x78] sm:$0xff] %v4840_v43  ;;  %v277_v32 = vld [vmem:[#allocation2 + $0x7b8] sm:$0xff]  ;;  %v6915_v23 = vld [vmem:[#allocation2 + $0x1c0] sm:$0xff] }
 0x178   :  { %5653 = vst [vmem:[%s7754_s4 + $0x60] sm:$0xff] %v5270_v24  ;;  %4046 = vmatpush1.bf16.msra.mxu1 %v5764_v9  ;;  %4006 = vmatprep.subr.bf16.mxu0 %v5827_v22  ;;  %5655 = vst [vmem:[%s7754_s4 + $0x70] sm:$0xff] %v5282_v2  ;;  %v5893_v27 = vcombine.high %v181_v63, %v213_v34  ;;  %v5890_v9 = vcombine.low %v180_v62, %v212_v33  ;;  %v6901_v59 = vld [vmem:[#allocation2 + $0xdb8] sm:$0xff]  ;;  %v6921_v45 = vld [vmem:[#allocation2 + $0xc8] sm:$0xff] }
 0x179   :  { %5654 = vst [vmem:[%s7754_s4 + $0x68] sm:$0xff] %v5276_v26  ;;  %4047 = vmatprep.subr.bf16.mxu1 %v5829_v18  ;;  %4036 = vmatprep.mubr.bf16.mxu0 %v6264_v0  ;;  %5656 = vst [vmem:[%s7754_s4 + $0x78] sm:$0xff] %v5288_v31  ;;  %v5892_v22 = vcombine.low %v181_v63, %v213_v34  ;;  %v5955_v12 = vcombine.high %v244_v17, %v276_v30  ;;  %v308_v18 = vld [vmem:[#allocation2 + $0x8b0] sm:$0xff]  ;;  %v6911_v28 = vld [vmem:[#allocation2 + $0xfb8] sm:$0xff] }
 0x17a   :  { %4077 = vmatprep.mubr.bf16.mxu1 %v6264_v0  ;;  %v5957_v38 = vcombine.high %v245_v4, %v277_v32  ;;  %v5954_v47 = vcombine.low %v244_v17, %v276_v30  ;;  %v5956_v48 = vcombine.low %v245_v4, %v277_v32  ;;  %v6019_v49 = vcombine.high %v308_v18, %v340_v6  ;;  %v6925_v13 = vld [vmem:[#allocation2 + $0x2c0] sm:$0xff]  ;;  %v6937_v42 = vld [vmem:[#allocation2 + $0x2c8] sm:$0xff] }
 0x17b   :  { %4007 = vmatpush1.bf16.msra.mxu0 %v5826_v3  ;;  %v6021_v50 = vcombine.high %v309_v7, %v341_v46  ;;  %v6018_v56 = vcombine.low %v308_v18, %v340_v6  ;;  %v6020_v60 = vcombine.low %v309_v7, %v341_v46  ;;  %v6083_v61 = vcombine.high %v372_v51, %v404_v52  ;;  %v6935_v10 = vld [vmem:[#allocation2 + $0x3c0] sm:$0xff]  ;;  %v6939_v25 = vld [vmem:[#allocation2 + $0x3c8] sm:$0xff] }
 0x17c   :  { %4048 = vmatpush1.bf16.msra.mxu1 %v5828_v16  ;;  %4008 = vmatprep.subr.bf16.mxu0 %v5891_v8  ;;  %v6085_v21 = vcombine.high %v6891_v53, %v6893_v54  ;;  %v6082_v1 = vcombine.low %v372_v51, %v404_v52  ;;  %v6084_v40 = vcombine.low %v6891_v53, %v6893_v54 }
 0x17d   :  { %4049 = vmatprep.subr.bf16.mxu1 %v5893_v27  ;;  %v6146_v41 = vcombine.low %v6895_v55, %v6897_v57  ;;  %v6147_v14 = vcombine.high %v6895_v55, %v6897_v57  ;;  %v6148_v15 = vcombine.low %v6899_v58, %v6901_v59  ;;  %v6149_v37 = vcombine.high %v6899_v58, %v6901_v59 }
 0x17e   :  { %v6210_v19 = vcombine.low %v6903_v44, %v6905_v5  ;;  %v6211_v36 = vcombine.high %v6903_v44, %v6905_v5  ;;  %v6212_v62 = vcombine.low %v6907_v20, %v6911_v28  ;;  %v6213_v33 = vcombine.high %v6907_v20, %v6911_v28  ;;  %v182_v44 = vld [vmem:[#allocation2 + $0x4c0] sm:$0xff] }
 0x17f   :  { %4009 = vmatpush1.bf16.msra.mxu0 %v5890_v9  ;;  %v5766_v43 = vcombine.low %v6913_v39, %v6915_v23  ;;  %v5767_v29 = vcombine.high %v6913_v39, %v6915_v23  ;;  %v5768_v63 = vcombine.low %v6921_v45, %v6923_v11  ;;  %v5769_v34 = vcombine.high %v6921_v45, %v6923_v11  ;;  %v214_v5 = vld [vmem:[#allocation2 + $0x5c0] sm:$0xff] }
 0x180   :  { %4050 = vmatpush1.bf16.msra.mxu1 %v5892_v22  ;;  %4010 = vmatprep.subr.bf16.mxu0 %v5955_v12  ;;  %v5831_v16 = vcombine.high %v6925_v13, %v6935_v10  ;;  %v5833_v8 = vcombine.high %v6937_v42, %v6939_v25  ;;  %v5895_v39 = vcombine.high %v182_v44, %v214_v5  ;;  %v246_v45 = vld [vmem:[#allocation2 + $0x6c0] sm:$0xff] }
 0x181   :  { %4051 = vmatprep.subr.bf16.mxu1 %v5957_v38  ;;  %v278_v11 = vld [vmem:[#allocation2 + $0x7c0] sm:$0xff] }
 0x183   :  { %4011 = vmatpush1.bf16.msra.mxu0 %v5954_v47 }
 0x184   :  { %4052 = vmatpush1.bf16.msra.mxu1 %v5956_v48  ;;  %4012 = vmatprep.subr.bf16.mxu0 %v6019_v49 }
 0x185   :  { %4053 = vmatprep.subr.bf16.mxu1 %v6021_v50 }
 0x187   :  { %4013 = vmatpush1.bf16.msra.mxu0 %v6018_v56 }
 0x188   :  { %4054 = vmatpush1.bf16.msra.mxu1 %v6020_v60  ;;  %4014 = vmatprep.subr.bf16.mxu0 %v6083_v61 }
 0x189   :  { %v3464_v24 = vpop.f32.mrb[16].mxu0  ;;  %4055 = vmatprep.subr.bf16.mxu1 %v6085_v21  ;;  %v3505_v3 = vpop.f32.mrb[16].mxu1 }
 0x18a   :  { %4434 = vst [vmem:[%s7752_s2 + $0x80] sm:$0xff] %v3464_v24  ;;  %v4841_v2 = vrot.slane %v3464_v24, 4  ;;  %v5145_v26 = vmul.f32 %v3464_v24, %v3464_v24  ;;  %v3466_v31 = vpop.f32.mrb[17].mxu0  ;;  %4436 = vst [vmem:[%s7752_s2 + $0x90] sm:$0xff] %v3505_v3  ;;  %v4853_v27 = vrot.slane %v3505_v3, 4  ;;  %v5147_v17 = vmul.f32 %v3505_v3, %v3505_v3  ;;  %v3507_v32 = vpop.f32.mrb[17].mxu1 }
 0x18b   :  { %4435 = vst [vmem:[%s7752_s2 + $0x88] sm:$0xff] %v3466_v31  ;;  %v4847_v30 = vrot.slane %v3466_v31, 4  ;;  %v5146_v4 = vmul.f32 %v3466_v31, %v3466_v31  ;;  %v3468_v9 = vpop.f32.mrb[18].mxu0  ;;  %4015 = vmatpush1.bf16.msra.mxu0 %v6082_v1  ;;  %4437 = vst [vmem:[%s7752_s2 + $0x98] sm:$0xff] %v3507_v32  ;;  %v4859_v38 = vrot.slane %v3507_v32, 4  ;;  %v5148_v18 = vmul.f32 %v3507_v32, %v3507_v32  ;;  %v3509_v6 = vpop.f32.mrb[18].mxu1 }
 0x18c   :  { %v4842_v22 = vadd.f32 %v4841_v2, %v3464_v24  ;;  %v5289_v12 = vrot.slane %v5145_v26, 4  ;;  %4056 = vmatpush1.bf16.msra.mxu1 %v6084_v40  ;;  %v3469_v7 = vpop.f32.mrb[19].mxu0  ;;  %4016 = vmatprep.subr.bf16.mxu0 %v6147_v14  ;;  %v4854_v46 = vadd.f32 %v4853_v27, %v3505_v3  ;;  %v5301_v47 = vrot.slane %v5147_v17, 4  ;;  %v3510_v50 = vpop.f32.mrb[19].mxu1  ;;  %v311_v6 = vld [vmem:[#allocation2 + $0x8c8] sm:$0xff] }
 0x18d   :  { %v4848_v48 = vadd.f32 %v4847_v30, %v3466_v31  ;;  %v5295_v49 = vrot.slane %v5146_v4, 4  ;;  %4057 = vmatprep.subr.bf16.mxu1 %v6149_v37  ;;  %v4860_v53 = vadd.f32 %v4859_v38, %v3507_v32  ;;  %v5307_v54 = vrot.slane %v5148_v18, 4  ;;  %v343_v7 = vld [vmem:[#allocation2 + $0x9c8] sm:$0xff]  ;;  %v374_v50 = vld [vmem:[#allocation2 + $0xac0] sm:$0xff] }
 0x18e   :  { %v4843_v51 = vrot.slane %v4842_v22, 2  ;;  %v5290_v52 = vadd.f32 %v5289_v12, %v5145_v26  ;;  %v4855_v55 = vrot.slane %v4854_v46, 2  ;;  %v5302_v56 = vadd.f32 %v5301_v47, %v5147_v17 }
 0x18f   :  { %v4849_v57 = vrot.slane %v4848_v48, 2  ;;  %v5296_v58 = vadd.f32 %v5295_v49, %v5146_v4  ;;  %4017 = vmatpush1.bf16.msra.mxu0 %v6146_v41  ;;  %v4861_v61 = vrot.slane %v4860_v53, 2  ;;  %v5308_v21 = vadd.f32 %v5307_v54, %v5148_v18  ;;  %v7031_v54 = vld [vmem:[#allocation2 + $0xcc0] sm:$0xff] }
 0x190   :  { %v4844_v59 = vadd.f32 %v4843_v51, %v4842_v22  ;;  %v5291_v60 = vrot.slane %v5290_v52, 2  ;;  %4058 = vmatpush1.bf16.msra.mxu1 %v6148_v15  ;;  %4018 = vmatprep.subr.bf16.mxu0 %v6211_v36  ;;  %v4856_v1 = vadd.f32 %v4855_v55, %v4854_v46  ;;  %v5303_v40 = vrot.slane %v5302_v56, 2  ;;  %v406_v51 = vld [vmem:[#allocation2 + $0xbc0] sm:$0xff] }
 0x191   :  { %v4850_v14 = vadd.f32 %v4849_v57, %v4848_v48  ;;  %v5297_v24 = vrot.slane %v5296_v58, 2  ;;  %4059 = vmatprep.subr.bf16.mxu1 %v6213_v33  ;;  %v4862_v26 = vadd.f32 %v4861_v61, %v4860_v53  ;;  %v5309_v3 = vrot.slane %v5308_v21, 2  ;;  %v7029_v53 = vld [vmem:[#allocation2 + $0xbc8] sm:$0xff]  ;;  %v7039_v61 = vld [vmem:[#allocation2 + $0xec0] sm:$0xff] }
 0x192   :  { %v4845_v37 = vrot.slane %v4844_v59, 1  ;;  %v5292_v2 = vadd.f32 %v5291_v60, %v5290_v52  ;;  %v4857_v31 = vrot.slane %v4856_v1, 1  ;;  %v5304_v27 = vadd.f32 %v5303_v40, %v5302_v56  ;;  %v7027_v52 = vld [vmem:[#allocation2 + $0xac8] sm:$0xff]  ;;  %v7033_v56 = vld [vmem:[#allocation2 + $0xdc0] sm:$0xff] }
 0x193   :  { %v4851_v17 = vrot.slane %v4850_v14, 1  ;;  %v5298_v30 = vadd.f32 %v5297_v24, %v5296_v58  ;;  %4019 = vmatpush1.bf16.msra.mxu0 %v6210_v19  ;;  %v4863_v36 = vrot.slane %v4862_v26, 1  ;;  %v5310_v4 = vadd.f32 %v5309_v3, %v5308_v21  ;;  %v7035_v57 = vld [vmem:[#allocation2 + $0xcc8] sm:$0xff]  ;;  %v7041_v21 = vld [vmem:[#allocation2 + $0xfc0] sm:$0xff]  ;;  %v7049_v24 = vld [vmem:[#allocation2 + $0xd0] sm:$0xff] }
 0x194   :  { %v4846_v41 = vadd.f32 %v4845_v37, %v4844_v59  ;;  %v5293_v15 = vrot.slane %v5292_v2, 1  ;;  %4060 = vmatpush1.bf16.msra.mxu1 %v6212_v62  ;;  %4086 = vmatprep.subr.bf16.mxu0 %v5767_v29  ;;  %v4858_v33 = vadd.f32 %v4857_v31, %v4856_v1  ;;  %v5305_v32 = vrot.slane %v5304_v27, 1  ;;  %v183_v62 = vld [vmem:[#allocation2 + $0x4c8] sm:$0xff]  ;;  %v7051_v37 = vld [vmem:[#allocation2 + $0x1d0] sm:$0xff]  ;;  %v7057_v31 = vld [vmem:[#allocation2 + $0xd8] sm:$0xff] }
 0x195   :  { %v4852_v9 = vadd.f32 %v4851_v17, %v4850_v14  ;;  %v5299_v22 = vrot.slane %v5298_v30, 1  ;;  %4127 = vmatprep.subr.bf16.mxu1 %v5769_v34  ;;  %v4864_v20 = vadd.f32 %v4863_v36, %v4862_v26  ;;  %v5311_v28 = vrot.slane %v5310_v4, 1  ;;  %v215_v29 = vld [vmem:[#allocation2 + $0x5c8] sm:$0xff]  ;;  %v7061_v17 = vld [vmem:[#allocation2 + $0x2d0] sm:$0xff] }
 0x196   :  { %v5294_v19 = vadd.f32 %v5293_v15, %v5292_v2  ;;  %5593 = vst [vmem:[%s7753_s3 + $0x80] sm:$0xff] %v4846_v41  ;;  %4037 = vmatmul.mubr.bf16.vlgmr.msra.gmra.mrb[44].mxu0 %v6712_v35  ;;  %v5306_v12 = vadd.f32 %v5305_v32, %v5304_v27  ;;  %5595 = vst [vmem:[%s7753_s3 + $0x90] sm:$0xff] %v4858_v33  ;;  %v5830_v34 = vcombine.low %v6925_v13, %v6935_v10  ;;  %v247_v13 = vld [vmem:[#allocation2 + $0x6c8] sm:$0xff]  ;;  %v7059_v27 = vld [vmem:[#allocation2 + $0x1d8] sm:$0xff] }
 0x197   :  { %v5300_v38 = vadd.f32 %v5299_v22, %v5298_v30  ;;  %5594 = vst [vmem:[%s7753_s3 + $0x88] sm:$0xff] %v4852_v9  ;;  %4078 = vmatmul.mubr.bf16.vlgmr.msra.gmra.mrb[44].mxu1 %v6712_v35  ;;  %4087 = vmatpush1.bf16.msra.mxu0 %v5766_v43  ;;  %v5312_v18 = vadd.f32 %v5311_v28, %v5310_v4  ;;  %5596 = vst [vmem:[%s7753_s3 + $0x98] sm:$0xff] %v4864_v20  ;;  %v279_v10 = vld [vmem:[#allocation2 + $0x7c8] sm:$0xff]  ;;  %v7071_v4 = vld [vmem:[#allocation2 + $0x3d0] sm:$0xff] }
 0x198   :  { %5657 = vst [vmem:[%s7754_s4 + $0x80] sm:$0xff] %v5294_v19  ;;  %4128 = vmatpush1.bf16.msra.mxu1 %v5768_v63  ;;  %4088 = vmatprep.subr.bf16.mxu0 %v5831_v16  ;;  %v5832_v35 = vcombine.low %v6937_v42, %v6939_v25  ;;  %5659 = vst [vmem:[%s7754_s4 + $0x90] sm:$0xff] %v5306_v12  ;;  %v5897_v23 = vcombine.high %v183_v62, %v215_v29  ;;  %v310_v16 = vld [vmem:[#allocation2 + $0x8c0] sm:$0xff]  ;;  %v7037_v58 = vld [vmem:[#allocation2 + $0xdc8] sm:$0xff] }
 0x199   :  { %5658 = vst [vmem:[%s7754_s4 + $0x88] sm:$0xff] %v5300_v38  ;;  %4129 = vmatprep.subr.bf16.mxu1 %v5833_v8  ;;  %4118 = vmatprep.mubr.bf16.mxu0 %v6264_v0  ;;  %5660 = vst [vmem:[%s7754_s4 + $0x98] sm:$0xff] %v5312_v18  ;;  %v5894_v43 = vcombine.low %v182_v44, %v214_v5  ;;  %v5896_v63 = vcombine.low %v183_v62, %v215_v29  ;;  %v342_v8 = vld [vmem:[#allocation2 + $0x9c0] sm:$0xff]  ;;  %v7043_v1 = vld [vmem:[#allocation2 + $0xec8] sm:$0xff] }
 0x19a   :  { %4159 = vmatprep.mubr.bf16.mxu1 %v6264_v0  ;;  %v5959_v42 = vcombine.high %v246_v45, %v278_v11  ;;  %v5961_v25 = vcombine.high %v247_v13, %v279_v10  ;;  %v5958_v46 = vcombine.low %v246_v45, %v278_v11  ;;  %v5960_v47 = vcombine.low %v247_v13, %v279_v10  ;;  %v7047_v14 = vld [vmem:[#allocation2 + $0xfc8] sm:$0xff]  ;;  %v7073_v33 = vld [vmem:[#allocation2 + $0x2d8] sm:$0xff] }
 0x19b   :  { %4089 = vmatpush1.bf16.msra.mxu0 %v5830_v34  ;;  %v6023_v48 = vcombine.high %v310_v16, %v342_v8  ;;  %v6025_v49 = vcombine.high %v311_v6, %v343_v7  ;;  %v6022_v55 = vcombine.low %v310_v16, %v342_v8  ;;  %v6024_v59 = vcombine.low %v311_v6, %v343_v7  ;;  %v7075_v32 = vld [vmem:[#allocation2 + $0x3d8] sm:$0xff] }
 0x19c   :  { %4130 = vmatpush1.bf16.msra.mxu1 %v5832_v35  ;;  %4090 = vmatprep.subr.bf16.mxu0 %v5895_v39  ;;  %v6087_v60 = vcombine.high %v374_v50, %v406_v51  ;;  %v6089_v40 = vcombine.high %v7027_v52, %v7029_v53  ;;  %v6086_v2 = vcombine.low %v374_v50, %v406_v51 }
 0x19d   :  { %4131 = vmatprep.subr.bf16.mxu1 %v5897_v23  ;;  %v6088_v26 = vcombine.low %v7027_v52, %v7029_v53  ;;  %v6150_v3 = vcombine.low %v7031_v54, %v7033_v56  ;;  %v6151_v30 = vcombine.high %v7031_v54, %v7033_v56  ;;  %v6152_v41 = vcombine.low %v7035_v57, %v7037_v58 }
 0x19e   :  { %v6153_v15 = vcombine.high %v7035_v57, %v7037_v58  ;;  %v6214_v36 = vcombine.low %v7039_v61, %v7041_v21  ;;  %v6215_v9 = vcombine.high %v7039_v61, %v7041_v21  ;;  %v6216_v22 = vcombine.low %v7043_v1, %v7047_v14  ;;  %v184_v61 = vld [vmem:[#allocation2 + $0x4d0] sm:$0xff] }
 0x19f   :  { %4091 = vmatpush1.bf16.msra.mxu0 %v5894_v43  ;;  %v6217_v44 = vcombine.high %v7043_v1, %v7047_v14  ;;  %v5770_v19 = vcombine.low %v7049_v24, %v7051_v37  ;;  %v5771_v20 = vcombine.high %v7049_v24, %v7051_v37  ;;  %v5772_v28 = vcombine.low %v7057_v31, %v7059_v27  ;;  %v216_v21 = vld [vmem:[#allocation2 + $0x5d0] sm:$0xff] }
 0x1a0   :  { %4132 = vmatpush1.bf16.msra.mxu1 %v5896_v63  ;;  %4092 = vmatprep.subr.bf16.mxu0 %v5959_v42  ;;  %v5773_v62 = vcombine.high %v7057_v31, %v7059_v27  ;;  %v5835_v18 = vcombine.high %v7061_v17, %v7071_v4  ;;  %v5837_v35 = vcombine.high %v7073_v33, %v7075_v32  ;;  %v248_v27 = vld [vmem:[#allocation2 + $0x6d0] sm:$0xff] }
 0x1a1   :  { %4133 = vmatprep.subr.bf16.mxu1 %v5961_v25  ;;  %v5836_v24 = vcombine.low %v7073_v33, %v7075_v32  ;;  %v5899_v37 = vcombine.high %v184_v61, %v216_v21 }
 0x1a3   :  { %4093 = vmatpush1.bf16.msra.mxu0 %v5958_v46 }
 0x1a4   :  { %4134 = vmatpush1.bf16.msra.mxu1 %v5960_v47  ;;  %4094 = vmatprep.subr.bf16.mxu0 %v6023_v48 }
 0x1a5   :  { %4135 = vmatprep.subr.bf16.mxu1 %v6025_v49 }
 0x1a7   :  { %4095 = vmatpush1.bf16.msra.mxu0 %v6022_v55 }
 0x1a8   :  { %4136 = vmatpush1.bf16.msra.mxu1 %v6024_v59  ;;  %4096 = vmatprep.subr.bf16.mxu0 %v6087_v60 }
 0x1a9   :  { %v3546_v5 = vpop.f32.mrb[20].mxu0  ;;  %4137 = vmatprep.subr.bf16.mxu1 %v6089_v40  ;;  %v3587_v38 = vpop.f32.mrb[20].mxu1 }
 0x1aa   :  { %4438 = vst [vmem:[%s7752_s2 + $0xa0] sm:$0xff] %v3546_v5  ;;  %v4865_v29 = vrot.slane %v3546_v5, 4  ;;  %v5149_v12 = vmul.f32 %v3546_v5, %v3546_v5  ;;  %v3548_v34 = vpop.f32.mrb[21].mxu0  ;;  %4440 = vst [vmem:[%s7752_s2 + $0xb0] sm:$0xff] %v3587_v38  ;;  %v4877_v39 = vrot.slane %v3587_v38, 4  ;;  %v5151_v23 = vmul.f32 %v3587_v38, %v3587_v38  ;;  %v3589_v13 = vpop.f32.mrb[21].mxu1 }
 0x1ab   :  { %4439 = vst [vmem:[%s7752_s2 + $0xa8] sm:$0xff] %v3548_v34  ;;  %v4871_v45 = vrot.slane %v3548_v34, 4  ;;  %v5150_v11 = vmul.f32 %v3548_v34, %v3548_v34  ;;  %v3550_v10 = vpop.f32.mrb[22].mxu0  ;;  %4097 = vmatpush1.bf16.msra.mxu0 %v6086_v2  ;;  %4441 = vst [vmem:[%s7752_s2 + $0xb8] sm:$0xff] %v3589_v13  ;;  %v4883_v42 = vrot.slane %v3589_v13, 4  ;;  %v5152_v25 = vmul.f32 %v3589_v13, %v3589_v13  ;;  %v3591_v16 = vpop.f32.mrb[22].mxu1 }
 0x1ac   :  { %v4866_v43 = vadd.f32 %v4865_v29, %v3546_v5  ;;  %v5313_v63 = vrot.slane %v5149_v12, 4  ;;  %4138 = vmatpush1.bf16.msra.mxu1 %v6088_v26  ;;  %v3551_v8 = vpop.f32.mrb[23].mxu0  ;;  %4098 = vmatprep.subr.bf16.mxu0 %v6151_v30  ;;  %v4878_v6 = vadd.f32 %v4877_v39, %v3587_v38  ;;  %v5325_v7 = vrot.slane %v5151_v23, 4  ;;  %v3592_v48 = vpop.f32.mrb[23].mxu1  ;;  %v344_v16 = vld [vmem:[#allocation2 + $0x9d0] sm:$0xff] }
 0x1ad   :  { %v4872_v46 = vadd.f32 %v4871_v45, %v3548_v34  ;;  %v5319_v47 = vrot.slane %v5150_v11, 4  ;;  %4139 = vmatprep.subr.bf16.mxu1 %v6153_v15  ;;  %v4884_v51 = vadd.f32 %v4883_v42, %v3589_v13  ;;  %v5331_v52 = vrot.slane %v5152_v25, 4  ;;  %v313_v8 = vld [vmem:[#allocation2 + $0x8d8] sm:$0xff] }
 0x1ae   :  { %v4867_v49 = vrot.slane %v4866_v43, 2  ;;  %v5314_v50 = vadd.f32 %v5313_v63, %v5149_v12  ;;  %v4879_v53 = vrot.slane %v4878_v6, 2  ;;  %v5326_v54 = vadd.f32 %v5325_v7, %v5151_v23 }
 0x1af   :  { %v4873_v55 = vrot.slane %v4872_v46, 2  ;;  %v5320_v56 = vadd.f32 %v5319_v47, %v5150_v11  ;;  %4099 = vmatpush1.bf16.msra.mxu0 %v6150_v3  ;;  %v4885_v59 = vrot.slane %v4884_v51, 2  ;;  %v5332_v60 = vadd.f32 %v5331_v52, %v5152_v25  ;;  %v7170_v52 = vld [vmem:[#allocation2 + $0xbd8] sm:$0xff] }
 0x1b0   :  { %v4868_v57 = vadd.f32 %v4867_v49, %v4866_v43  ;;  %v5315_v58 = vrot.slane %v5314_v50, 2  ;;  %4140 = vmatpush1.bf16.msra.mxu1 %v6152_v41  ;;  %4100 = vmatprep.subr.bf16.mxu0 %v6215_v9  ;;  %v4880_v40 = vadd.f32 %v4879_v53, %v4878_v6  ;;  %v5327_v2 = vrot.slane %v5326_v54, 2  ;;  %v217_v43 = vld [vmem:[#allocation2 + $0x5d8] sm:$0xff]  ;;  %v376_v49 = vld [vmem:[#allocation2 + $0xad0] sm:$0xff] }
 0x1b1   :  { %v4874_v26 = vadd.f32 %v4873_v55, %v4872_v46  ;;  %v5321_v30 = vrot.slane %v5320_v56, 2  ;;  %4141 = vmatprep.subr.bf16.mxu1 %v6217_v44  ;;  %v4886_v29 = vadd.f32 %v4885_v59, %v4884_v51  ;;  %v5333_v12 = vrot.slane %v5332_v60, 2  ;;  %v345_v6 = vld [vmem:[#allocation2 + $0x9d8] sm:$0xff]  ;;  %v7172_v53 = vld [vmem:[#allocation2 + $0xcd0] sm:$0xff] }
 0x1b2   :  { %v4869_v15 = vrot.slane %v4868_v57, 1  ;;  %v5316_v5 = vadd.f32 %v5315_v58, %v5314_v50  ;;  %v4881_v38 = vrot.slane %v4880_v40, 1  ;;  %v5328_v34 = vadd.f32 %v5327_v2, %v5326_v54  ;;  %v408_v50 = vld [vmem:[#allocation2 + $0xbd0] sm:$0xff]  ;;  %v7168_v51 = vld [vmem:[#allocation2 + $0xad8] sm:$0xff] }
 0x1b3   :  { %v4875_v39 = vrot.slane %v4874_v26, 1  ;;  %v5322_v23 = vadd.f32 %v5321_v30, %v5320_v56  ;;  %4101 = vmatpush1.bf16.msra.mxu0 %v6214_v36  ;;  %v4887_v9 = vrot.slane %v4886_v29, 1  ;;  %v5334_v45 = vadd.f32 %v5333_v12, %v5332_v60  ;;  %v7174_v55 = vld [vmem:[#allocation2 + $0xdd0] sm:$0xff]  ;;  %v7176_v56 = vld [vmem:[#allocation2 + $0xcd8] sm:$0xff] }
 0x1b4   :  { %v4870_v3 = vadd.f32 %v4869_v15, %v4868_v57  ;;  %v5317_v41 = vrot.slane %v5316_v5, 1  ;;  %4142 = vmatpush1.bf16.msra.mxu1 %v6216_v22  ;;  %4168 = vmatprep.subr.bf16.mxu0 %v5771_v20  ;;  %v4882_v44 = vadd.f32 %v4881_v38, %v4880_v40  ;;  %v5329_v11 = vrot.slane %v5328_v34, 1  ;;  %v7125_v22 = vld [vmem:[%s7750_s0] sm:$0xf]  ;;  %v185_v20 = vld [vmem:[#allocation2 + $0x4d8] sm:$0xff]  ;;  %v7180_v60 = vld [vmem:[#allocation2 + $0xed0] sm:$0xff] }
 0x1b5   :  { %v4876_v13 = vadd.f32 %v4875_v39, %v4874_v26  ;;  %v5323_v10 = vrot.slane %v5322_v23, 1  ;;  %4209 = vmatprep.subr.bf16.mxu1 %v5773_v62  ;;  %v4888_v1 = vadd.f32 %v4887_v9, %v4886_v29  ;;  %v5335_v14 = vrot.slane %v5334_v45, 1  ;;  %v7178_v57 = vld [vmem:[#allocation2 + $0xdd8] sm:$0xff]  ;;  %v7182_v40 = vld [vmem:[#allocation2 + $0xfd0] sm:$0xff]  ;;  %v7190_v15 = vld [vmem:[#allocation2 + $0xe0] sm:$0xff] }
 0x1b6   :  { %v5318_v36 = vadd.f32 %v5317_v41, %v5316_v5  ;;  %5597 = vst [vmem:[%s7753_s3 + $0xa0] sm:$0xff] %v4870_v3  ;;  %4119 = vmatmul.mubr.bf16.vlgmr.msra.gmra.mrb[48].mxu0 %v7125_v22  ;;  %v5330_v63 = vadd.f32 %v5329_v11, %v5328_v34  ;;  %5599 = vst [vmem:[%s7753_s3 + $0xb0] sm:$0xff] %v4882_v44  ;;  %v5834_v42 = vcombine.low %v7061_v17, %v7071_v4  ;;  %v280_v17 = vld [vmem:[#allocation2 + $0x7d0] sm:$0xff]  ;;  %v249_v4 = vld [vmem:[#allocation2 + $0x6d8] sm:$0xff] }
 0x1b7   :  { %v5324_v62 = vadd.f32 %v5323_v10, %v5322_v23  ;;  %5598 = vst [vmem:[%s7753_s3 + $0xa8] sm:$0xff] %v4876_v13  ;;  %4160 = vmatmul.mubr.bf16.vlgmr.msra.gmra.mrb[48].mxu1 %v7125_v22  ;;  %4169 = vmatpush1.bf16.msra.mxu0 %v5770_v19  ;;  %v5336_v25 = vadd.f32 %v5335_v14, %v5334_v45  ;;  %5600 = vst [vmem:[%s7753_s3 + $0xb8] sm:$0xff] %v4888_v1  ;;  %v281_v19 = vld [vmem:[#allocation2 + $0x7d8] sm:$0xff]  ;;  %v7192_v5 = vld [vmem:[#allocation2 + $0x1e0] sm:$0xff] }
 0x1b8   :  { %5661 = vst [vmem:[%s7754_s4 + $0xa0] sm:$0xff] %v5318_v36  ;;  %4210 = vmatpush1.bf16.msra.mxu1 %v5772_v28  ;;  %4170 = vmatprep.subr.bf16.mxu0 %v5835_v18  ;;  %5663 = vst [vmem:[%s7754_s4 + $0xb0] sm:$0xff] %v5330_v63  ;;  %v5901_v31 = vcombine.high %v185_v20, %v217_v43  ;;  %v5898_v28 = vcombine.low %v184_v61, %v216_v21  ;;  %v7184_v2 = vld [vmem:[#allocation2 + $0xed8] sm:$0xff]  ;;  %v7198_v34 = vld [vmem:[#allocation2 + $0xe8] sm:$0xff] }
 0x1b9   :  { %5662 = vst [vmem:[%s7754_s4 + $0xa8] sm:$0xff] %v5324_v62  ;;  %4211 = vmatprep.subr.bf16.mxu1 %v5837_v35  ;;  %4200 = vmatprep.mubr.bf16.mxu0 %v6264_v0  ;;  %5664 = vst [vmem:[%s7754_s4 + $0xb8] sm:$0xff] %v5336_v25  ;;  %v5900_v18 = vcombine.low %v185_v20, %v217_v43  ;;  %v5963_v33 = vcombine.high %v248_v27, %v280_v17  ;;  %v312_v35 = vld [vmem:[#allocation2 + $0x8d0] sm:$0xff]  ;;  %v7188_v30 = vld [vmem:[#allocation2 + $0xfd8] sm:$0xff] }
 0x1ba   :  { %4241 = vmatprep.mubr.bf16.mxu1 %v6264_v0  ;;  %v5965_v32 = vcombine.high %v249_v4, %v281_v19  ;;  %v5962_v7 = vcombine.low %v248_v27, %v280_v17  ;;  %v5964_v46 = vcombine.low %v249_v4, %v281_v19  ;;  %v6027_v47 = vcombine.high %v312_v35, %v344_v16  ;;  %v7200_v39 = vld [vmem:[#allocation2 + $0x1e8] sm:$0xff]  ;;  %v7202_v23 = vld [vmem:[#allocation2 + $0x2e0] sm:$0xff] }
 0x1bb   :  { %4171 = vmatpush1.bf16.msra.mxu0 %v5834_v42  ;;  %v6029_v48 = vcombine.high %v313_v8, %v345_v6  ;;  %v6026_v54 = vcombine.low %v312_v35, %v344_v16  ;;  %v6028_v58 = vcombine.low %v313_v8, %v345_v6  ;;  %v6091_v59 = vcombine.high %v376_v49, %v408_v50  ;;  %v7212_v44 = vld [vmem:[#allocation2 + $0x3e0] sm:$0xff]  ;;  %v7214_v11 = vld [vmem:[#allocation2 + $0x2e8] sm:$0xff] }
 0x1bc   :  { %4212 = vmatpush1.bf16.msra.mxu1 %v5836_v24  ;;  %4172 = vmatprep.subr.bf16.mxu0 %v5899_v37  ;;  %v6093_v26 = vcombine.high %v7168_v51, %v7170_v52  ;;  %v6090_v29 = vcombine.low %v376_v49, %v408_v50  ;;  %v6092_v12 = vcombine.low %v7168_v51, %v7170_v52  ;;  %v7216_v13 = vld [vmem:[#allocation2 + $0x3e8] sm:$0xff] }
 0x1bd   :  { %4213 = vmatprep.subr.bf16.mxu1 %v5901_v31  ;;  %v6154_v38 = vcombine.low %v7172_v53, %v7174_v55  ;;  %v6155_v3 = vcombine.high %v7172_v53, %v7174_v55  ;;  %v6156_v41 = vcombine.low %v7176_v56, %v7178_v57  ;;  %v6157_v9 = vcombine.high %v7176_v56, %v7178_v57 }
 0x1be   :  { %v6218_v45 = vcombine.low %v7180_v60, %v7182_v40  ;;  %v6219_v10 = vcombine.high %v7180_v60, %v7182_v40  ;;  %v6220_v61 = vcombine.low %v7184_v2, %v7188_v30  ;;  %v6221_v21 = vcombine.high %v7184_v2, %v7188_v30  ;;  %v186_v60 = vld [vmem:[#allocation2 + $0x4e0] sm:$0xff] }
 0x1bf   :  { %4173 = vmatpush1.bf16.msra.mxu0 %v5898_v28  ;;  %v5774_v1 = vcombine.low %v7190_v15, %v7192_v5  ;;  %v5775_v14 = vcombine.high %v7190_v15, %v7192_v5  ;;  %v5776_v20 = vcombine.low %v7198_v34, %v7200_v39  ;;  %v5777_v43 = vcombine.high %v7198_v34, %v7200_v39  ;;  %v218_v40 = vld [vmem:[#allocation2 + $0x5e0] sm:$0xff] }
 0x1c0   :  { %4214 = vmatpush1.bf16.msra.mxu1 %v5900_v18  ;;  %4174 = vmatprep.subr.bf16.mxu0 %v5963_v33  ;;  %v5839_v24 = vcombine.high %v7202_v23, %v7212_v44  ;;  %v5841_v37 = vcombine.high %v7214_v11, %v7216_v13  ;;  %v5840_v15 = vcombine.low %v7214_v11, %v7216_v13  ;;  %v250_v39 = vld [vmem:[#allocation2 + $0x6e0] sm:$0xff] }
 0x1c1   :  { %4215 = vmatprep.subr.bf16.mxu1 %v5965_v32  ;;  %v5903_v5 = vcombine.high %v186_v60, %v218_v40 }
 0x1c3   :  { %4175 = vmatpush1.bf16.msra.mxu0 %v5962_v7 }
 0x1c4   :  { %4216 = vmatpush1.bf16.msra.mxu1 %v5964_v46  ;;  %4176 = vmatprep.subr.bf16.mxu0 %v6027_v47 }
 0x1c5   :  { %4217 = vmatprep.subr.bf16.mxu1 %v6029_v48 }
 0x1c7   :  { %4177 = vmatpush1.bf16.msra.mxu0 %v6026_v54 }
 0x1c8   :  { %4218 = vmatpush1.bf16.msra.mxu1 %v6028_v58  ;;  %4178 = vmatprep.subr.bf16.mxu0 %v6091_v59 }
 0x1c9   :  { %v3628_v36 = vpop.f32.mrb[24].mxu0  ;;  %4219 = vmatprep.subr.bf16.mxu1 %v6093_v26  ;;  %v3669_v42 = vpop.f32.mrb[24].mxu1 }
 0x1ca   :  { %4442 = vst [vmem:[%s7752_s2 + $0xc0] sm:$0xff] %v3628_v36  ;;  %v4889_v63 = vrot.slane %v3628_v36, 4  ;;  %v5153_v62 = vmul.f32 %v3628_v36, %v3628_v36  ;;  %v3630_v25 = vpop.f32.mrb[25].mxu0  ;;  %4444 = vst [vmem:[%s7752_s2 + $0xd0] sm:$0xff] %v3669_v42  ;;  %v4901_v31 = vrot.slane %v3669_v42, 4  ;;  %v5155_v27 = vmul.f32 %v3669_v42, %v3669_v42  ;;  %v3671_v19 = vpop.f32.mrb[25].mxu1 }
 0x1cb   :  { %4443 = vst [vmem:[%s7752_s2 + $0xc8] sm:$0xff] %v3630_v25  ;;  %v4895_v17 = vrot.slane %v3630_v25, 4  ;;  %v5154_v4 = vmul.f32 %v3630_v25, %v3630_v25  ;;  %v3632_v28 = vpop.f32.mrb[26].mxu0  ;;  %4179 = vmatpush1.bf16.msra.mxu0 %v6090_v29  ;;  %4445 = vst [vmem:[%s7752_s2 + $0xd8] sm:$0xff] %v3671_v19  ;;  %v4907_v32 = vrot.slane %v3671_v19, 4  ;;  %v5156_v35 = vmul.f32 %v3671_v19, %v3671_v19  ;;  %v3673_v16 = vpop.f32.mrb[26].mxu1 }
 0x1cc   :  { %v4890_v18 = vadd.f32 %v4889_v63, %v3628_v36  ;;  %v5337_v33 = vrot.slane %v5153_v62, 4  ;;  %4220 = vmatpush1.bf16.msra.mxu1 %v6092_v12  ;;  %v3633_v8 = vpop.f32.mrb[27].mxu0  ;;  %4180 = vmatprep.subr.bf16.mxu0 %v6155_v3  ;;  %v4902_v6 = vadd.f32 %v4901_v31, %v3669_v42  ;;  %v5349_v7 = vrot.slane %v5155_v27, 4  ;;  %v3674_v48 = vpop.f32.mrb[27].mxu1  ;;  %v346_v16 = vld [vmem:[#allocation2 + $0x9e0] sm:$0xff] }
 0x1cd   :  { %v4896_v46 = vadd.f32 %v4895_v17, %v3630_v25  ;;  %v5343_v47 = vrot.slane %v5154_v4, 4  ;;  %4221 = vmatprep.subr.bf16.mxu1 %v6157_v9  ;;  %v4908_v51 = vadd.f32 %v4907_v32, %v3671_v19  ;;  %v5355_v52 = vrot.slane %v5156_v35, 4  ;;  %v315_v8 = vld [vmem:[#allocation2 + $0x8e8] sm:$0xff] }
 0x1ce   :  { %v4891_v49 = vrot.slane %v4890_v18, 2  ;;  %v5338_v50 = vadd.f32 %v5337_v33, %v5153_v62  ;;  %v4903_v53 = vrot.slane %v4902_v6, 2  ;;  %v5350_v54 = vadd.f32 %v5349_v7, %v5155_v27 }
 0x1cf   :  { %v4897_v55 = vrot.slane %v4896_v46, 2  ;;  %v5344_v56 = vadd.f32 %v5343_v47, %v5154_v4  ;;  %4181 = vmatpush1.bf16.msra.mxu0 %v6154_v38  ;;  %v4909_v59 = vrot.slane %v4908_v51, 2  ;;  %v5356_v26 = vadd.f32 %v5355_v52, %v5156_v35  ;;  %v7306_v52 = vld [vmem:[#allocation2 + $0xbe8] sm:$0xff] }
 0x1d0   :  { %v4892_v57 = vadd.f32 %v4891_v49, %v4890_v18  ;;  %v5339_v58 = vrot.slane %v5338_v50, 2  ;;  %4222 = vmatpush1.bf16.msra.mxu1 %v6156_v41  ;;  %4182 = vmatprep.subr.bf16.mxu0 %v6219_v10  ;;  %v4904_v29 = vadd.f32 %v4903_v53, %v4902_v6  ;;  %v5351_v12 = vrot.slane %v5350_v54, 2  ;;  %v347_v6 = vld [vmem:[#allocation2 + $0x9e8] sm:$0xff]  ;;  %v378_v49 = vld [vmem:[#allocation2 + $0xae0] sm:$0xff] }
 0x1d1   :  { %v4898_v3 = vadd.f32 %v4897_v55, %v4896_v46  ;;  %v5345_v36 = vrot.slane %v5344_v56, 2  ;;  %4223 = vmatprep.subr.bf16.mxu1 %v6221_v21  ;;  %v4910_v62 = vadd.f32 %v4909_v59, %v4908_v51  ;;  %v5357_v42 = vrot.slane %v5356_v26, 2  ;;  %v7304_v51 = vld [vmem:[#allocation2 + $0xae8] sm:$0xff]  ;;  %v7308_v53 = vld [vmem:[#allocation2 + $0xce0] sm:$0xff] }
 0x1d2   :  { %v4893_v9 = vrot.slane %v4892_v57, 1  ;;  %v5340_v63 = vadd.f32 %v5339_v58, %v5338_v50  ;;  %v4905_v25 = vrot.slane %v4904_v29, 1  ;;  %v5352_v31 = vadd.f32 %v5351_v12, %v5350_v54  ;;  %v410_v50 = vld [vmem:[#allocation2 + $0xbe0] sm:$0xff]  ;;  %v7320_v12 = vld [vmem:[#allocation2 + $0xee8] sm:$0xff] }
 0x1d3   :  { %v4899_v27 = vrot.slane %v4898_v3, 1  ;;  %v5346_v17 = vadd.f32 %v5345_v36, %v5344_v56  ;;  %4183 = vmatpush1.bf16.msra.mxu0 %v6218_v45  ;;  %v4911_v10 = vrot.slane %v4910_v62, 1  ;;  %v5358_v4 = vadd.f32 %v5357_v42, %v5356_v26  ;;  %v7310_v55 = vld [vmem:[#allocation2 + $0xde0] sm:$0xff]  ;;  %v7312_v56 = vld [vmem:[#allocation2 + $0xce8] sm:$0xff] }
 0x1d4   :  { %v4894_v38 = vadd.f32 %v4893_v9, %v4892_v57  ;;  %v5341_v41 = vrot.slane %v5340_v63, 1  ;;  %4224 = vmatpush1.bf16.msra.mxu1 %v6220_v61  ;;  %4250 = vmatprep.subr.bf16.mxu0 %v5775_v14  ;;  %v4906_v21 = vadd.f32 %v4905_v25, %v4904_v29  ;;  %v5353_v19 = vrot.slane %v5352_v31, 1  ;;  %v187_v61 = vld [vmem:[#allocation2 + $0x4e8] sm:$0xff]  ;;  %v7316_v26 = vld [vmem:[#allocation2 + $0xee0] sm:$0xff]  ;;  %v7326_v9 = vld [vmem:[#allocation2 + $0xf0] sm:$0xff] }
 0x1d5   :  { %v4900_v28 = vadd.f32 %v4899_v27, %v4898_v3  ;;  %v5347_v18 = vrot.slane %v5346_v17, 1  ;;  %4291 = vmatprep.subr.bf16.mxu1 %v5777_v43  ;;  %v4912_v2 = vadd.f32 %v4911_v10, %v4910_v62  ;;  %v5359_v30 = vrot.slane %v5358_v4, 1  ;;  %v219_v14 = vld [vmem:[#allocation2 + $0x5e8] sm:$0xff]  ;;  %v7318_v29 = vld [vmem:[#allocation2 + $0xfe0] sm:$0xff]  ;;  %v7336_v27 = vld [vmem:[#allocation2 + $0x1f8] sm:$0xff] }
 0x1d6   :  { %v5342_v45 = vadd.f32 %v5341_v41, %v5340_v63  ;;  %5601 = vst [vmem:[%s7753_s3 + $0xc0] sm:$0xff] %v4894_v38  ;;  %4201 = vmatmul.mubr.bf16.vlgmr.msra.gmra.mrb[52].mxu0 %v7125_v22  ;;  %v5354_v33 = vadd.f32 %v5353_v19, %v5352_v31  ;;  %5603 = vst [vmem:[%s7753_s3 + $0xd0] sm:$0xff] %v4906_v21  ;;  %v5838_v43 = vcombine.low %v7202_v23, %v7212_v44  ;;  %v282_v23 = vld [vmem:[#allocation2 + $0x7e0] sm:$0xff]  ;;  %v251_v44 = vld [vmem:[#allocation2 + $0x6e8] sm:$0xff] }
 0x1d7   :  { %v5348_v32 = vadd.f32 %v5347_v18, %v5346_v17  ;;  %5602 = vst [vmem:[%s7753_s3 + $0xc8] sm:$0xff] %v4900_v28  ;;  %4242 = vmatmul.mubr.bf16.vlgmr.msra.gmra.mrb[52].mxu1 %v7125_v22  ;;  %4251 = vmatpush1.bf16.msra.mxu0 %v5774_v1  ;;  %v5360_v35 = vadd.f32 %v5359_v30, %v5358_v4  ;;  %5604 = vst [vmem:[%s7753_s3 + $0xd8] sm:$0xff] %v4912_v2  ;;  %v283_v1 = vld [vmem:[#allocation2 + $0x7e8] sm:$0xff]  ;;  %v7328_v63 = vld [vmem:[#allocation2 + $0x1f0] sm:$0xff] }
 0x1d8   :  { %5665 = vst [vmem:[%s7754_s4 + $0xc0] sm:$0xff] %v5342_v45  ;;  %4292 = vmatpush1.bf16.msra.mxu1 %v5776_v20  ;;  %4252 = vmatprep.subr.bf16.mxu0 %v5839_v24  ;;  %5667 = vst [vmem:[%s7754_s4 + $0xd0] sm:$0xff] %v5354_v33  ;;  %v5905_v34 = vcombine.high %v187_v61, %v219_v14  ;;  %v5902_v20 = vcombine.low %v186_v60, %v218_v40  ;;  %v7314_v57 = vld [vmem:[#allocation2 + $0xde8] sm:$0xff]  ;;  %v7334_v31 = vld [vmem:[#allocation2 + $0xf8] sm:$0xff] }
 0x1d9   :  { %5666 = vst [vmem:[%s7754_s4 + $0xc8] sm:$0xff] %v5348_v32  ;;  %4293 = vmatprep.subr.bf16.mxu1 %v5841_v37  ;;  %4282 = vmatprep.mubr.bf16.mxu0 %v6264_v0  ;;  %5668 = vst [vmem:[%s7754_s4 + $0xd8] sm:$0xff] %v5360_v35  ;;  %v5904_v24 = vcombine.low %v187_v61, %v219_v14  ;;  %v5967_v11 = vcombine.high %v250_v39, %v282_v23  ;;  %v314_v37 = vld [vmem:[#allocation2 + $0x8e0] sm:$0xff]  ;;  %v7324_v36 = vld [vmem:[#allocation2 + $0xfe8] sm:$0xff] }
 0x1da   :  { %4323 = vmatprep.mubr.bf16.mxu1 %v6264_v0  ;;  %v5969_v13 = vcombine.high %v251_v44, %v283_v1  ;;  %v5966_v7 = vcombine.low %v250_v39, %v282_v23  ;;  %v5968_v46 = vcombine.low %v251_v44, %v283_v1  ;;  %v6031_v47 = vcombine.high %v314_v37, %v346_v16  ;;  %v7338_v17 = vld [vmem:[#allocation2 + $0x2f0] sm:$0xff]  ;;  %v7350_v19 = vld [vmem:[#allocation2 + $0x2f8] sm:$0xff] }
 0x1db   :  { %4253 = vmatpush1.bf16.msra.mxu0 %v5838_v43  ;;  %v6033_v48 = vcombine.high %v315_v8, %v347_v6  ;;  %v6030_v54 = vcombine.low %v314_v37, %v346_v16  ;;  %v6032_v58 = vcombine.low %v315_v8, %v347_v6  ;;  %v6095_v59 = vcombine.high %v378_v49, %v410_v50  ;;  %v7348_v21 = vld [vmem:[#allocation2 + $0x3f0] sm:$0xff]  ;;  %v7352_v28 = vld [vmem:[#allocation2 + $0x3f8] sm:$0xff] }
 0x1dc   :  { %4294 = vmatpush1.bf16.msra.mxu1 %v5840_v15  ;;  %4254 = vmatprep.subr.bf16.mxu0 %v5903_v5  ;;  %v6097_v3 = vcombine.high %v7304_v51, %v7306_v52  ;;  %v6094_v62 = vcombine.low %v378_v49, %v410_v50  ;;  %v6096_v42 = vcombine.low %v7304_v51, %v7306_v52 }
 0x1dd   :  { %4295 = vmatprep.subr.bf16.mxu1 %v5905_v34  ;;  %v6158_v25 = vcombine.low %v7308_v53, %v7310_v55  ;;  %v6159_v38 = vcombine.high %v7308_v53, %v7310_v55  ;;  %v6160_v41 = vcombine.low %v7312_v56, %v7314_v57  ;;  %v6161_v10 = vcombine.high %v7312_v56, %v7314_v57 }
 0x1de   :  { %v6222_v4 = vcombine.low %v7316_v26, %v7318_v29  ;;  %v6223_v18 = vcombine.high %v7316_v26, %v7318_v29  ;;  %v6224_v60 = vcombine.low %v7320_v12, %v7324_v36  ;;  %v6225_v40 = vcombine.high %v7320_v12, %v7324_v36  ;;  %v188_v26 = vld [vmem:[#allocation2 + $0x4f0] sm:$0xff] }
 0x1df   :  { %4255 = vmatpush1.bf16.msra.mxu0 %v5902_v20  ;;  %v5778_v2 = vcombine.low %v7326_v9, %v7328_v63  ;;  %v5779_v30 = vcombine.high %v7326_v9, %v7328_v63  ;;  %v5780_v61 = vcombine.low %v7334_v31, %v7336_v27  ;;  %v5781_v14 = vcombine.high %v7334_v31, %v7336_v27  ;;  %v220_v29 = vld [vmem:[#allocation2 + $0x5f0] sm:$0xff] }
 0x1e0   :  { %4296 = vmatpush1.bf16.msra.mxu1 %v5904_v24  ;;  %4256 = vmatprep.subr.bf16.mxu0 %v5967_v11  ;;  %v5843_v15 = vcombine.high %v7338_v17, %v7348_v21  ;;  %v5845_v5 = vcombine.high %v7350_v19, %v7352_v28  ;;  %v5844_v9 = vcombine.low %v7350_v19, %v7352_v28  ;;  %v252_v27 = vld [vmem:[#allocation2 + $0x6f0] sm:$0xff] }
 0x1e1   :  { %4297 = vmatprep.subr.bf16.mxu1 %v5969_v13  ;;  %v5907_v63 = vcombine.high %v188_v26, %v220_v29 }
 0x1e3   :  { %4257 = vmatpush1.bf16.msra.mxu0 %v5966_v7 }
 0x1e4   :  { %4298 = vmatpush1.bf16.msra.mxu1 %v5968_v46  ;;  %4258 = vmatprep.subr.bf16.mxu0 %v6031_v47 }
 0x1e5   :  { %4299 = vmatprep.subr.bf16.mxu1 %v6033_v48 }
 0x1e7   :  { %4259 = vmatpush1.bf16.msra.mxu0 %v6030_v54 }
 0x1e8   :  { %4300 = vmatpush1.bf16.msra.mxu1 %v6032_v58  ;;  %4260 = vmatprep.subr.bf16.mxu0 %v6095_v59 }
 0x1e9   :  { %v3710_v45 = vpop.f32.mrb[28].mxu0  ;;  %4301 = vmatprep.subr.bf16.mxu1 %v6097_v3 }
 0x1ea   :  { %4446 = vst [vmem:[%s7752_s2 + $0xe0] sm:$0xff] %v3710_v45  ;;  %v4913_v33 = vrot.slane %v3710_v45, 4  ;;  %v5157_v32 = vmul.f32 %v3710_v45, %v3710_v45  ;;  %v3751_v43 = vpop.f32.mrb[28].mxu1  ;;  %v3712_v35 = vpop.f32.mrb[29].mxu0 }
 0x1eb   :  { %4448 = vst [vmem:[%s7752_s2 + $0xf0] sm:$0xff] %v3751_v43  ;;  %v4925_v34 = vrot.slane %v3751_v43, 4  ;;  %v5159_v39 = vmul.f32 %v3751_v43, %v3751_v43  ;;  %4447 = vst [vmem:[%s7752_s2 + $0xe8] sm:$0xff] %v3712_v35  ;;  %v4919_v23 = vrot.slane %v3712_v35, 4  ;;  %v5158_v44 = vmul.f32 %v3712_v35, %v3712_v35  ;;  %v3753_v1 = vpop.f32.mrb[29].mxu1  ;;  %v3714_v20 = vpop.f32.mrb[30].mxu0  ;;  %4261 = vmatpush1.bf16.msra.mxu0 %v6094_v62 }
 0x1ec   :  { %v4914_v24 = vadd.f32 %v4913_v33, %v3710_v45  ;;  %v5361_v11 = vrot.slane %v5157_v32, 4  ;;  %4449 = vst [vmem:[%s7752_s2 + $0xf8] sm:$0xff] %v3753_v1  ;;  %v4931_v13 = vrot.slane %v3753_v1, 4  ;;  %v5160_v37 = vmul.f32 %v3753_v1, %v3753_v1  ;;  %v3755_v16 = vpop.f32.mrb[30].mxu1  ;;  %4302 = vmatpush1.bf16.msra.mxu1 %v6096_v42  ;;  %v3715_v8 = vpop.f32.mrb[31].mxu0  ;;  %4262 = vmatprep.subr.bf16.mxu0 %v6159_v38 }
 0x1ed   :  { %v4926_v6 = vadd.f32 %v4925_v34, %v3751_v43  ;;  %v5373_v7 = vrot.slane %v5159_v39, 4  ;;  %v4920_v46 = vadd.f32 %v4919_v23, %v3712_v35  ;;  %v5367_v47 = vrot.slane %v5158_v44, 4  ;;  %v3756_v48 = vpop.f32.mrb[31].mxu1  ;;  %4303 = vmatprep.subr.bf16.mxu1 %v6161_v10  ;;  %v348_v16 = vld [vmem:[#allocation2 + $0x9f0] sm:$0xff]  ;;  %v317_v8 = vld [vmem:[#allocation2 + $0x8f8] sm:$0xff] }
 0x1ee   :  { %v4915_v49 = vrot.slane %v4914_v24, 2  ;;  %v5362_v50 = vadd.f32 %v5361_v11, %v5157_v32  ;;  %v4932_v51 = vadd.f32 %v4931_v13, %v3753_v1  ;;  %v5379_v52 = vrot.slane %v5160_v37, 4  ;;  %v380_v48 = vld [vmem:[#allocation2 + $0xaf0] sm:$0xff] }
 0x1ef   :  { %v4927_v53 = vrot.slane %v4926_v6, 2  ;;  %v5374_v54 = vadd.f32 %v5373_v7, %v5159_v39  ;;  %v4921_v55 = vrot.slane %v4920_v46, 2  ;;  %v5368_v56 = vadd.f32 %v5367_v47, %v5158_v44  ;;  %4263 = vmatpush1.bf16.msra.mxu0 %v6158_v25 }
 0x1f0   :  { %v4916_v57 = vadd.f32 %v4915_v49, %v4914_v24  ;;  %v5363_v58 = vrot.slane %v5362_v50, 2  ;;  %v4933_v59 = vrot.slane %v4932_v51, 2  ;;  %v5380_v3 = vadd.f32 %v5379_v52, %v5160_v37  ;;  %4304 = vmatpush1.bf16.msra.mxu1 %v6160_v41  ;;  %4264 = vmatprep.subr.bf16.mxu0 %v6223_v18  ;;  %v412_v49 = vld [vmem:[#allocation2 + $0xbf0] sm:$0xff] }
 0x1f1   :  { %v4928_v62 = vadd.f32 %v4927_v53, %v4926_v6  ;;  %v5375_v42 = vrot.slane %v5374_v54, 2  ;;  %v4922_v38 = vadd.f32 %v4921_v55, %v4920_v46  ;;  %v5369_v45 = vrot.slane %v5368_v56, 2  ;;  %4305 = vmatprep.subr.bf16.mxu1 %v6225_v40  ;;  %v349_v6 = vld [vmem:[#allocation2 + $0x9f8] sm:$0xff] }
 0x1f2   :  { %v4917_v10 = vrot.slane %v4916_v57, 1  ;;  %v5364_v33 = vadd.f32 %v5363_v58, %v5362_v50  ;;  %v4934_v32 = vadd.f32 %v4933_v59, %v4932_v51  ;;  %v5381_v43 = vrot.slane %v5380_v3, 2  ;;  %v381_v50 = vld [vmem:[#allocation2 + $0xaf8] sm:$0xff] }
 0x1f3   :  { %v4929_v35 = vrot.slane %v4928_v62, 1  ;;  %v5376_v34 = vadd.f32 %v5375_v42, %v5374_v54  ;;  %v4923_v39 = vrot.slane %v4922_v38, 1  ;;  %v5370_v23 = vadd.f32 %v5369_v45, %v5368_v56  ;;  %4265 = vmatpush1.bf16.msra.mxu0 %v6222_v4  ;;  %v413_v51 = vld [vmem:[#allocation2 + $0xbf8] sm:$0xff]  ;;  %v444_v56 = vld [vmem:[#allocation2 + $0xcf0] sm:$0xff] }
 0x1f4   :  { %v4918_v25 = vadd.f32 %v4917_v10, %v4916_v57  ;;  %v5365_v41 = vrot.slane %v5364_v33, 1  ;;  %v4935_v18 = vrot.slane %v4934_v32, 1  ;;  %v5382_v44 = vadd.f32 %v5381_v43, %v5380_v3  ;;  %4306 = vmatpush1.bf16.msra.mxu1 %v6224_v60  ;;  %4332 = vmatprep.subr.bf16.mxu0 %v5779_v30  ;;  %v189_v60 = vld [vmem:[#allocation2 + $0x4f8] sm:$0xff]  ;;  %v476_v57 = vld [vmem:[#allocation2 + $0xdf0] sm:$0xff] }
 0x1f5   :  { %v4930_v40 = vadd.f32 %v4929_v35, %v4928_v62  ;;  %v5377_v1 = vrot.slane %v5376_v34, 1  ;;  %v4924_v20 = vadd.f32 %v4923_v39, %v4922_v38  ;;  %v5371_v24 = vrot.slane %v5370_v23, 1  ;;  %4373 = vmatprep.subr.bf16.mxu1 %v5781_v14  ;;  %v221_v30 = vld [vmem:[#allocation2 + $0x5f8] sm:$0xff]  ;;  %v7442_v3 = vld [vmem:[#allocation2 + $0xef0] sm:$0xff] }
 0x1f6   :  { %v5366_v4 = vadd.f32 %v5365_v41, %v5364_v33  ;;  %5605 = vst [vmem:[%s7753_s3 + $0xe0] sm:$0xff] %v4918_v25  ;;  %v4936_v12 = vadd.f32 %v4935_v18, %v4934_v32  ;;  %v5383_v36 = vrot.slane %v5382_v44, 1  ;;  %4283 = vmatmul.mubr.bf16.vlgmr.msra.gmra.mrb[56].mxu0 %v7125_v22  ;;  %v5842_v14 = vcombine.low %v7338_v17, %v7348_v21  ;;  %v284_v17 = vld [vmem:[#allocation2 + $0x7f0] sm:$0xff]  ;;  %v253_v21 = vld [vmem:[#allocation2 + $0x6f8] sm:$0xff] }
 0x1f7   :  { %v5378_v11 = vadd.f32 %v5377_v1, %v5376_v34  ;;  %5607 = vst [vmem:[%s7753_s3 + $0xf0] sm:$0xff] %v4930_v40  ;;  %v5372_v13 = vadd.f32 %v5371_v24, %v5370_v23  ;;  %5606 = vst [vmem:[%s7753_s3 + $0xe8] sm:$0xff] %v4924_v20  ;;  %4324 = vmatmul.mubr.bf16.vlgmr.msra.gmra.mrb[56].mxu1 %v7125_v22  ;;  %4333 = vmatpush1.bf16.msra.mxu0 %v5778_v2  ;;  %v285_v2 = vld [vmem:[#allocation2 + $0x7f8] sm:$0xff]  ;;  %v7444_v62 = vld [vmem:[#allocation2 + $0xff0] sm:$0xff] }
 0x1f8   :  { %5669 = vst [vmem:[%s7754_s4 + $0xe0] sm:$0xff] %v5366_v4  ;;  %v5384_v37 = vadd.f32 %v5383_v36, %v5382_v44  ;;  %5608 = vst [vmem:[%s7753_s3 + $0xf8] sm:$0xff] %v4936_v12  ;;  %4374 = vmatpush1.bf16.msra.mxu1 %v5780_v61  ;;  %4334 = vmatprep.subr.bf16.mxu0 %v5843_v15  ;;  %v5909_v31 = vcombine.high %v189_v60, %v221_v30  ;;  %v7440_v58 = vld [vmem:[#allocation2 + $0xcf8] sm:$0xff] }
 0x1f9   :  { %5671 = vst [vmem:[%s7754_s4 + $0xf0] sm:$0xff] %v5378_v11  ;;  %5670 = vst [vmem:[%s7754_s4 + $0xe8] sm:$0xff] %v5372_v13  ;;  %4375 = vmatprep.subr.bf16.mxu1 %v5845_v5  ;;  %4364 = vmatprep.mubr.bf16.mxu0 %v6264_v0  ;;  %v5906_v61 = vcombine.low %v188_v26, %v220_v29  ;;  %v5908_v15 = vcombine.low %v189_v60, %v221_v30  ;;  %v316_v5 = vld [vmem:[#allocation2 + $0x8f0] sm:$0xff]  ;;  %v477_v59 = vld [vmem:[#allocation2 + $0xdf8] sm:$0xff] }
 0x1fa   :  { %5672 = vst [vmem:[%s7754_s4 + $0xf8] sm:$0xff] %v5384_v37  ;;  %4405 = vmatprep.mubr.bf16.mxu1 %v6264_v0  ;;  %v5971_v19 = vcombine.high %v252_v27, %v284_v17  ;;  %v5973_v28 = vcombine.high %v253_v21, %v285_v2  ;;  %v5970_v7 = vcombine.low %v252_v27, %v284_v17  ;;  %v7446_v38 = vld [vmem:[#allocation2 + $0xef8] sm:$0xff] }
 0x1fb   :  { %4335 = vmatpush1.bf16.msra.mxu0 %v5842_v14  ;;  %v5972_v46 = vcombine.low %v253_v21, %v285_v2  ;;  %v6035_v47 = vcombine.high %v316_v5, %v348_v16  ;;  %v6037_v0 = vcombine.high %v317_v8, %v349_v6  ;;  %v6034_v52 = vcombine.low %v316_v5, %v348_v16  ;;  %v7448_v45 = vld [vmem:[#allocation2 + $0xff8] sm:$0xff] }
 0x1fc   :  { %4376 = vmatpush1.bf16.msra.mxu1 %v5844_v9  ;;  %4336 = vmatprep.subr.bf16.mxu0 %v5907_v63  ;;  %v6036_v53 = vcombine.low %v317_v8, %v349_v6  ;;  %v6099_v54 = vcombine.high %v380_v48, %v412_v49  ;;  %v6101_v55 = vcombine.high %v381_v50, %v413_v51 }
 0x1fd   :  { %4377 = vmatprep.subr.bf16.mxu1 %v5909_v31  ;;  %v6098_v42 = vcombine.low %v380_v48, %v412_v49  ;;  %v6100_v10 = vcombine.low %v381_v50, %v413_v51  ;;  %v6162_v33 = vcombine.low %v444_v56, %v476_v57  ;;  %v6163_v32 = vcombine.high %v444_v56, %v476_v57 }
 0x1fe   :  { %v6164_v35 = vcombine.low %v7440_v58, %v477_v59  ;;  %v6165_v34 = vcombine.high %v7440_v58, %v477_v59  ;;  %v6226_v39 = vcombine.low %v7442_v3, %v7444_v62  ;;  %v6227_v23 = vcombine.high %v7442_v3, %v7444_v62 }
 0x1ff   :  { %4337 = vmatpush1.bf16.msra.mxu0 %v5906_v61  ;;  %v6228_v40 = vcombine.low %v7446_v38, %v7448_v45  ;;  %v6229_v1 = vcombine.high %v7446_v38, %v7448_v45 }
 0x200   :  { %4378 = vmatpush1.bf16.msra.mxu1 %v5908_v15  ;;  %4338 = vmatprep.subr.bf16.mxu0 %v5971_v19 }
 0x201   :  { %4379 = vmatprep.subr.bf16.mxu1 %v5973_v28 }
 0x203   :  { %4339 = vmatpush1.bf16.msra.mxu0 %v5970_v7 }
 0x204   :  { %4380 = vmatpush1.bf16.msra.mxu1 %v5972_v46  ;;  %4340 = vmatprep.subr.bf16.mxu0 %v6035_v47 }
 0x205   :  { %4381 = vmatprep.subr.bf16.mxu1 %v6037_v0 }
 0x207   :  { %4341 = vmatpush1.bf16.msra.mxu0 %v6034_v52 }
 0x208   :  { %4382 = vmatpush1.bf16.msra.mxu1 %v6036_v53  ;;  %4342 = vmatprep.subr.bf16.mxu0 %v6099_v54 }
 0x209   :  { %v3792_v43 = vpop.f32.mrb[32].mxu0  ;;  %4383 = vmatprep.subr.bf16.mxu1 %v6101_v55 }
 0x20a   :  { %4450 = vst [vmem:[%s7752_s2 + $0x100] sm:$0xff] %v3792_v43  ;;  %v4937_v25 = vrot.slane %v3792_v43, 4  ;;  %v5161_v41 = vmul.f32 %v3792_v43, %v3792_v43  ;;  %v3833_v18 = vpop.f32.mrb[32].mxu1  ;;  %v3794_v44 = vpop.f32.mrb[33].mxu0 }
 0x20b   :  { %4452 = vst [vmem:[%s7752_s2 + $0x110] sm:$0xff] %v3833_v18  ;;  %v4949_v20 = vrot.slane %v3833_v18, 4  ;;  %v5163_v24 = vmul.f32 %v3833_v18, %v3833_v18  ;;  %4451 = vst [vmem:[%s7752_s2 + $0x108] sm:$0xff] %v3794_v44  ;;  %v4943_v26 = vrot.slane %v3794_v44, 4  ;;  %v5162_v29 = vmul.f32 %v3794_v44, %v3794_v44  ;;  %v3835_v4 = vpop.f32.mrb[33].mxu1  ;;  %v3796_v12 = vpop.f32.mrb[34].mxu0  ;;  %4343 = vmatpush1.bf16.msra.mxu0 %v6098_v42 }
 0x20c   :  { %v4938_v36 = vadd.f32 %v4937_v25, %v3792_v43  ;;  %v5385_v60 = vrot.slane %v5161_v41, 4  ;;  %4453 = vst [vmem:[%s7752_s2 + $0x118] sm:$0xff] %v3835_v4  ;;  %v4955_v30 = vrot.slane %v3835_v4, 4  ;;  %v5164_v11 = vmul.f32 %v3835_v4, %v3835_v4  ;;  %v3837_v13 = vpop.f32.mrb[34].mxu1  ;;  %4384 = vmatpush1.bf16.msra.mxu1 %v6100_v10  ;;  %v3797_v14 = vpop.f32.mrb[35].mxu0  ;;  %4344 = vmatprep.subr.bf16.mxu0 %v6163_v32 }
 0x20d   :  { %v4950_v37 = vadd.f32 %v4949_v20, %v3833_v18  ;;  %v5397_v9 = vrot.slane %v5163_v24, 4  ;;  %v4944_v63 = vadd.f32 %v4943_v26, %v3794_v44  ;;  %v5391_v31 = vrot.slane %v5162_v29, 4  ;;  %v3838_v27 = vpop.f32.mrb[35].mxu1  ;;  %4385 = vmatprep.subr.bf16.mxu1 %v6165_v34 }
 0x20e   :  { %v4939_v17 = vrot.slane %v4938_v36, 2  ;;  %v5386_v21 = vadd.f32 %v5385_v60, %v5161_v41  ;;  %v4956_v2 = vadd.f32 %v4955_v30, %v3835_v4  ;;  %v5403_v61 = vrot.slane %v5164_v11, 4 }
 0x20f   :  { %v4951_v15 = vrot.slane %v4950_v37, 2  ;;  %v5398_v19 = vadd.f32 %v5397_v9, %v5163_v24  ;;  %v4945_v28 = vrot.slane %v4944_v63, 2  ;;  %v5392_v5 = vadd.f32 %v5391_v31, %v5162_v29  ;;  %4345 = vmatpush1.bf16.msra.mxu0 %v6162_v33 }
 0x210   :  { %v4940_v16 = vadd.f32 %v4939_v17, %v4938_v36  ;;  %v5387_v8 = vrot.slane %v5386_v21, 2  ;;  %v4957_v6 = vrot.slane %v4956_v2, 2  ;;  %v5404_v7 = vadd.f32 %v5403_v61, %v5164_v11  ;;  %4386 = vmatpush1.bf16.msra.mxu1 %v6164_v35  ;;  %4346 = vmatprep.subr.bf16.mxu0 %v6227_v23 }
 0x211   :  { %v4952_v46 = vadd.f32 %v4951_v15, %v4950_v37  ;;  %v5399_v47 = vrot.slane %v5398_v19, 2  ;;  %v4946_v0 = vadd.f32 %v4945_v28, %v4944_v63  ;;  %v5393_v48 = vrot.slane %v5392_v5, 2  ;;  %4387 = vmatprep.subr.bf16.mxu1 %v6229_v1 }
 0x212   :  { %v4941_v49 = vrot.slane %v4940_v16, 1  ;;  %v5388_v50 = vadd.f32 %v5387_v8, %v5386_v21  ;;  %v4958_v51 = vadd.f32 %v4957_v6, %v4956_v2  ;;  %v5405_v52 = vrot.slane %v5404_v7, 2 }
 0x213   :  { %v4953_v53 = vrot.slane %v4952_v46, 1  ;;  %v5400_v54 = vadd.f32 %v5399_v47, %v5398_v19  ;;  %v4947_v55 = vrot.slane %v4946_v0, 1  ;;  %v5394_v56 = vadd.f32 %v5393_v48, %v5392_v5  ;;  %4347 = vmatpush1.bf16.msra.mxu0 %v6226_v39 }
 0x214   :  { %v4942_v57 = vadd.f32 %v4941_v49, %v4940_v16  ;;  %v5389_v58 = vrot.slane %v5388_v50, 1  ;;  %v4959_v59 = vrot.slane %v4958_v51, 1  ;;  %v5406_v3 = vadd.f32 %v5405_v52, %v5404_v7  ;;  %4388 = vmatpush1.bf16.msra.mxu1 %v6228_v40 }
 0x215   :  { %v4954_v62 = vadd.f32 %v4953_v53, %v4952_v46  ;;  %v5401_v42 = vrot.slane %v5400_v54, 1  ;;  %v4948_v38 = vadd.f32 %v4947_v55, %v4946_v0  ;;  %v5395_v45 = vrot.slane %v5394_v56, 1 }
 0x216   :  { %v5390_v10 = vadd.f32 %v5389_v58, %v5388_v50  ;;  %5609 = vst [vmem:[%s7753_s3 + $0x100] sm:$0xff] %v4942_v57  ;;  %v4960_v33 = vadd.f32 %v4959_v59, %v4958_v51  ;;  %v5407_v32 = vrot.slane %v5406_v3, 1  ;;  %4365 = vmatmul.mubr.bf16.vlgmr.msra.gmra.mrb[60].mxu0 %v7125_v22 }
 0x217   :  { %v5402_v43 = vadd.f32 %v5401_v42, %v5400_v54  ;;  %5611 = vst [vmem:[%s7753_s3 + $0x110] sm:$0xff] %v4954_v62  ;;  %v5396_v35 = vadd.f32 %v5395_v45, %v5394_v56  ;;  %5610 = vst [vmem:[%s7753_s3 + $0x108] sm:$0xff] %v4948_v38  ;;  %4406 = vmatmul.mubr.bf16.vlgmr.msra.gmra.mrb[60].mxu1 %v7125_v22 }
 0x218   :  { %5673 = vst [vmem:[%s7754_s4 + $0x100] sm:$0xff] %v5390_v10  ;;  %v5408_v34 = vadd.f32 %v5407_v32, %v5406_v3  ;;  %5612 = vst [vmem:[%s7753_s3 + $0x118] sm:$0xff] %v4960_v33 }
 0x219   :  { %5675 = vst [vmem:[%s7754_s4 + $0x110] sm:$0xff] %v5402_v43  ;;  %5674 = vst [vmem:[%s7754_s4 + $0x108] sm:$0xff] %v5396_v35 }
 0x21a   :  { %5676 = vst [vmem:[%s7754_s4 + $0x118] sm:$0xff] %v5408_v34 }
 0x229   :  { %v3874_v22 = vpop.f32.mrb[36].mxu0 }
 0x22a   :  { %4454 = vst [vmem:[%s7752_s2 + $0x120] sm:$0xff] %v3874_v22  ;;  %v4961_v39 = vrot.slane %v3874_v22, 4  ;;  %v5165_v23 = vmul.f32 %v3874_v22, %v3874_v22  ;;  %v3915_v25 = vpop.f32.mrb[36].mxu1  ;;  %v3876_v41 = vpop.f32.mrb[37].mxu0 }
 0x22b   :  { %4456 = vst [vmem:[%s7752_s2 + $0x130] sm:$0xff] %v3915_v25  ;;  %v4973_v18 = vrot.slane %v3915_v25, 4  ;;  %v5167_v44 = vmul.f32 %v3915_v25, %v3915_v25  ;;  %4455 = vst [vmem:[%s7752_s2 + $0x128] sm:$0xff] %v3876_v41  ;;  %v4967_v40 = vrot.slane %v3876_v41, 4  ;;  %v5166_v1 = vmul.f32 %v3876_v41, %v3876_v41  ;;  %v3917_v20 = vpop.f32.mrb[37].mxu1  ;;  %v3878_v24 = vpop.f32.mrb[38].mxu0 }
 0x22c   :  { %v4962_v26 = vadd.f32 %v4961_v39, %v3874_v22  ;;  %v5409_v29 = vrot.slane %v5165_v23, 4  ;;  %4457 = vst [vmem:[%s7752_s2 + $0x138] sm:$0xff] %v3917_v20  ;;  %v4979_v4 = vrot.slane %v3917_v20, 4  ;;  %v5168_v12 = vmul.f32 %v3917_v20, %v3917_v20  ;;  %v3919_v36 = vpop.f32.mrb[38].mxu1  ;;  %v3879_v60 = vpop.f32.mrb[39].mxu0 }
 0x22d   :  { %v4974_v30 = vadd.f32 %v4973_v18, %v3915_v25  ;;  %v5421_v11 = vrot.slane %v5167_v44, 4  ;;  %v4968_v13 = vadd.f32 %v4967_v40, %v3876_v41  ;;  %v5415_v14 = vrot.slane %v5166_v1, 4  ;;  %v3920_v37 = vpop.f32.mrb[39].mxu1 }
 0x22e   :  { %v4963_v9 = vrot.slane %v4962_v26, 2  ;;  %v5410_v63 = vadd.f32 %v5409_v29, %v5165_v23  ;;  %v4980_v31 = vadd.f32 %v4979_v4, %v3917_v20  ;;  %v5427_v27 = vrot.slane %v5168_v12, 4 }
 0x22f   :  { %v4975_v17 = vrot.slane %v4974_v30, 2  ;;  %v5422_v21 = vadd.f32 %v5421_v11, %v5167_v44  ;;  %v4969_v2 = vrot.slane %v4968_v13, 2  ;;  %v5416_v61 = vadd.f32 %v5415_v14, %v5166_v1 }
 0x230   :  { %v4964_v15 = vadd.f32 %v4963_v9, %v4962_v26  ;;  %v5411_v19 = vrot.slane %v5410_v63, 2  ;;  %v4981_v28 = vrot.slane %v4980_v31, 2  ;;  %v5428_v5 = vadd.f32 %v5427_v27, %v5168_v12 }
 0x231   :  { %v4976_v16 = vadd.f32 %v4975_v17, %v4974_v30  ;;  %v5423_v8 = vrot.slane %v5422_v21, 2  ;;  %v4970_v6 = vadd.f32 %v4969_v2, %v4968_v13  ;;  %v5417_v7 = vrot.slane %v5416_v61, 2 }
 0x232   :  { %v4965_v46 = vrot.slane %v4964_v15, 1  ;;  %v5412_v47 = vadd.f32 %v5411_v19, %v5410_v63  ;;  %v4982_v0 = vadd.f32 %v4981_v28, %v4980_v31  ;;  %v5429_v48 = vrot.slane %v5428_v5, 2 }
 0x233   :  { %v4977_v49 = vrot.slane %v4976_v16, 1  ;;  %v5424_v50 = vadd.f32 %v5423_v8, %v5422_v21  ;;  %v4971_v51 = vrot.slane %v4970_v6, 1  ;;  %v5418_v52 = vadd.f32 %v5417_v7, %v5416_v61 }
 0x234   :  { %v4966_v53 = vadd.f32 %v4965_v46, %v4964_v15  ;;  %v5413_v54 = vrot.slane %v5412_v47, 1  ;;  %v4983_v55 = vrot.slane %v4982_v0, 1  ;;  %v5430_v56 = vadd.f32 %v5429_v48, %v5428_v5 }
 0x235   :  { %v4978_v57 = vadd.f32 %v4977_v49, %v4976_v16  ;;  %v5425_v58 = vrot.slane %v5424_v50, 1  ;;  %v4972_v59 = vadd.f32 %v4971_v51, %v4970_v6  ;;  %v5419_v3 = vrot.slane %v5418_v52, 1 }
 0x236   :  { %v5414_v62 = vadd.f32 %v5413_v54, %v5412_v47  ;;  %5613 = vst [vmem:[%s7753_s3 + $0x120] sm:$0xff] %v4966_v53  ;;  %v4984_v42 = vadd.f32 %v4983_v55, %v4982_v0  ;;  %v5431_v38 = vrot.slane %v5430_v56, 1 }
 0x237   :  { %v5426_v45 = vadd.f32 %v5425_v58, %v5424_v50  ;;  %5615 = vst [vmem:[%s7753_s3 + $0x130] sm:$0xff] %v4978_v57  ;;  %v5420_v10 = vadd.f32 %v5419_v3, %v5418_v52  ;;  %5614 = vst [vmem:[%s7753_s3 + $0x128] sm:$0xff] %v4972_v59 }
 0x238   :  { %5677 = vst [vmem:[%s7754_s4 + $0x120] sm:$0xff] %v5414_v62  ;;  %v5432_v33 = vadd.f32 %v5431_v38, %v5430_v56  ;;  %5616 = vst [vmem:[%s7753_s3 + $0x138] sm:$0xff] %v4984_v42 }
 0x239   :  { %5679 = vst [vmem:[%s7754_s4 + $0x130] sm:$0xff] %v5426_v45  ;;  %5678 = vst [vmem:[%s7754_s4 + $0x128] sm:$0xff] %v5420_v10 }
 0x23a   :  { %5680 = vst [vmem:[%s7754_s4 + $0x138] sm:$0xff] %v5432_v33 }
 0x249   :  { %v3956_v32 = vpop.f32.mrb[40].mxu0 }
 0x24a   :  { %4458 = vst [vmem:[%s7752_s2 + $0x140] sm:$0xff] %v3956_v32  ;;  %v4985_v43 = vrot.slane %v3956_v32, 4  ;;  %v5169_v35 = vmul.f32 %v3956_v32, %v3956_v32  ;;  %v3997_v34 = vpop.f32.mrb[40].mxu1  ;;  %v3958_v22 = vpop.f32.mrb[41].mxu0 }
 0x24b   :  { %4460 = vst [vmem:[%s7752_s2 + $0x150] sm:$0xff] %v3997_v34  ;;  %v4997_v39 = vrot.slane %v3997_v34, 4  ;;  %v5171_v23 = vmul.f32 %v3997_v34, %v3997_v34  ;;  %4459 = vst [vmem:[%s7752_s2 + $0x148] sm:$0xff] %v3958_v22  ;;  %v4991_v25 = vrot.slane %v3958_v22, 4  ;;  %v5170_v41 = vmul.f32 %v3958_v22, %v3958_v22  ;;  %v3999_v18 = vpop.f32.mrb[41].mxu1  ;;  %v3960_v44 = vpop.f32.mrb[42].mxu0 }
 0x24c   :  { %v4986_v40 = vadd.f32 %v4985_v43, %v3956_v32  ;;  %v5433_v1 = vrot.slane %v5169_v35, 4  ;;  %4461 = vst [vmem:[%s7752_s2 + $0x158] sm:$0xff] %v3999_v18  ;;  %v5003_v20 = vrot.slane %v3999_v18, 4  ;;  %v5172_v24 = vmul.f32 %v3999_v18, %v3999_v18  ;;  %v4001_v26 = vpop.f32.mrb[42].mxu1  ;;  %v3961_v29 = vpop.f32.mrb[43].mxu0 }
 0x24d   :  { %v4998_v4 = vadd.f32 %v4997_v39, %v3997_v34  ;;  %v5445_v12 = vrot.slane %v5171_v23, 4  ;;  %v4992_v36 = vadd.f32 %v4991_v25, %v3958_v22  ;;  %v5439_v60 = vrot.slane %v5170_v41, 4  ;;  %v4002_v30 = vpop.f32.mrb[43].mxu1 }
 0x24e   :  { %v4987_v11 = vrot.slane %v4986_v40, 2  ;;  %v5434_v13 = vadd.f32 %v5433_v1, %v5169_v35  ;;  %v5004_v14 = vadd.f32 %v5003_v20, %v3999_v18  ;;  %v5451_v37 = vrot.slane %v5172_v24, 4 }
 0x24f   :  { %v4999_v9 = vrot.slane %v4998_v4, 2  ;;  %v5446_v63 = vadd.f32 %v5445_v12, %v5171_v23  ;;  %v4993_v31 = vrot.slane %v4992_v36, 2  ;;  %v5440_v27 = vadd.f32 %v5439_v60, %v5170_v41 }
 0x250   :  { %v4988_v17 = vadd.f32 %v4987_v11, %v4986_v40  ;;  %v5435_v21 = vrot.slane %v5434_v13, 2  ;;  %v5005_v2 = vrot.slane %v5004_v14, 2  ;;  %v5452_v61 = vadd.f32 %v5451_v37, %v5172_v24 }
 0x251   :  { %v5000_v15 = vadd.f32 %v4999_v9, %v4998_v4  ;;  %v5447_v19 = vrot.slane %v5446_v63, 2  ;;  %v4994_v28 = vadd.f32 %v4993_v31, %v4992_v36  ;;  %v5441_v5 = vrot.slane %v5440_v27, 2 }
 0x252   :  { %v4989_v16 = vrot.slane %v4988_v17, 1  ;;  %v5436_v8 = vadd.f32 %v5435_v21, %v5434_v13  ;;  %v5006_v6 = vadd.f32 %v5005_v2, %v5004_v14  ;;  %v5453_v7 = vrot.slane %v5452_v61, 2 }
 0x253   :  { %v5001_v46 = vrot.slane %v5000_v15, 1  ;;  %v5448_v47 = vadd.f32 %v5447_v19, %v5446_v63  ;;  %v4995_v0 = vrot.slane %v4994_v28, 1  ;;  %v5442_v48 = vadd.f32 %v5441_v5, %v5440_v27 }
 0x254   :  { %v4990_v49 = vadd.f32 %v4989_v16, %v4988_v17  ;;  %v5437_v50 = vrot.slane %v5436_v8, 1  ;;  %v5007_v51 = vrot.slane %v5006_v6, 1  ;;  %v5454_v52 = vadd.f32 %v5453_v7, %v5452_v61 }
 0x255   :  { %v5002_v53 = vadd.f32 %v5001_v46, %v5000_v15  ;;  %v5449_v54 = vrot.slane %v5448_v47, 1  ;;  %v4996_v55 = vadd.f32 %v4995_v0, %v4994_v28  ;;  %v5443_v56 = vrot.slane %v5442_v48, 1 }
 0x256   :  { %v5438_v57 = vadd.f32 %v5437_v50, %v5436_v8  ;;  %5617 = vst [vmem:[%s7753_s3 + $0x140] sm:$0xff] %v4990_v49  ;;  %v5008_v58 = vadd.f32 %v5007_v51, %v5006_v6  ;;  %v5455_v59 = vrot.slane %v5454_v52, 1 }
 0x257   :  { %v5450_v3 = vadd.f32 %v5449_v54, %v5448_v47  ;;  %5619 = vst [vmem:[%s7753_s3 + $0x150] sm:$0xff] %v5002_v53  ;;  %v5444_v62 = vadd.f32 %v5443_v56, %v5442_v48  ;;  %5618 = vst [vmem:[%s7753_s3 + $0x148] sm:$0xff] %v4996_v55 }
 0x258   :  { %5681 = vst [vmem:[%s7754_s4 + $0x140] sm:$0xff] %v5438_v57  ;;  %v5456_v42 = vadd.f32 %v5455_v59, %v5454_v52  ;;  %5620 = vst [vmem:[%s7753_s3 + $0x158] sm:$0xff] %v5008_v58 }
 0x259   :  { %5683 = vst [vmem:[%s7754_s4 + $0x150] sm:$0xff] %v5450_v3  ;;  %5682 = vst [vmem:[%s7754_s4 + $0x148] sm:$0xff] %v5444_v62 }
 0x25a   :  { %5684 = vst [vmem:[%s7754_s4 + $0x158] sm:$0xff] %v5456_v42 }
 0x269   :  { %v4038_v38 = vpop.f32.mrb[44].mxu0 }
 0x26a   :  { %4462 = vst [vmem:[%s7752_s2 + $0x160] sm:$0xff] %v4038_v38  ;;  %v5009_v45 = vrot.slane %v4038_v38, 4  ;;  %v5173_v10 = vmul.f32 %v4038_v38, %v4038_v38  ;;  %v4079_v33 = vpop.f32.mrb[44].mxu1  ;;  %v4040_v32 = vpop.f32.mrb[45].mxu0 }
 0x26b   :  { %4464 = vst [vmem:[%s7752_s2 + $0x170] sm:$0xff] %v4079_v33  ;;  %v5021_v43 = vrot.slane %v4079_v33, 4  ;;  %v5175_v35 = vmul.f32 %v4079_v33, %v4079_v33  ;;  %4463 = vst [vmem:[%s7752_s2 + $0x168] sm:$0xff] %v4040_v32  ;;  %v5015_v34 = vrot.slane %v4040_v32, 4  ;;  %v5174_v22 = vmul.f32 %v4040_v32, %v4040_v32  ;;  %v4081_v39 = vpop.f32.mrb[45].mxu1  ;;  %v4042_v23 = vpop.f32.mrb[46].mxu0 }
 0x26c   :  { %v5010_v25 = vadd.f32 %v5009_v45, %v4038_v38  ;;  %v5457_v41 = vrot.slane %v5173_v10, 4  ;;  %4465 = vst [vmem:[%s7752_s2 + $0x178] sm:$0xff] %v4081_v39  ;;  %v5027_v18 = vrot.slane %v4081_v39, 4  ;;  %v5176_v44 = vmul.f32 %v4081_v39, %v4081_v39  ;;  %v4083_v40 = vpop.f32.mrb[46].mxu1  ;;  %v4043_v1 = vpop.f32.mrb[47].mxu0 }
 0x26d   :  { %v5022_v20 = vadd.f32 %v5021_v43, %v4079_v33  ;;  %v5469_v24 = vrot.slane %v5175_v35, 4  ;;  %v5016_v26 = vadd.f32 %v5015_v34, %v4040_v32  ;;  %v5463_v29 = vrot.slane %v5174_v22, 4  ;;  %v4084_v4 = vpop.f32.mrb[47].mxu1 }
 0x26e   :  { %v5011_v12 = vrot.slane %v5010_v25, 2  ;;  %v5458_v36 = vadd.f32 %v5457_v41, %v5173_v10  ;;  %v5028_v60 = vadd.f32 %v5027_v18, %v4081_v39  ;;  %v5475_v30 = vrot.slane %v5176_v44, 4 }
 0x26f   :  { %v5023_v11 = vrot.slane %v5022_v20, 2  ;;  %v5470_v13 = vadd.f32 %v5469_v24, %v5175_v35  ;;  %v5017_v14 = vrot.slane %v5016_v26, 2  ;;  %v5464_v37 = vadd.f32 %v5463_v29, %v5174_v22 }
 0x270   :  { %v5012_v9 = vadd.f32 %v5011_v12, %v5010_v25  ;;  %v5459_v63 = vrot.slane %v5458_v36, 2  ;;  %v5029_v31 = vrot.slane %v5028_v60, 2  ;;  %v5476_v27 = vadd.f32 %v5475_v30, %v5176_v44 }
 0x271   :  { %v5024_v17 = vadd.f32 %v5023_v11, %v5022_v20  ;;  %v5471_v21 = vrot.slane %v5470_v13, 2  ;;  %v5018_v2 = vadd.f32 %v5017_v14, %v5016_v26  ;;  %v5465_v61 = vrot.slane %v5464_v37, 2 }
 0x272   :  { %v5013_v15 = vrot.slane %v5012_v9, 1  ;;  %v5460_v19 = vadd.f32 %v5459_v63, %v5458_v36  ;;  %v5030_v28 = vadd.f32 %v5029_v31, %v5028_v60  ;;  %v5477_v5 = vrot.slane %v5476_v27, 2 }
 0x273   :  { %v5025_v16 = vrot.slane %v5024_v17, 1  ;;  %v5472_v8 = vadd.f32 %v5471_v21, %v5470_v13  ;;  %v5019_v6 = vrot.slane %v5018_v2, 1  ;;  %v5466_v7 = vadd.f32 %v5465_v61, %v5464_v37 }
 0x274   :  { %v5014_v46 = vadd.f32 %v5013_v15, %v5012_v9  ;;  %v5461_v47 = vrot.slane %v5460_v19, 1  ;;  %v5031_v0 = vrot.slane %v5030_v28, 1  ;;  %v5478_v48 = vadd.f32 %v5477_v5, %v5476_v27 }
 0x275   :  { %v5026_v49 = vadd.f32 %v5025_v16, %v5024_v17  ;;  %v5473_v50 = vrot.slane %v5472_v8, 1  ;;  %v5020_v51 = vadd.f32 %v5019_v6, %v5018_v2  ;;  %v5467_v52 = vrot.slane %v5466_v7, 1 }
 0x276   :  { %v5462_v53 = vadd.f32 %v5461_v47, %v5460_v19  ;;  %5621 = vst [vmem:[%s7753_s3 + $0x160] sm:$0xff] %v5014_v46  ;;  %v5032_v54 = vadd.f32 %v5031_v0, %v5030_v28  ;;  %v5479_v55 = vrot.slane %v5478_v48, 1 }
 0x277   :  { %v5474_v56 = vadd.f32 %v5473_v50, %v5472_v8  ;;  %5623 = vst [vmem:[%s7753_s3 + $0x170] sm:$0xff] %v5026_v49  ;;  %v5468_v57 = vadd.f32 %v5467_v52, %v5466_v7  ;;  %5622 = vst [vmem:[%s7753_s3 + $0x168] sm:$0xff] %v5020_v51 }
 0x278   :  { %5685 = vst [vmem:[%s7754_s4 + $0x160] sm:$0xff] %v5462_v53  ;;  %v5480_v58 = vadd.f32 %v5479_v55, %v5478_v48  ;;  %5624 = vst [vmem:[%s7753_s3 + $0x178] sm:$0xff] %v5032_v54 }
 0x279   :  { %5687 = vst [vmem:[%s7754_s4 + $0x170] sm:$0xff] %v5474_v56  ;;  %5686 = vst [vmem:[%s7754_s4 + $0x168] sm:$0xff] %v5468_v57 }
 0x27a   :  { %5688 = vst [vmem:[%s7754_s4 + $0x178] sm:$0xff] %v5480_v58 }
 0x289   :  { %v4120_v59 = vpop.f32.mrb[48].mxu0 }
 0x28a   :  { %4466 = vst [vmem:[%s7752_s2 + $0x180] sm:$0xff] %v4120_v59  ;;  %v5033_v3 = vrot.slane %v4120_v59, 4  ;;  %v5177_v62 = vmul.f32 %v4120_v59, %v4120_v59  ;;  %v4161_v42 = vpop.f32.mrb[48].mxu1  ;;  %v4122_v38 = vpop.f32.mrb[49].mxu0 }
 0x28b   :  { %4468 = vst [vmem:[%s7752_s2 + $0x190] sm:$0xff] %v4161_v42  ;;  %v5045_v45 = vrot.slane %v4161_v42, 4  ;;  %v5179_v10 = vmul.f32 %v4161_v42, %v4161_v42  ;;  %4467 = vst [vmem:[%s7752_s2 + $0x188] sm:$0xff] %v4122_v38  ;;  %v5039_v33 = vrot.slane %v4122_v38, 4  ;;  %v5178_v32 = vmul.f32 %v4122_v38, %v4122_v38  ;;  %v4163_v43 = vpop.f32.mrb[49].mxu1  ;;  %v4124_v35 = vpop.f32.mrb[50].mxu0 }
 0x28c   :  { %v5034_v34 = vadd.f32 %v5033_v3, %v4120_v59  ;;  %v5481_v22 = vrot.slane %v5177_v62, 4  ;;  %4469 = vst [vmem:[%s7752_s2 + $0x198] sm:$0xff] %v4163_v43  ;;  %v5051_v39 = vrot.slane %v4163_v43, 4  ;;  %v5180_v23 = vmul.f32 %v4163_v43, %v4163_v43  ;;  %v4165_v25 = vpop.f32.mrb[50].mxu1  ;;  %v4125_v41 = vpop.f32.mrb[51].mxu0 }
 0x28d   :  { %v5046_v18 = vadd.f32 %v5045_v45, %v4161_v42  ;;  %v5493_v44 = vrot.slane %v5179_v10, 4  ;;  %v5040_v40 = vadd.f32 %v5039_v33, %v4122_v38  ;;  %v5487_v1 = vrot.slane %v5178_v32, 4  ;;  %v4166_v20 = vpop.f32.mrb[51].mxu1 }
 0x28e   :  { %v5035_v24 = vrot.slane %v5034_v34, 2  ;;  %v5482_v26 = vadd.f32 %v5481_v22, %v5177_v62  ;;  %v5052_v29 = vadd.f32 %v5051_v39, %v4163_v43  ;;  %v5499_v4 = vrot.slane %v5180_v23, 4 }
 0x28f   :  { %v5047_v12 = vrot.slane %v5046_v18, 2  ;;  %v5494_v36 = vadd.f32 %v5493_v44, %v5179_v10  ;;  %v5041_v60 = vrot.slane %v5040_v40, 2  ;;  %v5488_v30 = vadd.f32 %v5487_v1, %v5178_v32 }
 0x290   :  { %v5036_v11 = vadd.f32 %v5035_v24, %v5034_v34  ;;  %v5483_v13 = vrot.slane %v5482_v26, 2  ;;  %v5053_v14 = vrot.slane %v5052_v29, 2  ;;  %v5500_v37 = vadd.f32 %v5499_v4, %v5180_v23 }
 0x291   :  { %v5048_v9 = vadd.f32 %v5047_v12, %v5046_v18  ;;  %v5495_v63 = vrot.slane %v5494_v36, 2  ;;  %v5042_v31 = vadd.f32 %v5041_v60, %v5040_v40  ;;  %v5489_v27 = vrot.slane %v5488_v30, 2 }
 0x292   :  { %v5037_v17 = vrot.slane %v5036_v11, 1  ;;  %v5484_v21 = vadd.f32 %v5483_v13, %v5482_v26  ;;  %v5054_v2 = vadd.f32 %v5053_v14, %v5052_v29  ;;  %v5501_v61 = vrot.slane %v5500_v37, 2 }
 0x293   :  { %v5049_v15 = vrot.slane %v5048_v9, 1  ;;  %v5496_v19 = vadd.f32 %v5495_v63, %v5494_v36  ;;  %v5043_v28 = vrot.slane %v5042_v31, 1  ;;  %v5490_v5 = vadd.f32 %v5489_v27, %v5488_v30 }
 0x294   :  { %v5038_v16 = vadd.f32 %v5037_v17, %v5036_v11  ;;  %v5485_v8 = vrot.slane %v5484_v21, 1  ;;  %v5055_v6 = vrot.slane %v5054_v2, 1  ;;  %v5502_v7 = vadd.f32 %v5501_v61, %v5500_v37 }
 0x295   :  { %v5050_v46 = vadd.f32 %v5049_v15, %v5048_v9  ;;  %v5497_v47 = vrot.slane %v5496_v19, 1  ;;  %v5044_v0 = vadd.f32 %v5043_v28, %v5042_v31  ;;  %v5491_v48 = vrot.slane %v5490_v5, 1 }
 0x296   :  { %v5486_v49 = vadd.f32 %v5485_v8, %v5484_v21  ;;  %5625 = vst [vmem:[%s7753_s3 + $0x180] sm:$0xff] %v5038_v16  ;;  %v5056_v50 = vadd.f32 %v5055_v6, %v5054_v2  ;;  %v5503_v51 = vrot.slane %v5502_v7, 1 }
 0x297   :  { %v5498_v52 = vadd.f32 %v5497_v47, %v5496_v19  ;;  %5627 = vst [vmem:[%s7753_s3 + $0x190] sm:$0xff] %v5050_v46  ;;  %v5492_v53 = vadd.f32 %v5491_v48, %v5490_v5  ;;  %5626 = vst [vmem:[%s7753_s3 + $0x188] sm:$0xff] %v5044_v0 }
 0x298   :  { %5689 = vst [vmem:[%s7754_s4 + $0x180] sm:$0xff] %v5486_v49  ;;  %v5504_v54 = vadd.f32 %v5503_v51, %v5502_v7  ;;  %5628 = vst [vmem:[%s7753_s3 + $0x198] sm:$0xff] %v5056_v50 }
 0x299   :  { %5691 = vst [vmem:[%s7754_s4 + $0x190] sm:$0xff] %v5498_v52  ;;  %5690 = vst [vmem:[%s7754_s4 + $0x188] sm:$0xff] %v5492_v53 }
 0x29a   :  { %5692 = vst [vmem:[%s7754_s4 + $0x198] sm:$0xff] %v5504_v54 }
 0x2a9   :  { %v4202_v55 = vpop.f32.mrb[52].mxu0 }
 0x2aa   :  { %4470 = vst [vmem:[%s7752_s2 + $0x1a0] sm:$0xff] %v4202_v55  ;;  %v5057_v56 = vrot.slane %v4202_v55, 4  ;;  %v5181_v57 = vmul.f32 %v4202_v55, %v4202_v55  ;;  %v4243_v58 = vpop.f32.mrb[52].mxu1  ;;  %v4204_v59 = vpop.f32.mrb[53].mxu0 }
 0x2ab   :  { %4472 = vst [vmem:[%s7752_s2 + $0x1b0] sm:$0xff] %v4243_v58  ;;  %v5069_v3 = vrot.slane %v4243_v58, 4  ;;  %v5183_v62 = vmul.f32 %v4243_v58, %v4243_v58  ;;  %4471 = vst [vmem:[%s7752_s2 + $0x1a8] sm:$0xff] %v4204_v59  ;;  %v5063_v42 = vrot.slane %v4204_v59, 4  ;;  %v5182_v38 = vmul.f32 %v4204_v59, %v4204_v59  ;;  %v4245_v45 = vpop.f32.mrb[53].mxu1  ;;  %v4206_v10 = vpop.f32.mrb[54].mxu0 }
 0x2ac   :  { %v5058_v33 = vadd.f32 %v5057_v56, %v4202_v55  ;;  %v5505_v32 = vrot.slane %v5181_v57, 4  ;;  %4473 = vst [vmem:[%s7752_s2 + $0x1b8] sm:$0xff] %v4245_v45  ;;  %v5075_v43 = vrot.slane %v4245_v45, 4  ;;  %v5184_v35 = vmul.f32 %v4245_v45, %v4245_v45  ;;  %v4247_v34 = vpop.f32.mrb[54].mxu1  ;;  %v4207_v22 = vpop.f32.mrb[55].mxu0 }
 0x2ad   :  { %v5070_v39 = vadd.f32 %v5069_v3, %v4243_v58  ;;  %v5517_v23 = vrot.slane %v5183_v62, 4  ;;  %v5064_v25 = vadd.f32 %v5063_v42, %v4204_v59  ;;  %v5511_v41 = vrot.slane %v5182_v38, 4  ;;  %v4248_v18 = vpop.f32.mrb[55].mxu1 }
 0x2ae   :  { %v5059_v44 = vrot.slane %v5058_v33, 2  ;;  %v5506_v40 = vadd.f32 %v5505_v32, %v5181_v57  ;;  %v5076_v1 = vadd.f32 %v5075_v43, %v4245_v45  ;;  %v5523_v20 = vrot.slane %v5184_v35, 4 }
 0x2af   :  { %v5071_v24 = vrot.slane %v5070_v39, 2  ;;  %v5518_v26 = vadd.f32 %v5517_v23, %v5183_v62  ;;  %v5065_v29 = vrot.slane %v5064_v25, 2  ;;  %v5512_v4 = vadd.f32 %v5511_v41, %v5182_v38 }
 0x2b0   :  { %v5060_v12 = vadd.f32 %v5059_v44, %v5058_v33  ;;  %v5507_v36 = vrot.slane %v5506_v40, 2  ;;  %v5077_v60 = vrot.slane %v5076_v1, 2  ;;  %v5524_v30 = vadd.f32 %v5523_v20, %v5184_v35 }
 0x2b1   :  { %v5072_v11 = vadd.f32 %v5071_v24, %v5070_v39  ;;  %v5519_v13 = vrot.slane %v5518_v26, 2  ;;  %v5066_v14 = vadd.f32 %v5065_v29, %v5064_v25  ;;  %v5513_v37 = vrot.slane %v5512_v4, 2 }
 0x2b2   :  { %v5061_v9 = vrot.slane %v5060_v12, 1  ;;  %v5508_v63 = vadd.f32 %v5507_v36, %v5506_v40  ;;  %v5078_v31 = vadd.f32 %v5077_v60, %v5076_v1  ;;  %v5525_v27 = vrot.slane %v5524_v30, 2 }
 0x2b3   :  { %v5073_v17 = vrot.slane %v5072_v11, 1  ;;  %v5520_v21 = vadd.f32 %v5519_v13, %v5518_v26  ;;  %v5067_v2 = vrot.slane %v5066_v14, 1  ;;  %v5514_v61 = vadd.f32 %v5513_v37, %v5512_v4 }
 0x2b4   :  { %v5062_v15 = vadd.f32 %v5061_v9, %v5060_v12  ;;  %v5509_v19 = vrot.slane %v5508_v63, 1  ;;  %v5079_v28 = vrot.slane %v5078_v31, 1  ;;  %v5526_v5 = vadd.f32 %v5525_v27, %v5524_v30 }
 0x2b5   :  { %v5074_v16 = vadd.f32 %v5073_v17, %v5072_v11  ;;  %v5521_v8 = vrot.slane %v5520_v21, 1  ;;  %v5068_v6 = vadd.f32 %v5067_v2, %v5066_v14  ;;  %v5515_v7 = vrot.slane %v5514_v61, 1 }
 0x2b6   :  { %v5510_v46 = vadd.f32 %v5509_v19, %v5508_v63  ;;  %5629 = vst [vmem:[%s7753_s3 + $0x1a0] sm:$0xff] %v5062_v15  ;;  %v5080_v47 = vadd.f32 %v5079_v28, %v5078_v31  ;;  %v5527_v0 = vrot.slane %v5526_v5, 1 }
 0x2b7   :  { %v5522_v48 = vadd.f32 %v5521_v8, %v5520_v21  ;;  %5631 = vst [vmem:[%s7753_s3 + $0x1b0] sm:$0xff] %v5074_v16  ;;  %v5516_v49 = vadd.f32 %v5515_v7, %v5514_v61  ;;  %5630 = vst [vmem:[%s7753_s3 + $0x1a8] sm:$0xff] %v5068_v6 }
 0x2b8   :  { %5693 = vst [vmem:[%s7754_s4 + $0x1a0] sm:$0xff] %v5510_v46  ;;  %v5528_v50 = vadd.f32 %v5527_v0, %v5526_v5  ;;  %5632 = vst [vmem:[%s7753_s3 + $0x1b8] sm:$0xff] %v5080_v47 }
 0x2b9   :  { %5695 = vst [vmem:[%s7754_s4 + $0x1b0] sm:$0xff] %v5522_v48  ;;  %5694 = vst [vmem:[%s7754_s4 + $0x1a8] sm:$0xff] %v5516_v49 }
 0x2ba   :  { %5696 = vst [vmem:[%s7754_s4 + $0x1b8] sm:$0xff] %v5528_v50 }
 0x2c9   :  { %v4284_v51 = vpop.f32.mrb[56].mxu0 }
 0x2ca   :  { %4474 = vst [vmem:[%s7752_s2 + $0x1c0] sm:$0xff] %v4284_v51  ;;  %v5081_v52 = vrot.slane %v4284_v51, 4  ;;  %v5185_v53 = vmul.f32 %v4284_v51, %v4284_v51  ;;  %v4325_v54 = vpop.f32.mrb[56].mxu1  ;;  %v4286_v55 = vpop.f32.mrb[57].mxu0 }
 0x2cb   :  { %4476 = vst [vmem:[%s7752_s2 + $0x1d0] sm:$0xff] %v4325_v54  ;;  %v5093_v56 = vrot.slane %v4325_v54, 4  ;;  %v5187_v57 = vmul.f32 %v4325_v54, %v4325_v54  ;;  %4475 = vst [vmem:[%s7752_s2 + $0x1c8] sm:$0xff] %v4286_v55  ;;  %v5087_v58 = vrot.slane %v4286_v55, 4  ;;  %v5186_v59 = vmul.f32 %v4286_v55, %v4286_v55  ;;  %v4327_v3 = vpop.f32.mrb[57].mxu1  ;;  %v4288_v62 = vpop.f32.mrb[58].mxu0 }
 0x2cc   :  { %v5082_v42 = vadd.f32 %v5081_v52, %v4284_v51  ;;  %v5529_v38 = vrot.slane %v5185_v53, 4  ;;  %4477 = vst [vmem:[%s7752_s2 + $0x1d8] sm:$0xff] %v4327_v3  ;;  %v5099_v45 = vrot.slane %v4327_v3, 4  ;;  %v5188_v10 = vmul.f32 %v4327_v3, %v4327_v3  ;;  %v4329_v33 = vpop.f32.mrb[58].mxu1  ;;  %v4289_v32 = vpop.f32.mrb[59].mxu0 }
 0x2cd   :  { %v5094_v43 = vadd.f32 %v5093_v56, %v4325_v54  ;;  %v5541_v35 = vrot.slane %v5187_v57, 4  ;;  %v5088_v34 = vadd.f32 %v5087_v58, %v4286_v55  ;;  %v5535_v22 = vrot.slane %v5186_v59, 4  ;;  %v4330_v39 = vpop.f32.mrb[59].mxu1 }
 0x2ce   :  { %v5083_v23 = vrot.slane %v5082_v42, 2  ;;  %v5530_v25 = vadd.f32 %v5529_v38, %v5185_v53  ;;  %v5100_v41 = vadd.f32 %v5099_v45, %v4327_v3  ;;  %v5547_v18 = vrot.slane %v5188_v10, 4 }
 0x2cf   :  { %v5095_v44 = vrot.slane %v5094_v43, 2  ;;  %v5542_v40 = vadd.f32 %v5541_v35, %v5187_v57  ;;  %v5089_v1 = vrot.slane %v5088_v34, 2  ;;  %v5536_v20 = vadd.f32 %v5535_v22, %v5186_v59 }
 0x2d0   :  { %v5084_v24 = vadd.f32 %v5083_v23, %v5082_v42  ;;  %v5531_v26 = vrot.slane %v5530_v25, 2  ;;  %v5101_v29 = vrot.slane %v5100_v41, 2  ;;  %v5548_v4 = vadd.f32 %v5547_v18, %v5188_v10 }
 0x2d1   :  { %v5096_v12 = vadd.f32 %v5095_v44, %v5094_v43  ;;  %v5543_v36 = vrot.slane %v5542_v40, 2  ;;  %v5090_v60 = vadd.f32 %v5089_v1, %v5088_v34  ;;  %v5537_v30 = vrot.slane %v5536_v20, 2 }
 0x2d2   :  { %v5085_v11 = vrot.slane %v5084_v24, 1  ;;  %v5532_v13 = vadd.f32 %v5531_v26, %v5530_v25  ;;  %v5102_v14 = vadd.f32 %v5101_v29, %v5100_v41  ;;  %v5549_v37 = vrot.slane %v5548_v4, 2 }
 0x2d3   :  { %v5097_v9 = vrot.slane %v5096_v12, 1  ;;  %v5544_v63 = vadd.f32 %v5543_v36, %v5542_v40  ;;  %v5091_v31 = vrot.slane %v5090_v60, 1  ;;  %v5538_v27 = vadd.f32 %v5537_v30, %v5536_v20 }
 0x2d4   :  { %v5086_v17 = vadd.f32 %v5085_v11, %v5084_v24  ;;  %v5533_v21 = vrot.slane %v5532_v13, 1  ;;  %v5103_v2 = vrot.slane %v5102_v14, 1  ;;  %v5550_v61 = vadd.f32 %v5549_v37, %v5548_v4 }
 0x2d5   :  { %v5098_v15 = vadd.f32 %v5097_v9, %v5096_v12  ;;  %v5545_v19 = vrot.slane %v5544_v63, 1  ;;  %v5092_v28 = vadd.f32 %v5091_v31, %v5090_v60  ;;  %v5539_v5 = vrot.slane %v5538_v27, 1 }
 0x2d6   :  { %v5534_v16 = vadd.f32 %v5533_v21, %v5532_v13  ;;  %5633 = vst [vmem:[%s7753_s3 + $0x1c0] sm:$0xff] %v5086_v17  ;;  %v5104_v8 = vadd.f32 %v5103_v2, %v5102_v14  ;;  %v5551_v6 = vrot.slane %v5550_v61, 1 }
 0x2d7   :  { %v5546_v7 = vadd.f32 %v5545_v19, %v5544_v63  ;;  %5635 = vst [vmem:[%s7753_s3 + $0x1d0] sm:$0xff] %v5098_v15  ;;  %v5540_v46 = vadd.f32 %v5539_v5, %v5538_v27  ;;  %5634 = vst [vmem:[%s7753_s3 + $0x1c8] sm:$0xff] %v5092_v28 }
 0x2d8   :  { %5697 = vst [vmem:[%s7754_s4 + $0x1c0] sm:$0xff] %v5534_v16  ;;  %v5552_v47 = vadd.f32 %v5551_v6, %v5550_v61  ;;  %5636 = vst [vmem:[%s7753_s3 + $0x1d8] sm:$0xff] %v5104_v8 }
 0x2d9   :  { %5699 = vst [vmem:[%s7754_s4 + $0x1d0] sm:$0xff] %v5546_v7  ;;  %5698 = vst [vmem:[%s7754_s4 + $0x1c8] sm:$0xff] %v5540_v46 }
 0x2da   :  { %5700 = vst [vmem:[%s7754_s4 + $0x1d8] sm:$0xff] %v5552_v47 }
 0x2e9   :  { %v4366_v0 = vpop.f32.mrb[60].mxu0 }
 0x2ea   :  { %4478 = vst [vmem:[%s7752_s2 + $0x1e0] sm:$0xff] %v4366_v0  ;;  %v5105_v48 = vrot.slane %v4366_v0, 4  ;;  %v5189_v49 = vmul.f32 %v4366_v0, %v4366_v0  ;;  %v4407_v50 = vpop.f32.mrb[60].mxu1  ;;  %v4368_v51 = vpop.f32.mrb[61].mxu0 }
 0x2eb   :  { %4480 = vst [vmem:[%s7752_s2 + $0x1f0] sm:$0xff] %v4407_v50  ;;  %v5117_v52 = vrot.slane %v4407_v50, 4  ;;  %v5191_v53 = vmul.f32 %v4407_v50, %v4407_v50  ;;  %4479 = vst [vmem:[%s7752_s2 + $0x1e8] sm:$0xff] %v4368_v51  ;;  %v5111_v54 = vrot.slane %v4368_v51, 4  ;;  %v5190_v55 = vmul.f32 %v4368_v51, %v4368_v51  ;;  %v4409_v56 = vpop.f32.mrb[61].mxu1  ;;  %v4370_v57 = vpop.f32.mrb[62].mxu0 }
 0x2ec   :  { %v5106_v58 = vadd.f32 %v5105_v48, %v4366_v0  ;;  %v5553_v59 = vrot.slane %v5189_v49, 4  ;;  %4481 = vst [vmem:[%s7752_s2 + $0x1f8] sm:$0xff] %v4409_v56  ;;  %v5123_v3 = vrot.slane %v4409_v56, 4  ;;  %v5192_v62 = vmul.f32 %v4409_v56, %v4409_v56  ;;  %v4411_v42 = vpop.f32.mrb[62].mxu1  ;;  %v4371_v38 = vpop.f32.mrb[63].mxu0 }
 0x2ed   :  { %v5118_v45 = vadd.f32 %v5117_v52, %v4407_v50  ;;  %v5565_v10 = vrot.slane %v5191_v53, 4  ;;  %v5112_v33 = vadd.f32 %v5111_v54, %v4368_v51  ;;  %v5559_v32 = vrot.slane %v5190_v55, 4  ;;  %v4412_v43 = vpop.f32.mrb[63].mxu1 }
 0x2ee   :  { %v5107_v35 = vrot.slane %v5106_v58, 2  ;;  %v5554_v34 = vadd.f32 %v5553_v59, %v5189_v49  ;;  %v5124_v22 = vadd.f32 %v5123_v3, %v4409_v56  ;;  %v5571_v39 = vrot.slane %v5192_v62, 4 }
 0x2ef   :  { %v5119_v23 = vrot.slane %v5118_v45, 2  ;;  %v5566_v25 = vadd.f32 %v5565_v10, %v5191_v53  ;;  %v5113_v41 = vrot.slane %v5112_v33, 2  ;;  %v5560_v18 = vadd.f32 %v5559_v32, %v5190_v55 }
 0x2f0   :  { %v5108_v44 = vadd.f32 %v5107_v35, %v5106_v58  ;;  %v5555_v40 = vrot.slane %v5554_v34, 2  ;;  %v5125_v1 = vrot.slane %v5124_v22, 2  ;;  %v5572_v20 = vadd.f32 %v5571_v39, %v5192_v62 }
 0x2f1   :  { %v5120_v24 = vadd.f32 %v5119_v23, %v5118_v45  ;;  %v5567_v26 = vrot.slane %v5566_v25, 2  ;;  %v5114_v29 = vadd.f32 %v5113_v41, %v5112_v33  ;;  %v5561_v4 = vrot.slane %v5560_v18, 2 }
 0x2f2   :  { %v5109_v12 = vrot.slane %v5108_v44, 1  ;;  %v5556_v36 = vadd.f32 %v5555_v40, %v5554_v34  ;;  %v5126_v60 = vadd.f32 %v5125_v1, %v5124_v22  ;;  %v5573_v30 = vrot.slane %v5572_v20, 2 }
 0x2f3   :  { %v5121_v11 = vrot.slane %v5120_v24, 1  ;;  %v5568_v13 = vadd.f32 %v5567_v26, %v5566_v25  ;;  %v5115_v14 = vrot.slane %v5114_v29, 1  ;;  %v5562_v37 = vadd.f32 %v5561_v4, %v5560_v18 }
 0x2f4   :  { %v5110_v9 = vadd.f32 %v5109_v12, %v5108_v44  ;;  %v5557_v63 = vrot.slane %v5556_v36, 1  ;;  %v5127_v31 = vrot.slane %v5126_v60, 1  ;;  %v5574_v27 = vadd.f32 %v5573_v30, %v5572_v20 }
 0x2f5   :  { %v5122_v17 = vadd.f32 %v5121_v11, %v5120_v24  ;;  %v5569_v21 = vrot.slane %v5568_v13, 1  ;;  %v5116_v2 = vadd.f32 %v5115_v14, %v5114_v29  ;;  %v5563_v61 = vrot.slane %v5562_v37, 1 }
 0x2f6   :  { %v5558_v15 = vadd.f32 %v5557_v63, %v5556_v36  ;;  %5637 = vst [vmem:[%s7753_s3 + $0x1e0] sm:$0xff] %v5110_v9  ;;  %v5128_v19 = vadd.f32 %v5127_v31, %v5126_v60  ;;  %v5575_v28 = vrot.slane %v5574_v27, 1 }
 0x2f7   :  { %v5570_v5 = vadd.f32 %v5569_v21, %v5568_v13  ;;  %5639 = vst [vmem:[%s7753_s3 + $0x1f0] sm:$0xff] %v5122_v17  ;;  %v5564_v16 = vadd.f32 %v5563_v61, %v5562_v37  ;;  %5638 = vst [vmem:[%s7753_s3 + $0x1e8] sm:$0xff] %v5116_v2 }
 0x2f8   :  { %5701 = vst [vmem:[%s7754_s4 + $0x1e0] sm:$0xff] %v5558_v15  ;;  %v5576_v8 = vadd.f32 %v5575_v28, %v5574_v27  ;;  %5640 = vst [vmem:[%s7753_s3 + $0x1f8] sm:$0xff] %v5128_v19 }
 0x2f9   :  { %5703 = vst [vmem:[%s7754_s4 + $0x1f0] sm:$0xff] %v5570_v5  ;;  %5702 = vst [vmem:[%s7754_s4 + $0x1e8] sm:$0xff] %v5564_v16 }
 0x2fa   :  { %5704 = vst [vmem:[%s7754_s4 + $0x1f8] sm:$0xff] %v5576_v8 }
 0x2fb   :  { %5717 = vsyncpa [#allocation3], 1 }

// kernel: generator_forward.9
= control target key start
LH: loop header
LB: loop body
LE: loop exit
PB: predicated region body
PF: predicated region fallthrough
CT: control target
= control target key end

     0   :  { %s1801_s0 = inlined_call_operand.vmem [shape: bf16[4,32,2048], index: 0, kind: input, shape index: {}]   ;;  %s1802_s1 = inlined_call_operand.vmem [shape: bf16[4,2048,256], index: 1, kind: input, shape index: {}]   ;;  %s1803_s2 = inlined_call_operand.vmem [shape: f32[4,32,256], index: 2, kind: output, shape index: {0}]   ;;  %s1804_s3 = inlined_call_operand.vmem [shape: f32[4,1,8,256], index: 3, kind: output, shape index: {1}]   ;;  %s1805_s4 = inlined_call_operand.vmem [shape: f32[4,1,8,256], index: 4, kind: output, shape index: {2}]  }
   0x1   :  { %1806 = sst [smem:[#allocation3_spill]] %s1801_s0 }
   0x2   :  { %s1581_s15 = smov 0   ;;  %s1583_s16 = smov 0  }
   0x3   :  { %s1585_s17 = smov 0   ;;  %s1587_s18 = smov 0  }
   0x4   :  { %s1589_s19 = smov 0   ;;  %s1591_s20 = smov 0  }
   0x5   :  { %s1593_s21 = smov 0  }
   0x6 LB: > { %s27_s22 = sadd.s32 1, %s1546_s19  ;;  %s34_s23 = sadd.s32 1, %s1550_s20  ;;  %s1554_s21 = sphi %s1593_s21, %s15_s21   ;;  %s1550_s20 = sphi %s1591_s20, %s1813_s20   ;;  %s1546_s19 = sphi %s1589_s19, %s1812_s19   ;;  %s1542_s18 = sphi %s1587_s18, %s1811_s18   ;;  %s1538_s17 = sphi %s1585_s17, %s1810_s17   ;;  %s1534_s16 = sphi %s1583_s16, %s1809_s16   ;;  %s1530_s15 = sphi %s1581_s15, %s1808_s15  }
   0x7   : > { %p28_p0 = scmp.ge.s32.totalorder %s27_s22, 4  ;;  %p52_p1 = scmp.ne.s32.totalorder %s1534_s16, %s1530_s15 }
   0x8   : > { %p53_p2 = scmp.eq.s32.totalorder %s1554_s21, 0  ;;  %s45_s27 = sadd.s32 1, %s1534_s16 }
   0x9   : > { %s1815_s22 = smov (%p28_p0, %s27_s22), 0  ;;  %s1817_s23 = smov (!%p28_p0, %s34_s23), %s1550_s20 }
   0xa   : > { %p54_p3 = por %p53_p2, %p52_p1  ;;  %p36_p4 = scmp.ge.s32.totalorder %s1817_s23, 4 }
   0xb   : > { %s41_s24 = ssub.s32 %s1546_s19, %s1815_s22  ;;  %p1231_p6 = scmp.ge.s32.totalorder %s1554_s21, 16 }
   0xc   : > { %s1819_s23 = smov (%p36_p4, %s1817_s23), 0 }
   0xd   : > { %s38_s25 = ssub.s32 %s1550_s20, %s1819_s23  ;;  %190 = sbr.rel (%p1231_p6) target bundleno = 34 (0x22), region = 16 }
   0xe   : > { %s42_s26 = sor.u32 %s41_s24, %s38_s25 }
   0xf   : > { %p43_p5 = scmp.eq.s32.totalorder %s42_s26, 0 }
  0x11   : > { %s1632_s28 = scalar_select %p43_p5, %s1534_s16, %s45_s27  }
  0x14   : > { %193 = sbr.rel (!%p54_p3) target bundleno = 34 (0x22), region = 20  ;;  %s195_s29 = sand.u32 (%p54_p3), 1, %s1534_s16  }
  0x15   : > { %s1233_s30 = sshll.u32 (%p54_p3), %s1546_s19, 2  ;;  %s1232_s5 = sshll.u32 (%p54_p3), %s195_s29, 6 }
  0x16   : > { %s1234_s6 = sshll.u32 (%p54_p3), %s1550_s20, 6  ;;  %s1807_s0 = sld [smem:[#allocation3_spill]] (%p54_p3) }
  0x17   : > { %s203_s7 = sadd.s32 (%p54_p3), %s1234_s6, %s1233_s30  ;;  %s197_s12 = scalar_lea.vmem (%p54_p3), [#allocation2], %s1232_s5 }
  0x18   : > { %s1235_s8 = sshll.u32 (%p54_p3), %s203_s7, 2 }
  0x1c   : > { %s205_s11 = scalar_lea.vmem %s1807_s0, %s1235_s8 }
  0x1d   : > { %v218_v0 = vld [vmem:[%s205_s11] sm:$0xff]  ;;  %v220_v1 = vld [vmem:[%s205_s11 + $0x8] sm:$0xff] }
  0x1e   : > { %v222_v2 = vld [vmem:[%s205_s11 + $0x40] sm:$0xff]  ;;  %219 = vst [vmem:[%s197_s12] sm:$0xff] %v218_v0  ;;  %221 = vst [vmem:[%s197_s12 + $0x8] sm:$0xff] %v220_v1  ;;  %v224_v3 = vld [vmem:[%s205_s11 + $0x48] sm:$0xff] }
  0x1f   : > { %223 = vst [vmem:[%s197_s12 + $0x10] sm:$0xff] %v222_v2  ;;  %v226_v4 = vld [vmem:[%s205_s11 + $0x80] sm:$0xff]  ;;  %v228_v5 = vld [vmem:[%s205_s11 + $0x88] sm:$0xff]  ;;  %225 = vst [vmem:[%s197_s12 + $0x18] sm:$0xff] %v224_v3 }
  0x20   : > { %227 = vst [vmem:[%s197_s12 + $0x20] sm:$0xff] %v226_v4  ;;  %229 = vst [vmem:[%s197_s12 + $0x28] sm:$0xff] %v228_v5  ;;  %v230_v6 = vld [vmem:[%s205_s11 + $0xc0] sm:$0xff]  ;;  %v232_v7 = vld [vmem:[%s205_s11 + $0xc8] sm:$0xff] }
  0x21   : > { %231 = vst [vmem:[%s197_s12 + $0x30] sm:$0xff] %v230_v6  ;;  %233 = vst [vmem:[%s197_s12 + $0x38] sm:$0xff] %v232_v7 }
  0x22 PF: > { %p1236_p7 = scmp.ge.s32.totalorder %s1554_s21, 1  ;;  %p252_p8 = scmp.lt.s32.totalorder %s1554_s21, 17 }
  0x24   : > { %p253_p9 = pnand %p1236_p7, %p252_p8 }
  0x25   : > { %s1238_s13 = sshll.u32 (!%p253_p9), %s1538_s17, 6  ;;  %p320_p10 = scmp.lt.s32.totalorder (!%p253_p9), %s1542_s18, 3 }
  0x26   : > { %256 = sbr.rel (%p253_p9) target bundleno = 381 (0x17d), region = 47  ;;  %p322_p11 = scmp.lt.s32.totalorder (!%p253_p9), %s1238_s13, 255 }
  0x27   : > { %s259_s0 = sand.u32 (!%p253_p9), 1, %s1530_s15   ;;  %p1320_p12 = scmp.ne.s32.totalorder (!%p253_p9), %s1538_s17, 0 }
  0x2d   : > { %s1821_s18 = smov (!%p320_p10, %s1542_s18), 3  ;;  %s1823_s13 = smov (!%p322_p11, %s1238_s13), 255 }
  0x2e   : > { %s1240_s14 = sshll.u32 %s1821_s18, 9  ;;  %s1325_s24 = sshll.u32 %s1821_s18, 6 }
  0x2f   : > { %s1239_s25 = sshll.u32 %s1823_s13, 1  ;;  %s1649_s29 = scalar_lea.vmem %s1803_s2, %s1325_s24 }
  0x30   : > { %s326_s30 = sadd.s32 %s1240_s14, %s1239_s25  ;;  %s1326_s5 = sshll.u32 %s1821_s18, 4 }
  0x31   : > { %s1241_s6 = sshll.u32 %s326_s30, 2  ;;  %s1654_s9 = scalar_lea.vmem %s1804_s3, %s1326_s5 }
  0x32   : > { %s1659_s12 = scalar_lea.vmem %s1802_s1, %s1241_s6  ;;  %s1664_s18 = scalar_lea.vmem %s1805_s4, %s1326_s5 }
  0x33   : > { %v1392_v8 = vld [vmem:[%s1659_s12 + $0x4] ss:$8 sps:$4 sm:$0xff]   ;;  %v1396_v10 = vld [vmem:[%s1659_s12] ss:$8 sps:$4 sm:$0xff]   ;;  %v1398_v12 = vld [vmem:[%s1659_s12 + $0x14] ss:$8 sps:$4 sm:$0xff]  }
  0x34   : > { %v1394_v9 = vld [vmem:[%s1659_s12 + $0x104] ss:$8 sps:$4 sm:$0xff]   ;;  %791 = vmatprep.subr.bf16.mxu1 %v1392_v8  ;;  %v1397_v11 = vld [vmem:[%s1659_s12 + $0x100] ss:$8 sps:$4 sm:$0xff]   ;;  %v1400_v13 = vld [vmem:[%s1659_s12 + $0x114] ss:$8 sps:$4 sm:$0xff]  }
  0x35   : > { %844 = vmatprep.subr.bf16.mxu0 %v1394_v9  ;;  %792 = vmatpush1.bf16.msra.mxu1 %v1396_v10  ;;  %v1402_v14 = vld [vmem:[%s1659_s12 + $0x10] ss:$8 sps:$4 sm:$0xff]   ;;  %v1404_v16 = vld [vmem:[%s1659_s12 + $0x24] ss:$8 sps:$4 sm:$0xff]   ;;  %v1408_v18 = vld [vmem:[%s1659_s12 + $0x20] ss:$8 sps:$4 sm:$0xff]  }
  0x36   : > { %845 = vmatpush1.bf16.msra.mxu0 %v1397_v11  ;;  %793 = vmatprep.subr.bf16.mxu1 %v1398_v12  ;;  %v1403_v15 = vld [vmem:[%s1659_s12 + $0x110] ss:$8 sps:$4 sm:$0xff]   ;;  %v1406_v17 = vld [vmem:[%s1659_s12 + $0x124] ss:$8 sps:$4 sm:$0xff]   ;;  %v1409_v19 = vld [vmem:[%s1659_s12 + $0x120] ss:$8 sps:$4 sm:$0xff]  }
  0x37   : > { %846 = vmatprep.subr.bf16.mxu0 %v1400_v13  ;;  %v1410_v20 = vld [vmem:[%s1659_s12 + $0x34] ss:$8 sps:$4 sm:$0xff]   ;;  %v1414_v22 = vld [vmem:[%s1659_s12 + $0x30] ss:$8 sps:$4 sm:$0xff]   ;;  %v1416_v24 = vld [vmem:[%s1659_s12 + $0x44] ss:$8 sps:$4 sm:$0xff]  }
  0x38   : > { %v1412_v21 = vld [vmem:[%s1659_s12 + $0x134] ss:$8 sps:$4 sm:$0xff]   ;;  %v1415_v23 = vld [vmem:[%s1659_s12 + $0x130] ss:$8 sps:$4 sm:$0xff]   ;;  %v1418_v25 = vld [vmem:[%s1659_s12 + $0x144] ss:$8 sps:$4 sm:$0xff]  }
  0x39   : > { %794 = vmatpush1.bf16.msra.mxu1 %v1402_v14  ;;  %v1420_v26 = vld [vmem:[%s1659_s12 + $0x40] ss:$8 sps:$4 sm:$0xff]   ;;  %v1422_v28 = vld [vmem:[%s1659_s12 + $0x54] ss:$8 sps:$4 sm:$0xff]   ;;  %v1426_v30 = vld [vmem:[%s1659_s12 + $0x50] ss:$8 sps:$4 sm:$0xff]  }
  0x3a   : > { %847 = vmatpush1.bf16.msra.mxu0 %v1403_v15  ;;  %795 = vmatprep.subr.bf16.mxu1 %v1404_v16  ;;  %v1421_v27 = vld [vmem:[%s1659_s12 + $0x140] ss:$8 sps:$4 sm:$0xff]   ;;  %v1424_v29 = vld [vmem:[%s1659_s12 + $0x154] ss:$8 sps:$4 sm:$0xff]   ;;  %v1427_v31 = vld [vmem:[%s1659_s12 + $0x150] ss:$8 sps:$4 sm:$0xff]  }
  0x3b   : > { %848 = vmatprep.subr.bf16.mxu0 %v1406_v17  ;;  %v1428_v32 = vld [vmem:[%s1659_s12 + $0x64] ss:$8 sps:$4 sm:$0xff]   ;;  %v1432_v34 = vld [vmem:[%s1659_s12 + $0x60] ss:$8 sps:$4 sm:$0xff]   ;;  %v1434_v36 = vld [vmem:[%s1659_s12 + $0x74] ss:$8 sps:$4 sm:$0xff]  }
  0x3c   : > { %v1430_v33 = vld [vmem:[%s1659_s12 + $0x164] ss:$8 sps:$4 sm:$0xff]   ;;  %v1433_v35 = vld [vmem:[%s1659_s12 + $0x160] ss:$8 sps:$4 sm:$0xff]   ;;  %v1436_v37 = vld [vmem:[%s1659_s12 + $0x174] ss:$8 sps:$4 sm:$0xff]  }
  0x3d   : > { %796 = vmatpush1.bf16.msra.mxu1 %v1408_v18  ;;  %v1438_v38 = vld [vmem:[%s1659_s12 + $0x70] ss:$8 sps:$4 sm:$0xff]   ;;  %v1440_v40 = vld [vmem:[%s1659_s12 + $0x84] ss:$8 sps:$4 sm:$0xff]   ;;  %v1444_v42 = vld [vmem:[%s1659_s12 + $0x80] ss:$8 sps:$4 sm:$0xff]  }
  0x3e   : > { %849 = vmatpush1.bf16.msra.mxu0 %v1409_v19  ;;  %797 = vmatprep.subr.bf16.mxu1 %v1410_v20  ;;  %v1439_v39 = vld [vmem:[%s1659_s12 + $0x170] ss:$8 sps:$4 sm:$0xff]   ;;  %v1442_v41 = vld [vmem:[%s1659_s12 + $0x184] ss:$8 sps:$4 sm:$0xff]   ;;  %v1445_v43 = vld [vmem:[%s1659_s12 + $0x180] ss:$8 sps:$4 sm:$0xff]  }
  0x3f   : > { %850 = vmatprep.subr.bf16.mxu0 %v1412_v21  ;;  %v1446_v44 = vld [vmem:[%s1659_s12 + $0x94] ss:$8 sps:$4 sm:$0xff]   ;;  %v1450_v46 = vld [vmem:[%s1659_s12 + $0x90] ss:$8 sps:$4 sm:$0xff]   ;;  %v1452_v48 = vld [vmem:[%s1659_s12 + $0xa4] ss:$8 sps:$4 sm:$0xff]  }
  0x40   : > { %v1448_v45 = vld [vmem:[%s1659_s12 + $0x194] ss:$8 sps:$4 sm:$0xff]   ;;  %v1451_v47 = vld [vmem:[%s1659_s12 + $0x190] ss:$8 sps:$4 sm:$0xff]   ;;  %v1454_v49 = vld [vmem:[%s1659_s12 + $0x1a4] ss:$8 sps:$4 sm:$0xff]  }
  0x41   : > { %798 = vmatpush1.bf16.msra.mxu1 %v1414_v22  ;;  %s1237_s14 = sshll.u32 %s259_s0, 6  ;;  %v1456_v50 = vld [vmem:[%s1659_s12 + $0xa0] ss:$8 sps:$4 sm:$0xff]   ;;  %v1458_v52 = vld [vmem:[%s1659_s12 + $0xb4] ss:$8 sps:$4 sm:$0xff]  }
  0x42   : > { %851 = vmatpush1.bf16.msra.mxu0 %v1415_v23  ;;  %799 = vmatprep.subr.bf16.mxu1 %v1416_v24  ;;  %v1457_v51 = vld [vmem:[%s1659_s12 + $0x1a0] ss:$8 sps:$4 sm:$0xff]   ;;  %v1460_v53 = vld [vmem:[%s1659_s12 + $0x1b4] ss:$8 sps:$4 sm:$0xff]   ;;  %v1462_v54 = vld [vmem:[%s1659_s12 + $0xb0] ss:$8 sps:$4 sm:$0xff]  }
  0x43   : > { %852 = vmatprep.subr.bf16.mxu0 %v1418_v25  ;;  %v1463_v55 = vld [vmem:[%s1659_s12 + $0x1b0] ss:$8 sps:$4 sm:$0xff]   ;;  %s1715_s15 = scalar_lea.vmem [#allocation2], %s1237_s14  ;;  %v1464_v56 = vld [vmem:[%s1659_s12 + $0xc4] ss:$8 sps:$4 sm:$0xff]  }
  0x44   : > { %v1490_v57 = vld [vmem:[%s1715_s15 + $0x4] ss:$16 sps:$4 sm:$0xff]   ;;  %v1493_v59 = vld [vmem:[%s1715_s15 + $0xc] ss:$16 sps:$4 sm:$0xff]   ;;  %v1468_v60 = vld [vmem:[%s1659_s12 + $0xc0] ss:$8 sps:$4 sm:$0xff]  }
  0x45   : > { %800 = vmatpush1.bf16.msra.mxu1 %v1420_v26  ;;  %v1466_v58 = vld [vmem:[%s1659_s12 + $0x1c4] ss:$8 sps:$4 sm:$0xff]   ;;  %823 = vmatprep.mubr.bf16.mxu1 %v1490_v57  ;;  %v1469_v61 = vld [vmem:[%s1659_s12 + $0x1c0] ss:$8 sps:$4 sm:$0xff]   ;;  %v1470_v62 = vld [vmem:[%s1659_s12 + $0xd4] ss:$8 sps:$4 sm:$0xff]  }
  0x46   : > { %853 = vmatpush1.bf16.msra.mxu0 %v1421_v27  ;;  %801 = vmatprep.subr.bf16.mxu1 %v1422_v28  ;;  %v1472_v63 = vld [vmem:[%s1659_s12 + $0x1d4] ss:$8 sps:$4 sm:$0xff]   ;;  %v1474_v0 = vld [vmem:[%s1659_s12 + $0xd0] ss:$8 sps:$4 sm:$0xff]   ;;  %v1476_v2 = vld [vmem:[%s1659_s12 + $0xe4] ss:$8 sps:$4 sm:$0xff]  }
  0x47   : > { %854 = vmatprep.subr.bf16.mxu0 %v1424_v29  ;;  %876 = vmatprep.mubr.bf16.mxu0 %v1493_v59  ;;  %v1475_v1 = vld [vmem:[%s1659_s12 + $0x1d0] ss:$8 sps:$4 sm:$0xff]   ;;  %v1478_v3 = vld [vmem:[%s1659_s12 + $0x1e4] ss:$8 sps:$4 sm:$0xff]   ;;  %v1480_v4 = vld [vmem:[%s1659_s12 + $0xe0] ss:$8 sps:$4 sm:$0xff]  }
  0x48   : > { %v1481_v5 = vld [vmem:[%s1659_s12 + $0x1e0] ss:$8 sps:$4 sm:$0xff]   ;;  %v1482_v6 = vld [vmem:[%s1659_s12 + $0xf4] ss:$8 sps:$4 sm:$0xff]   ;;  %v1486_v8 = vld [vmem:[%s1659_s12 + $0xf0] ss:$8 sps:$4 sm:$0xff]  }
  0x49   : > { %802 = vmatpush1.bf16.msra.mxu1 %v1426_v30  ;;  %v1484_v7 = vld [vmem:[%s1659_s12 + $0x1f4] ss:$8 sps:$4 sm:$0xff]   ;;  %v1487_v9 = vld [vmem:[%s1659_s12 + $0x1f0] ss:$8 sps:$4 sm:$0xff]  }
  0x4a   : > { %855 = vmatpush1.bf16.msra.mxu0 %v1427_v31  ;;  %803 = vmatprep.subr.bf16.mxu1 %v1428_v32  ;;  %v1488_v10 = vld [vmem:[%s1715_s15] ss:$16 sps:$4 sm:$0xff]   ;;  %v1491_v11 = vld [vmem:[%s1715_s15 + $0x8] ss:$16 sps:$4 sm:$0xff]   ;;  %v1494_v12 = vld [vmem:[%s1715_s15 + $0x24] ss:$16 sps:$4 sm:$0xff]  }
  0x4b   : > { %856 = vmatprep.subr.bf16.mxu0 %v1430_v33  ;;  %v1496_v13 = vld [vmem:[%s1715_s15 + $0x2c] ss:$16 sps:$4 sm:$0xff]   ;;  %v1498_v14 = vld [vmem:[%s1715_s15 + $0x20] ss:$16 sps:$4 sm:$0xff]   ;;  %v1499_v15 = vld [vmem:[%s1715_s15 + $0x28] ss:$16 sps:$4 sm:$0xff]  }
  0x4d   : > { %804 = vmatpush1.bf16.msra.mxu1 %v1432_v34 }
  0x4e   : > { %857 = vmatpush1.bf16.msra.mxu0 %v1433_v35  ;;  %805 = vmatprep.subr.bf16.mxu1 %v1434_v36 }
  0x4f   : > { %858 = vmatprep.subr.bf16.mxu0 %v1436_v37 }
  0x51   : > { %806 = vmatpush1.bf16.msra.mxu1 %v1438_v38 }
  0x52   : > { %859 = vmatpush1.bf16.msra.mxu0 %v1439_v39  ;;  %807 = vmatprep.subr.bf16.mxu1 %v1440_v40 }
  0x53   : > { %860 = vmatprep.subr.bf16.mxu0 %v1442_v41 }
  0x55   : > { %808 = vmatpush1.bf16.msra.mxu1 %v1444_v42 }
  0x56   : > { %861 = vmatpush1.bf16.msra.mxu0 %v1445_v43  ;;  %809 = vmatprep.subr.bf16.mxu1 %v1446_v44 }
  0x57   : > { %862 = vmatprep.subr.bf16.mxu0 %v1448_v45 }
  0x59   : > { %810 = vmatpush1.bf16.msra.mxu1 %v1450_v46 }
  0x5a   : > { %863 = vmatpush1.bf16.msra.mxu0 %v1451_v47  ;;  %811 = vmatprep.subr.bf16.mxu1 %v1452_v48 }
  0x5b   : > { %864 = vmatprep.subr.bf16.mxu0 %v1454_v49 }
  0x5d   : > { %812 = vmatpush1.bf16.msra.mxu1 %v1456_v50 }
  0x5e   : > { %865 = vmatpush1.bf16.msra.mxu0 %v1457_v51  ;;  %813 = vmatprep.subr.bf16.mxu1 %v1458_v52 }
  0x5f   : > { %866 = vmatprep.subr.bf16.mxu0 %v1460_v53 }
  0x61   : > { %814 = vmatpush1.bf16.msra.mxu1 %v1462_v54 }
  0x62   : > { %867 = vmatpush1.bf16.msra.mxu0 %v1463_v55  ;;  %815 = vmatprep.subr.bf16.mxu1 %v1464_v56 }
  0x63   : > { %868 = vmatprep.subr.bf16.mxu0 %v1466_v58 }
  0x65   : > { %816 = vmatpush1.bf16.msra.mxu1 %v1468_v60 }
  0x66   : > { %869 = vmatpush1.bf16.msra.mxu0 %v1469_v61  ;;  %817 = vmatprep.subr.bf16.mxu1 %v1470_v62 }
  0x67   : > { %870 = vmatprep.subr.bf16.mxu0 %v1472_v63 }
  0x69   : > { %818 = vmatpush1.bf16.msra.mxu1 %v1474_v0 }
  0x6a   : > { %871 = vmatpush1.bf16.msra.mxu0 %v1475_v1  ;;  %819 = vmatprep.subr.bf16.mxu1 %v1476_v2 }
  0x6b   : > { %872 = vmatprep.subr.bf16.mxu0 %v1478_v3 }
  0x6d   : > { %820 = vmatpush1.bf16.msra.mxu1 %v1480_v4 }
  0x6e   : > { %873 = vmatpush1.bf16.msra.mxu0 %v1481_v5  ;;  %821 = vmatprep.subr.bf16.mxu1 %v1482_v6 }
  0x6f   : > { %874 = vmatprep.subr.bf16.mxu0 %v1484_v7 }
  0x71   : > { %822 = vmatpush1.bf16.msra.mxu1 %v1486_v8 }
  0x72   : > { %875 = vmatpush1.bf16.msra.mxu0 %v1487_v9 }
  0x74   : > { %824 = vmatmul.mubr.bf16.vlgmr.msra.gmra.mrb[0].mxu1 %v1488_v10 }
  0x75   : > { %877 = vmatmul.mubr.bf16.vlgmr.msra.gmra.mrb[0].mxu0 %v1491_v11  ;;  %833 = vmatprep.mubr.bf16.mxu1 %v1494_v12 }
  0x76   : > { %886 = vmatprep.mubr.bf16.mxu0 %v1496_v13 }
  0x7c   : > { %834 = vmatmul.mubr.bf16.gmra.mrb[4].mxu1 %v1498_v14 }
  0x7d   : > { %887 = vmatmul.mubr.bf16.gmra.mrb[4].mxu0 %v1499_v15 }
 0x147   : > { %v825_v16 = vpop.f32.mrb[0].mxu1 }
 0x148   : > { %v878_v17 = vpop.f32.mrb[0].mxu0  ;;  %v827_v19 = vpop.f32.mrb[1].mxu1 }
 0x149   : > { %v879_v18 = vadd.f32 %v878_v17, %v825_v16  ;;  %v880_v20 = vpop.f32.mrb[1].mxu0  ;;  %v829_v22 = vpop.f32.mrb[2].mxu1 }
 0x14a   : > { %v881_v21 = vadd.f32 %v880_v20, %v827_v19  ;;  %v882_v23 = vpop.f32.mrb[2].mxu0  ;;  %v831_v25 = vpop.f32.mrb[3].mxu1 }
 0x14b   : > { %v883_v24 = vadd.f32 %v882_v23, %v829_v22  ;;  %v884_v26 = vpop.f32.mrb[3].mxu0  ;;  %901 = vst [vmem:[%s1649_s29] sm:$0xff] (!%p1320_p12), %v879_v18 }
 0x14c   : > { %v885_v27 = vadd.f32 %v884_v26, %v831_v25  ;;  %902 = vst [vmem:[%s1649_s29 + $0x8] sm:$0xff] (!%p1320_p12), %v881_v21 }
 0x14d   : > { %903 = vst [vmem:[%s1649_s29 + $0x10] sm:$0xff] (!%p1320_p12), %v883_v24 }
 0x14e   : > { %900 = sbr.rel (%p1320_p12) target bundleno = 343 (0x157), region = 55  ;;  %904 = vst [vmem:[%s1649_s29 + $0x18] sm:$0xff] (!%p1320_p12), %v885_v27 }
 0x14f   : > { %v835_v28 = vpop.f32.mrb[4].mxu1 }
 0x150   : > { %v888_v29 = vpop.f32.mrb[4].mxu0  ;;  %v837_v31 = vpop.f32.mrb[5].mxu1 }
 0x151   : > { %v889_v30 = vadd.f32 %v888_v29, %v835_v28  ;;  %v890_v32 = vpop.f32.mrb[5].mxu0  ;;  %v839_v34 = vpop.f32.mrb[6].mxu1 }
 0x152   : > { %v891_v33 = vadd.f32 %v890_v32, %v837_v31  ;;  %v892_v35 = vpop.f32.mrb[6].mxu0  ;;  %v841_v37 = vpop.f32.mrb[7].mxu1 }
 0x153   : > { %v893_v36 = vadd.f32 %v892_v35, %v839_v34  ;;  %v894_v38 = vpop.f32.mrb[7].mxu0  ;;  %905 = vst [vmem:[%s1649_s29 + $0x20] sm:$0xff] (!%p1320_p12), %v889_v30 }
 0x154   : > { %v895_v39 = vadd.f32 %v894_v38, %v841_v37  ;;  %906 = vst [vmem:[%s1649_s29 + $0x28] sm:$0xff] (!%p1320_p12), %v891_v33 }
 0x155   : > { %907 = vst [vmem:[%s1649_s29 + $0x30] sm:$0xff] %v893_v36 }
 0x156   : > { %908 = vst [vmem:[%s1649_s29 + $0x38] sm:$0xff] %v895_v39 }
 0x157 PF: > { %p1321_p13 = scmp.le.s32.totalorder %s1538_s17, 0 }
 0x158   : > { %v913_v40 = vld [vmem:[%s1649_s29] sm:$0xff] (!%p1321_p13)  ;;  %v914_v41 = vld [vmem:[%s1649_s29 + $0x8] sm:$0xff] (!%p1321_p13)  ;;  %v915_v42 = vld [vmem:[%s1649_s29 + $0x10] sm:$0xff] (!%p1321_p13) }
 0x159   : > { %912 = sbr.rel (%p1321_p13) target bundleno = 354 (0x162), region = 59  ;;  %v921_v43 = vadd.f32 (!%p1321_p13), %v913_v40, %v879_v18  ;;  %v922_v44 = vadd.f32 (!%p1321_p13), %v914_v41, %v881_v21  ;;  %v923_v45 = vadd.f32 (!%p1321_p13), %v915_v42, %v883_v24  ;;  %v916_v46 = vld [vmem:[%s1649_s29 + $0x18] sm:$0xff] (!%p1321_p13) }
 0x15a   : > { %v924_v49 = vadd.f32 (!%p1321_p13), %v916_v46, %v885_v27 }
 0x15b   : > { %929 = vst [vmem:[%s1649_s29] sm:$0xff] (!%p1321_p13), %v921_v43  ;;  %930 = vst [vmem:[%s1649_s29 + $0x8] sm:$0xff] (!%p1321_p13), %v922_v44 }
 0x15c   : > { %v917_v47 = vld [vmem:[%s1649_s29 + $0x20] sm:$0xff] (!%p1321_p13)  ;;  %931 = vst [vmem:[%s1649_s29 + $0x10] sm:$0xff] (!%p1321_p13), %v923_v45  ;;  %932 = vst [vmem:[%s1649_s29 + $0x18] sm:$0xff] (!%p1321_p13), %v924_v49 }
 0x15d   : > { %v918_v48 = vld [vmem:[%s1649_s29 + $0x28] sm:$0xff] (!%p1321_p13)  ;;  %v925_v50 = vadd.f32 (!%p1321_p13), %v917_v47, %v889_v30  ;;  %v920_v53 = vld [vmem:[%s1649_s29 + $0x38] sm:$0xff] (!%p1321_p13) }
 0x15e   : > { %v926_v51 = vadd.f32 (!%p1321_p13), %v918_v48, %v891_v33  ;;  %v919_v52 = vld [vmem:[%s1649_s29 + $0x30] sm:$0xff] (!%p1321_p13)  ;;  %v928_v55 = vadd.f32 (!%p1321_p13), %v920_v53, %v895_v39 }
 0x15f   : > { %v927_v54 = vadd.f32 (!%p1321_p13), %v919_v52, %v893_v36  ;;  %933 = vst [vmem:[%s1649_s29 + $0x20] sm:$0xff] (!%p1321_p13), %v925_v50 }
 0x160   : > { %934 = vst [vmem:[%s1649_s29 + $0x28] sm:$0xff] %v926_v51  ;;  %936 = vst [vmem:[%s1649_s29 + $0x38] sm:$0xff] %v928_v55 }
 0x161   : > { %935 = vst [vmem:[%s1649_s29 + $0x30] sm:$0xff] %v927_v54 }
 0x162 PF: > { %p1322_p0 = scmp.ne.s32.totalorder %s1538_s17, 3 }
 0x164   : > { %940 = sbr.rel (%p1322_p0) target bundleno = 381 (0x17d), region = 63  ;;  %v941_v56 = vld [vmem:[%s1649_s29] sm:$0xff] (!%p1322_p0)  ;;  %v942_v61 = vld [vmem:[%s1649_s29 + $0x8] sm:$0xff] (!%p1322_p0) }
 0x165   : > { %v943_v57 = vld [vmem:[%s1649_s29 + $0x10] sm:$0xff] (!%p1322_p0)  ;;  %v944_v62 = vld [vmem:[%s1649_s29 + $0x18] sm:$0xff] (!%p1322_p0)  ;;  %v967_v63 = vmul.f32 (!%p1322_p0), %v941_v56, %v941_v56  ;;  %v968_v5 = vmul.f32 (!%p1322_p0), %v942_v61, %v942_v61 }
 0x166   : > { %v949_v60 = vadd.f32 (!%p1322_p0), %v943_v57, %v941_v56  ;;  %v969_v0 = vmul.f32 (!%p1322_p0), %v943_v57, %v943_v57  ;;  %v958_v4 = vadd.f32 (!%p1322_p0), %v944_v62, %v942_v61  ;;  %v970_v6 = vmul.f32 (!%p1322_p0), %v944_v62, %v944_v62 }
 0x168   : > { %v945_v58 = vld [vmem:[%s1649_s29 + $0x20] sm:$0xff] (!%p1322_p0)  ;;  %v947_v59 = vld [vmem:[%s1649_s29 + $0x30] sm:$0xff] (!%p1322_p0)  ;;  %v975_v9 = vadd.f32 (!%p1322_p0), %v969_v0, %v967_v63  ;;  %v984_v13 = vadd.f32 (!%p1322_p0), %v970_v6, %v968_v5 }
 0x169   : > { %v971_v1 = vmul.f32 (!%p1322_p0), %v945_v58, %v945_v58  ;;  %v946_v2 = vld [vmem:[%s1649_s29 + $0x28] sm:$0xff] (!%p1322_p0)  ;;  %v948_v3 = vld [vmem:[%s1649_s29 + $0x38] sm:$0xff] (!%p1322_p0)  ;;  %v950_v7 = vadd.f32 (!%p1322_p0), %v949_v60, %v945_v58  ;;  %v973_v8 = vmul.f32 (!%p1322_p0), %v947_v59, %v947_v59 }
 0x16a   : > { %v972_v10 = vmul.f32 (!%p1322_p0), %v946_v2, %v946_v2  ;;  %v959_v11 = vadd.f32 (!%p1322_p0), %v958_v4, %v946_v2  ;;  %v974_v12 = vmul.f32 (!%p1322_p0), %v948_v3, %v948_v3 }
 0x16b   : > { %v951_v14 = vadd.f32 %v950_v7, %v947_v59  ;;  %v976_v15 = vadd.f32 %v975_v9, %v971_v1 }
 0x16c   : > { %v960_v16 = vadd.f32 %v959_v11, %v948_v3  ;;  %v985_v17 = vadd.f32 %v984_v13, %v972_v10 }
 0x16d   : > { %v952_v18 = vrot.slane %v951_v14, 4  ;;  %v977_v19 = vadd.f32 %v976_v15, %v973_v8 }
 0x16e   : > { %v961_v20 = vrot.slane %v960_v16, 4  ;;  %v986_v21 = vadd.f32 %v985_v17, %v974_v12 }
 0x16f   : > { %v953_v22 = vadd.f32 %v952_v18, %v951_v14  ;;  %v978_v23 = vrot.slane %v977_v19, 4 }
 0x170   : > { %v962_v24 = vadd.f32 %v961_v20, %v960_v16  ;;  %v987_v25 = vrot.slane %v986_v21, 4 }
 0x171   : > { %v954_v26 = vrot.slane %v953_v22, 2  ;;  %v979_v27 = vadd.f32 %v978_v23, %v977_v19 }
 0x172   : > { %v963_v28 = vrot.slane %v962_v24, 2  ;;  %v988_v29 = vadd.f32 %v987_v25, %v986_v21 }
 0x173   : > { %v955_v30 = vadd.f32 %v954_v26, %v953_v22  ;;  %v980_v31 = vrot.slane %v979_v27, 2 }
 0x174   : > { %v964_v32 = vadd.f32 %v963_v28, %v962_v24  ;;  %v989_v33 = vrot.slane %v988_v29, 2 }
 0x175   : > { %v956_v34 = vrot.slane %v955_v30, 1  ;;  %v981_v35 = vadd.f32 %v980_v31, %v979_v27 }
 0x176   : > { %v965_v36 = vrot.slane %v964_v32, 1  ;;  %v990_v37 = vadd.f32 %v989_v33, %v988_v29 }
 0x177   : > { %v957_v38 = vadd.f32 %v956_v34, %v955_v30  ;;  %v982_v39 = vrot.slane %v981_v35, 1 }
 0x178   : > { %v966_v40 = vadd.f32 %v965_v36, %v964_v32  ;;  %v991_v41 = vrot.slane %v990_v37, 1 }
 0x179   : > { %993 = vst [vmem:[%s1654_s9] sm:$0xff] %v957_v38  ;;  %v983_v42 = vadd.f32 %v982_v39, %v981_v35 }
 0x17a   : > { %994 = vst [vmem:[%s1654_s9 + $0x8] sm:$0xff] %v966_v40  ;;  %v992_v43 = vadd.f32 %v991_v41, %v990_v37 }
 0x17b   : > { %995 = vst [vmem:[%s1664_s18] sm:$0xff] %v983_v42 }
 0x17c   : > { %996 = vst [vmem:[%s1664_s18 + $0x8] sm:$0xff] %v992_v43 }
 0x17d PF: > { %s15_s21 = sadd.s32 1, %s1554_s21   ;;  %s1808_s15 = smov %s1534_s16 }
 0x17e   : > { %p12_p1 = scmp.ge.s32.totalorder %s15_s21, 18   ;;  %s1809_s16 = smov %s1632_s28 }
 0x17f   : > { %s1810_s17 = smov %s1546_s19  ;;  %s1811_s18 = smov %s1550_s20 }
 0x180   : > { %s1812_s19 = smov %s1815_s22  ;;  %s1813_s20 = smov %s1819_s23 }
 0x181   :  { %14 = sbr.rel (!%p12_p1) target bundleno = 6 (0x6), region = 125 }

// kernel: generator_forward.10
= control target key start
LH: loop header
LB: loop body
LE: loop exit
PB: predicated region body
PF: predicated region fallthrough
CT: control target
= control target key end

     0   :  { %v48_v0 = vlaneseq  ;;  %s556_s1 = inlined_call_operand.vmem [shape: f32[1,256], index: 1, kind: input, shape index: {}]   ;;  %s557_s2 = inlined_call_operand.vmem [shape: f32[1,256], index: 2, kind: input, shape index: {}]   ;;  %s558_s0 = inlined_call_operand.vmem [shape: f32[128,256], index: 0, kind: input, shape index: {}]   ;;  %s559_s3 = inlined_call_operand.vmem [shape: bf16[128,256], index: 3, kind: output, shape index: {}]  }
   0x1   :  { %v46_v2 = vld [vmem:[%s556_s1] sm:$0x3]  ;;  %v15_v5 = vld [vmem:[%s558_s0 + $0x8] sm:$0xff]  ;;  %v16_v8 = vld [vmem:[%s558_s0 + $0x10] sm:$0xff] }
   0x2   :  { %v49_v1 = vshrl.u32 %v48_v0, 7  ;;  %v90_v3 = vld [vmem:[%s557_s2] sm:$0x3]  ;;  %v17_v9 = vld [vmem:[%s558_s0 + $0x18] sm:$0xff]  ;;  %v19_v15 = vld [vmem:[%s558_s0 + $0x28] sm:$0xff] }
   0x3   :  { %v14_v4 = vld [vmem:[%s558_s0] sm:$0xff]  ;;  %v20_v16 = vld [vmem:[%s558_s0 + $0x30] sm:$0xff]  ;;  %v21_v17 = vld [vmem:[%s558_s0 + $0x38] sm:$0xff] }
   0x4   :  { %v50_v6 = vsub.s32 0, %v49_v1  ;;  %v54_v7 = vsub.s32 1, %v49_v1  ;;  %v18_v10 = vld [vmem:[%s558_s0 + $0x20] sm:$0xff]  ;;  %v23_v35 = vld [vmem:[%s558_s0 + $0x48] sm:$0xff]  ;;  %v24_v40 = vld [vmem:[%s558_s0 + $0x50] sm:$0xff] }
   0x5   :  { %v22_v34 = vld [vmem:[%s558_s0 + $0x40] sm:$0xff]  ;;  %v25_v41 = vld [vmem:[%s558_s0 + $0x58] sm:$0xff]  ;;  %v27_v47 = vld [vmem:[%s558_s0 + $0x68] sm:$0xff] }
   0x6   :  { %v355_v11 = vrot.slane %v46_v2, %v50_v6  ;;  %v357_v12 = vrot.slane %v46_v2, %v54_v7  ;;  %v359_v13 = vrot.slane %v90_v3, %v50_v6  ;;  %v361_v14 = vrot.slane %v90_v3, %v54_v7  ;;  %v26_v46 = vld [vmem:[%s558_s0 + $0x60] sm:$0xff]  ;;  %v28_v52 = vld [vmem:[%s558_s0 + $0x70] sm:$0xff]  ;;  %v29_v53 = vld [vmem:[%s558_s0 + $0x78] sm:$0xff] }
   0x7   :  { %v30_v2 = vld [vmem:[%s558_s0 + $0x80] sm:$0xff]  ;;  %v31_v7 = vld [vmem:[%s558_s0 + $0x88] sm:$0xff] }
   0x8   :  { %v58_v18 = vmul.f32 %v355_v11, %v14_v4  ;;  %v59_v19 = vmul.f32 %v357_v12, %v15_v5  ;;  %v60_v20 = vmul.f32 %v355_v11, %v16_v8  ;;  %v61_v21 = vmul.f32 %v357_v12, %v17_v9 }
   0x9   :  { %v62_v22 = vmul.f32 %v355_v11, %v18_v10  ;;  %v63_v23 = vmul.f32 %v357_v12, %v19_v15  ;;  %v64_v24 = vmul.f32 %v355_v11, %v20_v16  ;;  %v65_v25 = vmul.f32 %v357_v12, %v21_v17  ;;  %v32_v16 = vld [vmem:[%s558_s0 + $0x90] sm:$0xff]  ;;  %v33_v17 = vld [vmem:[%s558_s0 + $0x98] sm:$0xff] }
   0xa   :  { %v102_v26 = vadd.f32 %v359_v13, %v58_v18  ;;  %v103_v27 = vadd.f32 %v361_v14, %v59_v19  ;;  %v104_v28 = vadd.f32 %v359_v13, %v60_v20  ;;  %v105_v29 = vadd.f32 %v361_v14, %v61_v21 }
   0xb   :  { %v106_v30 = vadd.f32 %v359_v13, %v62_v22  ;;  %v107_v31 = vadd.f32 %v361_v14, %v63_v23  ;;  %v108_v32 = vadd.f32 %v359_v13, %v64_v24  ;;  %v109_v33 = vadd.f32 %v361_v14, %v65_v25  ;;  %v34_v22 = vld [vmem:[%s558_s0 + $0xa0] sm:$0xff]  ;;  %v35_v23 = vld [vmem:[%s558_s0 + $0xa8] sm:$0xff] }
   0xc   :  { %v134_v36 = vmax.f32 %v102_v26, 0.0  ;;  %v135_v37 = vmax.f32 %v103_v27, 0.0  ;;  %v136_v38 = vmax.f32 %v104_v28, 0.0  ;;  %v137_v39 = vmax.f32 %v105_v29, 0.0  ;;  %v36_v28 = vld [vmem:[%s558_s0 + $0xb0] sm:$0xff] }
   0xd   :  { %v138_v42 = vmax.f32 %v106_v30, 0.0  ;;  %v139_v43 = vmax.f32 %v107_v31, 0.0  ;;  %v140_v44 = vmax.f32 %v108_v32, 0.0  ;;  %v141_v45 = vmax.f32 %v109_v33, 0.0  ;;  %v37_v33 = vld [vmem:[%s558_s0 + $0xb8] sm:$0xff] }
   0xe   :  { %v298_v48 = vpack.c.bf16 %v135_v37, %v134_v36  ;;  %v299_v49 = vpack.c.bf16 %v137_v39, %v136_v38  ;;  %v66_v50 = vmul.f32 %v355_v11, %v22_v34  ;;  %v67_v51 = vmul.f32 %v357_v12, %v23_v35  ;;  %v38_v38 = vld [vmem:[%s558_s0 + $0xc0] sm:$0xff] }
   0xf   :  { %v300_v54 = vpack.c.bf16 %v139_v43, %v138_v42  ;;  %v301_v55 = vpack.c.bf16 %v141_v45, %v140_v44  ;;  %v68_v56 = vmul.f32 %v355_v11, %v24_v40  ;;  %v69_v57 = vmul.f32 %v357_v12, %v25_v41 }
  0x10   :  { %262 = vst [vmem:[%s559_s3] sm:$0xff] %v298_v48  ;;  %263 = vst [vmem:[%s559_s3 + $0x8] sm:$0xff] %v299_v49  ;;  %v110_v58 = vadd.f32 %v359_v13, %v66_v50  ;;  %v111_v59 = vadd.f32 %v361_v14, %v67_v51  ;;  %v70_v60 = vmul.f32 %v355_v11, %v26_v46 }
  0x11   :  { %v71_v61 = vmul.f32 %v357_v12, %v27_v47  ;;  %264 = vst [vmem:[%s559_s3 + $0x10] sm:$0xff] %v300_v54  ;;  %265 = vst [vmem:[%s559_s3 + $0x18] sm:$0xff] %v301_v55  ;;  %v112_v62 = vadd.f32 %v359_v13, %v68_v56  ;;  %v113_v63 = vadd.f32 %v361_v14, %v69_v57  ;;  %v39_v47 = vld [vmem:[%s558_s0 + $0xc8] sm:$0xff] }
  0x12   :  { %v72_v0 = vmul.f32 %v355_v11, %v28_v52  ;;  %v73_v1 = vmul.f32 %v357_v12, %v29_v53  ;;  %v142_v3 = vmax.f32 %v110_v58, 0.0  ;;  %v143_v4 = vmax.f32 %v111_v59, 0.0  ;;  %v40_v52 = vld [vmem:[%s558_s0 + $0xd0] sm:$0xff]  ;;  %v41_v53 = vld [vmem:[%s558_s0 + $0xd8] sm:$0xff]  ;;  %v42_v58 = vld [vmem:[%s558_s0 + $0xe0] sm:$0xff] }
  0x13   :  { %v114_v5 = vadd.f32 %v359_v13, %v70_v60  ;;  %v115_v6 = vadd.f32 %v361_v14, %v71_v61  ;;  %v144_v8 = vmax.f32 %v112_v62, 0.0  ;;  %v145_v9 = vmax.f32 %v113_v63, 0.0  ;;  %v43_v59 = vld [vmem:[%s558_s0 + $0xe8] sm:$0xff] }
  0x14   :  { %v116_v10 = vadd.f32 %v359_v13, %v72_v0  ;;  %v117_v15 = vadd.f32 %v361_v14, %v73_v1  ;;  %v302_v18 = vpack.c.bf16 %v143_v4, %v142_v3  ;;  %v74_v21 = vmul.f32 %v355_v11, %v30_v2  ;;  %v44_v0 = vld [vmem:[%s558_s0 + $0xf0] sm:$0xff] }
  0x15   :  { %v146_v19 = vmax.f32 %v114_v5, 0.0  ;;  %v147_v20 = vmax.f32 %v115_v6, 0.0  ;;  %v303_v24 = vpack.c.bf16 %v145_v9, %v144_v8  ;;  %v75_v27 = vmul.f32 %v357_v12, %v31_v7  ;;  %v45_v5 = vld [vmem:[%s558_s0 + $0xf8] sm:$0xff] }
  0x16   :  { %v148_v25 = vmax.f32 %v116_v10, 0.0  ;;  %v149_v26 = vmax.f32 %v117_v15, 0.0  ;;  %266 = vst [vmem:[%s559_s3 + $0x20] sm:$0xff] %v302_v18  ;;  %v118_v30 = vadd.f32 %v359_v13, %v74_v21  ;;  %v76_v31 = vmul.f32 %v355_v11, %v32_v16 }
  0x17   :  { %v304_v29 = vpack.c.bf16 %v147_v20, %v146_v19  ;;  %v77_v32 = vmul.f32 %v357_v12, %v33_v17  ;;  %267 = vst [vmem:[%s559_s3 + $0x28] sm:$0xff] %v303_v24  ;;  %v119_v35 = vadd.f32 %v361_v14, %v75_v27  ;;  %v78_v36 = vmul.f32 %v355_v11, %v34_v22 }
  0x18   :  { %v305_v34 = vpack.c.bf16 %v149_v26, %v148_v25  ;;  %v79_v37 = vmul.f32 %v357_v12, %v35_v23  ;;  %v150_v39 = vmax.f32 %v118_v30, 0.0  ;;  %v120_v40 = vadd.f32 %v359_v13, %v76_v31 }
  0x19   :  { %268 = vst [vmem:[%s559_s3 + $0x30] sm:$0xff] %v304_v29  ;;  %v121_v41 = vadd.f32 %v361_v14, %v77_v32  ;;  %v80_v42 = vmul.f32 %v355_v11, %v36_v28  ;;  %v151_v43 = vmax.f32 %v119_v35, 0.0  ;;  %v122_v44 = vadd.f32 %v359_v13, %v78_v36 }
  0x1a   :  { %269 = vst [vmem:[%s559_s3 + $0x38] sm:$0xff] %v305_v34  ;;  %v123_v45 = vadd.f32 %v361_v14, %v79_v37  ;;  %v81_v46 = vmul.f32 %v357_v12, %v37_v33  ;;  %v152_v48 = vmax.f32 %v120_v40, 0.0  ;;  %v82_v51 = vmul.f32 %v355_v11, %v38_v38 }
  0x1b   :  { %v153_v49 = vmax.f32 %v121_v41, 0.0  ;;  %v124_v50 = vadd.f32 %v359_v13, %v80_v42  ;;  %v306_v54 = vpack.c.bf16 %v151_v43, %v150_v39  ;;  %v154_v55 = vmax.f32 %v122_v44, 0.0 }
  0x1c   :  { %v155_v56 = vmax.f32 %v123_v45, 0.0  ;;  %v125_v57 = vadd.f32 %v361_v14, %v81_v46  ;;  %v83_v62 = vmul.f32 %v357_v12, %v39_v47  ;;  %v126_v63 = vadd.f32 %v359_v13, %v82_v51 }
  0x1d   :  { %v307_v60 = vpack.c.bf16 %v153_v49, %v152_v48  ;;  %v156_v61 = vmax.f32 %v124_v50, 0.0  ;;  %270 = vst [vmem:[%s559_s3 + $0x40] sm:$0xff] %v306_v54  ;;  %v84_v3 = vmul.f32 %v355_v11, %v40_v52  ;;  %v85_v4 = vmul.f32 %v357_v12, %v41_v53 }
  0x1e   :  { %v308_v1 = vpack.c.bf16 %v155_v56, %v154_v55  ;;  %v157_v2 = vmax.f32 %v125_v57, 0.0  ;;  %v127_v6 = vadd.f32 %v361_v14, %v83_v62  ;;  %v158_v7 = vmax.f32 %v126_v63, 0.0 }
  0x1f   :  { %271 = vst [vmem:[%s559_s3 + $0x48] sm:$0xff] %v307_v60  ;;  %v86_v8 = vmul.f32 %v355_v11, %v42_v58  ;;  %v87_v9 = vmul.f32 %v357_v12, %v43_v59  ;;  %v128_v15 = vadd.f32 %v359_v13, %v84_v3  ;;  %v129_v16 = vadd.f32 %v361_v14, %v85_v4 }
  0x20   :  { %272 = vst [vmem:[%s559_s3 + $0x50] sm:$0xff] %v308_v1  ;;  %v309_v10 = vpack.c.bf16 %v157_v2, %v156_v61  ;;  %v88_v17 = vmul.f32 %v355_v11, %v44_v0  ;;  %v159_v18 = vmax.f32 %v127_v6, 0.0  ;;  %v89_v21 = vmul.f32 %v357_v12, %v45_v5 }
  0x21   :  { %v130_v19 = vadd.f32 %v359_v13, %v86_v8  ;;  %v131_v20 = vadd.f32 %v361_v14, %v87_v9  ;;  %v160_v22 = vmax.f32 %v128_v15, 0.0  ;;  %v161_v23 = vmax.f32 %v129_v16, 0.0 }
  0x22   :  { %273 = vst [vmem:[%s559_s3 + $0x58] sm:$0xff] %v309_v10  ;;  %v132_v24 = vadd.f32 %v359_v13, %v88_v17  ;;  %v310_v25 = vpack.c.bf16 %v159_v18, %v158_v7  ;;  %v133_v11 = vadd.f32 %v361_v14, %v89_v21 }
  0x23   :  { %v162_v26 = vmax.f32 %v130_v19, 0.0  ;;  %v163_v27 = vmax.f32 %v131_v20, 0.0  ;;  %v311_v28 = vpack.c.bf16 %v161_v23, %v160_v22 }
  0x24   :  { %v164_v29 = vmax.f32 %v132_v24, 0.0  ;;  %274 = vst [vmem:[%s559_s3 + $0x60] sm:$0xff] %v310_v25  ;;  %v165_v30 = vmax.f32 %v133_v11, 0.0 }
  0x25   :  { %v312_v12 = vpack.c.bf16 %v163_v27, %v162_v26  ;;  %275 = vst [vmem:[%s559_s3 + $0x68] sm:$0xff] %v311_v28 }
  0x26   :  { %v313_v13 = vpack.c.bf16 %v165_v30, %v164_v29 }
  0x27   :  { %276 = vst [vmem:[%s559_s3 + $0x70] sm:$0xff] %v312_v12 }
  0x28   :  { %277 = vst [vmem:[%s559_s3 + $0x78] sm:$0xff] %v313_v13 }

// kernel: generator_forward.11
= control target key start
LH: loop header
LB: loop body
LE: loop exit
PB: predicated region body
PF: predicated region fallthrough
CT: control target
= control target key end

     0   :  { %s1819_s15 = smov 0   ;;  %s1821_s16 = smov 0   ;;  %s2189_s0 = inlined_call_operand.vmem [shape: bf16[4,128,1024], index: 0, kind: input, shape index: {}]   ;;  %s2190_s1 = inlined_call_operand.vmem [shape: bf16[4,1024,128], index: 1, kind: input, shape index: {}]   ;;  %s2191_s2 = inlined_call_operand.vmem [shape: f32[4,128,128], index: 2, kind: output, shape index: {0}]   ;;  %s2192_s3 = inlined_call_operand.vmem [shape: f32[4,1,8,128], index: 3, kind: output, shape index: {1}]   ;;  %s2193_s4 = inlined_call_operand.vmem [shape: f32[4,1,8,128], index: 4, kind: output, shape index: {2}]  }
   0x1   :  { %s1823_s17 = smov 0   ;;  %s1825_s18 = smov 0  }
   0x2   :  { %s1827_s19 = smov 0   ;;  %s1829_s20 = smov 0  }
   0x3   :  { %s1831_s21 = smov 0  }
   0x4 LB: > { %s27_s22 = sadd.s32 1, %s1784_s19  ;;  %s34_s23 = sadd.s32 1, %s1788_s20  ;;  %s1792_s21 = sphi %s1831_s21, %s15_s21   ;;  %s1788_s20 = sphi %s1829_s20, %s2199_s20   ;;  %s1784_s19 = sphi %s1827_s19, %s2198_s19   ;;  %s1780_s18 = sphi %s1825_s18, %s2197_s18   ;;  %s1776_s17 = sphi %s1823_s17, %s2196_s17   ;;  %s1772_s16 = sphi %s1821_s16, %s2195_s16   ;;  %s1768_s15 = sphi %s1819_s15, %s2194_s15  }
   0x5   : > { %p28_p0 = scmp.ge.s32.totalorder %s27_s22, 2  ;;  %p52_p1 = scmp.ne.s32.totalorder %s1772_s16, %s1768_s15 }
   0x6   : > { %p53_p2 = scmp.eq.s32.totalorder %s1792_s21, 0  ;;  %s45_s27 = sadd.s32 1, %s1772_s16 }
   0x7   : > { %s2201_s22 = smov (%p28_p0, %s27_s22), 0  ;;  %s2203_s23 = smov (!%p28_p0, %s34_s23), %s1788_s20 }
   0x8   : > { %p54_p3 = por %p53_p2, %p52_p1  ;;  %p36_p4 = scmp.ge.s32.totalorder %s2203_s23, 4 }
   0x9   : > { %s41_s24 = ssub.s32 %s1784_s19, %s2201_s22  ;;  %p1390_p6 = scmp.ge.s32.totalorder %s1792_s21, 8 }
   0xa   : > { %s2205_s23 = smov (%p36_p4, %s2203_s23), 0 }
   0xb   : > { %s38_s25 = ssub.s32 %s1788_s20, %s2205_s23  ;;  %190 = sbr.rel (%p1390_p6) target bundleno = 41 (0x29), region = 16 }
   0xc   : > { %s42_s26 = sor.u32 %s41_s24, %s38_s25 }
   0xd   : > { %p43_p5 = scmp.eq.s32.totalorder %s42_s26, 0 }
   0xf   : > { %s1870_s28 = scalar_select %p43_p5, %s1772_s16, %s45_s27  }
  0x12   : > { %193 = sbr.rel (!%p54_p3) target bundleno = 41 (0x29), region = 20  ;;  %s195_s29 = sand.u32 (%p54_p3), 1, %s1772_s16  }
  0x13   : > { %s1392_s30 = sshll.u32 (%p54_p3), %s1784_s19, 2  ;;  %s1391_s5 = sshll.u32 (%p54_p3), %s195_s29, 8 }
  0x14   : > { %s1393_s6 = sshll.u32 (%p54_p3), %s1788_s20, 7  ;;  %s1884_s12 = scalar_lea.vmem (%p54_p3), [#allocation2], %s1391_s5 }
  0x15   : > { %s203_s7 = sadd.s32 (%p54_p3), %s1393_s6, %s1392_s30 }
  0x16   : > { %s1394_s8 = sshll.u32 (%p54_p3), %s203_s7, 2 }
  0x17   : > { %s1879_s11 = scalar_lea.vmem (%p54_p3), %s2189_s0, %s1394_s8 }
  0x18   : > { %v218_v0 = vld [vmem:[%s1879_s11] sm:$0xff] (%p54_p3)  ;;  %v220_v1 = vld [vmem:[%s1879_s11 + $0x8] sm:$0xff] (%p54_p3) }
  0x19   : > { %v222_v2 = vld [vmem:[%s1879_s11 + $0x20] sm:$0xff]  ;;  %219 = vst [vmem:[%s1884_s12] sm:$0xff] %v218_v0  ;;  %221 = vst [vmem:[%s1884_s12 + $0x8] sm:$0xff] %v220_v1  ;;  %v224_v3 = vld [vmem:[%s1879_s11 + $0x28] sm:$0xff] }
  0x1a   : > { %223 = vst [vmem:[%s1884_s12 + $0x10] sm:$0xff] %v222_v2  ;;  %v226_v4 = vld [vmem:[%s1879_s11 + $0x40] sm:$0xff]  ;;  %v228_v5 = vld [vmem:[%s1879_s11 + $0x48] sm:$0xff]  ;;  %225 = vst [vmem:[%s1884_s12 + $0x18] sm:$0xff] %v224_v3 }
  0x1b   : > { %227 = vst [vmem:[%s1884_s12 + $0x20] sm:$0xff] %v226_v4  ;;  %229 = vst [vmem:[%s1884_s12 + $0x28] sm:$0xff] %v228_v5  ;;  %v230_v6 = vld [vmem:[%s1879_s11 + $0x60] sm:$0xff]  ;;  %v232_v7 = vld [vmem:[%s1879_s11 + $0x68] sm:$0xff] }
  0x1c   : > { %v234_v8 = vld [vmem:[%s1879_s11 + $0x80] sm:$0xff]  ;;  %231 = vst [vmem:[%s1884_s12 + $0x30] sm:$0xff] %v230_v6  ;;  %233 = vst [vmem:[%s1884_s12 + $0x38] sm:$0xff] %v232_v7  ;;  %v236_v9 = vld [vmem:[%s1879_s11 + $0x88] sm:$0xff] }
  0x1d   : > { %235 = vst [vmem:[%s1884_s12 + $0x40] sm:$0xff] %v234_v8  ;;  %v238_v10 = vld [vmem:[%s1879_s11 + $0xa0] sm:$0xff]  ;;  %v240_v11 = vld [vmem:[%s1879_s11 + $0xa8] sm:$0xff]  ;;  %237 = vst [vmem:[%s1884_s12 + $0x48] sm:$0xff] %v236_v9 }
  0x1e   : > { %239 = vst [vmem:[%s1884_s12 + $0x50] sm:$0xff] %v238_v10  ;;  %241 = vst [vmem:[%s1884_s12 + $0x58] sm:$0xff] %v240_v11  ;;  %v242_v12 = vld [vmem:[%s1879_s11 + $0xc0] sm:$0xff]  ;;  %v244_v13 = vld [vmem:[%s1879_s11 + $0xc8] sm:$0xff] }
  0x1f   : > { %v246_v14 = vld [vmem:[%s1879_s11 + $0xe0] sm:$0xff]  ;;  %243 = vst [vmem:[%s1884_s12 + $0x60] sm:$0xff] %v242_v12  ;;  %245 = vst [vmem:[%s1884_s12 + $0x68] sm:$0xff] %v244_v13  ;;  %v248_v15 = vld [vmem:[%s1879_s11 + $0xe8] sm:$0xff] }
  0x20   : > { %247 = vst [vmem:[%s1884_s12 + $0x70] sm:$0xff] %v246_v14  ;;  %v250_v16 = vld [vmem:[%s1879_s11 + $0x100] sm:$0xff]  ;;  %v252_v17 = vld [vmem:[%s1879_s11 + $0x108] sm:$0xff]  ;;  %249 = vst [vmem:[%s1884_s12 + $0x78] sm:$0xff] %v248_v15 }
  0x21   : > { %251 = vst [vmem:[%s1884_s12 + $0x80] sm:$0xff] %v250_v16  ;;  %253 = vst [vmem:[%s1884_s12 + $0x88] sm:$0xff] %v252_v17  ;;  %v254_v18 = vld [vmem:[%s1879_s11 + $0x120] sm:$0xff]  ;;  %v256_v19 = vld [vmem:[%s1879_s11 + $0x128] sm:$0xff] }
  0x22   : > { %v258_v20 = vld [vmem:[%s1879_s11 + $0x140] sm:$0xff]  ;;  %255 = vst [vmem:[%s1884_s12 + $0x90] sm:$0xff] %v254_v18  ;;  %257 = vst [vmem:[%s1884_s12 + $0x98] sm:$0xff] %v256_v19  ;;  %v260_v21 = vld [vmem:[%s1879_s11 + $0x148] sm:$0xff] }
  0x23   : > { %259 = vst [vmem:[%s1884_s12 + $0xa0] sm:$0xff] %v258_v20  ;;  %v262_v22 = vld [vmem:[%s1879_s11 + $0x160] sm:$0xff]  ;;  %v264_v23 = vld [vmem:[%s1879_s11 + $0x168] sm:$0xff]  ;;  %261 = vst [vmem:[%s1884_s12 + $0xa8] sm:$0xff] %v260_v21 }
  0x24   : > { %263 = vst [vmem:[%s1884_s12 + $0xb0] sm:$0xff] %v262_v22  ;;  %265 = vst [vmem:[%s1884_s12 + $0xb8] sm:$0xff] %v264_v23  ;;  %v266_v24 = vld [vmem:[%s1879_s11 + $0x180] sm:$0xff]  ;;  %v268_v25 = vld [vmem:[%s1879_s11 + $0x188] sm:$0xff] }
  0x25   : > { %v270_v26 = vld [vmem:[%s1879_s11 + $0x1a0] sm:$0xff]  ;;  %267 = vst [vmem:[%s1884_s12 + $0xc0] sm:$0xff] %v266_v24  ;;  %269 = vst [vmem:[%s1884_s12 + $0xc8] sm:$0xff] %v268_v25  ;;  %v272_v27 = vld [vmem:[%s1879_s11 + $0x1a8] sm:$0xff] }
  0x26   : > { %271 = vst [vmem:[%s1884_s12 + $0xd0] sm:$0xff] %v270_v26  ;;  %v274_v28 = vld [vmem:[%s1879_s11 + $0x1c0] sm:$0xff]  ;;  %v276_v29 = vld [vmem:[%s1879_s11 + $0x1c8] sm:$0xff]  ;;  %273 = vst [vmem:[%s1884_s12 + $0xd8] sm:$0xff] %v272_v27 }
  0x27   : > { %275 = vst [vmem:[%s1884_s12 + $0xe0] sm:$0xff] %v274_v28  ;;  %277 = vst [vmem:[%s1884_s12 + $0xe8] sm:$0xff] %v276_v29  ;;  %v278_v30 = vld [vmem:[%s1879_s11 + $0x1e0] sm:$0xff]  ;;  %v280_v31 = vld [vmem:[%s1879_s11 + $0x1e8] sm:$0xff] }
  0x28   : > { %279 = vst [vmem:[%s1884_s12 + $0xf0] sm:$0xff] %v278_v30  ;;  %281 = vst [vmem:[%s1884_s12 + $0xf8] sm:$0xff] %v280_v31 }
  0x29 PF: > { %p1395_p7 = scmp.ge.s32.totalorder %s1792_s21, 1  ;;  %p299_p8 = scmp.lt.s32.totalorder %s1792_s21, 9 }
  0x2b   : > { %p300_p9 = pnand %p1395_p7, %p299_p8 }
  0x2c   : > { %s1397_s13 = sshll.u32 (!%p300_p9), %s1776_s17, 6  ;;  %p361_p10 = scmp.lt.s32.totalorder (!%p300_p9), %s1780_s18, 3 }
  0x2d   : > { %303 = sbr.rel (%p300_p9) target bundleno = 428 (0x1ac), region = 47  ;;  %p363_p11 = scmp.lt.s32.totalorder (!%p300_p9), %s1397_s13, 127 }
  0x2e   : > { %p1468_p12 = scmp.ne.s32.totalorder (!%p300_p9), %s1776_s17, 0 }
  0x34   : > { %s2207_s18 = smov (!%p361_p10, %s1780_s18), 3  ;;  %s2209_s13 = smov (!%p363_p11, %s1397_s13), 127 }
  0x35   : > { %s1398_s14 = sshll.u32 %s2207_s18, 7  ;;  %s1402_s24 = sshll.u32 %s2207_s18, 3 }
  0x36   : > { %s366_s25 = sadd.s32 %s1398_s14, %s2209_s13  ;;  %s1955_s29 = scalar_lea.vmem %s2191_s2, %s1398_s14 }
  0x37   : > { %s1399_s30 = sshll.u32 %s366_s25, 2  ;;  %s1960_s7 = scalar_lea.vmem %s2192_s3, %s1402_s24 }
  0x38   : > { %s1965_s10 = scalar_lea.vmem %s2190_s1, %s1399_s30  ;;  %s1970_s18 = scalar_lea.vmem %s2193_s4, %s1402_s24 }
  0x39   : > { %v1658_v32 = vld [vmem:[%s1965_s10 + $0x40] sm:$0xff]   ;;  %v1662_v36 = vld [vmem:[%s1965_s10 + $0x48] sm:$0xff]   ;;  %v1666_v40 = vld [vmem:[%s1965_s10 + $0x50] sm:$0xff]   ;;  %s306_s13 = sand.u32 1, %s1768_s15  }
  0x3a   : > { %v1659_v33 = vld [vmem:[%s1965_s10 + $0xc0] sm:$0xff]   ;;  %1474 = vmatprep.subr.bf16.mxu0 %v1658_v32  ;;  %v1663_v37 = vld [vmem:[%s1965_s10 + $0xc8] sm:$0xff]   ;;  %v1667_v41 = vld [vmem:[%s1965_s10 + $0xd0] sm:$0xff]   ;;  %s1396_s14 = sshll.u32 %s306_s13, 8 }
  0x3b   : > { %v1660_v34 = vld [vmem:[%s1965_s10] sm:$0xff]   ;;  %1538 = vmatprep.subr.bf16.mxu1 %v1659_v33  ;;  %v1664_v38 = vld [vmem:[%s1965_s10 + $0x8] sm:$0xff]   ;;  %v1668_v42 = vld [vmem:[%s1965_s10 + $0x10] sm:$0xff]   ;;  %s2005_s15 = scalar_lea.vmem [#allocation2], %s1396_s14 }
  0x3c   : > { %v1661_v35 = vld [vmem:[%s1965_s10 + $0x80] sm:$0xff]   ;;  %1475 = vmatpush3.bf16.msra.mxu0 %v1660_v34  ;;  %v1665_v39 = vld [vmem:[%s1965_s10 + $0x88] sm:$0xff]   ;;  %v1669_v43 = vld [vmem:[%s1965_s10 + $0x90] sm:$0xff]  }
  0x3d   : > { %1539 = vmatpush3.bf16.msra.mxu1 %v1661_v35  ;;  %1476 = vmatprep.subr.bf16.mxu0 %v1662_v36  ;;  %v1670_v44 = vld [vmem:[%s1965_s10 + $0x58] sm:$0xff]   ;;  %v1674_v48 = vld [vmem:[%s1965_s10 + $0x60] sm:$0xff]   ;;  %v1678_v52 = vld [vmem:[%s1965_s10 + $0x68] sm:$0xff]  }
  0x3e   : > { %1540 = vmatprep.subr.bf16.mxu1 %v1663_v37  ;;  %v1671_v45 = vld [vmem:[%s1965_s10 + $0xd8] sm:$0xff]   ;;  %v1675_v49 = vld [vmem:[%s1965_s10 + $0xe0] sm:$0xff]   ;;  %v1679_v53 = vld [vmem:[%s1965_s10 + $0xe8] sm:$0xff]  }
  0x3f   : > { %v1672_v46 = vld [vmem:[%s1965_s10 + $0x18] sm:$0xff]   ;;  %v1676_v50 = vld [vmem:[%s1965_s10 + $0x20] sm:$0xff]   ;;  %v1680_v54 = vld [vmem:[%s1965_s10 + $0x28] sm:$0xff]  }
  0x40   : > { %1477 = vmatpush3.bf16.msra.mxu0 %v1664_v38  ;;  %v1673_v47 = vld [vmem:[%s1965_s10 + $0x98] sm:$0xff]   ;;  %v1677_v51 = vld [vmem:[%s1965_s10 + $0xa0] sm:$0xff]   ;;  %v1681_v55 = vld [vmem:[%s1965_s10 + $0xa8] sm:$0xff]  }
  0x41   : > { %1541 = vmatpush3.bf16.msra.mxu1 %v1665_v39  ;;  %1478 = vmatprep.subr.bf16.mxu0 %v1666_v40  ;;  %v1682_v56 = vld [vmem:[%s1965_s10 + $0x70] sm:$0xff]   ;;  %v1686_v60 = vld [vmem:[%s1965_s10 + $0x78] sm:$0xff]  }
  0x42   : > { %1542 = vmatprep.subr.bf16.mxu1 %v1667_v41  ;;  %v1683_v57 = vld [vmem:[%s1965_s10 + $0xf0] sm:$0xff]   ;;  %v1687_v61 = vld [vmem:[%s1965_s10 + $0xf8] sm:$0xff]  }
  0x43   : > { %v1684_v58 = vld [vmem:[%s1965_s10 + $0x30] sm:$0xff]   ;;  %v1688_v62 = vld [vmem:[%s1965_s10 + $0x38] sm:$0xff]  }
  0x44   : > { %1479 = vmatpush3.bf16.msra.mxu0 %v1668_v42  ;;  %v1685_v59 = vld [vmem:[%s1965_s10 + $0xb0] sm:$0xff]   ;;  %v1689_v63 = vld [vmem:[%s1965_s10 + $0xb8] sm:$0xff]  }
  0x45   : > { %1543 = vmatpush3.bf16.msra.mxu1 %v1669_v43  ;;  %1480 = vmatprep.subr.bf16.mxu0 %v1670_v44  ;;  %v1690_v0 = vld [vmem:[%s2005_s15] ss:$16 sps:$4 sm:$0xff]   ;;  %v1692_v1 = vld [vmem:[%s2005_s15 + $0x4] ss:$16 sps:$4 sm:$0xff]   ;;  %v1693_v2 = vld [vmem:[%s2005_s15 + $0x8] ss:$16 sps:$4 sm:$0xff]  }
  0x46   : > { %1544 = vmatprep.subr.bf16.mxu1 %v1671_v45  ;;  %v1695_v3 = vld [vmem:[%s2005_s15 + $0xc] ss:$16 sps:$4 sm:$0xff]   ;;  %875 = vmatprep.mubr.bf16.mxu0 %v1692_v1  ;;  %v1696_v4 = vld [vmem:[%s2005_s15 + $0x24] ss:$16 sps:$4 sm:$0xff]   ;;  %v1700_v6 = vld [vmem:[%s2005_s15 + $0x20] ss:$16 sps:$4 sm:$0xff]  }
  0x47   : > { %972 = vmatprep.mubr.bf16.mxu1 %v1695_v3  ;;  %v1698_v5 = vld [vmem:[%s2005_s15 + $0x2c] ss:$16 sps:$4 sm:$0xff]   ;;  %v1701_v7 = vld [vmem:[%s2005_s15 + $0x28] ss:$16 sps:$4 sm:$0xff]   ;;  %v1702_v8 = vld [vmem:[%s2005_s15 + $0x44] ss:$16 sps:$4 sm:$0xff]  }
  0x48   : > { %1481 = vmatpush3.bf16.msra.mxu0 %v1672_v46  ;;  %v1704_v9 = vld [vmem:[%s2005_s15 + $0x4c] ss:$16 sps:$4 sm:$0xff]   ;;  %v1706_v10 = vld [vmem:[%s2005_s15 + $0x40] ss:$16 sps:$4 sm:$0xff]   ;;  %v1707_v11 = vld [vmem:[%s2005_s15 + $0x48] ss:$16 sps:$4 sm:$0xff]  }
  0x49   : > { %1545 = vmatpush3.bf16.msra.mxu1 %v1673_v47  ;;  %1482 = vmatprep.subr.bf16.mxu0 %v1674_v48  ;;  %v1708_v12 = vld [vmem:[%s2005_s15 + $0x64] ss:$16 sps:$4 sm:$0xff]   ;;  %v1710_v13 = vld [vmem:[%s2005_s15 + $0x6c] ss:$16 sps:$4 sm:$0xff]   ;;  %v1712_v14 = vld [vmem:[%s2005_s15 + $0x60] ss:$16 sps:$4 sm:$0xff]  }
  0x4a   : > { %1546 = vmatprep.subr.bf16.mxu1 %v1675_v49  ;;  %v1713_v15 = vld [vmem:[%s2005_s15 + $0x68] ss:$16 sps:$4 sm:$0xff]   ;;  %v1714_v16 = vld [vmem:[%s2005_s15 + $0x84] ss:$16 sps:$4 sm:$0xff]   ;;  %v1716_v17 = vld [vmem:[%s2005_s15 + $0x8c] ss:$16 sps:$4 sm:$0xff]  }
  0x4b   : > { %v1718_v18 = vld [vmem:[%s2005_s15 + $0x80] ss:$16 sps:$4 sm:$0xff]   ;;  %v1719_v19 = vld [vmem:[%s2005_s15 + $0x88] ss:$16 sps:$4 sm:$0xff]   ;;  %v1720_v20 = vld [vmem:[%s2005_s15 + $0xa4] ss:$16 sps:$4 sm:$0xff]  }
  0x4c   : > { %1483 = vmatpush3.bf16.msra.mxu0 %v1676_v50  ;;  %v1722_v21 = vld [vmem:[%s2005_s15 + $0xac] ss:$16 sps:$4 sm:$0xff]   ;;  %v1724_v22 = vld [vmem:[%s2005_s15 + $0xa0] ss:$16 sps:$4 sm:$0xff]   ;;  %v1725_v23 = vld [vmem:[%s2005_s15 + $0xa8] ss:$16 sps:$4 sm:$0xff]  }
  0x4d   : > { %1547 = vmatpush3.bf16.msra.mxu1 %v1677_v51  ;;  %1484 = vmatprep.subr.bf16.mxu0 %v1678_v52  ;;  %v1726_v24 = vld [vmem:[%s2005_s15 + $0xc4] ss:$16 sps:$4 sm:$0xff]   ;;  %v1728_v25 = vld [vmem:[%s2005_s15 + $0xcc] ss:$16 sps:$4 sm:$0xff]   ;;  %v1730_v26 = vld [vmem:[%s2005_s15 + $0xc0] ss:$16 sps:$4 sm:$0xff]  }
  0x4e   : > { %1548 = vmatprep.subr.bf16.mxu1 %v1679_v53  ;;  %v1731_v27 = vld [vmem:[%s2005_s15 + $0xc8] ss:$16 sps:$4 sm:$0xff]   ;;  %v1732_v28 = vld [vmem:[%s2005_s15 + $0xe4] ss:$16 sps:$4 sm:$0xff]   ;;  %v1734_v29 = vld [vmem:[%s2005_s15 + $0xec] ss:$16 sps:$4 sm:$0xff]  }
  0x4f   : > { %v1736_v30 = vld [vmem:[%s2005_s15 + $0xe0] ss:$16 sps:$4 sm:$0xff]   ;;  %v1737_v31 = vld [vmem:[%s2005_s15 + $0xe8] ss:$16 sps:$4 sm:$0xff]  }
  0x50   : > { %1485 = vmatpush3.bf16.msra.mxu0 %v1680_v54 }
  0x51   : > { %1549 = vmatpush3.bf16.msra.mxu1 %v1681_v55  ;;  %1486 = vmatprep.subr.bf16.mxu0 %v1682_v56 }
  0x52   : > { %1550 = vmatprep.subr.bf16.mxu1 %v1683_v57 }
  0x54   : > { %1487 = vmatpush3.bf16.msra.mxu0 %v1684_v58 }
  0x55   : > { %1551 = vmatpush3.bf16.msra.mxu1 %v1685_v59  ;;  %1488 = vmatprep.subr.bf16.mxu0 %v1686_v60 }
  0x56   : > { %1552 = vmatprep.subr.bf16.mxu1 %v1687_v61 }
  0x58   : > { %1489 = vmatpush3.bf16.msra.mxu0 %v1688_v62 }
  0x59   : > { %1553 = vmatpush3.bf16.msra.mxu1 %v1689_v63 }
  0x5b   : > { %876 = vmatmul.mubr.bf16.vlgmr.msra.gmra.mrb[0].mxu0 %v1690_v0 }
  0x5c   : > { %973 = vmatmul.mubr.bf16.vlgmr.msra.gmra.mrb[0].mxu1 %v1693_v2  ;;  %883 = vmatprep.mubr.bf16.mxu0 %v1696_v4 }
  0x5d   : > { %980 = vmatprep.mubr.bf16.mxu1 %v1698_v5 }
  0x63   : > { %884 = vmatmul.mubr.bf16.gmra.mrb[4].mxu0 %v1700_v6 }
  0x64   : > { %981 = vmatmul.mubr.bf16.gmra.mrb[4].mxu1 %v1701_v7  ;;  %891 = vmatprep.mubr.bf16.mxu0 %v1702_v8 }
  0x65   : > { %988 = vmatprep.mubr.bf16.mxu1 %v1704_v9 }
  0x6b   : > { %892 = vmatmul.mubr.bf16.gmra.mrb[8].mxu0 %v1706_v10 }
  0x6c   : > { %989 = vmatmul.mubr.bf16.gmra.mrb[8].mxu1 %v1707_v11  ;;  %899 = vmatprep.mubr.bf16.mxu0 %v1708_v12 }
  0x6d   : > { %996 = vmatprep.mubr.bf16.mxu1 %v1710_v13 }
  0x73   : > { %900 = vmatmul.mubr.bf16.gmra.mrb[12].mxu0 %v1712_v14 }
  0x74   : > { %997 = vmatmul.mubr.bf16.gmra.mrb[12].mxu1 %v1713_v15  ;;  %907 = vmatprep.mubr.bf16.mxu0 %v1714_v16 }
  0x75   : > { %1004 = vmatprep.mubr.bf16.mxu1 %v1716_v17 }
  0x7b   : > { %908 = vmatmul.mubr.bf16.gmra.mrb[16].mxu0 %v1718_v18 }
  0x7c   : > { %1005 = vmatmul.mubr.bf16.gmra.mrb[16].mxu1 %v1719_v19  ;;  %915 = vmatprep.mubr.bf16.mxu0 %v1720_v20 }
  0x7d   : > { %1012 = vmatprep.mubr.bf16.mxu1 %v1722_v21 }
  0x83   : > { %916 = vmatmul.mubr.bf16.gmra.mrb[20].mxu0 %v1724_v22 }
  0x84   : > { %1013 = vmatmul.mubr.bf16.gmra.mrb[20].mxu1 %v1725_v23  ;;  %923 = vmatprep.mubr.bf16.mxu0 %v1726_v24 }
  0x85   : > { %1020 = vmatprep.mubr.bf16.mxu1 %v1728_v25 }
  0x8b   : > { %924 = vmatmul.mubr.bf16.gmra.mrb[24].mxu0 %v1730_v26 }
  0x8c   : > { %1021 = vmatmul.mubr.bf16.gmra.mrb[24].mxu1 %v1731_v27  ;;  %931 = vmatprep.mubr.bf16.mxu0 %v1732_v28 }
  0x8d   : > { %1028 = vmatprep.mubr.bf16.mxu1 %v1734_v29 }
  0x93   : > { %932 = vmatmul.mubr.bf16.gmra.mrb[28].mxu0 %v1736_v30 }
  0x94   : > { %1029 = vmatmul.mubr.bf16.gmra.mrb[28].mxu1 %v1737_v31 }
 0x12e   : > { %v1490_v32 = vpop.f32.mrb[0].mxu0 }
 0x12f   : > { %v1554_v33 = vpop.f32.mrb[0].mxu1  ;;  %v1491_v34 = vpop.f32.mrb[1].mxu0 }
 0x130   : > { %v1492_v35 = vadd.f32 %v1491_v34, %v1490_v32  ;;  %v1555_v36 = vpop.f32.mrb[1].mxu1  ;;  %v1493_v37 = vpop.f32.mrb[2].mxu0 }
 0x131   : > { %v1556_v38 = vadd.f32 %v1555_v36, %v1554_v33  ;;  %v1557_v39 = vpop.f32.mrb[2].mxu1  ;;  %v1494_v40 = vpop.f32.mrb[3].mxu0 }
 0x132   : > { %v1495_v41 = vadd.f32 %v1494_v40, %v1493_v37  ;;  %v1558_v42 = vpop.f32.mrb[3].mxu1 }
 0x133   : > { %v2039_v43 = vadd.f32 %v1556_v38, %v1492_v35  ;;  %v1559_v44 = vadd.f32 %v1558_v42, %v1557_v39 }
 0x135   : > { %v2041_v45 = vadd.f32 %v1559_v44, %v1495_v41  ;;  %1041 = vst [vmem:[%s1955_s29] sm:$0xff] (!%p1468_p12), %v2039_v43 }
 0x136   : > { %v1496_v46 = vpop.f32.mrb[4].mxu0 }
 0x137   : > { %v1560_v47 = vpop.f32.mrb[4].mxu1  ;;  %v1497_v48 = vpop.f32.mrb[5].mxu0  ;;  %1042 = vst [vmem:[%s1955_s29 + $0x8] sm:$0xff] (!%p1468_p12), %v2041_v45 }
 0x138   : > { %v1498_v49 = vadd.f32 %v1497_v48, %v1496_v46  ;;  %v1561_v50 = vpop.f32.mrb[5].mxu1  ;;  %v1499_v51 = vpop.f32.mrb[6].mxu0 }
 0x139   : > { %v1562_v52 = vadd.f32 %v1561_v50, %v1560_v47  ;;  %v1563_v53 = vpop.f32.mrb[6].mxu1  ;;  %v1500_v54 = vpop.f32.mrb[7].mxu0 }
 0x13a   : > { %v1501_v55 = vadd.f32 %v1500_v54, %v1499_v51  ;;  %v1564_v56 = vpop.f32.mrb[7].mxu1 }
 0x13b   : > { %v2043_v57 = vadd.f32 %v1562_v52, %v1498_v49  ;;  %v1565_v58 = vadd.f32 %v1564_v56, %v1563_v53 }
 0x13d   : > { %v2045_v59 = vadd.f32 %v1565_v58, %v1501_v55  ;;  %1043 = vst [vmem:[%s1955_s29 + $0x10] sm:$0xff] (!%p1468_p12), %v2043_v57 }
 0x13e   : > { %v1502_v60 = vpop.f32.mrb[8].mxu0 }
 0x13f   : > { %v1566_v61 = vpop.f32.mrb[8].mxu1  ;;  %v1503_v62 = vpop.f32.mrb[9].mxu0  ;;  %1044 = vst [vmem:[%s1955_s29 + $0x18] sm:$0xff] (!%p1468_p12), %v2045_v59 }
 0x140   : > { %v1504_v63 = vadd.f32 %v1503_v62, %v1502_v60  ;;  %v1567_v0 = vpop.f32.mrb[9].mxu1  ;;  %v1505_v1 = vpop.f32.mrb[10].mxu0 }
 0x141   : > { %v1568_v2 = vadd.f32 %v1567_v0, %v1566_v61  ;;  %v1569_v3 = vpop.f32.mrb[10].mxu1  ;;  %v1506_v4 = vpop.f32.mrb[11].mxu0 }
 0x142   : > { %v1507_v5 = vadd.f32 %v1506_v4, %v1505_v1  ;;  %v1570_v6 = vpop.f32.mrb[11].mxu1 }
 0x143   : > { %v2047_v7 = vadd.f32 %v1568_v2, %v1504_v63  ;;  %v1571_v8 = vadd.f32 %v1570_v6, %v1569_v3 }
 0x145   : > { %v2049_v9 = vadd.f32 %v1571_v8, %v1507_v5  ;;  %1045 = vst [vmem:[%s1955_s29 + $0x20] sm:$0xff] (!%p1468_p12), %v2047_v7 }
 0x146   : > { %v1508_v10 = vpop.f32.mrb[12].mxu0 }
 0x147   : > { %v1572_v11 = vpop.f32.mrb[12].mxu1  ;;  %v1509_v12 = vpop.f32.mrb[13].mxu0  ;;  %1046 = vst [vmem:[%s1955_s29 + $0x28] sm:$0xff] (!%p1468_p12), %v2049_v9 }
 0x148   : > { %v1510_v13 = vadd.f32 %v1509_v12, %v1508_v10  ;;  %v1573_v14 = vpop.f32.mrb[13].mxu1  ;;  %v1511_v15 = vpop.f32.mrb[14].mxu0 }
 0x149   : > { %v1574_v16 = vadd.f32 %v1573_v14, %v1572_v11  ;;  %v1575_v17 = vpop.f32.mrb[14].mxu1  ;;  %v1512_v18 = vpop.f32.mrb[15].mxu0 }
 0x14a   : > { %v1513_v19 = vadd.f32 %v1512_v18, %v1511_v15  ;;  %v1576_v20 = vpop.f32.mrb[15].mxu1 }
 0x14b   : > { %v2051_v21 = vadd.f32 %v1574_v16, %v1510_v13  ;;  %v1577_v22 = vadd.f32 %v1576_v20, %v1575_v17 }
 0x14d   : > { %v2053_v23 = vadd.f32 %v1577_v22, %v1513_v19  ;;  %1047 = vst [vmem:[%s1955_s29 + $0x30] sm:$0xff] (!%p1468_p12), %v2051_v21 }
 0x14e   : > { %v1514_v24 = vpop.f32.mrb[16].mxu0 }
 0x14f   : > { %v1578_v25 = vpop.f32.mrb[16].mxu1  ;;  %v1515_v26 = vpop.f32.mrb[17].mxu0  ;;  %1048 = vst [vmem:[%s1955_s29 + $0x38] sm:$0xff] (!%p1468_p12), %v2053_v23 }
 0x150   : > { %v1516_v27 = vadd.f32 %v1515_v26, %v1514_v24  ;;  %v1579_v28 = vpop.f32.mrb[17].mxu1  ;;  %v1517_v29 = vpop.f32.mrb[18].mxu0 }
 0x151   : > { %v1580_v30 = vadd.f32 %v1579_v28, %v1578_v25  ;;  %v1581_v31 = vpop.f32.mrb[18].mxu1  ;;  %v1518_v32 = vpop.f32.mrb[19].mxu0 }
 0x152   : > { %v1519_v33 = vadd.f32 %v1518_v32, %v1517_v29  ;;  %v1582_v34 = vpop.f32.mrb[19].mxu1 }
 0x153   : > { %v2055_v35 = vadd.f32 %v1580_v30, %v1516_v27  ;;  %v1583_v36 = vadd.f32 %v1582_v34, %v1581_v31 }
 0x155   : > { %v2057_v37 = vadd.f32 %v1583_v36, %v1519_v33  ;;  %1049 = vst [vmem:[%s1955_s29 + $0x40] sm:$0xff] (!%p1468_p12), %v2055_v35 }
 0x156   : > { %v1520_v38 = vpop.f32.mrb[20].mxu0 }
 0x157   : > { %v1584_v39 = vpop.f32.mrb[20].mxu1  ;;  %v1521_v40 = vpop.f32.mrb[21].mxu0  ;;  %1050 = vst [vmem:[%s1955_s29 + $0x48] sm:$0xff] (!%p1468_p12), %v2057_v37 }
 0x158   : > { %v1522_v41 = vadd.f32 %v1521_v40, %v1520_v38  ;;  %v1585_v42 = vpop.f32.mrb[21].mxu1  ;;  %v1523_v44 = vpop.f32.mrb[22].mxu0 }
 0x159   : > { %v1586_v46 = vadd.f32 %v1585_v42, %v1584_v39  ;;  %v1587_v47 = vpop.f32.mrb[22].mxu1  ;;  %v1524_v48 = vpop.f32.mrb[23].mxu0 }
 0x15a   : > { %v1525_v49 = vadd.f32 %v1524_v48, %v1523_v44  ;;  %v1588_v50 = vpop.f32.mrb[23].mxu1 }
 0x15b   : > { %v2059_v51 = vadd.f32 %v1586_v46, %v1522_v41  ;;  %v1589_v52 = vadd.f32 %v1588_v50, %v1587_v47 }
 0x15d   : > { %v2061_v53 = vadd.f32 %v1589_v52, %v1525_v49  ;;  %1051 = vst [vmem:[%s1955_s29 + $0x50] sm:$0xff] (!%p1468_p12), %v2059_v51 }
 0x15e   : > { %v1526_v54 = vpop.f32.mrb[24].mxu0 }
 0x15f   : > { %v1590_v55 = vpop.f32.mrb[24].mxu1  ;;  %v1527_v56 = vpop.f32.mrb[25].mxu0  ;;  %1052 = vst [vmem:[%s1955_s29 + $0x58] sm:$0xff] (!%p1468_p12), %v2061_v53 }
 0x160   : > { %v1528_v58 = vadd.f32 %v1527_v56, %v1526_v54  ;;  %v1591_v60 = vpop.f32.mrb[25].mxu1  ;;  %v1529_v61 = vpop.f32.mrb[26].mxu0 }
 0x161   : > { %v1592_v62 = vadd.f32 %v1591_v60, %v1590_v55  ;;  %v1593_v63 = vpop.f32.mrb[26].mxu1  ;;  %v1530_v0 = vpop.f32.mrb[27].mxu0 }
 0x162   : > { %v1531_v1 = vadd.f32 %v1530_v0, %v1529_v61  ;;  %v1594_v2 = vpop.f32.mrb[27].mxu1 }
 0x163   : > { %v2063_v3 = vadd.f32 %v1592_v62, %v1528_v58  ;;  %v1595_v4 = vadd.f32 %v1594_v2, %v1593_v63 }
 0x165   : > { %v2065_v5 = vadd.f32 %v1595_v4, %v1531_v1  ;;  %1053 = vst [vmem:[%s1955_s29 + $0x60] sm:$0xff] (!%p1468_p12), %v2063_v3 }
 0x166   : > { %v1532_v6 = vpop.f32.mrb[28].mxu0 }
 0x167   : > { %v1596_v8 = vpop.f32.mrb[28].mxu1  ;;  %v1533_v10 = vpop.f32.mrb[29].mxu0  ;;  %1040 = sbr.rel (%p1468_p12) target bundleno = 368 (0x170), region = 55  ;;  %1054 = vst [vmem:[%s1955_s29 + $0x68] sm:$0xff] (!%p1468_p12), %v2065_v5 }
 0x168   : > { %v1534_v11 = vadd.f32 %v1533_v10, %v1532_v6  ;;  %v1597_v12 = vpop.f32.mrb[29].mxu1  ;;  %v1535_v13 = vpop.f32.mrb[30].mxu0 }
 0x169   : > { %v1598_v14 = vadd.f32 %v1597_v12, %v1596_v8  ;;  %v1599_v15 = vpop.f32.mrb[30].mxu1  ;;  %v1536_v16 = vpop.f32.mrb[31].mxu0 }
 0x16a   : > { %v1537_v17 = vadd.f32 %v1536_v16, %v1535_v13  ;;  %v1600_v18 = vpop.f32.mrb[31].mxu1 }
 0x16b   : > { %v1031_v19 = vadd.f32 %v1598_v14, %v1534_v11  ;;  %v1601_v20 = vadd.f32 %v1600_v18, %v1599_v15 }
 0x16d   : > { %v2067_v22 = vadd.f32 %v1601_v20, %v1537_v17  ;;  %1055 = vst [vmem:[%s1955_s29 + $0x70] sm:$0xff] (!%p1468_p12), %v1031_v19 }
 0x16f   : > { %1056 = vst [vmem:[%s1955_s29 + $0x78] sm:$0xff] %v2067_v22 }
 0x170 PF: > { %p1469_p13 = scmp.le.s32.totalorder %s1776_s17, 0 }
 0x171   : > { %v1061_v24 = vld [vmem:[%s1955_s29] sm:$0xff] (!%p1469_p13)  ;;  %v1062_v25 = vld [vmem:[%s1955_s29 + $0x8] sm:$0xff] (!%p1469_p13)  ;;  %v1063_v26 = vld [vmem:[%s1955_s29 + $0x10] sm:$0xff] (!%p1469_p13) }
 0x172   : > { %1060 = sbr.rel (%p1469_p13) target bundleno = 380 (0x17c), region = 59  ;;  %v1077_v27 = vadd.f32 (!%p1469_p13), %v1061_v24, %v2039_v43  ;;  %v1078_v28 = vadd.f32 (!%p1469_p13), %v1062_v25, %v2041_v45  ;;  %v1079_v29 = vadd.f32 (!%p1469_p13), %v1063_v26, %v2043_v57  ;;  %v1064_v30 = vld [vmem:[%s1955_s29 + $0x18] sm:$0xff] (!%p1469_p13)  ;;  %v1065_v31 = vld [vmem:[%s1955_s29 + $0x20] sm:$0xff] (!%p1469_p13)  ;;  %v1066_v32 = vld [vmem:[%s1955_s29 + $0x28] sm:$0xff] (!%p1469_p13) }
 0x173   : > { %v1080_v33 = vadd.f32 (!%p1469_p13), %v1064_v30, %v2045_v59  ;;  %v1081_v34 = vadd.f32 (!%p1469_p13), %v1065_v31, %v2047_v7  ;;  %v1082_v36 = vadd.f32 (!%p1469_p13), %v1066_v32, %v2049_v9  ;;  %v1067_v43 = vld [vmem:[%s1955_s29 + $0x30] sm:$0xff] (!%p1469_p13)  ;;  %v1068_v38 = vld [vmem:[%s1955_s29 + $0x38] sm:$0xff] (!%p1469_p13)  ;;  %v1069_v45 = vld [vmem:[%s1955_s29 + $0x40] sm:$0xff] (!%p1469_p13) }
 0x174   : > { %1093 = vst [vmem:[%s1955_s29] sm:$0xff] (!%p1469_p13), %v1077_v27  ;;  %1094 = vst [vmem:[%s1955_s29 + $0x8] sm:$0xff] (!%p1469_p13), %v1078_v28  ;;  %v1083_v57 = vadd.f32 (!%p1469_p13), %v1067_v43, %v2051_v21  ;;  %v1084_v59 = vadd.f32 (!%p1469_p13), %v1068_v38, %v2053_v23  ;;  %v1085_v7 = vadd.f32 (!%p1469_p13), %v1069_v45, %v2055_v35  ;;  %v1070_v39 = vld [vmem:[%s1955_s29 + $0x48] sm:$0xff] (!%p1469_p13)  ;;  %v1071_v9 = vld [vmem:[%s1955_s29 + $0x50] sm:$0xff] (!%p1469_p13) }
 0x175   : > { %1095 = vst [vmem:[%s1955_s29 + $0x10] sm:$0xff] (!%p1469_p13), %v1079_v29  ;;  %v1072_v40 = vld [vmem:[%s1955_s29 + $0x58] sm:$0xff] (!%p1469_p13)  ;;  %1096 = vst [vmem:[%s1955_s29 + $0x18] sm:$0xff] (!%p1469_p13), %v1080_v33  ;;  %v1086_v41 = vadd.f32 (!%p1469_p13), %v1070_v39, %v2057_v37  ;;  %v1087_v21 = vadd.f32 (!%p1469_p13), %v1071_v9, %v2059_v51  ;;  %v1073_v42 = vld [vmem:[%s1955_s29 + $0x60] sm:$0xff] (!%p1469_p13) }
 0x176   : > { %1097 = vst [vmem:[%s1955_s29 + $0x20] sm:$0xff] (!%p1469_p13), %v1081_v34  ;;  %1098 = vst [vmem:[%s1955_s29 + $0x28] sm:$0xff] (!%p1469_p13), %v1082_v36  ;;  %v1088_v23 = vadd.f32 (!%p1469_p13), %v1072_v40, %v2061_v53  ;;  %v1074_v35 = vld [vmem:[%s1955_s29 + $0x68] sm:$0xff] (!%p1469_p13)  ;;  %v1075_v44 = vld [vmem:[%s1955_s29 + $0x70] sm:$0xff] (!%p1469_p13)  ;;  %v1089_v46 = vadd.f32 (!%p1469_p13), %v1073_v42, %v2063_v3 }
 0x177   : > { %1099 = vst [vmem:[%s1955_s29 + $0x30] sm:$0xff] (!%p1469_p13), %v1083_v57  ;;  %1100 = vst [vmem:[%s1955_s29 + $0x38] sm:$0xff] (!%p1469_p13), %v1084_v59  ;;  %v1090_v47 = vadd.f32 (!%p1469_p13), %v1074_v35, %v2065_v5  ;;  %v1091_v48 = vadd.f32 (!%p1469_p13), %v1075_v44, %v1031_v19  ;;  %v1076_v37 = vld [vmem:[%s1955_s29 + $0x78] sm:$0xff] (!%p1469_p13) }
 0x178   : > { %1101 = vst [vmem:[%s1955_s29 + $0x40] sm:$0xff] (!%p1469_p13), %v1085_v7  ;;  %1102 = vst [vmem:[%s1955_s29 + $0x48] sm:$0xff] (!%p1469_p13), %v1086_v41  ;;  %v1092_v49 = vadd.f32 (!%p1469_p13), %v1076_v37, %v2067_v22 }
 0x179   : > { %1103 = vst [vmem:[%s1955_s29 + $0x50] sm:$0xff] %v1087_v21  ;;  %1104 = vst [vmem:[%s1955_s29 + $0x58] sm:$0xff] %v1088_v23 }
 0x17a   : > { %1105 = vst [vmem:[%s1955_s29 + $0x60] sm:$0xff] %v1089_v46  ;;  %1106 = vst [vmem:[%s1955_s29 + $0x68] sm:$0xff] %v1090_v47 }
 0x17b   : > { %1107 = vst [vmem:[%s1955_s29 + $0x70] sm:$0xff] %v1091_v48  ;;  %1108 = vst [vmem:[%s1955_s29 + $0x78] sm:$0xff] %v1092_v49 }
 0x17c PF: > { %p1470_p0 = scmp.ne.s32.totalorder %s1776_s17, 1 }
 0x17e   : > { %1112 = sbr.rel (%p1470_p0) target bundleno = 428 (0x1ac), region = 63  ;;  %v1113_v50 = vld [vmem:[%s1955_s29] sm:$0xff] (!%p1470_p0)  ;;  %v1114_v51 = vld [vmem:[%s1955_s29 + $0x8] sm:$0xff] (!%p1470_p0) }
 0x17f   : > { %v1115_v52 = vld [vmem:[%s1955_s29 + $0x10] sm:$0xff] (!%p1470_p0)  ;;  %v1116_v53 = vld [vmem:[%s1955_s29 + $0x18] sm:$0xff] (!%p1470_p0)  ;;  %v1129_v54 = vadd.f32 (!%p1470_p0), %v1114_v51, %v1113_v50  ;;  %v1150_v55 = vmul.f32 (!%p1470_p0), %v1113_v50, %v1113_v50  ;;  %v1151_v56 = vmul.f32 (!%p1470_p0), %v1114_v51, %v1114_v51 }
 0x180   : > { %v1152_v58 = vmul.f32 (!%p1470_p0), %v1115_v52, %v1115_v52  ;;  %v1117_v60 = vld [vmem:[%s1955_s29 + $0x20] sm:$0xff] (!%p1470_p0)  ;;  %v1153_v62 = vmul.f32 (!%p1470_p0), %v1116_v53, %v1116_v53  ;;  %v1118_v0 = vld [vmem:[%s1955_s29 + $0x28] sm:$0xff] (!%p1470_p0) }
 0x181   : > { %v1130_v61 = vadd.f32 (!%p1470_p0), %v1129_v54, %v1115_v52  ;;  %v1166_v63 = vadd.f32 (!%p1470_p0), %v1151_v56, %v1150_v55  ;;  %v1154_v2 = vmul.f32 (!%p1470_p0), %v1117_v60, %v1117_v60  ;;  %v1119_v4 = vld [vmem:[%s1955_s29 + $0x30] sm:$0xff] (!%p1470_p0)  ;;  %v1155_v6 = vmul.f32 (!%p1470_p0), %v1118_v0, %v1118_v0  ;;  %v1120_v10 = vld [vmem:[%s1955_s29 + $0x38] sm:$0xff] (!%p1470_p0)  ;;  %v1125_v32 = vld [vmem:[%s1955_s29 + $0x60] sm:$0xff] (!%p1470_p0) }
 0x182   : > { %v1156_v12 = vmul.f32 (!%p1470_p0), %v1119_v4, %v1119_v4  ;;  %v1121_v14 = vld [vmem:[%s1955_s29 + $0x40] sm:$0xff] (!%p1470_p0)  ;;  %v1157_v16 = vmul.f32 (!%p1470_p0), %v1120_v10, %v1120_v10  ;;  %v1122_v18 = vld [vmem:[%s1955_s29 + $0x48] sm:$0xff] (!%p1470_p0)  ;;  %v1162_v45 = vmul.f32 (!%p1470_p0), %v1125_v32, %v1125_v32  ;;  %v1127_v59 = vld [vmem:[%s1955_s29 + $0x70] sm:$0xff] (!%p1470_p0) }
 0x183   : > { %v1131_v1 = vadd.f32 (!%p1470_p0), %v1130_v61, %v1116_v53  ;;  %v1167_v3 = vadd.f32 (!%p1470_p0), %v1166_v63, %v1152_v58  ;;  %v1158_v20 = vmul.f32 (!%p1470_p0), %v1121_v14, %v1121_v14  ;;  %v1123_v24 = vld [vmem:[%s1955_s29 + $0x50] sm:$0xff] (!%p1470_p0)  ;;  %v1159_v26 = vmul.f32 (!%p1470_p0), %v1122_v18, %v1122_v18  ;;  %v1124_v28 = vld [vmem:[%s1955_s29 + $0x58] sm:$0xff] (!%p1470_p0)  ;;  %v1126_v43 = vld [vmem:[%s1955_s29 + $0x68] sm:$0xff] (!%p1470_p0) }
 0x184   : > { %v1160_v30 = vmul.f32 (!%p1470_p0), %v1123_v24, %v1123_v24  ;;  %v1161_v34 = vmul.f32 (!%p1470_p0), %v1124_v28, %v1124_v28  ;;  %v1163_v39 = vmul.f32 (!%p1470_p0), %v1126_v43, %v1126_v43  ;;  %v1128_v40 = vld [vmem:[%s1955_s29 + $0x78] sm:$0xff] (!%p1470_p0)  ;;  %v1164_v21 = vmul.f32 (!%p1470_p0), %v1127_v59, %v1127_v59 }
 0x185   : > { %v1132_v5 = vadd.f32 %v1131_v1, %v1117_v60  ;;  %v1168_v8 = vadd.f32 %v1167_v3, %v1153_v62  ;;  %v1165_v35 = vmul.f32 %v1128_v40, %v1128_v40 }
 0x187   : > { %v1133_v11 = vadd.f32 %v1132_v5, %v1118_v0  ;;  %v1169_v13 = vadd.f32 %v1168_v8, %v1154_v2 }
 0x189   : > { %v1134_v15 = vadd.f32 %v1133_v11, %v1119_v4  ;;  %v1170_v17 = vadd.f32 %v1169_v13, %v1155_v6 }
 0x18b   : > { %v1135_v19 = vadd.f32 %v1134_v15, %v1120_v10  ;;  %v1171_v22 = vadd.f32 %v1170_v17, %v1156_v12 }
 0x18d   : > { %v1136_v25 = vadd.f32 %v1135_v19, %v1121_v14  ;;  %v1172_v27 = vadd.f32 %v1171_v22, %v1157_v16 }
 0x18f   : > { %v1137_v29 = vadd.f32 %v1136_v25, %v1122_v18  ;;  %v1173_v31 = vadd.f32 %v1172_v27, %v1158_v20 }
 0x191   : > { %v1138_v33 = vadd.f32 %v1137_v29, %v1123_v24  ;;  %v1174_v36 = vadd.f32 %v1173_v31, %v1159_v26 }
 0x193   : > { %v1139_v38 = vadd.f32 %v1138_v33, %v1124_v28  ;;  %v1175_v57 = vadd.f32 %v1174_v36, %v1160_v30 }
 0x195   : > { %v1140_v7 = vadd.f32 %v1139_v38, %v1125_v32  ;;  %v1176_v9 = vadd.f32 %v1175_v57, %v1161_v34 }
 0x197   : > { %v1141_v41 = vadd.f32 %v1140_v7, %v1126_v43  ;;  %v1177_v23 = vadd.f32 %v1176_v9, %v1162_v45 }
 0x199   : > { %v1142_v42 = vadd.f32 %v1141_v41, %v1127_v59  ;;  %v1178_v44 = vadd.f32 %v1177_v23, %v1163_v39 }
 0x19b   : > { %v1143_v46 = vadd.f32 %v1142_v42, %v1128_v40  ;;  %v1179_v47 = vadd.f32 %v1178_v44, %v1164_v21 }
 0x19d   : > { %v1144_v48 = vrot.slane %v1143_v46, 4  ;;  %v1180_v37 = vadd.f32 %v1179_v47, %v1165_v35 }
 0x19f   : > { %v1145_v49 = vadd.f32 %v1144_v48, %v1143_v46  ;;  %v1181_v50 = vrot.slane %v1180_v37, 4 }
 0x1a1   : > { %v1146_v51 = vrot.slane %v1145_v49, 2  ;;  %v1182_v52 = vadd.f32 %v1181_v50, %v1180_v37 }
 0x1a3   : > { %v1147_v53 = vadd.f32 %v1146_v51, %v1145_v49  ;;  %v1183_v54 = vrot.slane %v1182_v52, 2 }
 0x1a5   : > { %v1148_v55 = vrot.slane %v1147_v53, 1  ;;  %v1184_v56 = vadd.f32 %v1183_v54, %v1182_v52 }
 0x1a7   : > { %v1149_v58 = vadd.f32 %v1148_v55, %v1147_v53  ;;  %v1185_v60 = vrot.slane %v1184_v56, 1 }
 0x1a9   : > { %1187 = vst [vmem:[%s1960_s7] sm:$0xff] %v1149_v58  ;;  %v1186_v61 = vadd.f32 %v1185_v60, %v1184_v56 }
 0x1ab   : > { %1188 = vst [vmem:[%s1970_s18] sm:$0xff] %v1186_v61 }
 0x1ac PF: > { %s15_s21 = sadd.s32 1, %s1792_s21   ;;  %s2194_s15 = smov %s1772_s16 }
 0x1ad   : > { %p12_p1 = scmp.ge.s32.totalorder %s15_s21, 10   ;;  %s2195_s16 = smov %s1870_s28 }
 0x1ae   : > { %s2196_s17 = smov %s1784_s19  ;;  %s2197_s18 = smov %s1788_s20 }
 0x1af   : > { %s2198_s19 = smov %s2201_s22  ;;  %s2199_s20 = smov %s2205_s23 }
 0x1b0   :  { %14 = sbr.rel (!%p12_p1) target bundleno = 4 (0x4), region = 125 }

// kernel: generator_forward.12
= control target key start
LH: loop header
LB: loop body
LE: loop exit
PB: predicated region body
PF: predicated region fallthrough
CT: control target
= control target key end

     0   :  { %s1375_s0 = inlined_call_operand.vmem [shape: f32[512,128], index: 0, kind: input, shape index: {}]   ;;  %s1376_s1 = inlined_call_operand.vmem [shape: f32[1,128], index: 1, kind: input, shape index: {}]   ;;  %s1377_s2 = inlined_call_operand.vmem [shape: f32[1,128], index: 2, kind: input, shape index: {}]   ;;  %s1378_s3 = inlined_call_operand.vmem [shape: bf16[512,128], index: 3, kind: output, shape index: {}]  }
   0x1   :  { %v14_v0 = vld [vmem:[%s1375_s0] sm:$0xff]  ;;  %v15_v1 = vld [vmem:[%s1375_s0 + $0x8] sm:$0xff]  ;;  %v16_v6 = vld [vmem:[%s1375_s0 + $0x10] sm:$0xff] }
   0x2   :  { %v958_v2 = vld [vmem:[%s1376_s1] ss:$0 sm:$0xff]  ;;  %v17_v7 = vld [vmem:[%s1375_s0 + $0x18] sm:$0xff]  ;;  %v19_v11 = vld [vmem:[%s1375_s0 + $0x28] sm:$0xff] }
   0x3   :  { %v85_v3 = vmul.f32 %v958_v2, %v14_v0  ;;  %v86_v4 = vmul.f32 %v958_v2, %v15_v1  ;;  %v965_v5 = vld [vmem:[%s1377_s2] ss:$0 sm:$0xff]  ;;  %v87_v8 = vmul.f32 %v958_v2, %v16_v6  ;;  %v88_v9 = vmul.f32 %v958_v2, %v17_v7  ;;  %v20_v12 = vld [vmem:[%s1375_s0 + $0x30] sm:$0xff]  ;;  %v21_v17 = vld [vmem:[%s1375_s0 + $0x38] sm:$0xff] }
   0x4   :  { %v18_v10 = vld [vmem:[%s1375_s0 + $0x20] sm:$0xff]  ;;  %v90_v16 = vmul.f32 %v958_v2, %v19_v11  ;;  %v91_v20 = vmul.f32 %v958_v2, %v20_v12  ;;  %v92_v21 = vmul.f32 %v958_v2, %v21_v17  ;;  %v23_v27 = vld [vmem:[%s1375_s0 + $0x48] sm:$0xff]  ;;  %v24_v32 = vld [vmem:[%s1375_s0 + $0x50] sm:$0xff] }
   0x5   :  { %v156_v13 = vadd.f32 %v965_v5, %v85_v3  ;;  %v157_v14 = vadd.f32 %v965_v5, %v86_v4  ;;  %v89_v15 = vmul.f32 %v958_v2, %v18_v10  ;;  %v158_v18 = vadd.f32 %v965_v5, %v87_v8  ;;  %v22_v22 = vld [vmem:[%s1375_s0 + $0x40] sm:$0xff]  ;;  %v25_v33 = vld [vmem:[%s1375_s0 + $0x58] sm:$0xff]  ;;  %v27_v39 = vld [vmem:[%s1375_s0 + $0x68] sm:$0xff] }
   0x6   :  { %v159_v19 = vadd.f32 %v965_v5, %v88_v9  ;;  %v161_v26 = vadd.f32 %v965_v5, %v90_v16  ;;  %v162_v30 = vadd.f32 %v965_v5, %v91_v20  ;;  %v163_v31 = vadd.f32 %v965_v5, %v92_v21  ;;  %v26_v38 = vld [vmem:[%s1375_s0 + $0x60] sm:$0xff]  ;;  %v28_v44 = vld [vmem:[%s1375_s0 + $0x70] sm:$0xff]  ;;  %v29_v49 = vld [vmem:[%s1375_s0 + $0x78] sm:$0xff] }
   0x7   :  { %v220_v23 = vmax.f32 %v156_v13, 0.0  ;;  %v221_v24 = vmax.f32 %v157_v14, 0.0  ;;  %v160_v25 = vadd.f32 %v965_v5, %v89_v15  ;;  %v222_v28 = vmax.f32 %v158_v18, 0.0  ;;  %v30_v54 = vld [vmem:[%s1375_s0 + $0x80] sm:$0xff]  ;;  %v31_v63 = vld [vmem:[%s1375_s0 + $0x88] sm:$0xff]  ;;  %v32_v6 = vld [vmem:[%s1375_s0 + $0x90] sm:$0xff] }
   0x8   :  { %v223_v29 = vmax.f32 %v159_v19, 0.0  ;;  %v225_v36 = vmax.f32 %v161_v26, 0.0  ;;  %v93_v37 = vmul.f32 %v958_v2, %v22_v22  ;;  %v226_v41 = vmax.f32 %v162_v30, 0.0  ;;  %v33_v7 = vld [vmem:[%s1375_s0 + $0x98] sm:$0xff]  ;;  %v34_v12 = vld [vmem:[%s1375_s0 + $0xa0] sm:$0xff]  ;;  %v35_v13 = vld [vmem:[%s1375_s0 + $0xa8] sm:$0xff] }
   0x9   :  { %v741_v34 = vpack.c.bf16 %v221_v24, %v220_v23  ;;  %v224_v35 = vmax.f32 %v160_v25, 0.0  ;;  %v227_v42 = vmax.f32 %v163_v31, 0.0  ;;  %v94_v43 = vmul.f32 %v958_v2, %v23_v27  ;;  %v36_v18 = vld [vmem:[%s1375_s0 + $0xb0] sm:$0xff]  ;;  %v37_v23 = vld [vmem:[%s1375_s0 + $0xb8] sm:$0xff] }
   0xa   :  { %v746_v40 = vpack.c.bf16 %v223_v29, %v222_v28  ;;  %v164_v46 = vadd.f32 %v965_v5, %v93_v37  ;;  %v95_v47 = vmul.f32 %v958_v2, %v24_v32  ;;  %v96_v48 = vmul.f32 %v958_v2, %v25_v33  ;;  %v38_v28 = vld [vmem:[%s1375_s0 + $0xc0] sm:$0xff]  ;;  %v39_v37 = vld [vmem:[%s1375_s0 + $0xc8] sm:$0xff] }
   0xb   :  { %742 = vst [vmem:[%s1378_s3] sm:$0xff] %v741_v34   ;;  %v751_v45 = vpack.c.bf16 %v225_v36, %v224_v35  ;;  %v756_v50 = vpack.c.bf16 %v227_v42, %v226_v41  ;;  %v165_v51 = vadd.f32 %v965_v5, %v94_v43  ;;  %v97_v52 = vmul.f32 %v958_v2, %v26_v38  ;;  %v40_v42 = vld [vmem:[%s1375_s0 + $0xd0] sm:$0xff]  ;;  %v41_v43 = vld [vmem:[%s1375_s0 + $0xd8] sm:$0xff] }
   0xc   :  { %898 = vst [vmem:[%s1378_s3 + $0x8] sm:$0xff] %v746_v40   ;;  %v98_v53 = vmul.f32 %v958_v2, %v27_v39  ;;  %v228_v55 = vmax.f32 %v164_v46, 0.0  ;;  %v166_v56 = vadd.f32 %v965_v5, %v95_v47  ;;  %v167_v57 = vadd.f32 %v965_v5, %v96_v48  ;;  %v42_v48 = vld [vmem:[%s1375_s0 + $0xe0] sm:$0xff] }
   0xd   :  { %899 = vst [vmem:[%s1378_s3 + $0x10] sm:$0xff] %v751_v45   ;;  %v99_v58 = vmul.f32 %v958_v2, %v28_v44  ;;  %900 = vst [vmem:[%s1378_s3 + $0x18] sm:$0xff] %v756_v50   ;;  %v229_v59 = vmax.f32 %v165_v51, 0.0  ;;  %v168_v60 = vadd.f32 %v965_v5, %v97_v52  ;;  %v100_v62 = vmul.f32 %v958_v2, %v29_v49  ;;  %v43_v49 = vld [vmem:[%s1375_s0 + $0xe8] sm:$0xff] }
   0xe   :  { %v169_v61 = vadd.f32 %v965_v5, %v98_v53  ;;  %v230_v0 = vmax.f32 %v166_v56, 0.0  ;;  %v231_v1 = vmax.f32 %v167_v57, 0.0  ;;  %v101_v4 = vmul.f32 %v958_v2, %v30_v54  ;;  %v44_v54 = vld [vmem:[%s1375_s0 + $0xf0] sm:$0xff] }
   0xf   :  { %v170_v3 = vadd.f32 %v965_v5, %v99_v58  ;;  %v761_v8 = vpack.c.bf16 %v229_v59, %v228_v55  ;;  %v232_v9 = vmax.f32 %v168_v60, 0.0  ;;  %v171_v11 = vadd.f32 %v965_v5, %v100_v62  ;;  %v45_v59 = vld [vmem:[%s1375_s0 + $0xf8] sm:$0xff] }
  0x10   :  { %v233_v10 = vmax.f32 %v169_v61, 0.0  ;;  %v766_v14 = vpack.c.bf16 %v231_v1, %v230_v0  ;;  %v102_v16 = vmul.f32 %v958_v2, %v31_v63  ;;  %v172_v17 = vadd.f32 %v965_v5, %v101_v4  ;;  %v46_v0 = vld [vmem:[%s1375_s0 + $0x100] sm:$0xff] }
  0x11   :  { %v234_v15 = vmax.f32 %v170_v3, 0.0  ;;  %901 = vst [vmem:[%s1378_s3 + $0x20] sm:$0xff] %v761_v8   ;;  %v235_v20 = vmax.f32 %v171_v11, 0.0  ;;  %v103_v21 = vmul.f32 %v958_v2, %v32_v6  ;;  %v104_v22 = vmul.f32 %v958_v2, %v33_v7  ;;  %v47_v11 = vld [vmem:[%s1375_s0 + $0x108] sm:$0xff] }
  0x12   :  { %v771_v19 = vpack.c.bf16 %v233_v10, %v232_v9  ;;  %902 = vst [vmem:[%s1378_s3 + $0x28] sm:$0xff] %v766_v14   ;;  %v173_v24 = vadd.f32 %v965_v5, %v102_v16  ;;  %v236_v25 = vmax.f32 %v172_v17, 0.0  ;;  %v105_v26 = vmul.f32 %v958_v2, %v34_v12  ;;  %v48_v16 = vld [vmem:[%s1375_s0 + $0x110] sm:$0xff]  ;;  %v49_v17 = vld [vmem:[%s1375_s0 + $0x118] sm:$0xff] }
  0x13   :  { %v106_v27 = vmul.f32 %v958_v2, %v35_v13  ;;  %v776_v29 = vpack.c.bf16 %v235_v20, %v234_v15  ;;  %v174_v30 = vadd.f32 %v965_v5, %v103_v21  ;;  %v175_v31 = vadd.f32 %v965_v5, %v104_v22  ;;  %v50_v22 = vld [vmem:[%s1375_s0 + $0x120] sm:$0xff] }
  0x14   :  { %903 = vst [vmem:[%s1378_s3 + $0x30] sm:$0xff] %v771_v19   ;;  %v107_v32 = vmul.f32 %v958_v2, %v36_v18  ;;  %v237_v33 = vmax.f32 %v173_v24, 0.0  ;;  %v176_v34 = vadd.f32 %v965_v5, %v105_v26  ;;  %v108_v36 = vmul.f32 %v958_v2, %v37_v23  ;;  %v51_v23 = vld [vmem:[%s1375_s0 + $0x128] sm:$0xff] }
  0x15   :  { %v177_v35 = vadd.f32 %v965_v5, %v106_v27  ;;  %904 = vst [vmem:[%s1378_s3 + $0x38] sm:$0xff] %v776_v29   ;;  %v238_v38 = vmax.f32 %v174_v30, 0.0  ;;  %v239_v39 = vmax.f32 %v175_v31, 0.0  ;;  %v109_v41 = vmul.f32 %v958_v2, %v38_v28  ;;  %v52_v28 = vld [vmem:[%s1375_s0 + $0x130] sm:$0xff] }
  0x16   :  { %v178_v40 = vadd.f32 %v965_v5, %v107_v32  ;;  %v781_v44 = vpack.c.bf16 %v237_v33, %v236_v25  ;;  %v240_v45 = vmax.f32 %v176_v34, 0.0  ;;  %v179_v47 = vadd.f32 %v965_v5, %v108_v36  ;;  %v53_v33 = vld [vmem:[%s1375_s0 + $0x138] sm:$0xff] }
  0x17   :  { %v241_v46 = vmax.f32 %v177_v35, 0.0  ;;  %v786_v50 = vpack.c.bf16 %v239_v39, %v238_v38  ;;  %v110_v52 = vmul.f32 %v958_v2, %v39_v37  ;;  %v180_v53 = vadd.f32 %v965_v5, %v109_v41  ;;  %v54_v38 = vld [vmem:[%s1375_s0 + $0x140] sm:$0xff] }
  0x18   :  { %v242_v51 = vmax.f32 %v178_v40, 0.0  ;;  %905 = vst [vmem:[%s1378_s3 + $0x40] sm:$0xff] %v781_v44   ;;  %v243_v56 = vmax.f32 %v179_v47, 0.0  ;;  %v111_v57 = vmul.f32 %v958_v2, %v40_v42  ;;  %v112_v58 = vmul.f32 %v958_v2, %v41_v43  ;;  %v55_v47 = vld [vmem:[%s1375_s0 + $0x148] sm:$0xff] }
  0x19   :  { %v791_v55 = vpack.c.bf16 %v241_v46, %v240_v45  ;;  %906 = vst [vmem:[%s1378_s3 + $0x48] sm:$0xff] %v786_v50   ;;  %v181_v60 = vadd.f32 %v965_v5, %v110_v52  ;;  %v244_v61 = vmax.f32 %v180_v53, 0.0  ;;  %v113_v62 = vmul.f32 %v958_v2, %v42_v48  ;;  %v56_v52 = vld [vmem:[%s1375_s0 + $0x150] sm:$0xff]  ;;  %v57_v53 = vld [vmem:[%s1375_s0 + $0x158] sm:$0xff] }
  0x1a   :  { %v114_v63 = vmul.f32 %v958_v2, %v43_v49  ;;  %v796_v1 = vpack.c.bf16 %v243_v56, %v242_v51  ;;  %v182_v3 = vadd.f32 %v965_v5, %v111_v57  ;;  %v183_v4 = vadd.f32 %v965_v5, %v112_v58  ;;  %v58_v58 = vld [vmem:[%s1375_s0 + $0x160] sm:$0xff] }
  0x1b   :  { %907 = vst [vmem:[%s1378_s3 + $0x50] sm:$0xff] %v791_v55   ;;  %v115_v6 = vmul.f32 %v958_v2, %v44_v54  ;;  %v245_v7 = vmax.f32 %v181_v60, 0.0  ;;  %v184_v8 = vadd.f32 %v965_v5, %v113_v62  ;;  %v116_v10 = vmul.f32 %v958_v2, %v45_v59  ;;  %v59_v59 = vld [vmem:[%s1375_s0 + $0x168] sm:$0xff] }
  0x1c   :  { %v185_v9 = vadd.f32 %v965_v5, %v114_v63  ;;  %908 = vst [vmem:[%s1378_s3 + $0x58] sm:$0xff] %v796_v1   ;;  %v246_v12 = vmax.f32 %v182_v3, 0.0  ;;  %v247_v13 = vmax.f32 %v183_v4, 0.0  ;;  %v117_v15 = vmul.f32 %v958_v2, %v46_v0  ;;  %v60_v0 = vld [vmem:[%s1375_s0 + $0x170] sm:$0xff] }
  0x1d   :  { %v186_v14 = vadd.f32 %v965_v5, %v115_v6  ;;  %v801_v18 = vpack.c.bf16 %v245_v7, %v244_v61  ;;  %v248_v19 = vmax.f32 %v184_v8, 0.0  ;;  %v187_v21 = vadd.f32 %v965_v5, %v116_v10  ;;  %v61_v7 = vld [vmem:[%s1375_s0 + $0x178] sm:$0xff] }
  0x1e   :  { %v249_v20 = vmax.f32 %v185_v9, 0.0  ;;  %v806_v24 = vpack.c.bf16 %v247_v13, %v246_v12  ;;  %v118_v26 = vmul.f32 %v958_v2, %v47_v11  ;;  %v188_v27 = vadd.f32 %v965_v5, %v117_v15  ;;  %v62_v12 = vld [vmem:[%s1375_s0 + $0x180] sm:$0xff] }
  0x1f   :  { %v250_v25 = vmax.f32 %v186_v14, 0.0  ;;  %909 = vst [vmem:[%s1378_s3 + $0x60] sm:$0xff] %v801_v18   ;;  %v251_v30 = vmax.f32 %v187_v21, 0.0  ;;  %v119_v31 = vmul.f32 %v958_v2, %v48_v16  ;;  %v120_v32 = vmul.f32 %v958_v2, %v49_v17  ;;  %v63_v21 = vld [vmem:[%s1375_s0 + $0x188] sm:$0xff] }
  0x20   :  { %v811_v29 = vpack.c.bf16 %v249_v20, %v248_v19  ;;  %910 = vst [vmem:[%s1378_s3 + $0x68] sm:$0xff] %v806_v24   ;;  %v189_v34 = vadd.f32 %v965_v5, %v118_v26  ;;  %v252_v35 = vmax.f32 %v188_v27, 0.0  ;;  %v121_v36 = vmul.f32 %v958_v2, %v50_v22  ;;  %v64_v26 = vld [vmem:[%s1375_s0 + $0x190] sm:$0xff]  ;;  %v65_v27 = vld [vmem:[%s1375_s0 + $0x198] sm:$0xff] }
  0x21   :  { %v122_v37 = vmul.f32 %v958_v2, %v51_v23  ;;  %v816_v39 = vpack.c.bf16 %v251_v30, %v250_v25  ;;  %v190_v40 = vadd.f32 %v965_v5, %v119_v31  ;;  %v191_v41 = vadd.f32 %v965_v5, %v120_v32  ;;  %v66_v32 = vld [vmem:[%s1375_s0 + $0x1a0] sm:$0xff] }
  0x22   :  { %911 = vst [vmem:[%s1378_s3 + $0x70] sm:$0xff] %v811_v29   ;;  %v123_v42 = vmul.f32 %v958_v2, %v52_v28  ;;  %v253_v43 = vmax.f32 %v189_v34, 0.0  ;;  %v192_v44 = vadd.f32 %v965_v5, %v121_v36  ;;  %v124_v46 = vmul.f32 %v958_v2, %v53_v33  ;;  %v67_v33 = vld [vmem:[%s1375_s0 + $0x1a8] sm:$0xff] }
  0x23   :  { %v193_v45 = vadd.f32 %v965_v5, %v122_v37  ;;  %912 = vst [vmem:[%s1378_s3 + $0x78] sm:$0xff] %v816_v39   ;;  %v254_v48 = vmax.f32 %v190_v40, 0.0  ;;  %v255_v49 = vmax.f32 %v191_v41, 0.0  ;;  %v125_v51 = vmul.f32 %v958_v2, %v54_v38  ;;  %v68_v38 = vld [vmem:[%s1375_s0 + $0x1b0] sm:$0xff] }
  0x24   :  { %v194_v50 = vadd.f32 %v965_v5, %v123_v42  ;;  %v821_v54 = vpack.c.bf16 %v253_v43, %v252_v35  ;;  %v256_v55 = vmax.f32 %v192_v44, 0.0  ;;  %v195_v57 = vadd.f32 %v965_v5, %v124_v46  ;;  %v69_v43 = vld [vmem:[%s1375_s0 + $0x1b8] sm:$0xff] }
  0x25   :  { %v257_v56 = vmax.f32 %v193_v45, 0.0  ;;  %v826_v60 = vpack.c.bf16 %v255_v49, %v254_v48  ;;  %v126_v62 = vmul.f32 %v958_v2, %v55_v47  ;;  %v196_v63 = vadd.f32 %v965_v5, %v125_v51  ;;  %v70_v48 = vld [vmem:[%s1375_s0 + $0x1c0] sm:$0xff] }
  0x26   :  { %v258_v61 = vmax.f32 %v194_v50, 0.0  ;;  %913 = vst [vmem:[%s1378_s3 + $0x80] sm:$0xff] %v821_v54   ;;  %v259_v3 = vmax.f32 %v195_v57, 0.0  ;;  %v127_v4 = vmul.f32 %v958_v2, %v56_v52  ;;  %v128_v6 = vmul.f32 %v958_v2, %v57_v53  ;;  %v71_v57 = vld [vmem:[%s1375_s0 + $0x1c8] sm:$0xff] }
  0x27   :  { %v831_v1 = vpack.c.bf16 %v257_v56, %v256_v55  ;;  %914 = vst [vmem:[%s1378_s3 + $0x88] sm:$0xff] %v826_v60   ;;  %v197_v8 = vadd.f32 %v965_v5, %v126_v62  ;;  %v260_v9 = vmax.f32 %v196_v63, 0.0  ;;  %v129_v10 = vmul.f32 %v958_v2, %v58_v58  ;;  %v72_v62 = vld [vmem:[%s1375_s0 + $0x1d0] sm:$0xff]  ;;  %v73_v63 = vld [vmem:[%s1375_s0 + $0x1d8] sm:$0xff] }
  0x28   :  { %v130_v11 = vmul.f32 %v958_v2, %v59_v59  ;;  %v836_v13 = vpack.c.bf16 %v259_v3, %v258_v61  ;;  %v198_v14 = vadd.f32 %v965_v5, %v127_v4  ;;  %v199_v15 = vadd.f32 %v965_v5, %v128_v6  ;;  %v74_v6 = vld [vmem:[%s1375_s0 + $0x1e0] sm:$0xff] }
  0x29   :  { %915 = vst [vmem:[%s1378_s3 + $0x90] sm:$0xff] %v831_v1   ;;  %v131_v16 = vmul.f32 %v958_v2, %v60_v0  ;;  %v261_v17 = vmax.f32 %v197_v8, 0.0  ;;  %v200_v18 = vadd.f32 %v965_v5, %v129_v10  ;;  %v132_v20 = vmul.f32 %v958_v2, %v61_v7  ;;  %v75_v7 = vld [vmem:[%s1375_s0 + $0x1e8] sm:$0xff] }
  0x2a   :  { %v201_v19 = vadd.f32 %v965_v5, %v130_v11  ;;  %916 = vst [vmem:[%s1378_s3 + $0x98] sm:$0xff] %v836_v13   ;;  %v262_v22 = vmax.f32 %v198_v14, 0.0  ;;  %v263_v23 = vmax.f32 %v199_v15, 0.0  ;;  %v133_v25 = vmul.f32 %v958_v2, %v62_v12  ;;  %v76_v12 = vld [vmem:[%s1375_s0 + $0x1f0] sm:$0xff] }
  0x2b   :  { %v202_v24 = vadd.f32 %v965_v5, %v131_v16  ;;  %v841_v28 = vpack.c.bf16 %v261_v17, %v260_v9  ;;  %v264_v29 = vmax.f32 %v200_v18, 0.0  ;;  %v203_v31 = vadd.f32 %v965_v5, %v132_v20  ;;  %v77_v17 = vld [vmem:[%s1375_s0 + $0x1f8] sm:$0xff] }
  0x2c   :  { %v265_v30 = vmax.f32 %v201_v19, 0.0  ;;  %v846_v34 = vpack.c.bf16 %v263_v23, %v262_v22  ;;  %v134_v36 = vmul.f32 %v958_v2, %v63_v21  ;;  %v204_v37 = vadd.f32 %v965_v5, %v133_v25 }
  0x2d   :  { %v266_v35 = vmax.f32 %v202_v24, 0.0  ;;  %917 = vst [vmem:[%s1378_s3 + $0xa0] sm:$0xff] %v841_v28   ;;  %v267_v40 = vmax.f32 %v203_v31, 0.0  ;;  %v135_v41 = vmul.f32 %v958_v2, %v64_v26  ;;  %v136_v42 = vmul.f32 %v958_v2, %v65_v27 }
  0x2e   :  { %v851_v39 = vpack.c.bf16 %v265_v30, %v264_v29  ;;  %918 = vst [vmem:[%s1378_s3 + $0xa8] sm:$0xff] %v846_v34   ;;  %v205_v44 = vadd.f32 %v965_v5, %v134_v36  ;;  %v268_v45 = vmax.f32 %v204_v37, 0.0  ;;  %v137_v46 = vmul.f32 %v958_v2, %v66_v32 }
  0x2f   :  { %v138_v47 = vmul.f32 %v958_v2, %v67_v33  ;;  %v856_v49 = vpack.c.bf16 %v267_v40, %v266_v35  ;;  %v206_v50 = vadd.f32 %v965_v5, %v135_v41  ;;  %v207_v51 = vadd.f32 %v965_v5, %v136_v42 }
  0x30   :  { %919 = vst [vmem:[%s1378_s3 + $0xb0] sm:$0xff] %v851_v39   ;;  %v139_v52 = vmul.f32 %v958_v2, %v68_v38  ;;  %v269_v53 = vmax.f32 %v205_v44, 0.0  ;;  %v208_v54 = vadd.f32 %v965_v5, %v137_v46  ;;  %v140_v56 = vmul.f32 %v958_v2, %v69_v43 }
  0x31   :  { %v209_v55 = vadd.f32 %v965_v5, %v138_v47  ;;  %920 = vst [vmem:[%s1378_s3 + $0xb8] sm:$0xff] %v856_v49   ;;  %v270_v58 = vmax.f32 %v206_v50, 0.0  ;;  %v271_v59 = vmax.f32 %v207_v51, 0.0  ;;  %v141_v61 = vmul.f32 %v958_v2, %v70_v48 }
  0x32   :  { %v210_v60 = vadd.f32 %v965_v5, %v139_v52  ;;  %v861_v0 = vpack.c.bf16 %v269_v53, %v268_v45  ;;  %v272_v1 = vmax.f32 %v208_v54, 0.0  ;;  %v211_v4 = vadd.f32 %v965_v5, %v140_v56 }
  0x33   :  { %v273_v3 = vmax.f32 %v209_v55, 0.0  ;;  %v866_v8 = vpack.c.bf16 %v271_v59, %v270_v58  ;;  %v142_v10 = vmul.f32 %v958_v2, %v71_v57  ;;  %v212_v11 = vadd.f32 %v965_v5, %v141_v61 }
  0x34   :  { %v274_v9 = vmax.f32 %v210_v60, 0.0  ;;  %921 = vst [vmem:[%s1378_s3 + $0xc0] sm:$0xff] %v861_v0   ;;  %v275_v14 = vmax.f32 %v211_v4, 0.0  ;;  %v143_v15 = vmul.f32 %v958_v2, %v72_v62  ;;  %v144_v16 = vmul.f32 %v958_v2, %v73_v63 }
  0x35   :  { %v871_v13 = vpack.c.bf16 %v273_v3, %v272_v1  ;;  %922 = vst [vmem:[%s1378_s3 + $0xc8] sm:$0xff] %v866_v8   ;;  %v213_v18 = vadd.f32 %v965_v5, %v142_v10  ;;  %v276_v19 = vmax.f32 %v212_v11, 0.0  ;;  %v145_v20 = vmul.f32 %v958_v2, %v74_v6 }
  0x36   :  { %v146_v21 = vmul.f32 %v958_v2, %v75_v7  ;;  %v876_v22 = vpack.c.bf16 %v275_v14, %v274_v9  ;;  %v214_v23 = vadd.f32 %v965_v5, %v143_v15  ;;  %v215_v24 = vadd.f32 %v965_v5, %v144_v16 }
  0x37   :  { %923 = vst [vmem:[%s1378_s3 + $0xd0] sm:$0xff] %v871_v13   ;;  %v147_v25 = vmul.f32 %v958_v2, %v76_v12  ;;  %v277_v26 = vmax.f32 %v213_v18, 0.0  ;;  %v216_v27 = vadd.f32 %v965_v5, %v145_v20  ;;  %v148_v29 = vmul.f32 %v958_v2, %v77_v17 }
  0x38   :  { %v217_v28 = vadd.f32 %v965_v5, %v146_v21  ;;  %924 = vst [vmem:[%s1378_s3 + $0xd8] sm:$0xff] %v876_v22   ;;  %v278_v30 = vmax.f32 %v214_v23, 0.0  ;;  %v279_v31 = vmax.f32 %v215_v24, 0.0 }
  0x39   :  { %v218_v32 = vadd.f32 %v965_v5, %v147_v25  ;;  %v881_v33 = vpack.c.bf16 %v277_v26, %v276_v19  ;;  %v280_v34 = vmax.f32 %v216_v27, 0.0  ;;  %v219_v36 = vadd.f32 %v965_v5, %v148_v29 }
  0x3a   :  { %v281_v35 = vmax.f32 %v217_v28, 0.0  ;;  %v886_v37 = vpack.c.bf16 %v279_v31, %v278_v30 }
  0x3b   :  { %v282_v38 = vmax.f32 %v218_v32, 0.0  ;;  %925 = vst [vmem:[%s1378_s3 + $0xe0] sm:$0xff] %v881_v33   ;;  %v283_v39 = vmax.f32 %v219_v36, 0.0 }
  0x3c   :  { %v891_v2 = vpack.c.bf16 %v281_v35, %v280_v34  ;;  %926 = vst [vmem:[%s1378_s3 + $0xe8] sm:$0xff] %v886_v37  }
  0x3d   :  { %v896_v40 = vpack.c.bf16 %v283_v39, %v282_v38 }
  0x3e   :  { %927 = vst [vmem:[%s1378_s3 + $0xf0] sm:$0xff] %v891_v2  }
  0x3f   :  { %928 = vst [vmem:[%s1378_s3 + $0xf8] sm:$0xff] %v896_v40  }

// kernel: generator_forward.13
= control target key start
LH: loop header
LB: loop body
LE: loop exit
PB: predicated region body
PF: predicated region fallthrough
CT: control target
= control target key end

     0   :  { %10 = vsyncpa [#allocation3], 0  ;;  %s2951_s0 = inlined_call_operand.vmem [shape: bf16[4,512,512], index: 0, kind: input, shape index: {}]   ;;  %s2952_s1 = inlined_call_operand.vmem [shape: bf16[4,512,128], index: 1, kind: input, shape index: {}]   ;;  %s2953_s2 = inlined_call_operand.vmem [shape: f32[4,512,128], index: 2, kind: output, shape index: {0}]   ;;  %s2954_s3 = inlined_call_operand.hbm [shape: f32[4,2,8,128], index: 3, kind: output, shape index: {1}]   ;;  %s2955_s4 = inlined_call_operand.hbm [shape: f32[4,2,8,128], index: 4, kind: output, shape index: {2}]  }
   0x1   :  { %12 = vsyncpa [#allocation3 + $0x1], 0 }
   0x2   :  { %13 = vsyncpa [#allocation5], 0 }
   0x3   :  { %15 = vsyncpa [#allocation5 + $0x1], 0  ;;  %s2623_s15 = smov 0   ;;  %s2625_s16 = smov 0  }
   0x4   :  { %s2627_s17 = smov 0   ;;  %s2629_s18 = smov 0  }
   0x5   :  { %s2631_s19 = smov 0   ;;  %s2633_s20 = smov 0  }
   0x6   :  { %s2635_s21 = smov 0   ;;  %s2637_s22 = smov 0  }
   0x7 LB: > { %s1855_s23 = sadd.s32 4294967295, %s2594_s22   ;;  %s1856_s24 = sadd.s32 4294967294, %s2594_s22   ;;  %s2594_s22 = sphi %s2637_s22, %s21_s22   ;;  %s2590_s21 = sphi %s2635_s21, %s2964_s21   ;;  %s2586_s20 = sphi %s2633_s20, %s2963_s20   ;;  %s2582_s19 = sphi %s2631_s19, %s2962_s19   ;;  %s2578_s18 = sphi %s2629_s18, %s2961_s18   ;;  %s2574_s17 = sphi %s2627_s17, %s2960_s17   ;;  %s2570_s16 = sphi %s2625_s16, %s2959_s16   ;;  %s2566_s15 = sphi %s2623_s15, %s2958_s15  }
   0x8   : > { %s36_s25 = sadd.s32 1, %s2586_s20  ;;  %s40_s26 = sadd.s32 1, %s2590_s21 }
   0x9   : > { %p38_p0 = scmp.ge.s32.totalorder %s36_s25, 2  ;;  %p145_p1 = scmp.ne.s32.totalorder %s2574_s17, %s2570_s16 }
   0xa   : > { %p146_p2 = scmp.eq.s32.totalorder %s1855_s23, 7  ;;  %p151_p5 = scmp.ne.s32.totalorder %s2570_s16, %s2566_s15 }
   0xb   : > { %s2966_s25 = smov (%p38_p0, %s36_s25), 0  ;;  %s2968_s26 = smov (!%p38_p0, %s40_s26), %s2590_s21 }
   0xc   : > { %s131_s27 = ssub.s32 %s2586_s20, %s2966_s25  ;;  %p2674_p3 = por %p146_p2, %p145_p1 }
   0xd   : > { %p42_p4 = scmp.ge.s32.totalorder %s2968_s26, 4  ;;  %p152_p6 = scmp.eq.s32.totalorder %s1856_s24, 7 }
   0xe   : > { %p1859_p7 = scmp.ge.s32.totalorder %s2594_s22, 1  ;;  %p230_p9 = scmp.lt.s32.totalorder %s2594_s22, 9 }
   0xf   : > { %s2970_s26 = smov (%p42_p4, %s2968_s26), 0  ;;  %p2683_p8 = por %p152_p6, %p151_p5 }
  0x10   : > { %s130_s30 = ssub.s32 %s2590_s21, %s2970_s26  ;;  %s135_s5 = sadd.s32 1, %s2574_s17 }
  0x11   : > { %s132_s6 = sor.u32 %s131_s27, %s130_s30  ;;  %p231_p10 = pnand %p1859_p7, %p230_p9 }
  0x12   : > { %p133_p11 = scmp.eq.s32.totalorder %s132_s6, 0  ;;  %p290_p12 = scmp.lt.s32.totalorder (!%p231_p10), %s2582_s19, 3 }
  0x13   : > { %234 = sbr.rel (%p231_p10) target bundleno = 467 (0x1d3), region = 28  ;;  %s1862_s8 = sshll.u32 (!%p231_p10), %s2578_s18, 5 }
  0x14   : > { %s2692_s7 = scalar_select %p133_p11, %s2574_s17, %s135_s5  }
  0x15   : > { %p292_p13 = scmp.lt.s32.totalorder (!%p231_p10), %s1862_s8, 63  ;;  %s2856_s13 = sand.u32 (!%p231_p10), 1, %s2570_s16  }
  0x1a   : > { %s2697_s9 = scalar_select %p290_p12, %s2582_s19, 3 }
  0x1b   : > { %s2972_s8 = smov (!%p292_p13, %s1862_s8), 63 }
  0x1c   : > { %s1864_s10 = sshll.u32 %s2697_s9, 8  ;;  %s1869_s11 = sshll.u32 %s2697_s9, 6 }
  0x1d   : > { %s2708_s14 = scalar_lea.vmem %s2952_s1, %s1864_s10  ;;  %s2712_s23 = sadd.s32 %s1869_s11, %s2972_s8 }
  0x1e   : > { %v2276_v0 = vld [vmem:[%s2708_s14 + $0x40] sm:$0xff]   ;;  %v2280_v4 = vld [vmem:[%s2708_s14 + $0x48] sm:$0xff]   ;;  %v2284_v8 = vld [vmem:[%s2708_s14 + $0x50] sm:$0xff]   ;;  %s1863_s24 = sshll.u32 %s2972_s8, 2  ;;  %s1870_s9 = sshll.u32 %s2712_s23, 3 }
  0x1f   : > { %v2277_v1 = vld [vmem:[%s2708_s14 + $0xc0] sm:$0xff]   ;;  %1976 = vmatprep.subr.bf16.mxu0 %v2276_v0  ;;  %v2281_v5 = vld [vmem:[%s2708_s14 + $0xc8] sm:$0xff]   ;;  %v2285_v9 = vld [vmem:[%s2708_s14 + $0xd0] sm:$0xff]   ;;  %s299_s27 = sadd.s32 %s1864_s10, %s1863_s24  ;;  %s2821_s12 = scalar_lea.vmem %s2953_s2, %s1870_s9 }
  0x20   : > { %v2278_v2 = vld [vmem:[%s2708_s14] sm:$0xff]   ;;  %2088 = vmatprep.subr.bf16.mxu1 %v2277_v1  ;;  %v2282_v6 = vld [vmem:[%s2708_s14 + $0x8] sm:$0xff]   ;;  %v2286_v10 = vld [vmem:[%s2708_s14 + $0x10] sm:$0xff]   ;;  %s1865_s30 = sshll.u32 %s299_s27, 2  ;;  %s1969_s23 = sshll.u32 %s2582_s19, 1 }
  0x21   : > { %v2279_v3 = vld [vmem:[%s2708_s14 + $0x80] sm:$0xff]   ;;  %1977 = vmatpush3.bf16.msra.mxu0 %v2278_v2  ;;  %v2283_v7 = vld [vmem:[%s2708_s14 + $0x88] sm:$0xff]   ;;  %v2287_v11 = vld [vmem:[%s2708_s14 + $0x90] sm:$0xff]   ;;  %s2749_s8 = scalar_lea.vmem %s2951_s0, %s1865_s30  ;;  %s1660_s24 = sadd.s32 %s2578_s18, %s1969_s23 }
  0x22   : > { %2089 = vmatpush3.bf16.msra.mxu1 %v2279_v3  ;;  %1978 = vmatprep.subr.bf16.mxu0 %v2280_v4  ;;  %v2288_v12 = vld [vmem:[%s2708_s14 + $0x58] sm:$0xff]   ;;  %v2292_v16 = vld [vmem:[%s2708_s14 + $0x60] sm:$0xff]   ;;  %v2296_v20 = vld [vmem:[%s2708_s14 + $0x68] sm:$0xff]   ;;  %s1970_s27 = sshll.u32 %s1660_s24, 7  ;;  %s2596_s24 = smov [#allocation2]  }
  0x23   : > { %2090 = vmatprep.subr.bf16.mxu1 %v2281_v5  ;;  %v2289_v13 = vld [vmem:[%s2708_s14 + $0xd8] sm:$0xff]   ;;  %v2293_v17 = vld [vmem:[%s2708_s14 + $0xe0] sm:$0xff]   ;;  %v2297_v21 = vld [vmem:[%s2708_s14 + $0xe8] sm:$0xff]   ;;  %s2867_s10 = scalar_lea.hbm %s2954_s3, %s1970_s27  ;;  %s2472_s19 = sshll.u32 %s2596_s24, 4  ;;  %s2473_s19 = int_to_ptr.vmem [resolvable:$false] %s2472_s19 }
  0x24   : > { %v2290_v14 = vld [vmem:[%s2708_s14 + $0x18] sm:$0xff]   ;;  %v2294_v18 = vld [vmem:[%s2708_s14 + $0x20] sm:$0xff]   ;;  %v2298_v22 = vld [vmem:[%s2708_s14 + $0x28] sm:$0xff]   ;;  %s2474_s9 = scalar_lea.vmem %s2473_s19, 256 }
  0x25   : > { %1979 = vmatpush3.bf16.msra.mxu0 %v2282_v6  ;;  %v2291_v15 = vld [vmem:[%s2708_s14 + $0x98] sm:$0xff]   ;;  %v2295_v19 = vld [vmem:[%s2708_s14 + $0xa0] sm:$0xff]   ;;  %v2299_v23 = vld [vmem:[%s2708_s14 + $0xa8] sm:$0xff]  }
  0x26   : > { %2091 = vmatpush3.bf16.msra.mxu1 %v2283_v7  ;;  %1980 = vmatprep.subr.bf16.mxu0 %v2284_v8  ;;  %v2300_v24 = vld [vmem:[%s2708_s14 + $0x70] sm:$0xff]   ;;  %v2304_v28 = vld [vmem:[%s2708_s14 + $0x78] sm:$0xff]  }
  0x27   : > { %2092 = vmatprep.subr.bf16.mxu1 %v2285_v9  ;;  %v2301_v25 = vld [vmem:[%s2708_s14 + $0xf0] sm:$0xff]   ;;  %v2305_v29 = vld [vmem:[%s2708_s14 + $0xf8] sm:$0xff]  }
  0x28   : > { %v2302_v26 = vld [vmem:[%s2708_s14 + $0x30] sm:$0xff]   ;;  %v2306_v30 = vld [vmem:[%s2708_s14 + $0x38] sm:$0xff]  }
  0x29   : > { %1981 = vmatpush3.bf16.msra.mxu0 %v2286_v10  ;;  %v2303_v27 = vld [vmem:[%s2708_s14 + $0xb0] sm:$0xff]   ;;  %v2307_v31 = vld [vmem:[%s2708_s14 + $0xb8] sm:$0xff]   ;;  %s1860_s14 = sshll.u32 %s2856_s13, 3 }
  0x2a   : > { %2093 = vmatpush3.bf16.msra.mxu1 %v2287_v11  ;;  %1982 = vmatprep.subr.bf16.mxu0 %v2288_v12  ;;  %v2308_v32 = vld [vmem:[%s2749_s8] ss:$16 sps:$4 sm:$0xff]   ;;  %v2310_v33 = vld [vmem:[%s2749_s8 + $0x4] ss:$16 sps:$4 sm:$0xff]   ;;  %v2311_v34 = vld [vmem:[%s2749_s8 + $0x8] ss:$16 sps:$4 sm:$0xff]  }
  0x2b   : > { %2094 = vmatprep.subr.bf16.mxu1 %v2289_v13  ;;  %v2313_v35 = vld [vmem:[%s2749_s8 + $0xc] ss:$16 sps:$4 sm:$0xff]   ;;  %997 = vmatprep.mubr.bf16.mxu0 %v2310_v33  ;;  %v2314_v36 = vld [vmem:[%s2749_s8 + $0x24] ss:$16 sps:$4 sm:$0xff]   ;;  %v2318_v38 = vld [vmem:[%s2749_s8 + $0x20] ss:$16 sps:$4 sm:$0xff]  }
  0x2c   : > { %1158 = vmatprep.mubr.bf16.mxu1 %v2313_v35  ;;  %v2316_v37 = vld [vmem:[%s2749_s8 + $0x2c] ss:$16 sps:$4 sm:$0xff]   ;;  %v2319_v39 = vld [vmem:[%s2749_s8 + $0x28] ss:$16 sps:$4 sm:$0xff]   ;;  %v2320_v40 = vld [vmem:[%s2749_s8 + $0x44] ss:$16 sps:$4 sm:$0xff]  }
  0x2d   : > { %1983 = vmatpush3.bf16.msra.mxu0 %v2290_v14  ;;  %v2322_v41 = vld [vmem:[%s2749_s8 + $0x4c] ss:$16 sps:$4 sm:$0xff]   ;;  %v2324_v42 = vld [vmem:[%s2749_s8 + $0x40] ss:$16 sps:$4 sm:$0xff]   ;;  %v2325_v43 = vld [vmem:[%s2749_s8 + $0x48] ss:$16 sps:$4 sm:$0xff]  }
  0x2e   : > { %2095 = vmatpush3.bf16.msra.mxu1 %v2291_v15  ;;  %1984 = vmatprep.subr.bf16.mxu0 %v2292_v16  ;;  %v2326_v44 = vld [vmem:[%s2749_s8 + $0x64] ss:$16 sps:$4 sm:$0xff]   ;;  %v2328_v45 = vld [vmem:[%s2749_s8 + $0x6c] ss:$16 sps:$4 sm:$0xff]   ;;  %v2330_v46 = vld [vmem:[%s2749_s8 + $0x60] ss:$16 sps:$4 sm:$0xff]  }
  0x2f   : > { %2096 = vmatprep.subr.bf16.mxu1 %v2293_v17  ;;  %v2331_v47 = vld [vmem:[%s2749_s8 + $0x68] ss:$16 sps:$4 sm:$0xff]   ;;  %v2332_v48 = vld [vmem:[%s2749_s8 + $0x84] ss:$16 sps:$4 sm:$0xff]   ;;  %v2334_v49 = vld [vmem:[%s2749_s8 + $0x8c] ss:$16 sps:$4 sm:$0xff]  }
  0x30   : > { %v2336_v50 = vld [vmem:[%s2749_s8 + $0x80] ss:$16 sps:$4 sm:$0xff]   ;;  %v2337_v51 = vld [vmem:[%s2749_s8 + $0x88] ss:$16 sps:$4 sm:$0xff]   ;;  %v2338_v52 = vld [vmem:[%s2749_s8 + $0xa4] ss:$16 sps:$4 sm:$0xff]  }
  0x31   : > { %1985 = vmatpush3.bf16.msra.mxu0 %v2294_v18  ;;  %v2340_v53 = vld [vmem:[%s2749_s8 + $0xac] ss:$16 sps:$4 sm:$0xff]   ;;  %v2342_v54 = vld [vmem:[%s2749_s8 + $0xa0] ss:$16 sps:$4 sm:$0xff]   ;;  %v2343_v55 = vld [vmem:[%s2749_s8 + $0xa8] ss:$16 sps:$4 sm:$0xff]  }
  0x32   : > { %2097 = vmatpush3.bf16.msra.mxu1 %v2295_v19  ;;  %1986 = vmatprep.subr.bf16.mxu0 %v2296_v20  ;;  %v2344_v56 = vld [vmem:[%s2749_s8 + $0xc4] ss:$16 sps:$4 sm:$0xff]   ;;  %v2346_v57 = vld [vmem:[%s2749_s8 + $0xcc] ss:$16 sps:$4 sm:$0xff]   ;;  %v2348_v58 = vld [vmem:[%s2749_s8 + $0xc0] ss:$16 sps:$4 sm:$0xff]  }
  0x33   : > { %2098 = vmatprep.subr.bf16.mxu1 %v2297_v21  ;;  %v2349_v59 = vld [vmem:[%s2749_s8 + $0xc8] ss:$16 sps:$4 sm:$0xff]   ;;  %v2350_v60 = vld [vmem:[%s2749_s8 + $0xe4] ss:$16 sps:$4 sm:$0xff]   ;;  %v2352_v61 = vld [vmem:[%s2749_s8 + $0xec] ss:$16 sps:$4 sm:$0xff]  }
  0x34   : > { %v2354_v62 = vld [vmem:[%s2749_s8 + $0xe0] ss:$16 sps:$4 sm:$0xff]   ;;  %v2355_v63 = vld [vmem:[%s2749_s8 + $0xe8] ss:$16 sps:$4 sm:$0xff]   ;;  %v2356_v0 = vld [vmem:[%s2749_s8 + $0x104] ss:$16 sps:$4 sm:$0xff]  }
  0x35   : > { %1987 = vmatpush3.bf16.msra.mxu0 %v2298_v22  ;;  %v2358_v1 = vld [vmem:[%s2749_s8 + $0x10c] ss:$16 sps:$4 sm:$0xff]   ;;  %v2360_v2 = vld [vmem:[%s2749_s8 + $0x100] ss:$16 sps:$4 sm:$0xff]   ;;  %v2361_v3 = vld [vmem:[%s2749_s8 + $0x108] ss:$16 sps:$4 sm:$0xff]  }
  0x36   : > { %2099 = vmatpush3.bf16.msra.mxu1 %v2299_v23  ;;  %1988 = vmatprep.subr.bf16.mxu0 %v2300_v24  ;;  %v2362_v4 = vld [vmem:[%s2749_s8 + $0x124] ss:$16 sps:$4 sm:$0xff]   ;;  %v2364_v5 = vld [vmem:[%s2749_s8 + $0x12c] ss:$16 sps:$4 sm:$0xff]   ;;  %v2366_v6 = vld [vmem:[%s2749_s8 + $0x120] ss:$16 sps:$4 sm:$0xff]  }
  0x37   : > { %2100 = vmatprep.subr.bf16.mxu1 %v2301_v25  ;;  %v2367_v7 = vld [vmem:[%s2749_s8 + $0x128] ss:$16 sps:$4 sm:$0xff]   ;;  %v2368_v8 = vld [vmem:[%s2749_s8 + $0x144] ss:$16 sps:$4 sm:$0xff]   ;;  %v2370_v9 = vld [vmem:[%s2749_s8 + $0x14c] ss:$16 sps:$4 sm:$0xff]  }
  0x38   : > { %v2372_v10 = vld [vmem:[%s2749_s8 + $0x140] ss:$16 sps:$4 sm:$0xff]   ;;  %v2373_v11 = vld [vmem:[%s2749_s8 + $0x148] ss:$16 sps:$4 sm:$0xff]   ;;  %v2374_v12 = vld [vmem:[%s2749_s8 + $0x164] ss:$16 sps:$4 sm:$0xff]  }
  0x39   : > { %1989 = vmatpush3.bf16.msra.mxu0 %v2302_v26  ;;  %v2376_v13 = vld [vmem:[%s2749_s8 + $0x16c] ss:$16 sps:$4 sm:$0xff]   ;;  %v2378_v14 = vld [vmem:[%s2749_s8 + $0x160] ss:$16 sps:$4 sm:$0xff]   ;;  %v2379_v15 = vld [vmem:[%s2749_s8 + $0x168] ss:$16 sps:$4 sm:$0xff]  }
  0x3a   : > { %2101 = vmatpush3.bf16.msra.mxu1 %v2303_v27  ;;  %1990 = vmatprep.subr.bf16.mxu0 %v2304_v28  ;;  %v2380_v16 = vld [vmem:[%s2749_s8 + $0x184] ss:$16 sps:$4 sm:$0xff]   ;;  %v2382_v17 = vld [vmem:[%s2749_s8 + $0x18c] ss:$16 sps:$4 sm:$0xff]   ;;  %v2384_v18 = vld [vmem:[%s2749_s8 + $0x180] ss:$16 sps:$4 sm:$0xff]  }
  0x3b   : > { %2102 = vmatprep.subr.bf16.mxu1 %v2305_v29  ;;  %v2385_v19 = vld [vmem:[%s2749_s8 + $0x188] ss:$16 sps:$4 sm:$0xff]   ;;  %v2386_v20 = vld [vmem:[%s2749_s8 + $0x1a4] ss:$16 sps:$4 sm:$0xff]   ;;  %v2388_v21 = vld [vmem:[%s2749_s8 + $0x1ac] ss:$16 sps:$4 sm:$0xff]  }
  0x3c   : > { %v2390_v22 = vld [vmem:[%s2749_s8 + $0x1a0] ss:$16 sps:$4 sm:$0xff]   ;;  %v2391_v23 = vld [vmem:[%s2749_s8 + $0x1a8] ss:$16 sps:$4 sm:$0xff]   ;;  %v2392_v24 = vld [vmem:[%s2749_s8 + $0x1c4] ss:$16 sps:$4 sm:$0xff]  }
  0x3d   : > { %1991 = vmatpush3.bf16.msra.mxu0 %v2306_v30  ;;  %v2394_v25 = vld [vmem:[%s2749_s8 + $0x1cc] ss:$16 sps:$4 sm:$0xff]   ;;  %v2396_v26 = vld [vmem:[%s2749_s8 + $0x1c0] ss:$16 sps:$4 sm:$0xff]   ;;  %v2397_v27 = vld [vmem:[%s2749_s8 + $0x1c8] ss:$16 sps:$4 sm:$0xff]  }
  0x3e   : > { %2103 = vmatpush3.bf16.msra.mxu1 %v2307_v31  ;;  %v2398_v28 = vld [vmem:[%s2749_s8 + $0x1e4] ss:$16 sps:$4 sm:$0xff]   ;;  %v2400_v29 = vld [vmem:[%s2749_s8 + $0x1ec] ss:$16 sps:$4 sm:$0xff]   ;;  %v2402_v30 = vld [vmem:[%s2749_s8 + $0x1e0] ss:$16 sps:$4 sm:$0xff]  }
  0x3f   : > { %v2403_v31 = vld [vmem:[%s2749_s8 + $0x1e8] ss:$16 sps:$4 sm:$0xff]   ;;  %s280_s30 = scalar_lea.vmem [#allocation2], %s1860_s14  ;;  %s2861_s6 = scalar_lea.vmem [#allocation4], %s1860_s14 }
  0x40   : > { %998 = vmatmul.mubr.bf16.vlgmr.msra.gmra.mrb[0].mxu0 %v2308_v32  ;;  %s1664_s5 = sshll.u32 %s280_s30, 4  ;;  %s1679_s8 = sshll.u32 %s2861_s6, 4  ;;  %s2869_s5 = int_to_ptr.vmem [resolvable:$true] %s1664_s5  ;;  %s2876_s8 = int_to_ptr.vmem [resolvable:$true] %s1679_s8 }
  0x41   : > { %1159 = vmatmul.mubr.bf16.vlgmr.msra.gmra.mrb[0].mxu1 %v2311_v34  ;;  %1005 = vmatprep.mubr.bf16.mxu0 %v2314_v36  ;;  %s1640_s14 = scalar_lea.sflag [#allocation3], %s2856_s13  ;;  %s2468_s23 = scalar_lea.vmem %s2869_s5, 128 }
  0x42   : > { %1166 = vmatprep.mubr.bf16.mxu1 %v2316_v37  ;;  %p2469_p0 = scmp.ne.s32.totalorder %s2869_s5, %s2468_s23  ;;  %p2475_p4 = scmp.lt.s32.totalorder %s2869_s5, %s2473_s19 }
  0x43   : > { %p2476_p5 = scmp.lt.s32.totalorder %s2474_s9, %s2468_s23 }
  0x44   : > { %p2470_p1 = pnand %p2469_p0, %p2674_p3 }
  0x45   : > { %p2477_p6 = por %p2476_p5, %p2475_p4 }
  0x46   : > { %p2471_p2 = pneg %p2470_p1 }
  0x48   : > { %1006 = vmatmul.mubr.bf16.gmra.mrb[4].mxu0 %v2318_v38  ;;  %p2478_p7 = pnand %p2477_p6, %p2471_p2 }
  0x49   : > { %1167 = vmatmul.mubr.bf16.gmra.mrb[4].mxu1 %v2319_v39  ;;  %1013 = vmatprep.mubr.bf16.mxu0 %v2320_v40 }
  0x4a   : > { %1174 = vmatprep.mubr.bf16.mxu1 %v2322_v41 }
  0x50   : > { %1014 = vmatmul.mubr.bf16.gmra.mrb[8].mxu0 %v2324_v42 }
  0x51   : > { %1175 = vmatmul.mubr.bf16.gmra.mrb[8].mxu1 %v2325_v43  ;;  %1021 = vmatprep.mubr.bf16.mxu0 %v2326_v44 }
  0x52   : > { %1182 = vmatprep.mubr.bf16.mxu1 %v2328_v45 }
  0x58   : > { %1022 = vmatmul.mubr.bf16.gmra.mrb[12].mxu0 %v2330_v46 }
  0x59   : > { %1183 = vmatmul.mubr.bf16.gmra.mrb[12].mxu1 %v2331_v47  ;;  %1029 = vmatprep.mubr.bf16.mxu0 %v2332_v48 }
  0x5a   : > { %1190 = vmatprep.mubr.bf16.mxu1 %v2334_v49 }
  0x60   : > { %1030 = vmatmul.mubr.bf16.gmra.mrb[16].mxu0 %v2336_v50 }
  0x61   : > { %1191 = vmatmul.mubr.bf16.gmra.mrb[16].mxu1 %v2337_v51  ;;  %1037 = vmatprep.mubr.bf16.mxu0 %v2338_v52 }
  0x62   : > { %1198 = vmatprep.mubr.bf16.mxu1 %v2340_v53 }
  0x68   : > { %1038 = vmatmul.mubr.bf16.gmra.mrb[20].mxu0 %v2342_v54 }
  0x69   : > { %1199 = vmatmul.mubr.bf16.gmra.mrb[20].mxu1 %v2343_v55  ;;  %1045 = vmatprep.mubr.bf16.mxu0 %v2344_v56 }
  0x6a   : > { %1206 = vmatprep.mubr.bf16.mxu1 %v2346_v57 }
  0x70   : > { %1046 = vmatmul.mubr.bf16.gmra.mrb[24].mxu0 %v2348_v58 }
  0x71   : > { %1207 = vmatmul.mubr.bf16.gmra.mrb[24].mxu1 %v2349_v59  ;;  %1053 = vmatprep.mubr.bf16.mxu0 %v2350_v60 }
  0x72   : > { %1214 = vmatprep.mubr.bf16.mxu1 %v2352_v61 }
  0x78   : > { %1054 = vmatmul.mubr.bf16.gmra.mrb[28].mxu0 %v2354_v62 }
  0x79   : > { %1215 = vmatmul.mubr.bf16.gmra.mrb[28].mxu1 %v2355_v63  ;;  %1061 = vmatprep.mubr.bf16.mxu0 %v2356_v0 }
  0x7a   : > { %1222 = vmatprep.mubr.bf16.mxu1 %v2358_v1 }
  0x80   : > { %1062 = vmatmul.mubr.bf16.gmra.mrb[32].mxu0 %v2360_v2 }
  0x81   : > { %1223 = vmatmul.mubr.bf16.gmra.mrb[32].mxu1 %v2361_v3  ;;  %1069 = vmatprep.mubr.bf16.mxu0 %v2362_v4 }
  0x82   : > { %1230 = vmatprep.mubr.bf16.mxu1 %v2364_v5 }
  0x88   : > { %1070 = vmatmul.mubr.bf16.gmra.mrb[36].mxu0 %v2366_v6 }
  0x89   : > { %1231 = vmatmul.mubr.bf16.gmra.mrb[36].mxu1 %v2367_v7  ;;  %1077 = vmatprep.mubr.bf16.mxu0 %v2368_v8 }
  0x8a   : > { %1238 = vmatprep.mubr.bf16.mxu1 %v2370_v9 }
  0x90   : > { %1078 = vmatmul.mubr.bf16.gmra.mrb[40].mxu0 %v2372_v10 }
  0x91   : > { %1239 = vmatmul.mubr.bf16.gmra.mrb[40].mxu1 %v2373_v11  ;;  %1085 = vmatprep.mubr.bf16.mxu0 %v2374_v12 }
  0x92   : > { %1246 = vmatprep.mubr.bf16.mxu1 %v2376_v13 }
  0x98   : > { %1086 = vmatmul.mubr.bf16.gmra.mrb[44].mxu0 %v2378_v14 }
  0x99   : > { %1247 = vmatmul.mubr.bf16.gmra.mrb[44].mxu1 %v2379_v15  ;;  %1093 = vmatprep.mubr.bf16.mxu0 %v2380_v16 }
  0x9a   : > { %1254 = vmatprep.mubr.bf16.mxu1 %v2382_v17 }
  0xa0   : > { %1094 = vmatmul.mubr.bf16.gmra.mrb[48].mxu0 %v2384_v18 }
  0xa1   : > { %1255 = vmatmul.mubr.bf16.gmra.mrb[48].mxu1 %v2385_v19  ;;  %1101 = vmatprep.mubr.bf16.mxu0 %v2386_v20 }
  0xa2   : > { %1262 = vmatprep.mubr.bf16.mxu1 %v2388_v21 }
  0xa8   : > { %1102 = vmatmul.mubr.bf16.gmra.mrb[52].mxu0 %v2390_v22 }
  0xa9   : > { %1263 = vmatmul.mubr.bf16.gmra.mrb[52].mxu1 %v2391_v23  ;;  %1109 = vmatprep.mubr.bf16.mxu0 %v2392_v24 }
  0xaa   : > { %1270 = vmatprep.mubr.bf16.mxu1 %v2394_v25 }
  0xb0   : > { %1110 = vmatmul.mubr.bf16.gmra.mrb[56].mxu0 %v2396_v26 }
  0xb1   : > { %1271 = vmatmul.mubr.bf16.gmra.mrb[56].mxu1 %v2397_v27  ;;  %1117 = vmatprep.mubr.bf16.mxu0 %v2398_v28 }
  0xb2   : > { %1278 = vmatprep.mubr.bf16.mxu1 %v2400_v29 }
  0xb8   : > { %1118 = vmatmul.mubr.bf16.gmra.mrb[60].mxu0 %v2402_v30 }
  0xb9   : > { %1279 = vmatmul.mubr.bf16.gmra.mrb[60].mxu1 %v2403_v31 }
 0x113   : > { %v1992_v32 = vpop.f32.mrb[0].mxu0 }
 0x114   : > { %v2104_v33 = vpop.f32.mrb[0].mxu1  ;;  %v1993_v34 = vpop.f32.mrb[1].mxu0 }
 0x115   : > { %v1994_v35 = vadd.f32 %v1993_v34, %v1992_v32  ;;  %v2105_v36 = vpop.f32.mrb[1].mxu1  ;;  %v1995_v37 = vpop.f32.mrb[2].mxu0 }
 0x116   : > { %v2106_v38 = vadd.f32 %v2105_v36, %v2104_v33  ;;  %v2107_v39 = vpop.f32.mrb[2].mxu1  ;;  %v1996_v40 = vpop.f32.mrb[3].mxu0 }
 0x117   : > { %v1997_v41 = vadd.f32 %v1996_v40, %v1995_v37  ;;  %v2108_v42 = vpop.f32.mrb[3].mxu1 }
 0x118   : > { %v1161_v43 = vadd.f32 %v2106_v38, %v1994_v35  ;;  %v2109_v44 = vadd.f32 %v2108_v42, %v2107_v39 }
 0x11a   : > { %2404 = vtanh.f32 %v1161_v43  ;;  %v1164_v45 = vadd.f32 %v2109_v44, %v1997_v41 }
 0x11b   : > { %v1998_v46 = vpop.f32.mrb[4].mxu0 }
 0x11c   : > { %2406 = vtanh.f32 %v1164_v45  ;;  %v2110_v47 = vpop.f32.mrb[4].mxu1  ;;  %v1999_v48 = vpop.f32.mrb[5].mxu0 }
 0x11d   : > { %v2000_v49 = vadd.f32 %v1999_v48, %v1998_v46  ;;  %v2111_v50 = vpop.f32.mrb[5].mxu1  ;;  %v2001_v51 = vpop.f32.mrb[6].mxu0 }
 0x11e   : > { %v2112_v52 = vadd.f32 %v2111_v50, %v2110_v47  ;;  %v2113_v53 = vpop.f32.mrb[6].mxu1  ;;  %v2002_v54 = vpop.f32.mrb[7].mxu0 }
 0x11f   : > { %v2003_v55 = vadd.f32 %v2002_v54, %v2001_v51  ;;  %v2114_v56 = vpop.f32.mrb[7].mxu1 }
 0x120   : > { %v1169_v57 = vadd.f32 %v2112_v52, %v2000_v49  ;;  %v2115_v58 = vadd.f32 %v2114_v56, %v2113_v53 }
 0x122   : > { %2408 = vtanh.f32 %v1169_v57  ;;  %v1172_v59 = vadd.f32 %v2115_v58, %v2003_v55 }
 0x123   : > { %v2004_v60 = vpop.f32.mrb[8].mxu0 }
 0x124   : > { %v2405_v61 = vpop.eup %2404  ;;  %2410 = vtanh.f32 %v1172_v59  ;;  %v2116_v62 = vpop.f32.mrb[8].mxu1 }
 0x125   : > { %v2005_v63 = vpop.f32.mrb[9].mxu0  ;;  %1490 = vst [vmem:[%s2821_s12] sm:$0xff] %v2405_v61  ;;  %v2117_v1 = vpop.f32.mrb[9].mxu1  ;;  %v1559_v7 = vmul.f32 %v2405_v61, %v2405_v61 }
 0x126   : > { %v2006_v0 = vadd.f32 %v2005_v63, %v2004_v60  ;;  %v2007_v2 = vpop.f32.mrb[10].mxu0  ;;  %v2407_v3 = vpop.eup %2406  ;;  %v2118_v4 = vadd.f32 %v2117_v1, %v2116_v62 }
 0x127   : > { %v2119_v5 = vpop.f32.mrb[10].mxu1  ;;  %v2008_v6 = vpop.f32.mrb[11].mxu0  ;;  %1491 = vst [vmem:[%s2821_s12 + $0x8] sm:$0xff] %v2407_v3  ;;  %v1522_v8 = vadd.f32 %v2407_v3, %v2405_v61  ;;  %v1560_v9 = vmul.f32 %v2407_v3, %v2407_v3 }
 0x128   : > { %v2009_v10 = vadd.f32 %v2008_v6, %v2007_v2  ;;  %v2120_v11 = vpop.f32.mrb[11].mxu1  ;;  %v1177_v12 = vadd.f32 %v2118_v4, %v2006_v0 }
 0x129   : > { %v2121_v13 = vadd.f32 %v2120_v11, %v2119_v5  ;;  %v1591_v14 = vadd.f32 %v1560_v9, %v1559_v7 }
 0x12a   : > { %2412 = vtanh.f32 %v1177_v12 }
 0x12b   : > { %v1180_v15 = vadd.f32 %v2121_v13, %v2009_v10  ;;  %v2010_v16 = vpop.f32.mrb[12].mxu0 }
 0x12c   : > { %v2409_v17 = vpop.eup %2408  ;;  %v2122_v18 = vpop.f32.mrb[12].mxu1 }
 0x12d   : > { %2414 = vtanh.f32 %v1180_v15  ;;  %v2011_v19 = vpop.f32.mrb[13].mxu0  ;;  %1492 = vst [vmem:[%s2821_s12 + $0x10] sm:$0xff] %v2409_v17  ;;  %v1523_v20 = vadd.f32 %v2409_v17, %v1522_v8  ;;  %v1561_v21 = vmul.f32 %v2409_v17, %v2409_v17  ;;  %v2123_v23 = vpop.f32.mrb[13].mxu1 }
 0x12e   : > { %v2012_v22 = vadd.f32 %v2011_v19, %v2010_v16  ;;  %v2013_v24 = vpop.f32.mrb[14].mxu0  ;;  %v2411_v25 = vpop.eup %2410  ;;  %v2124_v26 = vadd.f32 %v2123_v23, %v2122_v18 }
 0x12f   : > { %v2125_v27 = vpop.f32.mrb[14].mxu1  ;;  %v2014_v28 = vpop.f32.mrb[15].mxu0  ;;  %v1592_v29 = vadd.f32 %v1591_v14, %v1561_v21  ;;  %1493 = vst [vmem:[%s2821_s12 + $0x18] sm:$0xff] %v2411_v25  ;;  %v1524_v30 = vadd.f32 %v2411_v25, %v1523_v20  ;;  %v1562_v31 = vmul.f32 %v2411_v25, %v2411_v25 }
 0x130   : > { %v2015_v32 = vadd.f32 %v2014_v28, %v2013_v24  ;;  %v2126_v33 = vpop.f32.mrb[15].mxu1  ;;  %v1185_v34 = vadd.f32 %v2124_v26, %v2012_v22 }
 0x131   : > { %v2127_v35 = vadd.f32 %v2126_v33, %v2125_v27  ;;  %v1593_v36 = vadd.f32 %v1592_v29, %v1562_v31 }
 0x132   : > { %2416 = vtanh.f32 %v1185_v34 }
 0x133   : > { %v1188_v37 = vadd.f32 %v2127_v35, %v2015_v32  ;;  %v2016_v38 = vpop.f32.mrb[16].mxu0 }
 0x134   : > { %v2413_v39 = vpop.eup %2412  ;;  %v2128_v40 = vpop.f32.mrb[16].mxu1 }
 0x135   : > { %2418 = vtanh.f32 %v1188_v37  ;;  %v2017_v41 = vpop.f32.mrb[17].mxu0  ;;  %1494 = vst [vmem:[%s2821_s12 + $0x20] sm:$0xff] %v2413_v39  ;;  %v1525_v42 = vadd.f32 %v2413_v39, %v1524_v30  ;;  %v1563_v43 = vmul.f32 %v2413_v39, %v2413_v39  ;;  %v2129_v45 = vpop.f32.mrb[17].mxu1 }
 0x136   : > { %v2018_v44 = vadd.f32 %v2017_v41, %v2016_v38  ;;  %v2019_v46 = vpop.f32.mrb[18].mxu0  ;;  %v2130_v48 = vadd.f32 %v2129_v45, %v2128_v40  ;;  %v2131_v49 = vpop.f32.mrb[18].mxu1 }
 0x137   : > { %v2415_v47 = vpop.eup %2414  ;;  %v2020_v50 = vpop.f32.mrb[19].mxu0  ;;  %v1594_v51 = vadd.f32 %v1593_v36, %v1563_v43 }
 0x138   : > { %1495 = vst [vmem:[%s2821_s12 + $0x28] sm:$0xff] %v2415_v47  ;;  %v1526_v52 = vadd.f32 %v2415_v47, %v1525_v42  ;;  %v1564_v53 = vmul.f32 %v2415_v47, %v2415_v47  ;;  %v2021_v54 = vadd.f32 %v2020_v50, %v2019_v46  ;;  %v2132_v55 = vpop.f32.mrb[19].mxu1  ;;  %v1193_v56 = vadd.f32 %v2130_v48, %v2018_v44 }
 0x139   : > { %v2133_v57 = vadd.f32 %v2132_v55, %v2131_v49 }
 0x13a   : > { %v1595_v58 = vadd.f32 %v1594_v51, %v1564_v53  ;;  %2420 = vtanh.f32 %v1193_v56 }
 0x13b   : > { %v1196_v59 = vadd.f32 %v2133_v57, %v2021_v54  ;;  %v2022_v60 = vpop.f32.mrb[20].mxu0 }
 0x13c   : > { %v2417_v61 = vpop.eup %2416  ;;  %v2134_v62 = vpop.f32.mrb[20].mxu1 }
 0x13d   : > { %2422 = vtanh.f32 %v1196_v59  ;;  %v2023_v63 = vpop.f32.mrb[21].mxu0  ;;  %1496 = vst [vmem:[%s2821_s12 + $0x30] sm:$0xff] %v2417_v61  ;;  %v1527_v0 = vadd.f32 %v2417_v61, %v1526_v52  ;;  %v1565_v1 = vmul.f32 %v2417_v61, %v2417_v61  ;;  %v2135_v3 = vpop.f32.mrb[21].mxu1 }
 0x13e   : > { %v2024_v2 = vadd.f32 %v2023_v63, %v2022_v60  ;;  %v2025_v4 = vpop.f32.mrb[22].mxu0  ;;  %v2136_v6 = vadd.f32 %v2135_v3, %v2134_v62  ;;  %v2137_v7 = vpop.f32.mrb[22].mxu1 }
 0x13f   : > { %v2419_v5 = vpop.eup %2418  ;;  %v2026_v8 = vpop.f32.mrb[23].mxu0  ;;  %v1596_v9 = vadd.f32 %v1595_v58, %v1565_v1 }
 0x140   : > { %1497 = vst [vmem:[%s2821_s12 + $0x38] sm:$0xff] %v2419_v5  ;;  %v1528_v10 = vadd.f32 %v2419_v5, %v1527_v0  ;;  %v1566_v11 = vmul.f32 %v2419_v5, %v2419_v5  ;;  %v2027_v12 = vadd.f32 %v2026_v8, %v2025_v4  ;;  %v2138_v13 = vpop.f32.mrb[23].mxu1  ;;  %v1201_v14 = vadd.f32 %v2136_v6, %v2024_v2 }
 0x141   : > { %v2139_v15 = vadd.f32 %v2138_v13, %v2137_v7 }
 0x142   : > { %v1597_v16 = vadd.f32 %v1596_v9, %v1566_v11  ;;  %2424 = vtanh.f32 %v1201_v14 }
 0x143   : > { %v1204_v17 = vadd.f32 %v2139_v15, %v2027_v12  ;;  %v2028_v18 = vpop.f32.mrb[24].mxu0 }
 0x144   : > { %v2421_v19 = vpop.eup %2420  ;;  %v2140_v20 = vpop.f32.mrb[24].mxu1 }
 0x145   : > { %2426 = vtanh.f32 %v1204_v17  ;;  %v2029_v21 = vpop.f32.mrb[25].mxu0  ;;  %1498 = vst [vmem:[%s2821_s12 + $0x40] sm:$0xff] %v2421_v19  ;;  %v1529_v22 = vadd.f32 %v2421_v19, %v1528_v10  ;;  %v1567_v23 = vmul.f32 %v2421_v19, %v2421_v19  ;;  %v2141_v25 = vpop.f32.mrb[25].mxu1 }
 0x146   : > { %v2030_v24 = vadd.f32 %v2029_v21, %v2028_v18  ;;  %v2031_v26 = vpop.f32.mrb[26].mxu0  ;;  %v2142_v28 = vadd.f32 %v2141_v25, %v2140_v20  ;;  %v2143_v29 = vpop.f32.mrb[26].mxu1 }
 0x147   : > { %v2423_v27 = vpop.eup %2422  ;;  %v2032_v30 = vpop.f32.mrb[27].mxu0  ;;  %v1598_v31 = vadd.f32 %v1597_v16, %v1567_v23 }
 0x148   : > { %1499 = vst [vmem:[%s2821_s12 + $0x48] sm:$0xff] %v2423_v27  ;;  %v1530_v32 = vadd.f32 %v2423_v27, %v1529_v22  ;;  %v1568_v33 = vmul.f32 %v2423_v27, %v2423_v27  ;;  %v2033_v34 = vadd.f32 %v2032_v30, %v2031_v26  ;;  %v2144_v35 = vpop.f32.mrb[27].mxu1  ;;  %v1209_v36 = vadd.f32 %v2142_v28, %v2030_v24 }
 0x149   : > { %v2145_v37 = vadd.f32 %v2144_v35, %v2143_v29 }
 0x14a   : > { %v1599_v38 = vadd.f32 %v1598_v31, %v1568_v33  ;;  %2428 = vtanh.f32 %v1209_v36 }
 0x14b   : > { %v1212_v39 = vadd.f32 %v2145_v37, %v2033_v34  ;;  %v2034_v40 = vpop.f32.mrb[28].mxu0 }
 0x14c   : > { %v2425_v41 = vpop.eup %2424  ;;  %v2146_v42 = vpop.f32.mrb[28].mxu1 }
 0x14d   : > { %2430 = vtanh.f32 %v1212_v39  ;;  %v2035_v43 = vpop.f32.mrb[29].mxu0  ;;  %1500 = vst [vmem:[%s2821_s12 + $0x50] sm:$0xff] %v2425_v41  ;;  %v1531_v44 = vadd.f32 %v2425_v41, %v1530_v32  ;;  %v1569_v45 = vmul.f32 %v2425_v41, %v2425_v41  ;;  %v2147_v47 = vpop.f32.mrb[29].mxu1 }
 0x14e   : > { %v2036_v46 = vadd.f32 %v2035_v43, %v2034_v40  ;;  %v2037_v48 = vpop.f32.mrb[30].mxu0  ;;  %v2148_v50 = vadd.f32 %v2147_v47, %v2146_v42  ;;  %v2149_v51 = vpop.f32.mrb[30].mxu1 }
 0x14f   : > { %v2427_v49 = vpop.eup %2426  ;;  %v2038_v52 = vpop.f32.mrb[31].mxu0  ;;  %v1600_v53 = vadd.f32 %v1599_v38, %v1569_v45 }
 0x150   : > { %1501 = vst [vmem:[%s2821_s12 + $0x58] sm:$0xff] %v2427_v49  ;;  %v1532_v54 = vadd.f32 %v2427_v49, %v1531_v44  ;;  %v1570_v55 = vmul.f32 %v2427_v49, %v2427_v49  ;;  %v2039_v56 = vadd.f32 %v2038_v52, %v2037_v48  ;;  %v2150_v57 = vpop.f32.mrb[31].mxu1  ;;  %v1217_v58 = vadd.f32 %v2148_v50, %v2036_v46 }
 0x151   : > { %v2151_v59 = vadd.f32 %v2150_v57, %v2149_v51 }
 0x152   : > { %v1601_v60 = vadd.f32 %v1600_v53, %v1570_v55  ;;  %2432 = vtanh.f32 %v1217_v58 }
 0x153   : > { %v1220_v61 = vadd.f32 %v2151_v59, %v2039_v56  ;;  %v2040_v62 = vpop.f32.mrb[32].mxu0 }
 0x154   : > { %v2429_v63 = vpop.eup %2428  ;;  %v2152_v0 = vpop.f32.mrb[32].mxu1 }
 0x155   : > { %2434 = vtanh.f32 %v1220_v61  ;;  %v2041_v1 = vpop.f32.mrb[33].mxu0  ;;  %1502 = vst [vmem:[%s2821_s12 + $0x60] sm:$0xff] %v2429_v63  ;;  %v1533_v2 = vadd.f32 %v2429_v63, %v1532_v54  ;;  %v1571_v3 = vmul.f32 %v2429_v63, %v2429_v63  ;;  %v2153_v5 = vpop.f32.mrb[33].mxu1 }
 0x156   : > { %v2042_v4 = vadd.f32 %v2041_v1, %v2040_v62  ;;  %v2043_v6 = vpop.f32.mrb[34].mxu0  ;;  %v2154_v8 = vadd.f32 %v2153_v5, %v2152_v0  ;;  %v2155_v9 = vpop.f32.mrb[34].mxu1 }
 0x157   : > { %v2431_v7 = vpop.eup %2430  ;;  %v2044_v10 = vpop.f32.mrb[35].mxu0  ;;  %v1602_v11 = vadd.f32 %v1601_v60, %v1571_v3 }
 0x158   : > { %1503 = vst [vmem:[%s2821_s12 + $0x68] sm:$0xff] %v2431_v7  ;;  %v1534_v12 = vadd.f32 %v2431_v7, %v1533_v2  ;;  %v1572_v13 = vmul.f32 %v2431_v7, %v2431_v7  ;;  %v2045_v14 = vadd.f32 %v2044_v10, %v2043_v6  ;;  %v2156_v15 = vpop.f32.mrb[35].mxu1  ;;  %v1225_v16 = vadd.f32 %v2154_v8, %v2042_v4 }
 0x159   : > { %v2157_v17 = vadd.f32 %v2156_v15, %v2155_v9 }
 0x15a   : > { %v1603_v18 = vadd.f32 %v1602_v11, %v1572_v13  ;;  %2436 = vtanh.f32 %v1225_v16 }
 0x15b   : > { %v1228_v19 = vadd.f32 %v2157_v17, %v2045_v14  ;;  %v2046_v20 = vpop.f32.mrb[36].mxu0 }
 0x15c   : > { %v2433_v21 = vpop.eup %2432  ;;  %v2158_v22 = vpop.f32.mrb[36].mxu1 }
 0x15d   : > { %2438 = vtanh.f32 %v1228_v19  ;;  %v2047_v23 = vpop.f32.mrb[37].mxu0  ;;  %1504 = vst [vmem:[%s2821_s12 + $0x70] sm:$0xff] %v2433_v21  ;;  %v1535_v24 = vadd.f32 %v2433_v21, %v1534_v12  ;;  %v1573_v25 = vmul.f32 %v2433_v21, %v2433_v21  ;;  %v2159_v27 = vpop.f32.mrb[37].mxu1 }
 0x15e   : > { %v2048_v26 = vadd.f32 %v2047_v23, %v2046_v20  ;;  %v2049_v28 = vpop.f32.mrb[38].mxu0  ;;  %v2160_v30 = vadd.f32 %v2159_v27, %v2158_v22  ;;  %v2161_v31 = vpop.f32.mrb[38].mxu1 }
 0x15f   : > { %v2435_v29 = vpop.eup %2434  ;;  %v2050_v32 = vpop.f32.mrb[39].mxu0  ;;  %v1604_v33 = vadd.f32 %v1603_v18, %v1573_v25 }
 0x160   : > { %1505 = vst [vmem:[%s2821_s12 + $0x78] sm:$0xff] %v2435_v29  ;;  %v1536_v34 = vadd.f32 %v2435_v29, %v1535_v24  ;;  %v1574_v35 = vmul.f32 %v2435_v29, %v2435_v29  ;;  %v2051_v36 = vadd.f32 %v2050_v32, %v2049_v28  ;;  %v2162_v37 = vpop.f32.mrb[39].mxu1  ;;  %v1233_v38 = vadd.f32 %v2160_v30, %v2048_v26 }
 0x161   : > { %v2163_v39 = vadd.f32 %v2162_v37, %v2161_v31 }
 0x162   : > { %v1605_v40 = vadd.f32 %v1604_v33, %v1574_v35  ;;  %2440 = vtanh.f32 %v1233_v38 }
 0x163   : > { %v1236_v41 = vadd.f32 %v2163_v39, %v2051_v36  ;;  %v2052_v42 = vpop.f32.mrb[40].mxu0 }
 0x164   : > { %v2437_v43 = vpop.eup %2436  ;;  %v2164_v44 = vpop.f32.mrb[40].mxu1 }
 0x165   : > { %2442 = vtanh.f32 %v1236_v41  ;;  %v2053_v45 = vpop.f32.mrb[41].mxu0  ;;  %1506 = vst [vmem:[%s2821_s12 + $0x80] sm:$0xff] %v2437_v43  ;;  %v1537_v46 = vadd.f32 %v2437_v43, %v1536_v34  ;;  %v1575_v47 = vmul.f32 %v2437_v43, %v2437_v43  ;;  %v2165_v49 = vpop.f32.mrb[41].mxu1 }
 0x166   : > { %v2054_v48 = vadd.f32 %v2053_v45, %v2052_v42  ;;  %v2055_v50 = vpop.f32.mrb[42].mxu0  ;;  %v2166_v52 = vadd.f32 %v2165_v49, %v2164_v44  ;;  %v2167_v53 = vpop.f32.mrb[42].mxu1 }
 0x167   : > { %v2439_v51 = vpop.eup %2438  ;;  %v2056_v54 = vpop.f32.mrb[43].mxu0  ;;  %v1606_v55 = vadd.f32 %v1605_v40, %v1575_v47 }
 0x168   : > { %1507 = vst [vmem:[%s2821_s12 + $0x88] sm:$0xff] %v2439_v51  ;;  %v1538_v56 = vadd.f32 %v2439_v51, %v1537_v46  ;;  %v1576_v57 = vmul.f32 %v2439_v51, %v2439_v51  ;;  %v2057_v58 = vadd.f32 %v2056_v54, %v2055_v50  ;;  %v2168_v59 = vpop.f32.mrb[43].mxu1  ;;  %v1241_v60 = vadd.f32 %v2166_v52, %v2054_v48 }
 0x169   : > { %v2169_v61 = vadd.f32 %v2168_v59, %v2167_v53 }
 0x16a   : > { %v1607_v62 = vadd.f32 %v1606_v55, %v1576_v57  ;;  %2444 = vtanh.f32 %v1241_v60 }
 0x16b   : > { %v1244_v63 = vadd.f32 %v2169_v61, %v2057_v58  ;;  %v2058_v0 = vpop.f32.mrb[44].mxu0 }
 0x16c   : > { %v2441_v1 = vpop.eup %2440  ;;  %v2170_v2 = vpop.f32.mrb[44].mxu1 }
 0x16d   : > { %2446 = vtanh.f32 %v1244_v63  ;;  %v2059_v3 = vpop.f32.mrb[45].mxu0  ;;  %1508 = vst [vmem:[%s2821_s12 + $0x90] sm:$0xff] %v2441_v1  ;;  %v1577_v4 = vmul.f32 %v2441_v1, %v2441_v1  ;;  %v2171_v6 = vpop.f32.mrb[45].mxu1  ;;  %v1539_v8 = vadd.f32 %v2441_v1, %v1538_v56 }
 0x16e   : > { %v2060_v5 = vadd.f32 %v2059_v3, %v2058_v0  ;;  %v2061_v7 = vpop.f32.mrb[46].mxu0  ;;  %v2172_v10 = vadd.f32 %v2171_v6, %v2170_v2  ;;  %v2173_v11 = vpop.f32.mrb[46].mxu1 }
 0x16f   : > { %v2443_v9 = vpop.eup %2442  ;;  %v2062_v12 = vpop.f32.mrb[47].mxu0  ;;  %v1608_v17 = vadd.f32 %v1607_v62, %v1577_v4 }
 0x170   : > { %1509 = vst [vmem:[%s2821_s12 + $0x98] sm:$0xff] %v2443_v9  ;;  %v2063_v13 = vadd.f32 %v2062_v12, %v2061_v7  ;;  %v2174_v14 = vpop.f32.mrb[47].mxu1  ;;  %v1540_v15 = vadd.f32 %v2443_v9, %v1539_v8  ;;  %v1578_v16 = vmul.f32 %v2443_v9, %v2443_v9  ;;  %v1249_v18 = vadd.f32 %v2172_v10, %v2060_v5 }
 0x171   : > { %v2175_v19 = vadd.f32 %v2174_v14, %v2173_v11 }
 0x172   : > { %v1609_v20 = vadd.f32 %v1608_v17, %v1578_v16  ;;  %2448 = vtanh.f32 %v1249_v18 }
 0x173   : > { %v1252_v21 = vadd.f32 %v2175_v19, %v2063_v13  ;;  %v2064_v22 = vpop.f32.mrb[48].mxu0 }
 0x174   : > { %v2445_v23 = vpop.eup %2444  ;;  %v2176_v24 = vpop.f32.mrb[48].mxu1 }
 0x175   : > { %2450 = vtanh.f32 %v1252_v21  ;;  %v2065_v25 = vpop.f32.mrb[49].mxu0  ;;  %1510 = vst [vmem:[%s2821_s12 + $0xa0] sm:$0xff] %v2445_v23  ;;  %v2177_v27 = vpop.f32.mrb[49].mxu1  ;;  %v1541_v29 = vadd.f32 %v2445_v23, %v1540_v15  ;;  %v1579_v30 = vmul.f32 %v2445_v23, %v2445_v23 }
 0x176   : > { %v2066_v26 = vadd.f32 %v2065_v25, %v2064_v22  ;;  %v2067_v28 = vpop.f32.mrb[50].mxu0  ;;  %v2178_v32 = vadd.f32 %v2177_v27, %v2176_v24  ;;  %v2179_v33 = vpop.f32.mrb[50].mxu1 }
 0x177   : > { %v2447_v31 = vpop.eup %2446  ;;  %v2068_v34 = vpop.f32.mrb[51].mxu0  ;;  %v1610_v39 = vadd.f32 %v1609_v20, %v1579_v30 }
 0x178   : > { %1511 = vst [vmem:[%s2821_s12 + $0xa8] sm:$0xff] %v2447_v31  ;;  %v2069_v35 = vadd.f32 %v2068_v34, %v2067_v28  ;;  %v2180_v36 = vpop.f32.mrb[51].mxu1  ;;  %v1542_v37 = vadd.f32 %v2447_v31, %v1541_v29  ;;  %v1580_v38 = vmul.f32 %v2447_v31, %v2447_v31  ;;  %v1257_v40 = vadd.f32 %v2178_v32, %v2066_v26 }
 0x179   : > { %v2181_v41 = vadd.f32 %v2180_v36, %v2179_v33 }
 0x17a   : > { %v1611_v42 = vadd.f32 %v1610_v39, %v1580_v38  ;;  %2452 = vtanh.f32 %v1257_v40 }
 0x17b   : > { %v1260_v43 = vadd.f32 %v2181_v41, %v2069_v35  ;;  %v2070_v44 = vpop.f32.mrb[52].mxu0 }
 0x17c   : > { %v2449_v45 = vpop.eup %2448  ;;  %v2182_v46 = vpop.f32.mrb[52].mxu1 }
 0x17d   : > { %2454 = vtanh.f32 %v1260_v43  ;;  %v2071_v47 = vpop.f32.mrb[53].mxu0  ;;  %1512 = vst [vmem:[%s2821_s12 + $0xb0] sm:$0xff] %v2449_v45  ;;  %v2183_v49 = vpop.f32.mrb[53].mxu1  ;;  %v1543_v51 = vadd.f32 %v2449_v45, %v1542_v37  ;;  %v1581_v52 = vmul.f32 %v2449_v45, %v2449_v45 }
 0x17e   : > { %v2072_v48 = vadd.f32 %v2071_v47, %v2070_v44  ;;  %v2073_v50 = vpop.f32.mrb[54].mxu0  ;;  %v2184_v54 = vadd.f32 %v2183_v49, %v2182_v46  ;;  %v2185_v55 = vpop.f32.mrb[54].mxu1 }
 0x17f   : > { %v2451_v53 = vpop.eup %2450  ;;  %v2074_v56 = vpop.f32.mrb[55].mxu0  ;;  %v1612_v61 = vadd.f32 %v1611_v42, %v1581_v52 }
 0x180   : > { %1513 = vst [vmem:[%s2821_s12 + $0xb8] sm:$0xff] %v2451_v53  ;;  %v2075_v57 = vadd.f32 %v2074_v56, %v2073_v50  ;;  %v2186_v58 = vpop.f32.mrb[55].mxu1  ;;  %v1544_v59 = vadd.f32 %v2451_v53, %v1543_v51  ;;  %v1582_v60 = vmul.f32 %v2451_v53, %v2451_v53  ;;  %v1265_v62 = vadd.f32 %v2184_v54, %v2072_v48 }
 0x181   : > { %v2187_v63 = vadd.f32 %v2186_v58, %v2185_v55 }
 0x182   : > { %v1613_v0 = vadd.f32 %v1612_v61, %v1582_v60  ;;  %2456 = vtanh.f32 %v1265_v62 }
 0x183   : > { %v1268_v1 = vadd.f32 %v2187_v63, %v2075_v57  ;;  %v2076_v2 = vpop.f32.mrb[56].mxu0 }
 0x184   : > { %v2453_v3 = vpop.eup %2452  ;;  %v2188_v4 = vpop.f32.mrb[56].mxu1 }
 0x185   : > { %2458 = vtanh.f32 %v1268_v1  ;;  %v2077_v5 = vpop.f32.mrb[57].mxu0  ;;  %1514 = vst [vmem:[%s2821_s12 + $0xc0] sm:$0xff] %v2453_v3  ;;  %v2189_v7 = vpop.f32.mrb[57].mxu1  ;;  %v1545_v9 = vadd.f32 %v2453_v3, %v1544_v59  ;;  %v1583_v10 = vmul.f32 %v2453_v3, %v2453_v3 }
 0x186   : > { %v2078_v6 = vadd.f32 %v2077_v5, %v2076_v2  ;;  %v2079_v8 = vpop.f32.mrb[58].mxu0  ;;  %v2190_v12 = vadd.f32 %v2189_v7, %v2188_v4  ;;  %v2191_v13 = vpop.f32.mrb[58].mxu1 }
 0x187   : > { %v2455_v11 = vpop.eup %2454  ;;  %v2080_v14 = vpop.f32.mrb[59].mxu0  ;;  %v1614_v19 = vadd.f32 %v1613_v0, %v1583_v10 }
 0x188   : > { %1515 = vst [vmem:[%s2821_s12 + $0xc8] sm:$0xff] %v2455_v11  ;;  %v2081_v15 = vadd.f32 %v2080_v14, %v2079_v8  ;;  %v2192_v16 = vpop.f32.mrb[59].mxu1  ;;  %v1546_v17 = vadd.f32 %v2455_v11, %v1545_v9  ;;  %v1584_v18 = vmul.f32 %v2455_v11, %v2455_v11  ;;  %v1273_v20 = vadd.f32 %v2190_v12, %v2078_v6 }
 0x189   : > { %v2193_v21 = vadd.f32 %v2192_v16, %v2191_v13 }
 0x18a   : > { %v1615_v22 = vadd.f32 %v1614_v19, %v1584_v18  ;;  %2460 = vtanh.f32 %v1273_v20 }
 0x18b   : > { %v1276_v23 = vadd.f32 %v2193_v21, %v2081_v15  ;;  %v2082_v24 = vpop.f32.mrb[60].mxu0 }
 0x18c   : > { %v2457_v25 = vpop.eup %2456  ;;  %v2194_v26 = vpop.f32.mrb[60].mxu1 }
 0x18d   : > { %2462 = vtanh.f32 %v1276_v23  ;;  %v2083_v27 = vpop.f32.mrb[61].mxu0  ;;  %1516 = vst [vmem:[%s2821_s12 + $0xd0] sm:$0xff] %v2457_v25  ;;  %v2195_v29 = vpop.f32.mrb[61].mxu1  ;;  %v1547_v31 = vadd.f32 %v2457_v25, %v1546_v17  ;;  %v1585_v32 = vmul.f32 %v2457_v25, %v2457_v25 }
 0x18e   : > { %v2084_v28 = vadd.f32 %v2083_v27, %v2082_v24  ;;  %v2085_v30 = vpop.f32.mrb[62].mxu0  ;;  %v2196_v34 = vadd.f32 %v2195_v29, %v2194_v26  ;;  %v2197_v35 = vpop.f32.mrb[62].mxu1 }
 0x18f   : > { %v2459_v33 = vpop.eup %2458  ;;  %v2086_v36 = vpop.f32.mrb[63].mxu0  ;;  %v1616_v41 = vadd.f32 %v1615_v22, %v1585_v32 }
 0x190   : > { %1517 = vst [vmem:[%s2821_s12 + $0xd8] sm:$0xff] %v2459_v33  ;;  %v2087_v37 = vadd.f32 %v2086_v36, %v2085_v30  ;;  %v2198_v38 = vpop.f32.mrb[63].mxu1  ;;  %v1548_v39 = vadd.f32 %v2459_v33, %v1547_v31  ;;  %v1586_v40 = vmul.f32 %v2459_v33, %v2459_v33  ;;  %v1281_v42 = vadd.f32 %v2196_v34, %v2084_v28 }
 0x191   : > { %v2199_v43 = vadd.f32 %v2198_v38, %v2197_v35 }
 0x192   : > { %v1617_v44 = vadd.f32 %v1616_v41, %v1586_v40  ;;  %2464 = vtanh.f32 %v1281_v42 }
 0x193   : > { %v1284_v45 = vadd.f32 %v2199_v43, %v2087_v37 }
 0x194   : > { %v2461_v46 = vpop.eup %2460 }
 0x195   : > { %2466 = vtanh.f32 %v1284_v45  ;;  %1518 = vst [vmem:[%s2821_s12 + $0xe0] sm:$0xff] %v2461_v46  ;;  %v1549_v47 = vadd.f32 %v2461_v46, %v1548_v39  ;;  %v1587_v48 = vmul.f32 %v2461_v46, %v2461_v46 }
 0x197   : > { %v2463_v49 = vpop.eup %2462  ;;  %v1618_v52 = vadd.f32 %v1617_v44, %v1587_v48 }
 0x198   : > { %1519 = vst [vmem:[%s2821_s12 + $0xe8] sm:$0xff] %v2463_v49  ;;  %v1550_v50 = vadd.f32 %v2463_v49, %v1549_v47  ;;  %v1588_v51 = vmul.f32 %v2463_v49, %v2463_v49 }
 0x19a   : > { %v1619_v53 = vadd.f32 %v1618_v52, %v1588_v51 }
 0x19c   : > { %v2465_v54 = vpop.eup %2464 }
 0x19d   : > { %1520 = vst [vmem:[%s2821_s12 + $0xf0] sm:$0xff] %v2465_v54  ;;  %v1551_v55 = vadd.f32 %v2465_v54, %v1550_v50  ;;  %v1589_v56 = vmul.f32 %v2465_v54, %v2465_v54 }
 0x19f   : > { %v2467_v57 = vpop.eup %2466  ;;  %v1620_v60 = vadd.f32 %v1619_v53, %v1589_v56 }
 0x1a0   : > { %1521 = vst [vmem:[%s2821_s12 + $0xf8] sm:$0xff] %v2467_v57  ;;  %v1552_v58 = vadd.f32 %v2467_v57, %v1551_v55  ;;  %v1590_v59 = vmul.f32 %v2467_v57, %v2467_v57  ;;  %s2874_s12 = scalar_lea.hbm %s2955_s4, %s1970_s27 }
 0x1a2   : > { %v1553_v61 = vrot.slane %v1552_v58, 4  ;;  %v1621_v62 = vadd.f32 %v1620_v60, %v1590_v59 }
 0x1a4   : > { %v1554_v63 = vadd.f32 %v1553_v61, %v1552_v58  ;;  %v1622_v0 = vrot.slane %v1621_v62, 4 }
 0x1a6   : > { %v1555_v1 = vrot.slane %v1554_v63, 2  ;;  %v1623_v2 = vadd.f32 %v1622_v0, %v1621_v62 }
 0x1a8   : > { %v1556_v3 = vadd.f32 %v1555_v1, %v1554_v63  ;;  %v1624_v4 = vrot.slane %v1623_v2, 2 }
 0x1aa   : > { %v1557_v5 = vrot.slane %v1556_v3, 1  ;;  %v1625_v6 = vadd.f32 %v1624_v4, %v1623_v2 }
 0x1ac   : > { %v1558_v7 = vadd.f32 %v1557_v5, %v1556_v3  ;;  %v1626_v8 = vrot.slane %v1625_v6, 1 }
 0x1ae   : > { %1628 = vst [vmem:[%s280_s30] sm:$0xff] %v1558_v7  ;;  %v1627_v9 = vadd.f32 %v1626_v8, %v1625_v6 }
 0x1af   : > { %2481 = shalt.err (!%p2478_p7)
}
 0x1b0   : > { %s2482_s27 = scalar_lea.hbm %s2867_s10, 128  ;;  %s2486_s11 = scalar_lea.hbm %s2954_s3, 1024 }
 0x1b1   : > { %p2483_p9 = scmp.ne.s32.totalorder %s2867_s10, %s2482_s27  ;;  %p2487_p12 = scmp.lt.u32.totalorder %s2867_s10, %s2954_s3 }
 0x1b2   : > { %p2488_p13 = scmp.lt.u32.totalorder %s2486_s11, %s2482_s27  ;;  %p2490_p1 = scmp.lt.u32.totalorder %s2482_s27, %s2867_s10 }
 0x1b3   : > { %p2484_p10 = pnand %p2483_p9, %p2674_p3 }
 0x1b4   : > { %p2489_p0 = por %p2488_p13, %p2487_p12 }
 0x1b5   : > { %p2485_p11 = pneg %p2484_p10 }
 0x1b6   : > { %p2491_p2 = por %p2490_p1, %p2489_p0 }
 0x1b8   : > { %p2492_p4 = pnand %p2491_p2, %p2485_p11 }
 0x1ba   : > { %2495 = shalt.err (!%p2492_p4)
}
 0x1bb   : > { %2200 = dma.vmem_to_hbm [thread:$0]  (%p2674_p3), %s2869_s5, 128, %s2867_s10, %s1640_s14   ;;  %1629 = vst [vmem:[%s2861_s6] sm:$0xff] %v1627_v9 }
 0x1bc   : > { %s1645_s23 = scalar_lea.sflag [#allocation5], %s2856_s13  ;;  %s2496_s9 = scalar_lea.vmem %s2876_s8, 128 }
 0x1bd   : > { %p2497_p5 = scmp.ne.s32.totalorder %s2876_s8, %s2496_s9  ;;  %s2597_s27 = smov [#allocation4]  }
 0x1be   : > { %s2500_s30 = sshll.u32 %s2597_s27, 4  ;;  %s2501_s30 = int_to_ptr.vmem [resolvable:$false] %s2500_s30 }
 0x1bf   : > { %p2498_p6 = pnand %p2497_p5, %p2674_p3  ;;  %s2502_s18 = scalar_lea.vmem %s2501_s30, 256 }
 0x1c0   : > { %p2503_p9 = scmp.lt.s32.totalorder %s2876_s8, %s2501_s30  ;;  %p2504_p10 = scmp.lt.s32.totalorder %s2502_s18, %s2496_s9 }
 0x1c1   : > { %p2499_p7 = pneg %p2498_p6 }
 0x1c2   : > { %p2505_p11 = por %p2504_p10, %p2503_p9 }
 0x1c4   : > { %p2506_p12 = pnand %p2505_p11, %p2499_p7 }
 0x1c6   : > { %2509 = shalt.err (!%p2506_p12)
}
 0x1c7   : > { %s2510_s13 = scalar_lea.hbm %s2874_s12, 128  ;;  %s2514_s10 = scalar_lea.hbm %s2955_s4, 1024 }
 0x1c8   : > { %p2511_p13 = scmp.ne.s32.totalorder %s2874_s12, %s2510_s13  ;;  %p2515_p2 = scmp.lt.u32.totalorder %s2874_s12, %s2955_s4 }
 0x1c9   : > { %p2516_p4 = scmp.lt.u32.totalorder %s2514_s10, %s2510_s13  ;;  %p2518_p6 = scmp.lt.u32.totalorder %s2510_s13, %s2874_s12 }
 0x1ca   : > { %p2512_p0 = pnand %p2511_p13, %p2674_p3 }
 0x1cb   : > { %p2517_p5 = por %p2516_p4, %p2515_p2 }
 0x1cc   : > { %p2513_p1 = pneg %p2512_p0 }
 0x1cd   : > { %p2519_p7 = por %p2518_p6, %p2517_p5 }
 0x1cf   : > { %p2520_p9 = pnand %p2519_p7, %p2513_p1 }
 0x1d1   : > { %2523 = shalt.err (!%p2520_p9)
}
 0x1d2   : > { %2201 = dma.vmem_to_hbm [thread:$0]  (%p2674_p3), %s2876_s8, 128, %s2874_s12, %s1645_s23  }
 0x1d3 PF: > { %p2211_p10 = scmp.ge.s32.totalorder %s2594_s22, 2  ;;  %s1703_s24 = sand.u32 1, %s2566_s15  }
 0x1d4   : > { %s1704_s19 = scalar_lea.sflag [#allocation3], %s1703_s24 }
 0x1d5   : > { %p2205_p11 = pnand %p2211_p10, %p2683_p8 }
 0x1d7   : > { %2557 = dma.done.wait (!%p2205_p11), %s1704_s19, 128  }
 0x1d8   : > { %2559 = vsyncadd (!%p2205_p11), %s1704_s19, 4294967168  ;;  %s1713_s9 = scalar_lea.sflag [#allocation5], %s1703_s24 }
 0x1d9   : > { %2561 = dma.done.wait (!%p2205_p11), %s1713_s9, 128  }
 0x1da   : > { %2563 = vsyncadd (!%p2205_p11), %s1713_s9, 4294967168  ;;  %s21_s22 = sadd.s32 1, %s2594_s22   ;;  %s2958_s15 = smov %s2570_s16 }
 0x1db   : > { %p18_p12 = scmp.ge.s32.totalorder %s21_s22, 10   ;;  %s2959_s16 = smov %s2574_s17 }
 0x1dc   : > { %s2960_s17 = smov %s2692_s7  ;;  %s2961_s18 = smov %s2586_s20 }
 0x1dd   : > { %s2962_s19 = smov %s2590_s21  ;;  %s2963_s20 = smov %s2966_s25 }
 0x1de   : > { %s2964_s21 = smov %s2970_s26  ;;  %20 = sbr.rel (!%p18_p12) target bundleno = 7 (0x7), region = 107 }
 0x1e5   :  { %1718 = vsyncpa [#allocation3], 1 }
 0x1e6   :  { %1720 = vsyncpa [#allocation3 + $0x1], 1 }
 0x1e7   :  { %1721 = vsyncpa [#allocation5], 1 }
 0x1e8   :  { %1723 = vsyncpa [#allocation5 + $0x1], 1 }

</bundles_post_ra>
